<compile_context>
chip_gen: v7x
topology: tpu7x:2x2x1
jax: 0.10.0
libtpu: 0.0.40
codegen_flags: <defaults>
</compile_context>

<pallas_src>
import math
from functools import partial

import numpy as np
import jax
import jax.numpy as jnp
from jax import lax
from jax.experimental import pallas as pl
from jax.experimental.pallas import tpu as pltpu

# ---------------- small config (consistent with FastSpeech2 structure) ----------------
B = 2
T_SRC = 8
VOCAB = 40
HID = 32              # encoder_hidden == decoder_hidden
N_HEAD = 2
D_HEAD = 16
FFN_FILTER = 64
FFT_K = (3, 1)        # fft_conv1d_kernel_size
N_ENC_LAYERS = 2
N_DEC_LAYERS = 2
VP_FILTER = 32        # variance predictor filter size
VP_K = 3
N_BINS = 16
N_MELS = 20
POSTNET_CH = 32
POSTNET_K = 5
POSTNET_LAYERS = 5
MAX_POS = 64
LN_EPS = 1e-5
BN_EPS = 1e-5
ATTN_SCALE = 1.0 / math.sqrt(D_HEAD)


# ------------------------------- in-kernel helpers -------------------------------------
def _mm(a, w):
    """(T, Cin) @ (Cin, Cout) on the MXU with bf16 operands, f32 accumulation."""
    return jnp.dot(a.astype(jnp.bfloat16), w.astype(jnp.bfloat16),
                   preferred_element_type=jnp.float32)


def _layer_norm(v, g, b):
    mu = jnp.mean(v, axis=-1, keepdims=True)
    var = jnp.mean(jnp.square(v - mu), axis=-1, keepdims=True)
    return (v - mu) * lax.rsqrt(var + LN_EPS) * g + b


def _time_shift_matrix(t, d):
    """S such that (S @ x)[i] == x[i + d] (zeros outside [0, t))."""
    rows = lax.broadcasted_iota(jnp.int32, (t, t), 0)
    cols = lax.broadcasted_iota(jnp.int32, (t, t), 1)
    return (cols == rows + d).astype(jnp.float32)


def _conv1d_tap(x, w_flat, b, K, relu=False):
    """PyTorch Conv1d(pad=(K-1)//2) on (T, Cin) as K shifted matmuls, fully in-kernel.

    w_flat is (K*Cin, Cout) with rows ordered [tap0 | tap1 | ...].
    """
    Tk, Cin = x.shape
    pad = (K - 1) // 2
    acc = None
    for j in range(K):
        d = j - pad
        if d == 0:
            xs = x
        else:
            xs = jnp.dot(_time_shift_matrix(Tk, d), x,
                         preferred_element_type=jnp.float32)
        y = _mm(xs, w_flat[j * Cin:(j + 1) * Cin, :])
        acc = y if acc is None else acc + y
    acc = acc + b
    if relu:
        acc = jnp.maximum(acc, 0.0)
    return acc


def _fft_block(x, neg, keep, wq, bq, wk, bk, wv, bv, wo, bo, g1, b1,
               c1w, c1b, c2w, c2b, g2, b2):
    """One FFT block (MHA + add/LN + conv-FFN + add/LN), fully fused, masks applied."""
    q = _mm(x, wq) + bq
    k = _mm(x, wk) + bk
    v = _mm(x, wv) + bv
    ctx = None
    for h in range(N_HEAD):
        sl = slice(h * D_HEAD, (h + 1) * D_HEAD)
        s = lax.dot_general(q[:, sl].astype(jnp.bfloat16),
                            k[:, sl].astype(jnp.bfloat16),
                            (((1,), (1,)), ((), ())),
                            preferred_element_type=jnp.float32) * ATTN_SCALE
        s = s - neg                                   # key padding mask
        s = s - jnp.max(s, axis=-1, keepdims=True)    # stable softmax
        p = jnp.exp(s)
        p = p * pl.reciprocal(jnp.sum(p, axis=-1, keepdims=True), approx=True)
        oh = jnp.dot(p.astype(jnp.bfloat16), v[:, sl].astype(jnp.bfloat16),
                     preferred_element_type=jnp.float32)
        head_out = _mm(oh, wo[sl, :])                 # per-head slice of out-proj
        ctx = head_out if ctx is None else ctx + head_out
    ctx = ctx + bo
    h1 = _layer_norm(ctx + x, g1, b1) * keep          # add + LN + masked_fill

    f = _conv1d_tap(h1, c1w, c1b, FFT_K[0], relu=True)
    f = _conv1d_tap(f, c2w, c2b, FFT_K[1], relu=False)
    return _layer_norm(f + h1, g2, b2) * keep         # add + LN + masked_fill


def _postnet(mel, pn_refs):
    h = mel
    for i in range(POSTNET_LAYERS):
        w, b, sc, sh = pn_refs[4 * i:4 * i + 4]
        h = _conv1d_tap(h, w[...], b[...], POSTNET_K)
        h = h * sc[...] + sh[...]                     # folded eval-mode BatchNorm1d
        if i < POSTNET_LAYERS - 1:
            h = jnp.tanh(h)
    return h + mel


# ------------------------------- fused Pallas kernels ----------------------------------
def _enc_stack_kernel(mask_k_ref, keep_ref, x_ref,
                      wq, bq, wk, bk, wv, bv, wo, bo, g1, b1,
                      c1w, c1b, c2w, c2b, g2, b2,
                      o_ref):
    """Encoder: one FFT block per grid step; residual stream lives in o_ref
    (VMEM-resident across the 'arbitrary' layer axis)."""
    layer = pl.program_id(1)

    @pl.when(layer == 0)
    def _():
        o_ref[...] = x_ref[...]

    x = o_ref[0]                                      # (T, H) resident across layers
    o_ref[0] = _fft_block(x, mask_k_ref[0] * 1e9, keep_ref[0],
                          wq[0], bq[0], wk[0], bk[0], wv[0], bv[0], wo[0], bo[0],
                          g1[0], b1[0], c1w[0], c1b[0], c2w[0], c2b[0], g2[0], b2[0])


def _va_kernel(x_ref, pemb_ref, eemb_ref, keep_ref, *refs):
    """Fused variance adaptor core: duration / pitch / energy predictors (each:
    conv+ReLU+LN, conv+ReLU+LN, linear, mask) plus pitch/energy embedding adds."""
    d_w = refs[0:10]
    p_w = refs[10:20]
    e_w = refs[20:30]
    d_ref, p_ref, e_ref, xo_ref = refs[30], refs[31], refs[32], refs[33]

    x = x_ref[0]                                      # (T, H)
    keep = keep_ref[0]                                # (T, 1)

    def vp(h, w):
        c1w, c1b, g1, b1, c2w, c2b, g2, b2, lw, lb = w
        h = _conv1d_tap(h, c1w[...], c1b[...], VP_K, relu=True)
        h = _layer_norm(h, g1[...], b1[...])
        h = _conv1d_tap(h, c2w[...], c2b[...], VP_K, relu=True)
        h = _layer_norm(h, g2[...], b2[...])
        return (_mm(h, lw[...]) + lb[...]) * keep     # (T, 1), masked

    d_ref[0] = vp(x, d_w)                             # log-duration prediction
    p_ref[0] = vp(x, p_w)                             # pitch prediction
    xp = x + pemb_ref[0]                              # x += pitch embedding (teacher forced)
    e_ref[0] = vp(xp, e_w)                            # energy prediction (on x + pitch_emb)
    xo_ref[0] = xp + eemb_ref[0]                      # x += energy embedding


def _dec_mel_postnet_kernel(mask_k_ref, keep_ref, x_ref, *refs):
    """Decoder FFT stack + mel_linear + PostNet(+residual), one kernel.

    Residual stream carried in VMEM scratch across the 'arbitrary' layer axis
    (never written to HBM); mel/postnet outputs written only on the last layer."""
    fft = refs[0:16]
    mel_w, mel_b = refs[16], refs[17]
    pn = refs[18:18 + 4 * POSTNET_LAYERS]
    mel_ref, post_ref = refs[-3], refs[-2]
    h_scr = refs[-1]

    (wq, bq, wk, bk, wv, bv, wo, bo, g1, b1, c1w, c1b, c2w, c2b, g2, b2) = fft

    layer = pl.program_id(1)

    @pl.when(layer == 0)
    def _():
        h_scr[...] = x_ref[0]

    x = h_scr[...]                                    # (T, H) resident across layers
    h2 = _fft_block(x, mask_k_ref[0] * 1e9, keep_ref[0],
                    wq[0], bq[0], wk[0], bk[0], wv[0], bv[0], wo[0], bo[0],
                    g1[0], b1[0], c1w[0], c1b[0], c2w[0], c2b[0], g2[0], b2[0])
    h_scr[...] = h2

    @pl.when(layer == pl.num_programs(1) - 1)
    def _():
        mel = _mm(h2, mel_w[...]) + mel_b[...]        # mel_linear
        mel_ref[0] = mel
        post_ref[0] = _postnet(mel, pn)               # PostNet + residual add


# ------------------------------- pallas_call wrappers -----------------------------------
_FFT_NAMES = ["wq", "bq", "wk", "bk", "wv", "bv", "wo", "bo", "g1", "b1",
              "c1w", "c1b", "c2w", "c2b", "g2", "b2"]
_VP_NAMES = ["c1w", "c1b", "g1", "b1", "c2w", "c2b", "g2", "b2", "lw", "lb"]


def _layer_spec(arr):
    nd = arr.ndim - 1
    return pl.BlockSpec((1,) + arr.shape[1:], lambda b, l, nd=nd: (l,) + (0,) * nd)


def _full_spec_1(arr):
    return pl.BlockSpec(arr.shape, lambda b, nd=arr.ndim: (0,) * nd)


def _full_spec_2(arr):
    return pl.BlockSpec(arr.shape, lambda b, l, nd=arr.ndim: (0,) * nd)


def run_encoder(x, mask_k, keep_q, p):
    """Run the whole encoder FFT stack as one pallas_call."""
    Bc, T, H = x.shape
    weights = [p[n] for n in _FFT_NAMES]
    n_layers = weights[0].shape[0]

    in_specs = ([pl.BlockSpec((1, 1, T), lambda b, l: (b, 0, 0)),    # key mask
                 pl.BlockSpec((1, T, 1), lambda b, l: (b, 0, 0)),    # keep mask
                 pl.BlockSpec((1, T, H), lambda b, l: (b, 0, 0))]    # input activations
                + [_layer_spec(w) for w in weights])

    return pl.pallas_call(
        _enc_stack_kernel,
        grid=(Bc, n_layers),
        in_specs=in_specs,
        out_specs=pl.BlockSpec((1, T, H), lambda b, l: (b, 0, 0)),   # resident over layers
        out_shape=jax.ShapeDtypeStruct((Bc, T, H), jnp.float32),
        compiler_params=pltpu.CompilerParams(
            dimension_semantics=("parallel", "arbitrary")),
    )(mask_k, keep_q, x, *weights)


def run_variance_adaptor_core(x, pitch_emb, energy_emb, keep_q, params):
    """Duration/pitch/energy predictors + pitch/energy embedding adds, one pallas_call."""
    Bc, T, H = x.shape
    weights = []
    for key in ("dur", "pitch", "energy"):
        weights += [params[key][n] for n in _VP_NAMES]

    act_spec = pl.BlockSpec((1, T, H), lambda b: (b, 0, 0))
    in_specs = ([act_spec, act_spec, act_spec,
                 pl.BlockSpec((1, T, 1), lambda b: (b, 0, 0))]
                + [_full_spec_1(w) for w in weights])

    outs = pl.pallas_call(
        _va_kernel,
        grid=(Bc,),
        in_specs=in_specs,
        out_specs=[pl.BlockSpec((1, T, 1), lambda b: (b, 0, 0))] * 3
                  + [pl.BlockSpec((1, T, H), lambda b: (b, 0, 0))],
        out_shape=[jax.ShapeDtypeStruct((Bc, T, 1), jnp.float32)] * 3
                  + [jax.ShapeDtypeStruct((Bc, T, H), jnp.float32)],
        compiler_params=pltpu.CompilerParams(dimension_semantics=("parallel",)),
    )(x, pitch_emb, energy_emb, keep_q, *weights)
    log_d, p_pred, e_pred, x_out = outs
    return log_d[:, :, 0], p_pred[:, :, 0], e_pred[:, :, 0], x_out


def run_decoder_mel_postnet(x, mask_k, keep_q, p, mel_w, mel_b, postnet):
    """Decoder FFT stack + mel_linear + PostNet(+residual) as one pallas_call."""
    Bc, T, H = x.shape
    layer_w = [p[n] for n in _FFT_NAMES]
    n_layers = layer_w[0].shape[0]
    extra = [mel_w, mel_b]
    for lp in postnet:
        extra += [lp["w"], lp["b"], lp["bn_scale"], lp["bn_shift"]]

    in_specs = ([pl.BlockSpec((1, 1, T), lambda b, l: (b, 0, 0)),
                 pl.BlockSpec((1, T, 1), lambda b, l: (b, 0, 0)),
                 pl.BlockSpec((1, T, H), lambda b, l: (b, 0, 0))]
                + [_layer_spec(w) for w in layer_w]
                + [_full_spec_2(w) for w in extra])

    mel, post = pl.pallas_call(
        _dec_mel_postnet_kernel,
        grid=(Bc, n_layers),
        in_specs=in_specs,
        out_specs=[pl.BlockSpec((1, T, N_MELS), lambda b, l: (b, 0, 0)),
                   pl.BlockSpec((1, T, N_MELS), lambda b, l: (b, 0, 0))],
        out_shape=[jax.ShapeDtypeStruct((Bc, T, N_MELS), jnp.float32),
                   jax.ShapeDtypeStruct((Bc, T, N_MELS), jnp.float32)],
        scratch_shapes=[pltpu.VMEM((T, H), jnp.float32)],
        compiler_params=pltpu.CompilerParams(
            dimension_semantics=("parallel", "arbitrary")),
    )(mask_k, keep_q, x, *layer_w, *extra)
    return mel, post


# ------------------------------- JAX glue helpers --------------------------------------
def get_mask_from_lengths(lengths, max_len):
    ids = jnp.arange(max_len)[None, :]
    return ids >= lengths[:, None]            # True == padded


def sinusoid_table(n_pos, d_hid):
    pos = np.arange(n_pos)[:, None].astype(np.float64)
    i = np.arange(d_hid)[None, :].astype(np.float64)
    angle = pos / np.power(10000.0, 2.0 * (i // 2) / d_hid)
    table = np.zeros((n_pos, d_hid))
    table[:, 0::2] = np.sin(angle[:, 0::2])
    table[:, 1::2] = np.cos(angle[:, 1::2])
    return jnp.asarray(table, jnp.float32)


def length_regulate(x, durations, max_len):
    """Expand each source token i by durations[b, i] frames (teacher-forced path)."""
    Bc, T, _ = x.shape
    cum = jnp.cumsum(durations, axis=1)                  # (B, T)
    mel_lens = cum[:, -1]
    frame = jnp.arange(max_len)
    idx = jnp.sum(cum[:, None, :] <= frame[None, :, None], axis=-1)   # (B, max_len)
    idx = jnp.clip(idx, 0, T - 1)
    out = jnp.take_along_axis(x, idx[:, :, None], axis=1)             # (B, max_len, H)
    pad = (frame[None, :] >= mel_lens[:, None]).astype(x.dtype)
    out = out * (1.0 - pad)[:, :, None]
    return out, mel_lens


# ------------------------------- parameter init ----------------------------------------
class KeyGen:
    def __init__(self, key):
        self.key = key

    def __call__(self):
        self.key, sub = jax.random.split(self.key)
        return sub


def dense(kg, fin, fout):
    w = jax.random.normal(kg(), (fin, fout), jnp.float32) * 0.02
    b = jnp.zeros((fout,), jnp.float32)
    return w, b


def init_fft_stack(kg, n_layers, hid):
    """Per-layer weights stacked along a leading layer axis (for the fused stack kernel)."""
    def stack(shape, init="normal"):
        if init == "normal":
            return jax.random.normal(kg(), (n_layers,) + shape, jnp.float32) * 0.02
        if init == "ones":
            return jnp.ones((n_layers,) + shape, jnp.float32)
        return jnp.zeros((n_layers,) + shape, jnp.float32)

    hd = N_HEAD * D_HEAD
    return {
        "wq": stack((hid, hd)), "bq": stack((1, hd), "zeros"),
        "wk": stack((hid, hd)), "bk": stack((1, hd), "zeros"),
        "wv": stack((hid, hd)), "bv": stack((1, hd), "zeros"),
        "wo": stack((hd, hid)), "bo": stack((1, hid), "zeros"),
        "g1": stack((1, hid), "ones"), "b1": stack((1, hid), "zeros"),
        "c1w": stack((FFT_K[0] * hid, FFN_FILTER)), "c1b": stack((1, FFN_FILTER), "zeros"),
        "c2w": stack((FFT_K[1] * FFN_FILTER, hid)), "c2b": stack((1, hid), "zeros"),
        "g2": stack((1, hid), "ones"), "b2": stack((1, hid), "zeros"),
    }


def init_vp(kg, hid):
    c1w, c1b = dense(kg, VP_K * hid, VP_FILTER)
    c2w, c2b = dense(kg, VP_K * VP_FILTER, VP_FILTER)
    lw, lb = dense(kg, VP_FILTER, 1)
    return {
        "c1w": c1w, "c1b": c1b.reshape(1, -1),
        "g1": jnp.ones((1, VP_FILTER), jnp.float32),
        "b1": jnp.zeros((1, VP_FILTER), jnp.float32),
        "c2w": c2w, "c2b": c2b.reshape(1, -1),
        "g2": jnp.ones((1, VP_FILTER), jnp.float32),
        "b2": jnp.zeros((1, VP_FILTER), jnp.float32),
        "lw": lw, "lb": lb.reshape(1, 1),
    }


def init_postnet(kg):
    layers = []
    chans = [N_MELS] + [POSTNET_CH] * (POSTNET_LAYERS - 1) + [N_MELS]
    for i in range(POSTNET_LAYERS):
        cin, cout = chans[i], chans[i + 1]
        w, b = dense(kg, POSTNET_K * cin, cout)
        # eval-mode BatchNorm1d folded to per-channel affine (running_mean=0, running_var=1)
        layers.append({"w": w, "b": b.reshape(1, cout),
                       "bn_scale": jnp.full((1, cout), 1.0 / math.sqrt(1.0 + BN_EPS),
                                            jnp.float32),
                       "bn_shift": jnp.zeros((1, cout), jnp.float32)})
    return layers


def init_params(key):
    kg = KeyGen(key)
    params = {}
    emb = jax.random.normal(kg(), (VOCAB, HID), jnp.float32) * 0.02
    params["emb"] = emb.at[0].set(0.0)          # padding_idx = 0
    params["enc"] = init_fft_stack(kg, N_ENC_LAYERS, HID)
    params["dur"] = init_vp(kg, HID)
    params["pitch"] = init_vp(kg, HID)
    params["energy"] = init_vp(kg, HID)
    params["pitch_bins"] = jnp.linspace(-2.0, 2.0, N_BINS - 1)
    params["energy_bins"] = jnp.linspace(-2.0, 2.0, N_BINS - 1)
    params["pitch_emb"] = jax.random.normal(kg(), (N_BINS, HID), jnp.float32) * 0.02
    params["energy_emb"] = jax.random.normal(kg(), (N_BINS, HID), jnp.float32) * 0.02
    params["dec"] = init_fft_stack(kg, N_DEC_LAYERS, HID)
    mel_w, mel_b = dense(kg, HID, N_MELS)
    params["mel_w"], params["mel_b"] = mel_w, mel_b.reshape(1, N_MELS)
    params["postnet"] = init_postnet(kg)
    return params


# ------------------------------- model forward pieces ----------------------------------
def variance_adaptor(x, keep_src, max_mel_len, p_targets, e_targets, d_targets, params):
    # bucketize + embedding gathers stay in XLA; predictors + adds are one fused kernel.
    pitch_emb = params["pitch_emb"][jnp.digitize(p_targets, params["pitch_bins"])]
    energy_emb = params["energy_emb"][jnp.digitize(e_targets, params["energy_bins"])]
    log_d_pred, p_pred, e_pred, x = run_variance_adaptor_core(
        x, pitch_emb, energy_emb, keep_src, params)
    d_masked = (d_targets.astype(jnp.float32) * keep_src[:, :, 0]).astype(jnp.int32)
    x, mel_lens = length_regulate(x, d_masked, max_mel_len)
    mel_masks = get_mask_from_lengths(mel_lens, max_mel_len)
    return x, p_pred, e_pred, log_d_pred, d_targets, mel_lens, mel_masks


@partial(jax.jit, static_argnums=(5, 6))
def fastspeech2_forward(params, pos_table, speakers, texts, src_lens, max_src_len,
                        max_mel_len, p_targets, e_targets, d_targets):
    src_masks = get_mask_from_lengths(src_lens, max_src_len)       # bool, True == padded
    src_mask_f = src_masks.astype(jnp.float32)
    mask_k_src = src_mask_f[:, None, :]           # (B, 1, T)  attention key mask
    keep_src = (1.0 - src_mask_f)[:, :, None]     # (B, T, 1)  valid-frame mask

    # ----- encoder (embedding lookup + positional add in XLA, FFT stack fused) -----
    T_src = texts.shape[1]
    enc_in = params["emb"][texts] + pos_table[:T_src][None, :, :]
    output = run_encoder(enc_in, mask_k_src, keep_src, params["enc"])
    # speaker_emb is None (multi_speaker = False); ifbert = False path.

    # ----- variance adaptor (predictors fused) + length regulator (XLA gather) -----
    (output, p_pred, e_pred, log_d_pred, d_rounded,
     mel_lens, mel_masks) = variance_adaptor(output, keep_src, max_mel_len,
                                             p_targets, e_targets, d_targets, params)

    # ----- decoder + mel_linear + postnet (one fused kernel) -----
    mel_mask_f = mel_masks.astype(jnp.float32)
    T_mel = output.shape[1]
    dec_in = output + pos_table[:T_mel][None, :, :]
    mel, postnet_mel = run_decoder_mel_postnet(
        dec_in, mel_mask_f[:, None, :], (1.0 - mel_mask_f)[:, :, None],
        params["dec"], params["mel_w"], params["mel_b"], params["postnet"])

    # TODO(synk): ICASSP-variant "ed" (word-level emphasis distribution) predictor has no
    # reference implementation in the given source; returning zeros for ed_predictions.
    ed_pred = jnp.zeros_like(p_pred)
    return (mel, postnet_mel, ed_pred, p_pred, e_pred, log_d_pred,
            d_rounded, src_masks, mel_masks, src_lens, mel_lens)


# --------------------------------------- main ------------------------------------------
if __name__ == "__main__":
    key = jax.random.PRNGKey(0)
    pkey, ptkey, etkey = jax.random.split(key, 3)
    params = init_params(pkey)

    rng = np.random.RandomState(0)
    src_lens_np = np.array([T_SRC, T_SRC - 2], dtype=np.int32)
    texts_np = rng.randint(1, VOCAB, size=(B, T_SRC)).astype(np.int32)
    d_np = rng.randint(1, 4, size=(B, T_SRC)).astype(np.int32)
    for b in range(B):
        texts_np[b, src_lens_np[b]:] = 0
        d_np[b, src_lens_np[b]:] = 0
    max_src_len = int(src_lens_np.max())
    max_mel_len = int(d_np.sum(axis=1).max())

    # Positional table sized to cover both source and mel sequence lengths.
    pos_table = sinusoid_table(max(MAX_POS, max_src_len, max_mel_len), HID)

    texts = jnp.asarray(texts_np)
    src_lens = jnp.asarray(src_lens_np)
    d_targets = jnp.asarray(d_np)
    p_targets = jax.random.normal(ptkey, (B, T_SRC), jnp.float32)
    e_targets = jax.random.normal(etkey, (B, T_SRC), jnp.float32)
    speakers = jnp.zeros((B,), jnp.int32)

    outs = fastspeech2_forward(params, pos_table, speakers, texts, src_lens,
                               max_src_len, max_mel_len, p_targets, e_targets, d_targets)
    outs = jax.block_until_ready(outs)

    mel, postnet_mel = outs[0], outs[1]
    assert mel.shape == (B, max_mel_len, N_MELS)
    assert postnet_mel.shape == (B, max_mel_len, N_MELS)
    assert outs[5].shape == (B, T_SRC)               # log duration predictions
    assert outs[3].shape == (B, T_SRC)               # pitch predictions
    assert outs[4].shape == (B, T_SRC)               # energy predictions
    assert bool(jnp.all(jnp.isfinite(mel))) and bool(jnp.all(jnp.isfinite(postnet_mel)))
    print("KERNEL_OK")
</pallas_src>

<mosaic_0001>
module attributes {stable_mosaic.version = 11 : i64} {
  func.func @_enc_stack_kernel(%arg0: i32, %arg1: i32, %arg2: memref<1x1x8xf32, #tpu.memory_space<vmem>>, %arg3: memref<1x8x1xf32, #tpu.memory_space<vmem>>, %arg4: memref<1x8x32xf32, #tpu.memory_space<vmem>>, %arg5: memref<1x32x32xf32, #tpu.memory_space<vmem>>, %arg6: memref<1x1x32xf32, #tpu.memory_space<vmem>>, %arg7: memref<1x32x32xf32, #tpu.memory_space<vmem>>, %arg8: memref<1x1x32xf32, #tpu.memory_space<vmem>>, %arg9: memref<1x32x32xf32, #tpu.memory_space<vmem>>, %arg10: memref<1x1x32xf32, #tpu.memory_space<vmem>>, %arg11: memref<1x32x32xf32, #tpu.memory_space<vmem>>, %arg12: memref<1x1x32xf32, #tpu.memory_space<vmem>>, %arg13: memref<1x1x32xf32, #tpu.memory_space<vmem>>, %arg14: memref<1x1x32xf32, #tpu.memory_space<vmem>>, %arg15: memref<1x96x64xf32, #tpu.memory_space<vmem>>, %arg16: memref<1x1x64xf32, #tpu.memory_space<vmem>>, %arg17: memref<1x64x32xf32, #tpu.memory_space<vmem>>, %arg18: memref<1x1x32xf32, #tpu.memory_space<vmem>>, %arg19: memref<1x1x32xf32, #tpu.memory_space<vmem>>, %arg20: memref<1x1x32xf32, #tpu.memory_space<vmem>>, %arg21: memref<1x8x32xf32, #tpu.memory_space<vmem>>) attributes {dimension_semantics = [#tpu.dimension_semantics<parallel>, #tpu.dimension_semantics<arbitrary>], iteration_bounds = array<i64: 2, 2>, scalar_prefetch = 0 : i64, scratch_operands = 0 : i64, tpu.core_type = #tpu.core_type<tc>, window_params = [{transform_indices = @transform_0, window_bounds = array<i64: 1, 1, 8>}, {transform_indices = @transform_1, window_bounds = array<i64: 1, 8, 1>}, {transform_indices = @transform_2, window_bounds = array<i64: 1, 8, 32>}, {transform_indices = @transform_3, window_bounds = array<i64: 1, 32, 32>}, {transform_indices = @transform_4, window_bounds = array<i64: 1, 1, 32>}, {transform_indices = @transform_5, window_bounds = array<i64: 1, 32, 32>}, {transform_indices = @transform_6, window_bounds = array<i64: 1, 1, 32>}, {transform_indices = @transform_7, window_bounds = array<i64: 1, 32, 32>}, {transform_indices = @transform_8, window_bounds = array<i64: 1, 1, 32>}, {transform_indices = @transform_9, window_bounds = array<i64: 1, 32, 32>}, {transform_indices = @transform_10, window_bounds = array<i64: 1, 1, 32>}, {transform_indices = @transform_11, window_bounds = array<i64: 1, 1, 32>}, {transform_indices = @transform_12, window_bounds = array<i64: 1, 1, 32>}, {transform_indices = @transform_13, window_bounds = array<i64: 1, 96, 64>}, {transform_indices = @transform_14, window_bounds = array<i64: 1, 1, 64>}, {transform_indices = @transform_15, window_bounds = array<i64: 1, 64, 32>}, {transform_indices = @transform_16, window_bounds = array<i64: 1, 1, 32>}, {transform_indices = @transform_17, window_bounds = array<i64: 1, 1, 32>}, {transform_indices = @transform_18, window_bounds = array<i64: 1, 1, 32>}, {transform_indices = @transform_19, window_bounds = array<i64: 1, 8, 32>}]} {
    %c0_i32 = arith.constant 0 : i32
    %0 = arith.cmpi eq, %arg1, %c0_i32 : i32
    %1 = arith.extui %0 : i1 to i32
    %c0_i32_0 = arith.constant 0 : i32
    %2 = arith.cmpi ne, %1, %c0_i32_0 : i32
    scf.if %2 {
      %c0_92 = arith.constant 0 : index
      %c0_93 = arith.constant 0 : index
      %c0_94 = arith.constant 0 : index
      %207 = vector.load %arg4[%c0_92, %c0_93, %c0_94] : memref<1x8x32xf32, #tpu.memory_space<vmem>>, vector<1x8x32xf32>
      %c0_95 = arith.constant 0 : index
      %c0_96 = arith.constant 0 : index
      %c0_97 = arith.constant 0 : index
      %208 = vector.load %arg21[%c0_95, %c0_96, %c0_97] : memref<1x8x32xf32, #tpu.memory_space<vmem>>, vector<1x8x32xf32>
      tpu.vector_store %arg21[%c0_95, %c0_96, %c0_97], %207 {strides = array<i32>} : memref<1x8x32xf32, #tpu.memory_space<vmem>>, vector<1x8x32xf32>,
    } else {
    }
    %c0 = arith.constant 0 : index
    %c0_1 = arith.constant 0 : index
    %c0_2 = arith.constant 0 : index
    %3 = vector.load %arg21[%c0, %c0_1, %c0_2] : memref<1x8x32xf32, #tpu.memory_space<vmem>>, vector<1x8x32xf32>
    %4 = vector.shape_cast %3 : vector<1x8x32xf32> to vector<8x32xf32>
    %c0_3 = arith.constant 0 : index
    %c0_4 = arith.constant 0 : index
    %c0_5 = arith.constant 0 : index
    %5 = vector.load %arg2[%c0_3, %c0_4, %c0_5] : memref<1x1x8xf32, #tpu.memory_space<vmem>>, vector<1x1x8xf32>
    %6 = vector.shape_cast %5 : vector<1x1x8xf32> to vector<1x8xf32>
    %cst = arith.constant 1.000000e+09 : f32
    %7 = vector.broadcast %cst : f32 to vector<1x8xf32>
    %8 = arith.mulf %6, %7 : vector<1x8xf32>
    %c0_6 = arith.constant 0 : index
    %c0_7 = arith.constant 0 : index
    %c0_8 = arith.constant 0 : index
    %9 = vector.load %arg3[%c0_6, %c0_7, %c0_8] : memref<1x8x1xf32, #tpu.memory_space<vmem>>, vector<1x8x1xf32>
    %10 = vector.shape_cast %9 : vector<1x8x1xf32> to vector<8x1xf32>
    %c0_9 = arith.constant 0 : index
    %c0_10 = arith.constant 0 : index
    %c0_11 = arith.constant 0 : index
    %11 = vector.load %arg5[%c0_9, %c0_10, %c0_11] : memref<1x32x32xf32, #tpu.memory_space<vmem>>, vector<1x32x32xf32>
    %12 = vector.shape_cast %11 : vector<1x32x32xf32> to vector<32x32xf32>
    %c0_12 = arith.constant 0 : index
    %c0_13 = arith.constant 0 : index
    %c0_14 = arith.constant 0 : index
    %13 = vector.load %arg6[%c0_12, %c0_13, %c0_14] : memref<1x1x32xf32, #tpu.memory_space<vmem>>, vector<1x1x32xf32>
    %14 = vector.shape_cast %13 : vector<1x1x32xf32> to vector<1x32xf32>
    %c0_15 = arith.constant 0 : index
    %c0_16 = arith.constant 0 : index
    %c0_17 = arith.constant 0 : index
    %15 = vector.load %arg7[%c0_15, %c0_16, %c0_17] : memref<1x32x32xf32, #tpu.memory_space<vmem>>, vector<1x32x32xf32>
    %16 = vector.shape_cast %15 : vector<1x32x32xf32> to vector<32x32xf32>
    %c0_18 = arith.constant 0 : index
    %c0_19 = arith.constant 0 : index
    %c0_20 = arith.constant 0 : index
    %17 = vector.load %arg8[%c0_18, %c0_19, %c0_20] : memref<1x1x32xf32, #tpu.memory_space<vmem>>, vector<1x1x32xf32>
    %18 = vector.shape_cast %17 : vector<1x1x32xf32> to vector<1x32xf32>
    %c0_21 = arith.constant 0 : index
    %c0_22 = arith.constant 0 : index
    %c0_23 = arith.constant 0 : index
    %19 = vector.load %arg9[%c0_21, %c0_22, %c0_23] : memref<1x32x32xf32, #tpu.memory_space<vmem>>, vector<1x32x32xf32>
    %20 = vector.shape_cast %19 : vector<1x32x32xf32> to vector<32x32xf32>
    %c0_24 = arith.constant 0 : index
    %c0_25 = arith.constant 0 : index
    %c0_26 = arith.constant 0 : index
    %21 = vector.load %arg10[%c0_24, %c0_25, %c0_26] : memref<1x1x32xf32, #tpu.memory_space<vmem>>, vector<1x1x32xf32>
    %22 = vector.shape_cast %21 : vector<1x1x32xf32> to vector<1x32xf32>
    %c0_27 = arith.constant 0 : index
    %c0_28 = arith.constant 0 : index
    %c0_29 = arith.constant 0 : index
    %23 = vector.load %arg11[%c0_27, %c0_28, %c0_29] : memref<1x32x32xf32, #tpu.memory_space<vmem>>, vector<1x32x32xf32>
    %24 = vector.shape_cast %23 : vector<1x32x32xf32> to vector<32x32xf32>
    %c0_30 = arith.constant 0 : index
    %c0_31 = arith.constant 0 : index
    %c0_32 = arith.constant 0 : index
    %25 = vector.load %arg12[%c0_30, %c0_31, %c0_32] : memref<1x1x32xf32, #tpu.memory_space<vmem>>, vector<1x1x32xf32>
    %26 = vector.shape_cast %25 : vector<1x1x32xf32> to vector<1x32xf32>
    %c0_33 = arith.constant 0 : index
    %c0_34 = arith.constant 0 : index
    %c0_35 = arith.constant 0 : index
    %27 = vector.load %arg13[%c0_33, %c0_34, %c0_35] : memref<1x1x32xf32, #tpu.memory_space<vmem>>, vector<1x1x32xf32>
    %28 = vector.shape_cast %27 : vector<1x1x32xf32> to vector<1x32xf32>
    %c0_36 = arith.constant 0 : index
    %c0_37 = arith.constant 0 : index
    %c0_38 = arith.constant 0 : index
    %29 = vector.load %arg14[%c0_36, %c0_37, %c0_38] : memref<1x1x32xf32, #tpu.memory_space<vmem>>, vector<1x1x32xf32>
    %30 = vector.shape_cast %29 : vector<1x1x32xf32> to vector<1x32xf32>
    %c0_39 = arith.constant 0 : index
    %c0_40 = arith.constant 0 : index
    %c0_41 = arith.constant 0 : index
    %31 = vector.load %arg15[%c0_39, %c0_40, %c0_41] : memref<1x96x64xf32, #tpu.memory_space<vmem>>, vector<1x96x64xf32>
    %32 = vector.shape_cast %31 : vector<1x96x64xf32> to vector<96x64xf32>
    %c0_42 = arith.constant 0 : index
    %c0_43 = arith.constant 0 : index
    %c0_44 = arith.constant 0 : index
    %33 = vector.load %arg16[%c0_42, %c0_43, %c0_44] : memref<1x1x64xf32, #tpu.memory_space<vmem>>, vector<1x1x64xf32>
    %34 = vector.shape_cast %33 : vector<1x1x64xf32> to vector<1x64xf32>
    %c0_45 = arith.constant 0 : index
    %c0_46 = arith.constant 0 : index
    %c0_47 = arith.constant 0 : index
    %35 = vector.load %arg17[%c0_45, %c0_46, %c0_47] : memref<1x64x32xf32, #tpu.memory_space<vmem>>, vector<1x64x32xf32>
    %36 = vector.shape_cast %35 : vector<1x64x32xf32> to vector<64x32xf32>
    %c0_48 = arith.constant 0 : index
    %c0_49 = arith.constant 0 : index
    %c0_50 = arith.constant 0 : index
    %37 = vector.load %arg18[%c0_48, %c0_49, %c0_50] : memref<1x1x32xf32, #tpu.memory_space<vmem>>, vector<1x1x32xf32>
    %38 = vector.shape_cast %37 : vector<1x1x32xf32> to vector<1x32xf32>
    %c0_51 = arith.constant 0 : index
    %c0_52 = arith.constant 0 : index
    %c0_53 = arith.constant 0 : index
    %39 = vector.load %arg19[%c0_51, %c0_52, %c0_53] : memref<1x1x32xf32, #tpu.memory_space<vmem>>, vector<1x1x32xf32>
    %40 = vector.shape_cast %39 : vector<1x1x32xf32> to vector<1x32xf32>
    %c0_54 = arith.constant 0 : index
    %c0_55 = arith.constant 0 : index
    %c0_56 = arith.constant 0 : index
    %41 = vector.load %arg20[%c0_54, %c0_55, %c0_56] : memref<1x1x32xf32, #tpu.memory_space<vmem>>, vector<1x1x32xf32>
    %42 = vector.shape_cast %41 : vector<1x1x32xf32> to vector<1x32xf32>
    %43 = arith.truncf %4 : vector<8x32xf32> to vector<8x32xbf16>
    %44 = arith.truncf %12 : vector<32x32xf32> to vector<32x32xbf16>
    %cst_57 = arith.constant dense<0.000000e+00> : vector<8x32xf32>
    %45 = tpu.matmul %43, %44, %cst_57 {dimension_numbers = #tpu.dot_dimension_numbers<[1], [0], [0], [1], [0, 0, 1, 1], [], []>} : vector<8x32xbf16>, vector<32x32xbf16>, vector<8x32xf32> -> vector<8x32xf32>
    %46 = vector.broadcast %14 : vector<1x32xf32> to vector<8x32xf32>
    %47 = arith.addf %45, %46 : vector<8x32xf32>
    %48 = arith.truncf %4 : vector<8x32xf32> to vector<8x32xbf16>
    %49 = arith.truncf %16 : vector<32x32xf32> to vector<32x32xbf16>
    %cst_58 = arith.constant dense<0.000000e+00> : vector<8x32xf32>
    %50 = tpu.matmul %48, %49, %cst_58 {dimension_numbers = #tpu.dot_dimension_numbers<[1], [0], [0], [1], [0, 0, 1, 1], [], []>} : vector<8x32xbf16>, vector<32x32xbf16>, vector<8x32xf32> -> vector<8x32xf32>
    %51 = vector.broadcast %18 : vector<1x32xf32> to vector<8x32xf32>
    %52 = arith.addf %50, %51 : vector<8x32xf32>
    %53 = arith.truncf %4 : vector<8x32xf32> to vector<8x32xbf16>
    %54 = arith.truncf %20 : vector<32x32xf32> to vector<32x32xbf16>
    %cst_59 = arith.constant dense<0.000000e+00> : vector<8x32xf32>
    %55 = tpu.matmul %53, %54, %cst_59 {dimension_numbers = #tpu.dot_dimension_numbers<[1], [0], [0], [1], [0, 0, 1, 1], [], []>} : vector<8x32xbf16>, vector<32x32xbf16>, vector<8x32xf32> -> vector<8x32xf32>
    %56 = vector.broadcast %22 : vector<1x32xf32> to vector<8x32xf32>
    %57 = arith.addf %55, %56 : vector<8x32xf32>
    %58 = vector.extract_strided_slice %47 {offsets = [0, 0], sizes = [8, 16], strides = [1, 1]} : vector<8x32xf32> to vector<8x16xf32>
    %59 = arith.truncf %58 : vector<8x16xf32> to vector<8x16xbf16>
    %60 = vector.extract_strided_slice %52 {offsets = [0, 0], sizes = [8, 16], strides = [1, 1]} : vector<8x32xf32> to vector<8x16xf32>
    %61 = arith.truncf %60 : vector<8x16xf32> to vector<8x16xbf16>
    %cst_60 = arith.constant dense<0.000000e+00> : vector<8x8xf32>
    %62 = tpu.matmul %59, %61, %cst_60 {dimension_numbers = #tpu.dot_dimension_numbers<[1], [1], [0], [0], [0, 0, 1, 0], [], []>} : vector<8x16xbf16>, vector<8x16xbf16>, vector<8x8xf32> -> vector<8x8xf32>
    %cst_61 = arith.constant 2.500000e-01 : f32
    %63 = vector.broadcast %cst_61 : f32 to vector<8x8xf32>
    %64 = arith.mulf %62, %63 : vector<8x8xf32>
    %65 = vector.broadcast %8 : vector<1x8xf32> to vector<8x8xf32>
    %66 = arith.subf %64, %65 : vector<8x8xf32>
    %cst_62 = arith.constant dense<0xFF800000> : vector<8xf32>
    %67 = vector.multi_reduction <maximumf>, %66, %cst_62 [1] : vector<8x8xf32> to vector<8xf32>
    %68 = vector.shape_cast %67 : vector<8xf32> to vector<8x1xf32>
    %69 = vector.broadcast %68 : vector<8x1xf32> to vector<8x8xf32>
    %70 = arith.subf %66, %69 : vector<8x8xf32>
    %71 = math.exp %70 : vector<8x8xf32>
    %cst_63 = arith.constant dense<0.000000e+00> : vector<8xf32>
    %72 = vector.multi_reduction <add>, %71, %cst_63 [1] : vector<8x8xf32> to vector<8xf32>
    %73 = vector.shape_cast %72 : vector<8xf32> to vector<8x1xf32>
    %74 = tpu.reciprocal %73 {approx = true} : vector<8x1xf32> -> vector<8x1xf32>
    %75 = vector.broadcast %74 : vector<8x1xf32> to vector<8x8xf32>
    %76 = arith.mulf %71, %75 : vector<8x8xf32>
    %77 = arith.truncf %76 : vector<8x8xf32> to vector<8x8xbf16>
    %78 = vector.extract_strided_slice %57 {offsets = [0, 0], sizes = [8, 16], strides = [1, 1]} : vector<8x32xf32> to vector<8x16xf32>
    %79 = arith.truncf %78 : vector<8x16xf32> to vector<8x16xbf16>
    %cst_64 = arith.constant dense<0.000000e+00> : vector<8x16xf32>
    %80 = tpu.matmul %77, %79, %cst_64 {dimension_numbers = #tpu.dot_dimension_numbers<[1], [0], [0], [1], [0, 0, 1, 1], [], []>} : vector<8x8xbf16>, vector<8x16xbf16>, vector<8x16xf32> -> vector<8x16xf32>
    %81 = vector.extract_strided_slice %24 {offsets = [0, 0], sizes = [16, 32], strides = [1, 1]} : vector<32x32xf32> to vector<16x32xf32>
    %82 = arith.truncf %80 : vector<8x16xf32> to vector<8x16xbf16>
    %83 = arith.truncf %81 : vector<16x32xf32> to vector<16x32xbf16>
    %cst_65 = arith.constant dense<0.000000e+00> : vector<8x32xf32>
    %84 = tpu.matmul %82, %83, %cst_65 {dimension_numbers = #tpu.dot_dimension_numbers<[1], [0], [0], [1], [0, 0, 1, 1], [], []>} : vector<8x16xbf16>, vector<16x32xbf16>, vector<8x32xf32> -> vector<8x32xf32>
    %85 = vector.extract_strided_slice %47 {offsets = [0, 16], sizes = [8, 16], strides = [1, 1]} : vector<8x32xf32> to vector<8x16xf32>
    %86 = arith.truncf %85 : vector<8x16xf32> to vector<8x16xbf16>
    %87 = vector.extract_strided_slice %52 {offsets = [0, 16], sizes = [8, 16], strides = [1, 1]} : vector<8x32xf32> to vector<8x16xf32>
    %88 = arith.truncf %87 : vector<8x16xf32> to vector<8x16xbf16>
    %cst_66 = arith.constant dense<0.000000e+00> : vector<8x8xf32>
    %89 = tpu.matmul %86, %88, %cst_66 {dimension_numbers = #tpu.dot_dimension_numbers<[1], [1], [0], [0], [0, 0, 1, 0], [], []>} : vector<8x16xbf16>, vector<8x16xbf16>, vector<8x8xf32> -> vector<8x8xf32>
    %cst_67 = arith.constant 2.500000e-01 : f32
    %90 = vector.broadcast %cst_67 : f32 to vector<8x8xf32>
    %91 = arith.mulf %89, %90 : vector<8x8xf32>
    %92 = vector.broadcast %8 : vector<1x8xf32> to vector<8x8xf32>
    %93 = arith.subf %91, %92 : vector<8x8xf32>
    %cst_68 = arith.constant dense<0xFF800000> : vector<8xf32>
    %94 = vector.multi_reduction <maximumf>, %93, %cst_68 [1] : vector<8x8xf32> to vector<8xf32>
    %95 = vector.shape_cast %94 : vector<8xf32> to vector<8x1xf32>
    %96 = vector.broadcast %95 : vector<8x1xf32> to vector<8x8xf32>
    %97 = arith.subf %93, %96 : vector<8x8xf32>
    %98 = math.exp %97 : vector<8x8xf32>
    %cst_69 = arith.constant dense<0.000000e+00> : vector<8xf32>
    %99 = vector.multi_reduction <add>, %98, %cst_69 [1] : vector<8x8xf32> to vector<8xf32>
    %100 = vector.shape_cast %99 : vector<8xf32> to vector<8x1xf32>
    %101 = tpu.reciprocal %100 {approx = true} : vector<8x1xf32> -> vector<8x1xf32>
    %102 = vector.broadcast %101 : vector<8x1xf32> to vector<8x8xf32>
    %103 = arith.mulf %98, %102 : vector<8x8xf32>
    %104 = arith.truncf %103 : vector<8x8xf32> to vector<8x8xbf16>
    %105 = vector.extract_strided_slice %57 {offsets = [0, 16], sizes = [8, 16], strides = [1, 1]} : vector<8x32xf32> to vector<8x16xf32>
    %106 = arith.truncf %105 : vector<8x16xf32> to vector<8x16xbf16>
    %cst_70 = arith.constant dense<0.000000e+00> : vector<8x16xf32>
    %107 = tpu.matmul %104, %106, %cst_70 {dimension_numbers = #tpu.dot_dimension_numbers<[1], [0], [0], [1], [0, 0, 1, 1], [], []>} : vector<8x8xbf16>, vector<8x16xbf16>, vector<8x16xf32> -> vector<8x16xf32>
    %108 = vector.extract_strided_slice %24 {offsets = [16, 0], sizes = [16, 32], strides = [1, 1]} : vector<32x32xf32> to vector<16x32xf32>
    %109 = arith.truncf %107 : vector<8x16xf32> to vector<8x16xbf16>
    %110 = arith.truncf %108 : vector<16x32xf32> to vector<16x32xbf16>
    %cst_71 = arith.constant dense<0.000000e+00> : vector<8x32xf32>
    %111 = tpu.matmul %109, %110, %cst_71 {dimension_numbers = #tpu.dot_dimension_numbers<[1], [0], [0], [1], [0, 0, 1, 1], [], []>} : vector<8x16xbf16>, vector<16x32xbf16>, vector<8x32xf32> -> vector<8x32xf32>
    %112 = arith.addf %84, %111 : vector<8x32xf32>
    %113 = vector.broadcast %26 : vector<1x32xf32> to vector<8x32xf32>
    %114 = arith.addf %112, %113 : vector<8x32xf32>
    %115 = arith.addf %114, %4 : vector<8x32xf32>
    %cst_72 = arith.constant dense<0.000000e+00> : vector<8xf32>
    %116 = vector.multi_reduction <add>, %115, %cst_72 [1] : vector<8x32xf32> to vector<8xf32>
    %117 = vector.shape_cast %116 : vector<8xf32> to vector<8x1xf32>
    %cst_73 = arith.constant 3.200000e+01 : f32
    %118 = vector.broadcast %cst_73 : f32 to vector<8x1xf32>
    %119 = arith.divf %117, %118 : vector<8x1xf32>
    %120 = vector.broadcast %119 : vector<8x1xf32> to vector<8x32xf32>
    %121 = arith.subf %115, %120 : vector<8x32xf32>
    %122 = arith.mulf %121, %121 : vector<8x32xf32>
    %cst_74 = arith.constant dense<0.000000e+00> : vector<8xf32>
    %123 = vector.multi_reduction <add>, %122, %cst_74 [1] : vector<8x32xf32> to vector<8xf32>
    %124 = vector.shape_cast %123 : vector<8xf32> to vector<8x1xf32>
    %cst_75 = arith.constant 3.200000e+01 : f32
    %125 = vector.broadcast %cst_75 : f32 to vector<8x1xf32>
    %126 = arith.divf %124, %125 : vector<8x1xf32>
    %127 = vector.broadcast %119 : vector<8x1xf32> to vector<8x32xf32>
    %128 = arith.subf %115, %127 : vector<8x32xf32>
    %cst_76 = arith.constant 9.99999974E-6 : f32
    %129 = vector.broadcast %cst_76 : f32 to vector<8x1xf32>
    %130 = arith.addf %126, %129 : vector<8x1xf32>
    %131 = math.rsqrt %130 : vector<8x1xf32>
    %132 = vector.broadcast %131 : vector<8x1xf32> to vector<8x32xf32>
    %133 = arith.mulf %128, %132 : vector<8x32xf32>
    %134 = vector.broadcast %28 : vector<1x32xf32> to vector<8x32xf32>
    %135 = arith.mulf %133, %134 : vector<8x32xf32>
    %136 = vector.broadcast %30 : vector<1x32xf32> to vector<8x32xf32>
    %137 = arith.addf %135, %136 : vector<8x32xf32>
    %138 = vector.broadcast %10 : vector<8x1xf32> to vector<8x32xf32>
    %139 = arith.mulf %137, %138 : vector<8x32xf32>
    %140 = tpu.iota {dimensions = array<i32: 0>} : vector<8x8xi32>
    %141 = tpu.iota {dimensions = array<i32: 1>} : vector<8x8xi32>
    %c-1_i32 = arith.constant -1 : i32
    %142 = vector.broadcast %c-1_i32 : i32 to vector<8x8xi32>
    %143 = arith.addi %140, %142 : vector<8x8xi32>
    %144 = arith.cmpi eq, %141, %143 : vector<8x8xi32>
    %145 = arith.extui %144 : vector<8x8xi1> to vector<8x8xi32>
    %146 = arith.sitofp %145 : vector<8x8xi32> to vector<8x8xf32>
    %cst_77 = arith.constant dense<0.000000e+00> : vector<8x32xf32>
    %147 = tpu.matmul %146, %139, %cst_77 {dimension_numbers = #tpu.dot_dimension_numbers<[1], [0], [0], [1], [0, 0, 1, 1], [], []>} : vector<8x8xf32>, vector<8x32xf32>, vector<8x32xf32> -> vector<8x32xf32>
    %148 = vector.extract_strided_slice %32 {offsets = [0, 0], sizes = [32, 64], strides = [1, 1]} : vector<96x64xf32> to vector<32x64xf32>
    %149 = arith.truncf %147 : vector<8x32xf32> to vector<8x32xbf16>
    %150 = arith.truncf %148 : vector<32x64xf32> to vector<32x64xbf16>
    %cst_78 = arith.constant dense<0.000000e+00> : vector<8x64xf32>
    %151 = tpu.matmul %149, %150, %cst_78 {dimension_numbers = #tpu.dot_dimension_numbers<[1], [0], [0], [1], [0, 0, 1, 1], [], []>} : vector<8x32xbf16>, vector<32x64xbf16>, vector<8x64xf32> -> vector<8x64xf32>
    %152 = vector.extract_strided_slice %32 {offsets = [32, 0], sizes = [32, 64], strides = [1, 1]} : vector<96x64xf32> to vector<32x64xf32>
    %153 = arith.truncf %139 : vector<8x32xf32> to vector<8x32xbf16>
    %154 = arith.truncf %152 : vector<32x64xf32> to vector<32x64xbf16>
    %cst_79 = arith.constant dense<0.000000e+00> : vector<8x64xf32>
    %155 = tpu.matmul %153, %154, %cst_79 {dimension_numbers = #tpu.dot_dimension_numbers<[1], [0], [0], [1], [0, 0, 1, 1], [], []>} : vector<8x32xbf16>, vector<32x64xbf16>, vector<8x64xf32> -> vector<8x64xf32>
    %156 = arith.addf %151, %155 : vector<8x64xf32>
    %157 = tpu.iota {dimensions = array<i32: 0>} : vector<8x8xi32>
    %158 = tpu.iota {dimensions = array<i32: 1>} : vector<8x8xi32>
    %c1_i32 = arith.constant 1 : i32
    %159 = vector.broadcast %c1_i32 : i32 to vector<8x8xi32>
    %160 = arith.addi %157, %159 : vector<8x8xi32>
    %161 = arith.cmpi eq, %158, %160 : vector<8x8xi32>
    %162 = arith.extui %161 : vector<8x8xi1> to vector<8x8xi32>
    %163 = arith.sitofp %162 : vector<8x8xi32> to vector<8x8xf32>
    %cst_80 = arith.constant dense<0.000000e+00> : vector<8x32xf32>
    %164 = tpu.matmul %163, %139, %cst_80 {dimension_numbers = #tpu.dot_dimension_numbers<[1], [0], [0], [1], [0, 0, 1, 1], [], []>} : vector<8x8xf32>, vector<8x32xf32>, vector<8x32xf32> -> vector<8x32xf32>
    %165 = vector.extract_strided_slice %32 {offsets = [64, 0], sizes = [32, 64], strides = [1, 1]} : vector<96x64xf32> to vector<32x64xf32>
    %166 = arith.truncf %164 : vector<8x32xf32> to vector<8x32xbf16>
    %167 = arith.truncf %165 : vector<32x64xf32> to vector<32x64xbf16>
    %cst_81 = arith.constant dense<0.000000e+00> : vector<8x64xf32>
    %168 = tpu.matmul %166, %167, %cst_81 {dimension_numbers = #tpu.dot_dimension_numbers<[1], [0], [0], [1], [0, 0, 1, 1], [], []>} : vector<8x32xbf16>, vector<32x64xbf16>, vector<8x64xf32> -> vector<8x64xf32>
    %169 = arith.addf %156, %168 : vector<8x64xf32>
    %170 = vector.broadcast %34 : vector<1x64xf32> to vector<8x64xf32>
    %171 = arith.addf %169, %170 : vector<8x64xf32>
    %cst_82 = arith.constant 0.000000e+00 : f32
    %172 = vector.broadcast %cst_82 : f32 to vector<8x64xf32>
    %173 = arith.maximumf %171, %172 : vector<8x64xf32>
    %174 = arith.truncf %173 : vector<8x64xf32> to vector<8x64xbf16>
    %175 = arith.truncf %36 : vector<64x32xf32> to vector<64x32xbf16>
    %cst_83 = arith.constant dense<0.000000e+00> : vector<8x32xf32>
    %176 = tpu.matmul %174, %175, %cst_83 {dimension_numbers = #tpu.dot_dimension_numbers<[1], [0], [0], [1], [0, 0, 1, 1], [], []>} : vector<8x64xbf16>, vector<64x32xbf16>, vector<8x32xf32> -> vector<8x32xf32>
    %177 = vector.broadcast %38 : vector<1x32xf32> to vector<8x32xf32>
    %178 = arith.addf %176, %177 : vector<8x32xf32>
    %179 = arith.addf %178, %139 : vector<8x32xf32>
    %cst_84 = arith.constant dense<0.000000e+00> : vector<8xf32>
    %180 = vector.multi_reduction <add>, %179, %cst_84 [1] : vector<8x32xf32> to vector<8xf32>
    %181 = vector.shape_cast %180 : vector<8xf32> to vector<8x1xf32>
    %cst_85 = arith.constant 3.200000e+01 : f32
    %182 = vector.broadcast %cst_85 : f32 to vector<8x1xf32>
    %183 = arith.divf %181, %182 : vector<8x1xf32>
    %184 = vector.broadcast %183 : vector<8x1xf32> to vector<8x32xf32>
    %185 = arith.subf %179, %184 : vector<8x32xf32>
    %186 = arith.mulf %185, %185 : vector<8x32xf32>
    %cst_86 = arith.constant dense<0.000000e+00> : vector<8xf32>
    %187 = vector.multi_reduction <add>, %186, %cst_86 [1] : vector<8x32xf32> to vector<8xf32>
    %188 = vector.shape_cast %187 : vector<8xf32> to vector<8x1xf32>
    %cst_87 = arith.constant 3.200000e+01 : f32
    %189 = vector.broadcast %cst_87 : f32 to vector<8x1xf32>
    %190 = arith.divf %188, %189 : vector<8x1xf32>
    %191 = vector.broadcast %183 : vector<8x1xf32> to vector<8x32xf32>
    %192 = arith.subf %179, %191 : vector<8x32xf32>
    %cst_88 = arith.constant 9.99999974E-6 : f32
    %193 = vector.broadcast %cst_88 : f32 to vector<8x1xf32>
    %194 = arith.addf %190, %193 : vector<8x1xf32>
    %195 = math.rsqrt %194 : vector<8x1xf32>
    %196 = vector.broadcast %195 : vector<8x1xf32> to vector<8x32xf32>
    %197 = arith.mulf %192, %196 : vector<8x32xf32>
    %198 = vector.broadcast %40 : vector<1x32xf32> to vector<8x32xf32>
    %199 = arith.mulf %197, %198 : vector<8x32xf32>
    %200 = vector.broadcast %42 : vector<1x32xf32> to vector<8x32xf32>
    %201 = arith.addf %199, %200 : vector<8x32xf32>
    %202 = vector.broadcast %10 : vector<8x1xf32> to vector<8x32xf32>
    %203 = arith.mulf %201, %202 : vector<8x32xf32>
    %c0_89 = arith.constant 0 : index
    %c0_90 = arith.constant 0 : index
    %c0_91 = arith.constant 0 : index
    %204 = vector.load %arg21[%c0_89, %c0_90, %c0_91] : memref<1x8x32xf32, #tpu.memory_space<vmem>>, vector<1x8x32xf32>
    %205 = vector.shape_cast %204 : vector<1x8x32xf32> to vector<8x32xf32>
    %206 = vector.shape_cast %203 : vector<8x32xf32> to vector<1x8x32xf32>
    tpu.vector_store %arg21[%c0_89, %c0_90, %c0_91], %206 {strides = array<i32>} : memref<1x8x32xf32, #tpu.memory_space<vmem>>, vector<1x8x32xf32>,
    return
  }
  func.func @transform_0(%arg0: i32, %arg1: i32) -> (i32, i32, i32) {
    %c0_i32 = arith.constant 0 : i32
    %c0_i32_0 = arith.constant 0 : i32
    %c0_i32_1 = arith.constant 0 : i32
    return %arg0, %c0_i32, %c0_i32_0 : i32, i32, i32
  }
  func.func @transform_1(%arg0: i32, %arg1: i32) -> (i32, i32, i32) {
    %c0_i32 = arith.constant 0 : i32
    %c0_i32_0 = arith.constant 0 : i32
    %c0_i32_1 = arith.constant 0 : i32
    return %arg0, %c0_i32, %c0_i32_0 : i32, i32, i32
  }
  func.func @transform_2(%arg0: i32, %arg1: i32) -> (i32, i32, i32) {
    %c0_i32 = arith.constant 0 : i32
    %c0_i32_0 = arith.constant 0 : i32
    %c0_i32_1 = arith.constant 0 : i32
    return %arg0, %c0_i32, %c0_i32_0 : i32, i32, i32
  }
  func.func @transform_3(%arg0: i32, %arg1: i32) -> (i32, i32, i32) {
    %c0_i32 = arith.constant 0 : i32
    %c0_i32_0 = arith.constant 0 : i32
    %c0_i32_1 = arith.constant 0 : i32
    return %arg1, %c0_i32, %c0_i32_0 : i32, i32, i32
  }
  func.func @transform_4(%arg0: i32, %arg1: i32) -> (i32, i32, i32) {
    %c0_i32 = arith.constant 0 : i32
    %c0_i32_0 = arith.constant 0 : i32
    %c0_i32_1 = arith.constant 0 : i32
    return %arg1, %c0_i32, %c0_i32_0 : i32, i32, i32
  }
  func.func @transform_5(%arg0: i32, %arg1: i32) -> (i32, i32, i32) {
    %c0_i32 = arith.constant 0 : i32
    %c0_i32_0 = arith.constant 0 : i32
    %c0_i32_1 = arith.constant 0 : i32
    return %arg1, %c0_i32, %c0_i32_0 : i32, i32, i32
  }
  func.func @transform_6(%arg0: i32, %arg1: i32) -> (i32, i32, i32) {
    %c0_i32 = arith.constant 0 : i32
    %c0_i32_0 = arith.constant 0 : i32
    %c0_i32_1 = arith.constant 0 : i32
    return %arg1, %c0_i32, %c0_i32_0 : i32, i32, i32
  }
  func.func @transform_7(%arg0: i32, %arg1: i32) -> (i32, i32, i32) {
    %c0_i32 = arith.constant 0 : i32
    %c0_i32_0 = arith.constant 0 : i32
    %c0_i32_1 = arith.constant 0 : i32
    return %arg1, %c0_i32, %c0_i32_0 : i32, i32, i32
  }
  func.func @transform_8(%arg0: i32, %arg1: i32) -> (i32, i32, i32) {
    %c0_i32 = arith.constant 0 : i32
    %c0_i32_0 = arith.constant 0 : i32
    %c0_i32_1 = arith.constant 0 : i32
    return %arg1, %c0_i32, %c0_i32_0 : i32, i32, i32
  }
  func.func @transform_9(%arg0: i32, %arg1: i32) -> (i32, i32, i32) {
    %c0_i32 = arith.constant 0 : i32
    %c0_i32_0 = arith.constant 0 : i32
    %c0_i32_1 = arith.constant 0 : i32
    return %arg1, %c0_i32, %c0_i32_0 : i32, i32, i32
  }
  func.func @transform_10(%arg0: i32, %arg1: i32) -> (i32, i32, i32) {
    %c0_i32 = arith.constant 0 : i32
    %c0_i32_0 = arith.constant 0 : i32
    %c0_i32_1 = arith.constant 0 : i32
    return %arg1, %c0_i32, %c0_i32_0 : i32, i32, i32
  }
  func.func @transform_11(%arg0: i32, %arg1: i32) -> (i32, i32, i32) {
    %c0_i32 = arith.constant 0 : i32
    %c0_i32_0 = arith.constant 0 : i32
    %c0_i32_1 = arith.constant 0 : i32
    return %arg1, %c0_i32, %c0_i32_0 : i32, i32, i32
  }
  func.func @transform_12(%arg0: i32, %arg1: i32) -> (i32, i32, i32) {
    %c0_i32 = arith.constant 0 : i32
    %c0_i32_0 = arith.constant 0 : i32
    %c0_i32_1 = arith.constant 0 : i32
    return %arg1, %c0_i32, %c0_i32_0 : i32, i32, i32
  }
  func.func @transform_13(%arg0: i32, %arg1: i32) -> (i32, i32, i32) {
    %c0_i32 = arith.constant 0 : i32
    %c0_i32_0 = arith.constant 0 : i32
    %c0_i32_1 = arith.constant 0 : i32
    return %arg1, %c0_i32, %c0_i32_0 : i32, i32, i32
  }
  func.func @transform_14(%arg0: i32, %arg1: i32) -> (i32, i32, i32) {
    %c0_i32 = arith.constant 0 : i32
    %c0_i32_0 = arith.constant 0 : i32
    %c0_i32_1 = arith.constant 0 : i32
    return %arg1, %c0_i32, %c0_i32_0 : i32, i32, i32
  }
  func.func @transform_15(%arg0: i32, %arg1: i32) -> (i32, i32, i32) {
    %c0_i32 = arith.constant 0 : i32
    %c0_i32_0 = arith.constant 0 : i32
    %c0_i32_1 = arith.constant 0 : i32
    return %arg1, %c0_i32, %c0_i32_0 : i32, i32, i32
  }
  func.func @transform_16(%arg0: i32, %arg1: i32) -> (i32, i32, i32) {
    %c0_i32 = arith.constant 0 : i32
    %c0_i32_0 = arith.constant 0 : i32
    %c0_i32_1 = arith.constant 0 : i32
    return %arg1, %c0_i32, %c0_i32_0 : i32, i32, i32
  }
  func.func @transform_17(%arg0: i32, %arg1: i32) -> (i32, i32, i32) {
    %c0_i32 = arith.constant 0 : i32
    %c0_i32_0 = arith.constant 0 : i32
    %c0_i32_1 = arith.constant 0 : i32
    return %arg1, %c0_i32, %c0_i32_0 : i32, i32, i32
  }
  func.func @transform_18(%arg0: i32, %arg1: i32) -> (i32, i32, i32) {
    %c0_i32 = arith.constant 0 : i32
    %c0_i32_0 = arith.constant 0 : i32
    %c0_i32_1 = arith.constant 0 : i32
    return %arg1, %c0_i32, %c0_i32_0 : i32, i32, i32
  }
  func.func @transform_19(%arg0: i32, %arg1: i32) -> (i32, i32, i32) {
    %c0_i32 = arith.constant 0 : i32
    %c0_i32_0 = arith.constant 0 : i32
    %c0_i32_1 = arith.constant 0 : i32
    return %arg0, %c0_i32, %c0_i32_0 : i32, i32, i32
  }
}

module attributes {stable_mosaic.version = 11 : i64} {
  func.func @_va_kernel(%arg0: i32, %arg1: memref<1x8x32xf32, #tpu.memory_space<vmem>>, %arg2: memref<1x8x32xf32, #tpu.memory_space<vmem>>, %arg3: memref<1x8x32xf32, #tpu.memory_space<vmem>>, %arg4: memref<1x8x1xf32, #tpu.memory_space<vmem>>, %arg5: memref<96x32xf32, #tpu.memory_space<vmem>>, %arg6: memref<1x32xf32, #tpu.memory_space<vmem>>, %arg7: memref<1x32xf32, #tpu.memory_space<vmem>>, %arg8: memref<1x32xf32, #tpu.memory_space<vmem>>, %arg9: memref<96x32xf32, #tpu.memory_space<vmem>>, %arg10: memref<1x32xf32, #tpu.memory_space<vmem>>, %arg11: memref<1x32xf32, #tpu.memory_space<vmem>>, %arg12: memref<1x32xf32, #tpu.memory_space<vmem>>, %arg13: memref<32x1xf32, #tpu.memory_space<vmem>>, %arg14: memref<1x1xf32, #tpu.memory_space<vmem>>, %arg15: memref<96x32xf32, #tpu.memory_space<vmem>>, %arg16: memref<1x32xf32, #tpu.memory_space<vmem>>, %arg17: memref<1x32xf32, #tpu.memory_space<vmem>>, %arg18: memref<1x32xf32, #tpu.memory_space<vmem>>, %arg19: memref<96x32xf32, #tpu.memory_space<vmem>>, %arg20: memref<1x32xf32, #tpu.memory_space<vmem>>, %arg21: memref<1x32xf32, #tpu.memory_space<vmem>>, %arg22: memref<1x32xf32, #tpu.memory_space<vmem>>, %arg23: memref<32x1xf32, #tpu.memory_space<vmem>>, %arg24: memref<1x1xf32, #tpu.memory_space<vmem>>, %arg25: memref<96x32xf32, #tpu.memory_space<vmem>>, %arg26: memref<1x32xf32, #tpu.memory_space<vmem>>, %arg27: memref<1x32xf32, #tpu.memory_space<vmem>>, %arg28: memref<1x32xf32, #tpu.memory_space<vmem>>, %arg29: memref<96x32xf32, #tpu.memory_space<vmem>>, %arg30: memref<1x32xf32, #tpu.memory_space<vmem>>, %arg31: memref<1x32xf32, #tpu.memory_space<vmem>>, %arg32: memref<1x32xf32, #tpu.memory_space<vmem>>, %arg33: memref<32x1xf32, #tpu.memory_space<vmem>>, %arg34: memref<1x1xf32, #tpu.memory_space<vmem>>, %arg35: memref<1x8x1xf32, #tpu.memory_space<vmem>>, %arg36: memref<1x8x1xf32, #tpu.memory_space<vmem>>, %arg37: memref<1x8x1xf32, #tpu.memory_space<vmem>>, %arg38: memref<1x8x32xf32, #tpu.memory_space<vmem>>) attributes {dimension_semantics = [#tpu.dimension_semantics<parallel>], iteration_bounds = array<i64: 2>, scalar_prefetch = 0 : i64, scratch_operands = 0 : i64, tpu.core_type = #tpu.core_type<tc>, window_params = [{transform_indices = @transform_0, window_bounds = array<i64: 1, 8, 32>}, {transform_indices = @transform_1, window_bounds = array<i64: 1, 8, 32>}, {transform_indices = @transform_2, window_bounds = array<i64: 1, 8, 32>}, {transform_indices = @transform_3, window_bounds = array<i64: 1, 8, 1>}, {pipeline_mode = #tpu.pipeline_mode<synchronous>, transform_indices = @transform_4, window_bounds = array<i64: 96, 32>}, {pipeline_mode = #tpu.pipeline_mode<synchronous>, transform_indices = @transform_5, window_bounds = array<i64: 1, 32>}, {pipeline_mode = #tpu.pipeline_mode<synchronous>, transform_indices = @transform_6, window_bounds = array<i64: 1, 32>}, {pipeline_mode = #tpu.pipeline_mode<synchronous>, transform_indices = @transform_7, window_bounds = array<i64: 1, 32>}, {pipeline_mode = #tpu.pipeline_mode<synchronous>, transform_indices = @transform_8, window_bounds = array<i64: 96, 32>}, {pipeline_mode = #tpu.pipeline_mode<synchronous>, transform_indices = @transform_9, window_bounds = array<i64: 1, 32>}, {pipeline_mode = #tpu.pipeline_mode<synchronous>, transform_indices = @transform_10, window_bounds = array<i64: 1, 32>}, {pipeline_mode = #tpu.pipeline_mode<synchronous>, transform_indices = @transform_11, window_bounds = array<i64: 1, 32>}, {pipeline_mode = #tpu.pipeline_mode<synchronous>, transform_indices = @transform_12, window_bounds = array<i64: 32, 1>}, {pipeline_mode = #tpu.pipeline_mode<synchronous>, transform_indices = @transform_13, window_bounds = array<i64: 1, 1>}, {pipeline_mode = #tpu.pipeline_mode<synchronous>, transform_indices = @transform_14, window_bounds = array<i64: 96, 32>}, {pipeline_mode = #tpu.pipeline_mode<synchronous>, transform_indices = @transform_15, window_bounds = array<i64: 1, 32>}, {pipeline_mode = #tpu.pipeline_mode<synchronous>, transform_indices = @transform_16, window_bounds = array<i64: 1, 32>}, {pipeline_mode = #tpu.pipeline_mode<synchronous>, transform_indices = @transform_17, window_bounds = array<i64: 1, 32>}, {pipeline_mode = #tpu.pipeline_mode<synchronous>, transform_indices = @transform_18, window_bounds = array<i64: 96, 32>}, {pipeline_mode = #tpu.pipeline_mode<synchronous>, transform_indices = @transform_19, window_bounds = array<i64: 1, 32>}, {pipeline_mode = #tpu.pipeline_mode<synchronous>, transform_indices = @transform_20, window_bounds = array<i64: 1, 32>}, {pipeline_mode = #tpu.pipeline_mode<synchronous>, transform_indices = @transform_21, window_bounds = array<i64: 1, 32>}, {pipeline_mode = #tpu.pipeline_mode<synchronous>, transform_indices = @transform_22, window_bounds = array<i64: 32, 1>}, {pipeline_mode = #tpu.pipeline_mode<synchronous>, transform_indices = @transform_23, window_bounds = array<i64: 1, 1>}, {pipeline_mode = #tpu.pipeline_mode<synchronous>, transform_indices = @transform_24, window_bounds = array<i64: 96, 32>}, {pipeline_mode = #tpu.pipeline_mode<synchronous>, transform_indices = @transform_25, window_bounds = array<i64: 1, 32>}, {pipeline_mode = #tpu.pipeline_mode<synchronous>, transform_indices = @transform_26, window_bounds = array<i64: 1, 32>}, {pipeline_mode = #tpu.pipeline_mode<synchronous>, transform_indices = @transform_27, window_bounds = array<i64: 1, 32>}, {pipeline_mode = #tpu.pipeline_mode<synchronous>, transform_indices = @transform_28, window_bounds = array<i64: 96, 32>}, {pipeline_mode = #tpu.pipeline_mode<synchronous>, transform_indices = @transform_29, window_bounds = array<i64: 1, 32>}, {pipeline_mode = #tpu.pipeline_mode<synchronous>, transform_indices = @transform_30, window_bounds = array<i64: 1, 32>}, {pipeline_mode = #tpu.pipeline_mode<synchronous>, transform_indices = @transform_31, window_bounds = array<i64: 1, 32>}, {pipeline_mode = #tpu.pipeline_mode<synchronous>, transform_indices = @transform_32, window_bounds = array<i64: 32, 1>}, {pipeline_mode = #tpu.pipeline_mode<synchronous>, transform_indices = @transform_33, window_bounds = array<i64: 1, 1>}, {transform_indices = @transform_34, window_bounds = array<i64: 1, 8, 1>}, {transform_indices = @transform_35, window_bounds = array<i64: 1, 8, 1>}, {transform_indices = @transform_36, window_bounds = array<i64: 1, 8, 1>}, {transform_indices = @transform_37, window_bounds = array<i64: 1, 8, 32>}]} {
    %c0 = arith.constant 0 : index
    %c0_0 = arith.constant 0 : index
    %c0_1 = arith.constant 0 : index
    %0 = vector.load %arg1[%c0, %c0_0, %c0_1] : memref<1x8x32xf32, #tpu.memory_space<vmem>>, vector<1x8x32xf32>
    %1 = vector.shape_cast %0 : vector<1x8x32xf32> to vector<8x32xf32>
    %c0_2 = arith.constant 0 : index
    %c0_3 = arith.constant 0 : index
    %c0_4 = arith.constant 0 : index
    %2 = vector.load %arg4[%c0_2, %c0_3, %c0_4] : memref<1x8x1xf32, #tpu.memory_space<vmem>>, vector<1x8x1xf32>
    %3 = vector.shape_cast %2 : vector<1x8x1xf32> to vector<8x1xf32>
    %c0_5 = arith.constant 0 : index
    %c0_6 = arith.constant 0 : index
    %4 = vector.load %arg5[%c0_5, %c0_6] : memref<96x32xf32, #tpu.memory_space<vmem>>, vector<96x32xf32>
    %c0_7 = arith.constant 0 : index
    %c0_8 = arith.constant 0 : index
    %5 = vector.load %arg6[%c0_7, %c0_8] : memref<1x32xf32, #tpu.memory_space<vmem>>, vector<1x32xf32>
    %6 = tpu.iota {dimensions = array<i32: 0>} : vector<8x8xi32>
    %7 = tpu.iota {dimensions = array<i32: 1>} : vector<8x8xi32>
    %c-1_i32 = arith.constant -1 : i32
    %8 = vector.broadcast %c-1_i32 : i32 to vector<8x8xi32>
    %9 = arith.addi %6, %8 : vector<8x8xi32>
    %10 = arith.cmpi eq, %7, %9 : vector<8x8xi32>
    %11 = arith.extui %10 : vector<8x8xi1> to vector<8x8xi32>
    %12 = arith.sitofp %11 : vector<8x8xi32> to vector<8x8xf32>
    %cst = arith.constant dense<0.000000e+00> : vector<8x32xf32>
    %13 = tpu.matmul %12, %1, %cst {dimension_numbers = #tpu.dot_dimension_numbers<[1], [0], [0], [1], [0, 0, 1, 1], [], []>} : vector<8x8xf32>, vector<8x32xf32>, vector<8x32xf32> -> vector<8x32xf32>
    %14 = vector.extract_strided_slice %4 {offsets = [0, 0], sizes = [32, 32], strides = [1, 1]} : vector<96x32xf32> to vector<32x32xf32>
    %15 = arith.truncf %13 : vector<8x32xf32> to vector<8x32xbf16>
    %16 = arith.truncf %14 : vector<32x32xf32> to vector<32x32xbf16>
    %cst_9 = arith.constant dense<0.000000e+00> : vector<8x32xf32>
    %17 = tpu.matmul %15, %16, %cst_9 {dimension_numbers = #tpu.dot_dimension_numbers<[1], [0], [0], [1], [0, 0, 1, 1], [], []>} : vector<8x32xbf16>, vector<32x32xbf16>, vector<8x32xf32> -> vector<8x32xf32>
    %18 = vector.extract_strided_slice %4 {offsets = [32, 0], sizes = [32, 32], strides = [1, 1]} : vector<96x32xf32> to vector<32x32xf32>
    %19 = arith.truncf %1 : vector<8x32xf32> to vector<8x32xbf16>
    %20 = arith.truncf %18 : vector<32x32xf32> to vector<32x32xbf16>
    %cst_10 = arith.constant dense<0.000000e+00> : vector<8x32xf32>
    %21 = tpu.matmul %19, %20, %cst_10 {dimension_numbers = #tpu.dot_dimension_numbers<[1], [0], [0], [1], [0, 0, 1, 1], [], []>} : vector<8x32xbf16>, vector<32x32xbf16>, vector<8x32xf32> -> vector<8x32xf32>
    %22 = arith.addf %17, %21 : vector<8x32xf32>
    %23 = tpu.iota {dimensions = array<i32: 0>} : vector<8x8xi32>
    %24 = tpu.iota {dimensions = array<i32: 1>} : vector<8x8xi32>
    %c1_i32 = arith.constant 1 : i32
    %25 = vector.broadcast %c1_i32 : i32 to vector<8x8xi32>
    %26 = arith.addi %23, %25 : vector<8x8xi32>
    %27 = arith.cmpi eq, %24, %26 : vector<8x8xi32>
    %28 = arith.extui %27 : vector<8x8xi1> to vector<8x8xi32>
    %29 = arith.sitofp %28 : vector<8x8xi32> to vector<8x8xf32>
    %cst_11 = arith.constant dense<0.000000e+00> : vector<8x32xf32>
    %30 = tpu.matmul %29, %1, %cst_11 {dimension_numbers = #tpu.dot_dimension_numbers<[1], [0], [0], [1], [0, 0, 1, 1], [], []>} : vector<8x8xf32>, vector<8x32xf32>, vector<8x32xf32> -> vector<8x32xf32>
    %31 = vector.extract_strided_slice %4 {offsets = [64, 0], sizes = [32, 32], strides = [1, 1]} : vector<96x32xf32> to vector<32x32xf32>
    %32 = arith.truncf %30 : vector<8x32xf32> to vector<8x32xbf16>
    %33 = arith.truncf %31 : vector<32x32xf32> to vector<32x32xbf16>
    %cst_12 = arith.constant dense<0.000000e+00> : vector<8x32xf32>
    %34 = tpu.matmul %32, %33, %cst_12 {dimension_numbers = #tpu.dot_dimension_numbers<[1], [0], [0], [1], [0, 0, 1, 1], [], []>} : vector<8x32xbf16>, vector<32x32xbf16>, vector<8x32xf32> -> vector<8x32xf32>
    %35 = arith.addf %22, %34 : vector<8x32xf32>
    %36 = vector.broadcast %5 : vector<1x32xf32> to vector<8x32xf32>
    %37 = arith.addf %35, %36 : vector<8x32xf32>
    %cst_13 = arith.constant 0.000000e+00 : f32
    %38 = vector.broadcast %cst_13 : f32 to vector<8x32xf32>
    %39 = arith.maximumf %37, %38 : vector<8x32xf32>
    %c0_14 = arith.constant 0 : index
    %c0_15 = arith.constant 0 : index
    %40 = vector.load %arg7[%c0_14, %c0_15] : memref<1x32xf32, #tpu.memory_space<vmem>>, vector<1x32xf32>
    %c0_16 = arith.constant 0 : index
    %c0_17 = arith.constant 0 : index
    %41 = vector.load %arg8[%c0_16, %c0_17] : memref<1x32xf32, #tpu.memory_space<vmem>>, vector<1x32xf32>
    %cst_18 = arith.constant dense<0.000000e+00> : vector<8xf32>
    %42 = vector.multi_reduction <add>, %39, %cst_18 [1] : vector<8x32xf32> to vector<8xf32>
    %43 = vector.shape_cast %42 : vector<8xf32> to vector<8x1xf32>
    %cst_19 = arith.constant 3.200000e+01 : f32
    %44 = vector.broadcast %cst_19 : f32 to vector<8x1xf32>
    %45 = arith.divf %43, %44 : vector<8x1xf32>
    %46 = vector.broadcast %45 : vector<8x1xf32> to vector<8x32xf32>
    %47 = arith.subf %39, %46 : vector<8x32xf32>
    %48 = arith.mulf %47, %47 : vector<8x32xf32>
    %cst_20 = arith.constant dense<0.000000e+00> : vector<8xf32>
    %49 = vector.multi_reduction <add>, %48, %cst_20 [1] : vector<8x32xf32> to vector<8xf32>
    %50 = vector.shape_cast %49 : vector<8xf32> to vector<8x1xf32>
    %cst_21 = arith.constant 3.200000e+01 : f32
    %51 = vector.broadcast %cst_21 : f32 to vector<8x1xf32>
    %52 = arith.divf %50, %51 : vector<8x1xf32>
    %53 = vector.broadcast %45 : vector<8x1xf32> to vector<8x32xf32>
    %54 = arith.subf %39, %53 : vector<8x32xf32>
    %cst_22 = arith.constant 9.99999974E-6 : f32
    %55 = vector.broadcast %cst_22 : f32 to vector<8x1xf32>
    %56 = arith.addf %52, %55 : vector<8x1xf32>
    %57 = math.rsqrt %56 : vector<8x1xf32>
    %58 = vector.broadcast %57 : vector<8x1xf32> to vector<8x32xf32>
    %59 = arith.mulf %54, %58 : vector<8x32xf32>
    %60 = vector.broadcast %40 : vector<1x32xf32> to vector<8x32xf32>
    %61 = arith.mulf %59, %60 : vector<8x32xf32>
    %62 = vector.broadcast %41 : vector<1x32xf32> to vector<8x32xf32>
    %63 = arith.addf %61, %62 : vector<8x32xf32>
    %c0_23 = arith.constant 0 : index
    %c0_24 = arith.constant 0 : index
    %64 = vector.load %arg9[%c0_23, %c0_24] : memref<96x32xf32, #tpu.memory_space<vmem>>, vector<96x32xf32>
    %c0_25 = arith.constant 0 : index
    %c0_26 = arith.constant 0 : index
    %65 = vector.load %arg10[%c0_25, %c0_26] : memref<1x32xf32, #tpu.memory_space<vmem>>, vector<1x32xf32>
    %66 = tpu.iota {dimensions = array<i32: 0>} : vector<8x8xi32>
    %67 = tpu.iota {dimensions = array<i32: 1>} : vector<8x8xi32>
    %c-1_i32_27 = arith.constant -1 : i32
    %68 = vector.broadcast %c-1_i32_27 : i32 to vector<8x8xi32>
    %69 = arith.addi %66, %68 : vector<8x8xi32>
    %70 = arith.cmpi eq, %67, %69 : vector<8x8xi32>
    %71 = arith.extui %70 : vector<8x8xi1> to vector<8x8xi32>
    %72 = arith.sitofp %71 : vector<8x8xi32> to vector<8x8xf32>
    %cst_28 = arith.constant dense<0.000000e+00> : vector<8x32xf32>
    %73 = tpu.matmul %72, %63, %cst_28 {dimension_numbers = #tpu.dot_dimension_numbers<[1], [0], [0], [1], [0, 0, 1, 1], [], []>} : vector<8x8xf32>, vector<8x32xf32>, vector<8x32xf32> -> vector<8x32xf32>
    %74 = vector.extract_strided_slice %64 {offsets = [0, 0], sizes = [32, 32], strides = [1, 1]} : vector<96x32xf32> to vector<32x32xf32>
    %75 = arith.truncf %73 : vector<8x32xf32> to vector<8x32xbf16>
    %76 = arith.truncf %74 : vector<32x32xf32> to vector<32x32xbf16>
    %cst_29 = arith.constant dense<0.000000e+00> : vector<8x32xf32>
    %77 = tpu.matmul %75, %76, %cst_29 {dimension_numbers = #tpu.dot_dimension_numbers<[1], [0], [0], [1], [0, 0, 1, 1], [], []>} : vector<8x32xbf16>, vector<32x32xbf16>, vector<8x32xf32> -> vector<8x32xf32>
    %78 = vector.extract_strided_slice %64 {offsets = [32, 0], sizes = [32, 32], strides = [1, 1]} : vector<96x32xf32> to vector<32x32xf32>
    %79 = arith.truncf %63 : vector<8x32xf32> to vector<8x32xbf16>
    %80 = arith.truncf %78 : vector<32x32xf32> to vector<32x32xbf16>
    %cst_30 = arith.constant dense<0.000000e+00> : vector<8x32xf32>
    %81 = tpu.matmul %79, %80, %cst_30 {dimension_numbers = #tpu.dot_dimension_numbers<[1], [0], [0], [1], [0, 0, 1, 1], [], []>} : vector<8x32xbf16>, vector<32x32xbf16>, vector<8x32xf32> -> vector<8x32xf32>
    %82 = arith.addf %77, %81 : vector<8x32xf32>
    %83 = tpu.iota {dimensions = array<i32: 0>} : vector<8x8xi32>
    %84 = tpu.iota {dimensions = array<i32: 1>} : vector<8x8xi32>
    %c1_i32_31 = arith.constant 1 : i32
    %85 = vector.broadcast %c1_i32_31 : i32 to vector<8x8xi32>
    %86 = arith.addi %83, %85 : vector<8x8xi32>
    %87 = arith.cmpi eq, %84, %86 : vector<8x8xi32>
    %88 = arith.extui %87 : vector<8x8xi1> to vector<8x8xi32>
    %89 = arith.sitofp %88 : vector<8x8xi32> to vector<8x8xf32>
    %cst_32 = arith.constant dense<0.000000e+00> : vector<8x32xf32>
    %90 = tpu.matmul %89, %63, %cst_32 {dimension_numbers = #tpu.dot_dimension_numbers<[1], [0], [0], [1], [0, 0, 1, 1], [], []>} : vector<8x8xf32>, vector<8x32xf32>, vector<8x32xf32> -> vector<8x32xf32>
    %91 = vector.extract_strided_slice %64 {offsets = [64, 0], sizes = [32, 32], strides = [1, 1]} : vector<96x32xf32> to vector<32x32xf32>
    %92 = arith.truncf %90 : vector<8x32xf32> to vector<8x32xbf16>
    %93 = arith.truncf %91 : vector<32x32xf32> to vector<32x32xbf16>
    %cst_33 = arith.constant dense<0.000000e+00> : vector<8x32xf32>
    %94 = tpu.matmul %92, %93, %cst_33 {dimension_numbers = #tpu.dot_dimension_numbers<[1], [0], [0], [1], [0, 0, 1, 1], [], []>} : vector<8x32xbf16>, vector<32x32xbf16>, vector<8x32xf32> -> vector<8x32xf32>
    %95 = arith.addf %82, %94 : vector<8x32xf32>
    %96 = vector.broadcast %65 : vector<1x32xf32> to vector<8x32xf32>
    %97 = arith.addf %95, %96 : vector<8x32xf32>
    %cst_34 = arith.constant 0.000000e+00 : f32
    %98 = vector.broadcast %cst_34 : f32 to vector<8x32xf32>
    %99 = arith.maximumf %97, %98 : vector<8x32xf32>
    %c0_35 = arith.constant 0 : index
    %c0_36 = arith.constant 0 : index
    %100 = vector.load %arg11[%c0_35, %c0_36] : memref<1x32xf32, #tpu.memory_space<vmem>>, vector<1x32xf32>
    %c0_37 = arith.constant 0 : index
    %c0_38 = arith.constant 0 : index
    %101 = vector.load %arg12[%c0_37, %c0_38] : memref<1x32xf32, #tpu.memory_space<vmem>>, vector<1x32xf32>
    %cst_39 = arith.constant dense<0.000000e+00> : vector<8xf32>
    %102 = vector.multi_reduction <add>, %99, %cst_39 [1] : vector<8x32xf32> to vector<8xf32>
    %103 = vector.shape_cast %102 : vector<8xf32> to vector<8x1xf32>
    %cst_40 = arith.constant 3.200000e+01 : f32
    %104 = vector.broadcast %cst_40 : f32 to vector<8x1xf32>
    %105 = arith.divf %103, %104 : vector<8x1xf32>
    %106 = vector.broadcast %105 : vector<8x1xf32> to vector<8x32xf32>
    %107 = arith.subf %99, %106 : vector<8x32xf32>
    %108 = arith.mulf %107, %107 : vector<8x32xf32>
    %cst_41 = arith.constant dense<0.000000e+00> : vector<8xf32>
    %109 = vector.multi_reduction <add>, %108, %cst_41 [1] : vector<8x32xf32> to vector<8xf32>
    %110 = vector.shape_cast %109 : vector<8xf32> to vector<8x1xf32>
    %cst_42 = arith.constant 3.200000e+01 : f32
    %111 = vector.broadcast %cst_42 : f32 to vector<8x1xf32>
    %112 = arith.divf %110, %111 : vector<8x1xf32>
    %113 = vector.broadcast %105 : vector<8x1xf32> to vector<8x32xf32>
    %114 = arith.subf %99, %113 : vector<8x32xf32>
    %cst_43 = arith.constant 9.99999974E-6 : f32
    %115 = vector.broadcast %cst_43 : f32 to vector<8x1xf32>
    %116 = arith.addf %112, %115 : vector<8x1xf32>
    %117 = math.rsqrt %116 : vector<8x1xf32>
    %118 = vector.broadcast %117 : vector<8x1xf32> to vector<8x32xf32>
    %119 = arith.mulf %114, %118 : vector<8x32xf32>
    %120 = vector.broadcast %100 : vector<1x32xf32> to vector<8x32xf32>
    %121 = arith.mulf %119, %120 : vector<8x32xf32>
    %122 = vector.broadcast %101 : vector<1x32xf32> to vector<8x32xf32>
    %123 = arith.addf %121, %122 : vector<8x32xf32>
    %c0_44 = arith.constant 0 : index
    %c0_45 = arith.constant 0 : index
    %124 = vector.load %arg13[%c0_44, %c0_45] : memref<32x1xf32, #tpu.memory_space<vmem>>, vector<32x1xf32>
    %125 = arith.truncf %123 : vector<8x32xf32> to vector<8x32xbf16>
    %126 = arith.truncf %124 : vector<32x1xf32> to vector<32x1xbf16>
    %cst_46 = arith.constant dense<0.000000e+00> : vector<8x1xf32>
    %127 = tpu.matmul %125, %126, %cst_46 {dimension_numbers = #tpu.dot_dimension_numbers<[1], [0], [0], [1], [0, 0, 1, 1], [], []>} : vector<8x32xbf16>, vector<32x1xbf16>, vector<8x1xf32> -> vector<8x1xf32>
    %c0_47 = arith.constant 0 : index
    %c0_48 = arith.constant 0 : index
    %128 = vector.load %arg14[%c0_47, %c0_48] : memref<1x1xf32, #tpu.memory_space<vmem>>, vector<1x1xf32>
    %129 = vector.broadcast %128 : vector<1x1xf32> to vector<8x1xf32>
    %130 = arith.addf %127, %129 : vector<8x1xf32>
    %131 = arith.mulf %130, %3 : vector<8x1xf32>
    %c0_49 = arith.constant 0 : index
    %c0_50 = arith.constant 0 : index
    %c0_51 = arith.constant 0 : index
    %132 = vector.load %arg35[%c0_49, %c0_50, %c0_51] : memref<1x8x1xf32, #tpu.memory_space<vmem>>, vector<1x8x1xf32>
    %133 = vector.shape_cast %132 : vector<1x8x1xf32> to vector<8x1xf32>
    %134 = vector.shape_cast %131 : vector<8x1xf32> to vector<1x8x1xf32>
    tpu.vector_store %arg35[%c0_49, %c0_50, %c0_51], %134 {strides = array<i32>} : memref<1x8x1xf32, #tpu.memory_space<vmem>>, vector<1x8x1xf32>,
    %c0_52 = arith.constant 0 : index
    %c0_53 = arith.constant 0 : index
    %135 = vector.load %arg15[%c0_52, %c0_53] : memref<96x32xf32, #tpu.memory_space<vmem>>, vector<96x32xf32>
    %c0_54 = arith.constant 0 : index
    %c0_55 = arith.constant 0 : index
    %136 = vector.load %arg16[%c0_54, %c0_55] : memref<1x32xf32, #tpu.memory_space<vmem>>, vector<1x32xf32>
    %137 = tpu.iota {dimensions = array<i32: 0>} : vector<8x8xi32>
    %138 = tpu.iota {dimensions = array<i32: 1>} : vector<8x8xi32>
    %c-1_i32_56 = arith.constant -1 : i32
    %139 = vector.broadcast %c-1_i32_56 : i32 to vector<8x8xi32>
    %140 = arith.addi %137, %139 : vector<8x8xi32>
    %141 = arith.cmpi eq, %138, %140 : vector<8x8xi32>
    %142 = arith.extui %141 : vector<8x8xi1> to vector<8x8xi32>
    %143 = arith.sitofp %142 : vector<8x8xi32> to vector<8x8xf32>
    %cst_57 = arith.constant dense<0.000000e+00> : vector<8x32xf32>
    %144 = tpu.matmul %143, %1, %cst_57 {dimension_numbers = #tpu.dot_dimension_numbers<[1], [0], [0], [1], [0, 0, 1, 1], [], []>} : vector<8x8xf32>, vector<8x32xf32>, vector<8x32xf32> -> vector<8x32xf32>
    %145 = vector.extract_strided_slice %135 {offsets = [0, 0], sizes = [32, 32], strides = [1, 1]} : vector<96x32xf32> to vector<32x32xf32>
    %146 = arith.truncf %144 : vector<8x32xf32> to vector<8x32xbf16>
    %147 = arith.truncf %145 : vector<32x32xf32> to vector<32x32xbf16>
    %cst_58 = arith.constant dense<0.000000e+00> : vector<8x32xf32>
    %148 = tpu.matmul %146, %147, %cst_58 {dimension_numbers = #tpu.dot_dimension_numbers<[1], [0], [0], [1], [0, 0, 1, 1], [], []>} : vector<8x32xbf16>, vector<32x32xbf16>, vector<8x32xf32> -> vector<8x32xf32>
    %149 = vector.extract_strided_slice %135 {offsets = [32, 0], sizes = [32, 32], strides = [1, 1]} : vector<96x32xf32> to vector<32x32xf32>
    %150 = arith.truncf %1 : vector<8x32xf32> to vector<8x32xbf16>
    %151 = arith.truncf %149 : vector<32x32xf32> to vector<32x32xbf16>
    %cst_59 = arith.constant dense<0.000000e+00> : vector<8x32xf32>
    %152 = tpu.matmul %150, %151, %cst_59 {dimension_numbers = #tpu.dot_dimension_numbers<[1], [0], [0], [1], [0, 0, 1, 1], [], []>} : vector<8x32xbf16>, vector<32x32xbf16>, vector<8x32xf32> -> vector<8x32xf32>
    %153 = arith.addf %148, %152 : vector<8x32xf32>
    %154 = tpu.iota {dimensions = array<i32: 0>} : vector<8x8xi32>
    %155 = tpu.iota {dimensions = array<i32: 1>} : vector<8x8xi32>
    %c1_i32_60 = arith.constant 1 : i32
    %156 = vector.broadcast %c1_i32_60 : i32 to vector<8x8xi32>
    %157 = arith.addi %154, %156 : vector<8x8xi32>
    %158 = arith.cmpi eq, %155, %157 : vector<8x8xi32>
    %159 = arith.extui %158 : vector<8x8xi1> to vector<8x8xi32>
    %160 = arith.sitofp %159 : vector<8x8xi32> to vector<8x8xf32>
    %cst_61 = arith.constant dense<0.000000e+00> : vector<8x32xf32>
    %161 = tpu.matmul %160, %1, %cst_61 {dimension_numbers = #tpu.dot_dimension_numbers<[1], [0], [0], [1], [0, 0, 1, 1], [], []>} : vector<8x8xf32>, vector<8x32xf32>, vector<8x32xf32> -> vector<8x32xf32>
    %162 = vector.extract_strided_slice %135 {offsets = [64, 0], sizes = [32, 32], strides = [1, 1]} : vector<96x32xf32> to vector<32x32xf32>
    %163 = arith.truncf %161 : vector<8x32xf32> to vector<8x32xbf16>
    %164 = arith.truncf %162 : vector<32x32xf32> to vector<32x32xbf16>
    %cst_62 = arith.constant dense<0.000000e+00> : vector<8x32xf32>
    %165 = tpu.matmul %163, %164, %cst_62 {dimension_numbers = #tpu.dot_dimension_numbers<[1], [0], [0], [1], [0, 0, 1, 1], [], []>} : vector<8x32xbf16>, vector<32x32xbf16>, vector<8x32xf32> -> vector<8x32xf32>
    %166 = arith.addf %153, %165 : vector<8x32xf32>
    %167 = vector.broadcast %136 : vector<1x32xf32> to vector<8x32xf32>
    %168 = arith.addf %166, %167 : vector<8x32xf32>
    %cst_63 = arith.constant 0.000000e+00 : f32
    %169 = vector.broadcast %cst_63 : f32 to vector<8x32xf32>
    %170 = arith.maximumf %168, %169 : vector<8x32xf32>
    %c0_64 = arith.constant 0 : index
    %c0_65 = arith.constant 0 : index
    %171 = vector.load %arg17[%c0_64, %c0_65] : memref<1x32xf32, #tpu.memory_space<vmem>>, vector<1x32xf32>
    %c0_66 = arith.constant 0 : index
    %c0_67 = arith.constant 0 : index
    %172 = vector.load %arg18[%c0_66, %c0_67] : memref<1x32xf32, #tpu.memory_space<vmem>>, vector<1x32xf32>
    %cst_68 = arith.constant dense<0.000000e+00> : vector<8xf32>
    %173 = vector.multi_reduction <add>, %170, %cst_68 [1] : vector<8x32xf32> to vector<8xf32>
    %174 = vector.shape_cast %173 : vector<8xf32> to vector<8x1xf32>
    %cst_69 = arith.constant 3.200000e+01 : f32
    %175 = vector.broadcast %cst_69 : f32 to vector<8x1xf32>
    %176 = arith.divf %174, %175 : vector<8x1xf32>
    %177 = vector.broadcast %176 : vector<8x1xf32> to vector<8x32xf32>
    %178 = arith.subf %170, %177 : vector<8x32xf32>
    %179 = arith.mulf %178, %178 : vector<8x32xf32>
    %cst_70 = arith.constant dense<0.000000e+00> : vector<8xf32>
    %180 = vector.multi_reduction <add>, %179, %cst_70 [1] : vector<8x32xf32> to vector<8xf32>
    %181 = vector.shape_cast %180 : vector<8xf32> to vector<8x1xf32>
    %cst_71 = arith.constant 3.200000e+01 : f32
    %182 = vector.broadcast %cst_71 : f32 to vector<8x1xf32>
    %183 = arith.divf %181, %182 : vector<8x1xf32>
    %184 = vector.broadcast %176 : vector<8x1xf32> to vector<8x32xf32>
    %185 = arith.subf %170, %184 : vector<8x32xf32>
    %cst_72 = arith.constant 9.99999974E-6 : f32
    %186 = vector.broadcast %cst_72 : f32 to vector<8x1xf32>
    %187 = arith.addf %183, %186 : vector<8x1xf32>
    %188 = math.rsqrt %187 : vector<8x1xf32>
    %189 = vector.broadcast %188 : vector<8x1xf32> to vector<8x32xf32>
    %190 = arith.mulf %185, %189 : vector<8x32xf32>
    %191 = vector.broadcast %171 : vector<1x32xf32> to vector<8x32xf32>
    %192 = arith.mulf %190, %191 : vector<8x32xf32>
    %193 = vector.broadcast %172 : vector<1x32xf32> to vector<8x32xf32>
    %194 = arith.addf %192, %193 : vector<8x32xf32>
    %c0_73 = arith.constant 0 : index
    %c0_74 = arith.constant 0 : index
    %195 = vector.load %arg19[%c0_73, %c0_74] : memref<96x32xf32, #tpu.memory_space<vmem>>, vector<96x32xf32>
    %c0_75 = arith.constant 0 : index
    %c0_76 = arith.constant 0 : index
    %196 = vector.load %arg20[%c0_75, %c0_76] : memref<1x32xf32, #tpu.memory_space<vmem>>, vector<1x32xf32>
    %197 = tpu.iota {dimensions = array<i32: 0>} : vector<8x8xi32>
    %198 = tpu.iota {dimensions = array<i32: 1>} : vector<8x8xi32>
    %c-1_i32_77 = arith.constant -1 : i32
    %199 = vector.broadcast %c-1_i32_77 : i32 to vector<8x8xi32>
    %200 = arith.addi %197, %199 : vector<8x8xi32>
    %201 = arith.cmpi eq, %198, %200 : vector<8x8xi32>
    %202 = arith.extui %201 : vector<8x8xi1> to vector<8x8xi32>
    %203 = arith.sitofp %202 : vector<8x8xi32> to vector<8x8xf32>
    %cst_78 = arith.constant dense<0.000000e+00> : vector<8x32xf32>
    %204 = tpu.matmul %203, %194, %cst_78 {dimension_numbers = #tpu.dot_dimension_numbers<[1], [0], [0], [1], [0, 0, 1, 1], [], []>} : vector<8x8xf32>, vector<8x32xf32>, vector<8x32xf32> -> vector<8x32xf32>
    %205 = vector.extract_strided_slice %195 {offsets = [0, 0], sizes = [32, 32], strides = [1, 1]} : vector<96x32xf32> to vector<32x32xf32>
    %206 = arith.truncf %204 : vector<8x32xf32> to vector<8x32xbf16>
    %207 = arith.truncf %205 : vector<32x32xf32> to vector<32x32xbf16>
    %cst_79 = arith.constant dense<0.000000e+00> : vector<8x32xf32>
    %208 = tpu.matmul %206, %207, %cst_79 {dimension_numbers = #tpu.dot_dimension_numbers<[1], [0], [0], [1], [0, 0, 1, 1], [], []>} : vector<8x32xbf16>, vector<32x32xbf16>, vector<8x32xf32> -> vector<8x32xf32>
    %209 = vector.extract_strided_slice %195 {offsets = [32, 0], sizes = [32, 32], strides = [1, 1]} : vector<96x32xf32> to vector<32x32xf32>
    %210 = arith.truncf %194 : vector<8x32xf32> to vector<8x32xbf16>
    %211 = arith.truncf %209 : vector<32x32xf32> to vector<32x32xbf16>
    %cst_80 = arith.constant dense<0.000000e+00> : vector<8x32xf32>
    %212 = tpu.matmul %210, %211, %cst_80 {dimension_numbers = #tpu.dot_dimension_numbers<[1], [0], [0], [1], [0, 0, 1, 1], [], []>} : vector<8x32xbf16>, vector<32x32xbf16>, vector<8x32xf32> -> vector<8x32xf32>
    %213 = arith.addf %208, %212 : vector<8x32xf32>
    %214 = tpu.iota {dimensions = array<i32: 0>} : vector<8x8xi32>
    %215 = tpu.iota {dimensions = array<i32: 1>} : vector<8x8xi32>
    %c1_i32_81 = arith.constant 1 : i32
    %216 = vector.broadcast %c1_i32_81 : i32 to vector<8x8xi32>
    %217 = arith.addi %214, %216 : vector<8x8xi32>
    %218 = arith.cmpi eq, %215, %217 : vector<8x8xi32>
    %219 = arith.extui %218 : vector<8x8xi1> to vector<8x8xi32>
    %220 = arith.sitofp %219 : vector<8x8xi32> to vector<8x8xf32>
    %cst_82 = arith.constant dense<0.000000e+00> : vector<8x32xf32>
    %221 = tpu.matmul %220, %194, %cst_82 {dimension_numbers = #tpu.dot_dimension_numbers<[1], [0], [0], [1], [0, 0, 1, 1], [], []>} : vector<8x8xf32>, vector<8x32xf32>, vector<8x32xf32> -> vector<8x32xf32>
    %222 = vector.extract_strided_slice %195 {offsets = [64, 0], sizes = [32, 32], strides = [1, 1]} : vector<96x32xf32> to vector<32x32xf32>
    %223 = arith.truncf %221 : vector<8x32xf32> to vector<8x32xbf16>
    %224 = arith.truncf %222 : vector<32x32xf32> to vector<32x32xbf16>
    %cst_83 = arith.constant dense<0.000000e+00> : vector<8x32xf32>
    %225 = tpu.matmul %223, %224, %cst_83 {dimension_numbers = #tpu.dot_dimension_numbers<[1], [0], [0], [1], [0, 0, 1, 1], [], []>} : vector<8x32xbf16>, vector<32x32xbf16>, vector<8x32xf32> -> vector<8x32xf32>
    %226 = arith.addf %213, %225 : vector<8x32xf32>
    %227 = vector.broadcast %196 : vector<1x32xf32> to vector<8x32xf32>
    %228 = arith.addf %226, %227 : vector<8x32xf32>
    %cst_84 = arith.constant 0.000000e+00 : f32
    %229 = vector.broadcast %cst_84 : f32 to vector<8x32xf32>
    %230 = arith.maximumf %228, %229 : vector<8x32xf32>
    %c0_85 = arith.constant 0 : index
    %c0_86 = arith.constant 0 : index
    %231 = vector.load %arg21[%c0_85, %c0_86] : memref<1x32xf32, #tpu.memory_space<vmem>>, vector<1x32xf32>
    %c0_87 = arith.constant 0 : index
    %c0_88 = arith.constant 0 : index
    %232 = vector.load %arg22[%c0_87, %c0_88] : memref<1x32xf32, #tpu.memory_space<vmem>>, vector<1x32xf32>
    %cst_89 = arith.constant dense<0.000000e+00> : vector<8xf32>
    %233 = vector.multi_reduction <add>, %230, %cst_89 [1] : vector<8x32xf32> to vector<8xf32>
    %234 = vector.shape_cast %233 : vector<8xf32> to vector<8x1xf32>
    %cst_90 = arith.constant 3.200000e+01 : f32
    %235 = vector.broadcast %cst_90 : f32 to vector<8x1xf32>
    %236 = arith.divf %234, %235 : vector<8x1xf32>
    %237 = vector.broadcast %236 : vector<8x1xf32> to vector<8x32xf32>
    %238 = arith.subf %230, %237 : vector<8x32xf32>
    %239 = arith.mulf %238, %238 : vector<8x32xf32>
    %cst_91 = arith.constant dense<0.000000e+00> : vector<8xf32>
    %240 = vector.multi_reduction <add>, %239, %cst_91 [1] : vector<8x32xf32> to vector<8xf32>
    %241 = vector.shape_cast %240 : vector<8xf32> to vector<8x1xf32>
    %cst_92 = arith.constant 3.200000e+01 : f32
    %242 = vector.broadcast %cst_92 : f32 to vector<8x1xf32>
    %243 = arith.divf %241, %242 : vector<8x1xf32>
    %244 = vector.broadcast %236 : vector<8x1xf32> to vector<8x32xf32>
    %245 = arith.subf %230, %244 : vector<8x32xf32>
    %cst_93 = arith.constant 9.99999974E-6 : f32
    %246 = vector.broadcast %cst_93 : f32 to vector<8x1xf32>
    %247 = arith.addf %243, %246 : vector<8x1xf32>
    %248 = math.rsqrt %247 : vector<8x1xf32>
    %249 = vector.broadcast %248 : vector<8x1xf32> to vector<8x32xf32>
    %250 = arith.mulf %245, %249 : vector<8x32xf32>
    %251 = vector.broadcast %231 : vector<1x32xf32> to vector<8x32xf32>
    %252 = arith.mulf %250, %251 : vector<8x32xf32>
    %253 = vector.broadcast %232 : vector<1x32xf32> to vector<8x32xf32>
    %254 = arith.addf %252, %253 : vector<8x32xf32>
    %c0_94 = arith.constant 0 : index
    %c0_95 = arith.constant 0 : index
    %255 = vector.load %arg23[%c0_94, %c0_95] : memref<32x1xf32, #tpu.memory_space<vmem>>, vector<32x1xf32>
    %256 = arith.truncf %254 : vector<8x32xf32> to vector<8x32xbf16>
    %257 = arith.truncf %255 : vector<32x1xf32> to vector<32x1xbf16>
    %cst_96 = arith.constant dense<0.000000e+00> : vector<8x1xf32>
    %258 = tpu.matmul %256, %257, %cst_96 {dimension_numbers = #tpu.dot_dimension_numbers<[1], [0], [0], [1], [0, 0, 1, 1], [], []>} : vector<8x32xbf16>, vector<32x1xbf16>, vector<8x1xf32> -> vector<8x1xf32>
    %c0_97 = arith.constant 0 : index
    %c0_98 = arith.constant 0 : index
    %259 = vector.load %arg24[%c0_97, %c0_98] : memref<1x1xf32, #tpu.memory_space<vmem>>, vector<1x1xf32>
    %260 = vector.broadcast %259 : vector<1x1xf32> to vector<8x1xf32>
    %261 = arith.addf %258, %260 : vector<8x1xf32>
    %262 = arith.mulf %261, %3 : vector<8x1xf32>
    %c0_99 = arith.constant 0 : index
    %c0_100 = arith.constant 0 : index
    %c0_101 = arith.constant 0 : index
    %263 = vector.load %arg36[%c0_99, %c0_100, %c0_101] : memref<1x8x1xf32, #tpu.memory_space<vmem>>, vector<1x8x1xf32>
    %264 = vector.shape_cast %263 : vector<1x8x1xf32> to vector<8x1xf32>
    %265 = vector.shape_cast %262 : vector<8x1xf32> to vector<1x8x1xf32>
    tpu.vector_store %arg36[%c0_99, %c0_100, %c0_101], %265 {strides = array<i32>} : memref<1x8x1xf32, #tpu.memory_space<vmem>>, vector<1x8x1xf32>,
    %c0_102 = arith.constant 0 : index
    %c0_103 = arith.constant 0 : index
    %c0_104 = arith.constant 0 : index
    %266 = vector.load %arg2[%c0_102, %c0_103, %c0_104] : memref<1x8x32xf32, #tpu.memory_space<vmem>>, vector<1x8x32xf32>
    %267 = vector.shape_cast %266 : vector<1x8x32xf32> to vector<8x32xf32>
    %268 = arith.addf %1, %267 : vector<8x32xf32>
    %c0_105 = arith.constant 0 : index
    %c0_106 = arith.constant 0 : index
    %269 = vector.load %arg25[%c0_105, %c0_106] : memref<96x32xf32, #tpu.memory_space<vmem>>, vector<96x32xf32>
    %c0_107 = arith.constant 0 : index
    %c0_108 = arith.constant 0 : index
    %270 = vector.load %arg26[%c0_107, %c0_108] : memref<1x32xf32, #tpu.memory_space<vmem>>, vector<1x32xf32>
    %271 = tpu.iota {dimensions = array<i32: 0>} : vector<8x8xi32>
    %272 = tpu.iota {dimensions = array<i32: 1>} : vector<8x8xi32>
    %c-1_i32_109 = arith.constant -1 : i32
    %273 = vector.broadcast %c-1_i32_109 : i32 to vector<8x8xi32>
    %274 = arith.addi %271, %273 : vector<8x8xi32>
    %275 = arith.cmpi eq, %272, %274 : vector<8x8xi32>
    %276 = arith.extui %275 : vector<8x8xi1> to vector<8x8xi32>
    %277 = arith.sitofp %276 : vector<8x8xi32> to vector<8x8xf32>
    %cst_110 = arith.constant dense<0.000000e+00> : vector<8x32xf32>
    %278 = tpu.matmul %277, %268, %cst_110 {dimension_numbers = #tpu.dot_dimension_numbers<[1], [0], [0], [1], [0, 0, 1, 1], [], []>} : vector<8x8xf32>, vector<8x32xf32>, vector<8x32xf32> -> vector<8x32xf32>
    %279 = vector.extract_strided_slice %269 {offsets = [0, 0], sizes = [32, 32], strides = [1, 1]} : vector<96x32xf32> to vector<32x32xf32>
    %280 = arith.truncf %278 : vector<8x32xf32> to vector<8x32xbf16>
    %281 = arith.truncf %279 : vector<32x32xf32> to vector<32x32xbf16>
    %cst_111 = arith.constant dense<0.000000e+00> : vector<8x32xf32>
    %282 = tpu.matmul %280, %281, %cst_111 {dimension_numbers = #tpu.dot_dimension_numbers<[1], [0], [0], [1], [0, 0, 1, 1], [], []>} : vector<8x32xbf16>, vector<32x32xbf16>, vector<8x32xf32> -> vector<8x32xf32>
    %283 = vector.extract_strided_slice %269 {offsets = [32, 0], sizes = [32, 32], strides = [1, 1]} : vector<96x32xf32> to vector<32x32xf32>
    %284 = arith.truncf %268 : vector<8x32xf32> to vector<8x32xbf16>
    %285 = arith.truncf %283 : vector<32x32xf32> to vector<32x32xbf16>
    %cst_112 = arith.constant dense<0.000000e+00> : vector<8x32xf32>
    %286 = tpu.matmul %284, %285, %cst_112 {dimension_numbers = #tpu.dot_dimension_numbers<[1], [0], [0], [1], [0, 0, 1, 1], [], []>} : vector<8x32xbf16>, vector<32x32xbf16>, vector<8x32xf32> -> vector<8x32xf32>
    %287 = arith.addf %282, %286 : vector<8x32xf32>
    %288 = tpu.iota {dimensions = array<i32: 0>} : vector<8x8xi32>
    %289 = tpu.iota {dimensions = array<i32: 1>} : vector<8x8xi32>
    %c1_i32_113 = arith.constant 1 : i32
    %290 = vector.broadcast %c1_i32_113 : i32 to vector<8x8xi32>
    %291 = arith.addi %288, %290 : vector<8x8xi32>
    %292 = arith.cmpi eq, %289, %291 : vector<8x8xi32>
    %293 = arith.extui %292 : vector<8x8xi1> to vector<8x8xi32>
    %294 = arith.sitofp %293 : vector<8x8xi32> to vector<8x8xf32>
    %cst_114 = arith.constant dense<0.000000e+00> : vector<8x32xf32>
    %295 = tpu.matmul %294, %268, %cst_114 {dimension_numbers = #tpu.dot_dimension_numbers<[1], [0], [0], [1], [0, 0, 1, 1], [], []>} : vector<8x8xf32>, vector<8x32xf32>, vector<8x32xf32> -> vector<8x32xf32>
    %296 = vector.extract_strided_slice %269 {offsets = [64, 0], sizes = [32, 32], strides = [1, 1]} : vector<96x32xf32> to vector<32x32xf32>
    %297 = arith.truncf %295 : vector<8x32xf32> to vector<8x32xbf16>
    %298 = arith.truncf %296 : vector<32x32xf32> to vector<32x32xbf16>
    %cst_115 = arith.constant dense<0.000000e+00> : vector<8x32xf32>
    %299 = tpu.matmul %297, %298, %cst_115 {dimension_numbers = #tpu.dot_dimension_numbers<[1], [0], [0], [1], [0, 0, 1, 1], [], []>} : vector<8x32xbf16>, vector<32x32xbf16>, vector<8x32xf32> -> vector<8x32xf32>
    %300 = arith.addf %287, %299 : vector<8x32xf32>
    %301 = vector.broadcast %270 : vector<1x32xf32> to vector<8x32xf32>
    %302 = arith.addf %300, %301 : vector<8x32xf32>
    %cst_116 = arith.constant 0.000000e+00 : f32
    %303 = vector.broadcast %cst_116 : f32 to vector<8x32xf32>
    %304 = arith.maximumf %302, %303 : vector<8x32xf32>
    %c0_117 = arith.constant 0 : index
    %c0_118 = arith.constant 0 : index
    %305 = vector.load %arg27[%c0_117, %c0_118] : memref<1x32xf32, #tpu.memory_space<vmem>>, vector<1x32xf32>
    %c0_119 = arith.constant 0 : index
    %c0_120 = arith.constant 0 : index
    %306 = vector.load %arg28[%c0_119, %c0_120] : memref<1x32xf32, #tpu.memory_space<vmem>>, vector<1x32xf32>
    %cst_121 = arith.constant dense<0.000000e+00> : vector<8xf32>
    %307 = vector.multi_reduction <add>, %304, %cst_121 [1] : vector<8x32xf32> to vector<8xf32>
    %308 = vector.shape_cast %307 : vector<8xf32> to vector<8x1xf32>
    %cst_122 = arith.constant 3.200000e+01 : f32
    %309 = vector.broadcast %cst_122 : f32 to vector<8x1xf32>
    %310 = arith.divf %308, %309 : vector<8x1xf32>
    %311 = vector.broadcast %310 : vector<8x1xf32> to vector<8x32xf32>
    %312 = arith.subf %304, %311 : vector<8x32xf32>
    %313 = arith.mulf %312, %312 : vector<8x32xf32>
    %cst_123 = arith.constant dense<0.000000e+00> : vector<8xf32>
    %314 = vector.multi_reduction <add>, %313, %cst_123 [1] : vector<8x32xf32> to vector<8xf32>
    %315 = vector.shape_cast %314 : vector<8xf32> to vector<8x1xf32>
    %cst_124 = arith.constant 3.200000e+01 : f32
    %316 = vector.broadcast %cst_124 : f32 to vector<8x1xf32>
    %317 = arith.divf %315, %316 : vector<8x1xf32>
    %318 = vector.broadcast %310 : vector<8x1xf32> to vector<8x32xf32>
    %319 = arith.subf %304, %318 : vector<8x32xf32>
    %cst_125 = arith.constant 9.99999974E-6 : f32
    %320 = vector.broadcast %cst_125 : f32 to vector<8x1xf32>
    %321 = arith.addf %317, %320 : vector<8x1xf32>
    %322 = math.rsqrt %321 : vector<8x1xf32>
    %323 = vector.broadcast %322 : vector<8x1xf32> to vector<8x32xf32>
    %324 = arith.mulf %319, %323 : vector<8x32xf32>
    %325 = vector.broadcast %305 : vector<1x32xf32> to vector<8x32xf32>
    %326 = arith.mulf %324, %325 : vector<8x32xf32>
    %327 = vector.broadcast %306 : vector<1x32xf32> to vector<8x32xf32>
    %328 = arith.addf %326, %327 : vector<8x32xf32>
    %c0_126 = arith.constant 0 : index
    %c0_127 = arith.constant 0 : index
    %329 = vector.load %arg29[%c0_126, %c0_127] : memref<96x32xf32, #tpu.memory_space<vmem>>, vector<96x32xf32>
    %c0_128 = arith.constant 0 : index
    %c0_129 = arith.constant 0 : index
    %330 = vector.load %arg30[%c0_128, %c0_129] : memref<1x32xf32, #tpu.memory_space<vmem>>, vector<1x32xf32>
    %331 = tpu.iota {dimensions = array<i32: 0>} : vector<8x8xi32>
    %332 = tpu.iota {dimensions = array<i32: 1>} : vector<8x8xi32>
    %c-1_i32_130 = arith.constant -1 : i32
    %333 = vector.broadcast %c-1_i32_130 : i32 to vector<8x8xi32>
    %334 = arith.addi %331, %333 : vector<8x8xi32>
    %335 = arith.cmpi eq, %332, %334 : vector<8x8xi32>
    %336 = arith.extui %335 : vector<8x8xi1> to vector<8x8xi32>
    %337 = arith.sitofp %336 : vector<8x8xi32> to vector<8x8xf32>
    %cst_131 = arith.constant dense<0.000000e+00> : vector<8x32xf32>
    %338 = tpu.matmul %337, %328, %cst_131 {dimension_numbers = #tpu.dot_dimension_numbers<[1], [0], [0], [1], [0, 0, 1, 1], [], []>} : vector<8x8xf32>, vector<8x32xf32>, vector<8x32xf32> -> vector<8x32xf32>
    %339 = vector.extract_strided_slice %329 {offsets = [0, 0], sizes = [32, 32], strides = [1, 1]} : vector<96x32xf32> to vector<32x32xf32>
    %340 = arith.truncf %338 : vector<8x32xf32> to vector<8x32xbf16>
    %341 = arith.truncf %339 : vector<32x32xf32> to vector<32x32xbf16>
    %cst_132 = arith.constant dense<0.000000e+00> : vector<8x32xf32>
    %342 = tpu.matmul %340, %341, %cst_132 {dimension_numbers = #tpu.dot_dimension_numbers<[1], [0], [0], [1], [0, 0, 1, 1], [], []>} : vector<8x32xbf16>, vector<32x32xbf16>, vector<8x32xf32> -> vector<8x32xf32>
    %343 = vector.extract_strided_slice %329 {offsets = [32, 0], sizes = [32, 32], strides = [1, 1]} : vector<96x32xf32> to vector<32x32xf32>
    %344 = arith.truncf %328 : vector<8x32xf32> to vector<8x32xbf16>
    %345 = arith.truncf %343 : vector<32x32xf32> to vector<32x32xbf16>
    %cst_133 = arith.constant dense<0.000000e+00> : vector<8x32xf32>
    %346 = tpu.matmul %344, %345, %cst_133 {dimension_numbers = #tpu.dot_dimension_numbers<[1], [0], [0], [1], [0, 0, 1, 1], [], []>} : vector<8x32xbf16>, vector<32x32xbf16>, vector<8x32xf32> -> vector<8x32xf32>
    %347 = arith.addf %342, %346 : vector<8x32xf32>
    %348 = tpu.iota {dimensions = array<i32: 0>} : vector<8x8xi32>
    %349 = tpu.iota {dimensions = array<i32: 1>} : vector<8x8xi32>
    %c1_i32_134 = arith.constant 1 : i32
    %350 = vector.broadcast %c1_i32_134 : i32 to vector<8x8xi32>
    %351 = arith.addi %348, %350 : vector<8x8xi32>
    %352 = arith.cmpi eq, %349, %351 : vector<8x8xi32>
    %353 = arith.extui %352 : vector<8x8xi1> to vector<8x8xi32>
    %354 = arith.sitofp %353 : vector<8x8xi32> to vector<8x8xf32>
    %cst_135 = arith.constant dense<0.000000e+00> : vector<8x32xf32>
    %355 = tpu.matmul %354, %328, %cst_135 {dimension_numbers = #tpu.dot_dimension_numbers<[1], [0], [0], [1], [0, 0, 1, 1], [], []>} : vector<8x8xf32>, vector<8x32xf32>, vector<8x32xf32> -> vector<8x32xf32>
    %356 = vector.extract_strided_slice %329 {offsets = [64, 0], sizes = [32, 32], strides = [1, 1]} : vector<96x32xf32> to vector<32x32xf32>
    %357 = arith.truncf %355 : vector<8x32xf32> to vector<8x32xbf16>
    %358 = arith.truncf %356 : vector<32x32xf32> to vector<32x32xbf16>
    %cst_136 = arith.constant dense<0.000000e+00> : vector<8x32xf32>
    %359 = tpu.matmul %357, %358, %cst_136 {dimension_numbers = #tpu.dot_dimension_numbers<[1], [0], [0], [1], [0, 0, 1, 1], [], []>} : vector<8x32xbf16>, vector<32x32xbf16>, vector<8x32xf32> -> vector<8x32xf32>
    %360 = arith.addf %347, %359 : vector<8x32xf32>
    %361 = vector.broadcast %330 : vector<1x32xf32> to vector<8x32xf32>
    %362 = arith.addf %360, %361 : vector<8x32xf32>
    %cst_137 = arith.constant 0.000000e+00 : f32
    %363 = vector.broadcast %cst_137 : f32 to vector<8x32xf32>
    %364 = arith.maximumf %362, %363 : vector<8x32xf32>
    %c0_138 = arith.constant 0 : index
    %c0_139 = arith.constant 0 : index
    %365 = vector.load %arg31[%c0_138, %c0_139] : memref<1x32xf32, #tpu.memory_space<vmem>>, vector<1x32xf32>
    %c0_140 = arith.constant 0 : index
    %c0_141 = arith.constant 0 : index
    %366 = vector.load %arg32[%c0_140, %c0_141] : memref<1x32xf32, #tpu.memory_space<vmem>>, vector<1x32xf32>
    %cst_142 = arith.constant dense<0.000000e+00> : vector<8xf32>
    %367 = vector.multi_reduction <add>, %364, %cst_142 [1] : vector<8x32xf32> to vector<8xf32>
    %368 = vector.shape_cast %367 : vector<8xf32> to vector<8x1xf32>
    %cst_143 = arith.constant 3.200000e+01 : f32
    %369 = vector.broadcast %cst_143 : f32 to vector<8x1xf32>
    %370 = arith.divf %368, %369 : vector<8x1xf32>
    %371 = vector.broadcast %370 : vector<8x1xf32> to vector<8x32xf32>
    %372 = arith.subf %364, %371 : vector<8x32xf32>
    %373 = arith.mulf %372, %372 : vector<8x32xf32>
    %cst_144 = arith.constant dense<0.000000e+00> : vector<8xf32>
    %374 = vector.multi_reduction <add>, %373, %cst_144 [1] : vector<8x32xf32> to vector<8xf32>
    %375 = vector.shape_cast %374 : vector<8xf32> to vector<8x1xf32>
    %cst_145 = arith.constant 3.200000e+01 : f32
    %376 = vector.broadcast %cst_145 : f32 to vector<8x1xf32>
    %377 = arith.divf %375, %376 : vector<8x1xf32>
    %378 = vector.broadcast %370 : vector<8x1xf32> to vector<8x32xf32>
    %379 = arith.subf %364, %378 : vector<8x32xf32>
    %cst_146 = arith.constant 9.99999974E-6 : f32
    %380 = vector.broadcast %cst_146 : f32 to vector<8x1xf32>
    %381 = arith.addf %377, %380 : vector<8x1xf32>
    %382 = math.rsqrt %381 : vector<8x1xf32>
    %383 = vector.broadcast %382 : vector<8x1xf32> to vector<8x32xf32>
    %384 = arith.mulf %379, %383 : vector<8x32xf32>
    %385 = vector.broadcast %365 : vector<1x32xf32> to vector<8x32xf32>
    %386 = arith.mulf %384, %385 : vector<8x32xf32>
    %387 = vector.broadcast %366 : vector<1x32xf32> to vector<8x32xf32>
    %388 = arith.addf %386, %387 : vector<8x32xf32>
    %c0_147 = arith.constant 0 : index
    %c0_148 = arith.constant 0 : index
    %389 = vector.load %arg33[%c0_147, %c0_148] : memref<32x1xf32, #tpu.memory_space<vmem>>, vector<32x1xf32>
    %390 = arith.truncf %388 : vector<8x32xf32> to vector<8x32xbf16>
    %391 = arith.truncf %389 : vector<32x1xf32> to vector<32x1xbf16>
    %cst_149 = arith.constant dense<0.000000e+00> : vector<8x1xf32>
    %392 = tpu.matmul %390, %391, %cst_149 {dimension_numbers = #tpu.dot_dimension_numbers<[1], [0], [0], [1], [0, 0, 1, 1], [], []>} : vector<8x32xbf16>, vector<32x1xbf16>, vector<8x1xf32> -> vector<8x1xf32>
    %c0_150 = arith.constant 0 : index
    %c0_151 = arith.constant 0 : index
    %393 = vector.load %arg34[%c0_150, %c0_151] : memref<1x1xf32, #tpu.memory_space<vmem>>, vector<1x1xf32>
    %394 = vector.broadcast %393 : vector<1x1xf32> to vector<8x1xf32>
    %395 = arith.addf %392, %394 : vector<8x1xf32>
    %396 = arith.mulf %395, %3 : vector<8x1xf32>
    %c0_152 = arith.constant 0 : index
    %c0_153 = arith.constant 0 : index
    %c0_154 = arith.constant 0 : index
    %397 = vector.load %arg37[%c0_152, %c0_153, %c0_154] : memref<1x8x1xf32, #tpu.memory_space<vmem>>, vector<1x8x1xf32>
    %398 = vector.shape_cast %397 : vector<1x8x1xf32> to vector<8x1xf32>
    %399 = vector.shape_cast %396 : vector<8x1xf32> to vector<1x8x1xf32>
    tpu.vector_store %arg37[%c0_152, %c0_153, %c0_154], %399 {strides = array<i32>} : memref<1x8x1xf32, #tpu.memory_space<vmem>>, vector<1x8x1xf32>,
    %c0_155 = arith.constant 0 : index
    %c0_156 = arith.constant 0 : index
    %c0_157 = arith.constant 0 : index
    %400 = vector.load %arg3[%c0_155, %c0_156, %c0_157] : memref<1x8x32xf32, #tpu.memory_space<vmem>>, vector<1x8x32xf32>
    %401 = vector.shape_cast %400 : vector<1x8x32xf32> to vector<8x32xf32>
    %402 = arith.addf %268, %401 : vector<8x32xf32>
    %c0_158 = arith.constant 0 : index
    %c0_159 = arith.constant 0 : index
    %c0_160 = arith.constant 0 : index
    %403 = vector.load %arg38[%c0_158, %c0_159, %c0_160] : memref<1x8x32xf32, #tpu.memory_space<vmem>>, vector<1x8x32xf32>
    %404 = vector.shape_cast %403 : vector<1x8x32xf32> to vector<8x32xf32>
    %405 = vector.shape_cast %402 : vector<8x32xf32> to vector<1x8x32xf32>
    tpu.vector_store %arg38[%c0_158, %c0_159, %c0_160], %405 {strides = array<i32>} : memref<1x8x32xf32, #tpu.memory_space<vmem>>, vector<1x8x32xf32>,
    return
  }
  func.func @transform_0(%arg0: i32) -> (i32, i32, i32) {
    %c0_i32 = arith.constant 0 : i32
    %c0_i32_0 = arith.constant 0 : i32
    %c0_i32_1 = arith.constant 0 : i32
    return %arg0, %c0_i32, %c0_i32_0 : i32, i32, i32
  }
  func.func @transform_1(%arg0: i32) -> (i32, i32, i32) {
    %c0_i32 = arith.constant 0 : i32
    %c0_i32_0 = arith.constant 0 : i32
    %c0_i32_1 = arith.constant 0 : i32
    return %arg0, %c0_i32, %c0_i32_0 : i32, i32, i32
  }
  func.func @transform_2(%arg0: i32) -> (i32, i32, i32) {
    %c0_i32 = arith.constant 0 : i32
    %c0_i32_0 = arith.constant 0 : i32
    %c0_i32_1 = arith.constant 0 : i32
    return %arg0, %c0_i32, %c0_i32_0 : i32, i32, i32
  }
  func.func @transform_3(%arg0: i32) -> (i32, i32, i32) {
    %c0_i32 = arith.constant 0 : i32
    %c0_i32_0 = arith.constant 0 : i32
    %c0_i32_1 = arith.constant 0 : i32
    return %arg0, %c0_i32, %c0_i32_0 : i32, i32, i32
  }
  func.func @transform_4(%arg0: i32) -> (i32, i32) {
    %c0_i32 = arith.constant 0 : i32
    %c0_i32_0 = arith.constant 0 : i32
    %c0_i32_1 = arith.constant 0 : i32
    return %c0_i32, %c0_i32_0 : i32, i32
  }
  func.func @transform_5(%arg0: i32) -> (i32, i32) {
    %c0_i32 = arith.constant 0 : i32
    %c0_i32_0 = arith.constant 0 : i32
    %c0_i32_1 = arith.constant 0 : i32
    return %c0_i32, %c0_i32_0 : i32, i32
  }
  func.func @transform_6(%arg0: i32) -> (i32, i32) {
    %c0_i32 = arith.constant 0 : i32
    %c0_i32_0 = arith.constant 0 : i32
    %c0_i32_1 = arith.constant 0 : i32
    return %c0_i32, %c0_i32_0 : i32, i32
  }
  func.func @transform_7(%arg0: i32) -> (i32, i32) {
    %c0_i32 = arith.constant 0 : i32
    %c0_i32_0 = arith.constant 0 : i32
    %c0_i32_1 = arith.constant 0 : i32
    return %c0_i32, %c0_i32_0 : i32, i32
  }
  func.func @transform_8(%arg0: i32) -> (i32, i32) {
    %c0_i32 = arith.constant 0 : i32
    %c0_i32_0 = arith.constant 0 : i32
    %c0_i32_1 = arith.constant 0 : i32
    return %c0_i32, %c0_i32_0 : i32, i32
  }
  func.func @transform_9(%arg0: i32) -> (i32, i32) {
    %c0_i32 = arith.constant 0 : i32
    %c0_i32_0 = arith.constant 0 : i32
    %c0_i32_1 = arith.constant 0 : i32
    return %c0_i32, %c0_i32_0 : i32, i32
  }
  func.func @transform_10(%arg0: i32) -> (i32, i32) {
    %c0_i32 = arith.constant 0 : i32
    %c0_i32_0 = arith.constant 0 : i32
    %c0_i32_1 = arith.constant 0 : i32
    return %c0_i32, %c0_i32_0 : i32, i32
  }
  func.func @transform_11(%arg0: i32) -> (i32, i32) {
    %c0_i32 = arith.constant 0 : i32
    %c0_i32_0 = arith.constant 0 : i32
    %c0_i32_1 = arith.constant 0 : i32
    return %c0_i32, %c0_i32_0 : i32, i32
  }
  func.func @transform_12(%arg0: i32) -> (i32, i32) {
    %c0_i32 = arith.constant 0 : i32
    %c0_i32_0 = arith.constant 0 : i32
    %c0_i32_1 = arith.constant 0 : i32
    return %c0_i32, %c0_i32_0 : i32, i32
  }
  func.func @transform_13(%arg0: i32) -> (i32, i32) {
    %c0_i32 = arith.constant 0 : i32
    %c0_i32_0 = arith.constant 0 : i32
    %c0_i32_1 = arith.constant 0 : i32
    return %c0_i32, %c0_i32_0 : i32, i32
  }
  func.func @transform_14(%arg0: i32) -> (i32, i32) {
    %c0_i32 = arith.constant 0 : i32
    %c0_i32_0 = arith.constant 0 : i32
    %c0_i32_1 = arith.constant 0 : i32
    return %c0_i32, %c0_i32_0 : i32, i32
  }
  func.func @transform_15(%arg0: i32) -> (i32, i32) {
    %c0_i32 = arith.constant 0 : i32
    %c0_i32_0 = arith.constant 0 : i32
    %c0_i32_1 = arith.constant 0 : i32
    return %c0_i32, %c0_i32_0 : i32, i32
  }
  func.func @transform_16(%arg0: i32) -> (i32, i32) {
    %c0_i32 = arith.constant 0 : i32
    %c0_i32_0 = arith.constant 0 : i32
    %c0_i32_1 = arith.constant 0 : i32
    return %c0_i32, %c0_i32_0 : i32, i32
  }
  func.func @transform_17(%arg0: i32) -> (i32, i32) {
    %c0_i32 = arith.constant 0 : i32
    %c0_i32_0 = arith.constant 0 : i32
    %c0_i32_1 = arith.constant 0 : i32
    return %c0_i32, %c0_i32_0 : i32, i32
  }
  func.func @transform_18(%arg0: i32) -> (i32, i32) {
    %c0_i32 = arith.constant 0 : i32
    %c0_i32_0 = arith.constant 0 : i32
    %c0_i32_1 = arith.constant 0 : i32
    return %c0_i32, %c0_i32_0 : i32, i32
  }
  func.func @transform_19(%arg0: i32) -> (i32, i32) {
    %c0_i32 = arith.constant 0 : i32
    %c0_i32_0 = arith.constant 0 : i32
    %c0_i32_1 = arith.constant 0 : i32
    return %c0_i32, %c0_i32_0 : i32, i32
  }
  func.func @transform_20(%arg0: i32) -> (i32, i32) {
    %c0_i32 = arith.constant 0 : i32
    %c0_i32_0 = arith.constant 0 : i32
    %c0_i32_1 = arith.constant 0 : i32
    return %c0_i32, %c0_i32_0 : i32, i32
  }
  func.func @transform_21(%arg0: i32) -> (i32, i32) {
    %c0_i32 = arith.constant 0 : i32
    %c0_i32_0 = arith.constant 0 : i32
    %c0_i32_1 = arith.constant 0 : i32
    return %c0_i32, %c0_i32_0 : i32, i32
  }
  func.func @transform_22(%arg0: i32) -> (i32, i32) {
    %c0_i32 = arith.constant 0 : i32
    %c0_i32_0 = arith.constant 0 : i32
    %c0_i32_1 = arith.constant 0 : i32
    return %c0_i32, %c0_i32_0 : i32, i32
  }
  func.func @transform_23(%arg0: i32) -> (i32, i32) {
    %c0_i32 = arith.constant 0 : i32
    %c0_i32_0 = arith.constant 0 : i32
    %c0_i32_1 = arith.constant 0 : i32
    return %c0_i32, %c0_i32_0 : i32, i32
  }
  func.func @transform_24(%arg0: i32) -> (i32, i32) {
    %c0_i32 = arith.constant 0 : i32
    %c0_i32_0 = arith.constant 0 : i32
    %c0_i32_1 = arith.constant 0 : i32
    return %c0_i32, %c0_i32_0 : i32, i32
  }
  func.func @transform_25(%arg0: i32) -> (i32, i32) {
    %c0_i32 = arith.constant 0 : i32
    %c0_i32_0 = arith.constant 0 : i32
    %c0_i32_1 = arith.constant 0 : i32
    return %c0_i32, %c0_i32_0 : i32, i32
  }
  func.func @transform_26(%arg0: i32) -> (i32, i32) {
    %c0_i32 = arith.constant 0 : i32
    %c0_i32_0 = arith.constant 0 : i32
    %c0_i32_1 = arith.constant 0 : i32
    return %c0_i32, %c0_i32_0 : i32, i32
  }
  func.func @transform_27(%arg0: i32) -> (i32, i32) {
    %c0_i32 = arith.constant 0 : i32
    %c0_i32_0 = arith.constant 0 : i32
    %c0_i32_1 = arith.constant 0 : i32
    return %c0_i32, %c0_i32_0 : i32, i32
  }
  func.func @transform_28(%arg0: i32) -> (i32, i32) {
    %c0_i32 = arith.constant 0 : i32
    %c0_i32_0 = arith.constant 0 : i32
    %c0_i32_1 = arith.constant 0 : i32
    return %c0_i32, %c0_i32_0 : i32, i32
  }
  func.func @transform_29(%arg0: i32) -> (i32, i32) {
    %c0_i32 = arith.constant 0 : i32
    %c0_i32_0 = arith.constant 0 : i32
    %c0_i32_1 = arith.constant 0 : i32
    return %c0_i32, %c0_i32_0 : i32, i32
  }
  func.func @transform_30(%arg0: i32) -> (i32, i32) {
    %c0_i32 = arith.constant 0 : i32
    %c0_i32_0 = arith.constant 0 : i32
    %c0_i32_1 = arith.constant 0 : i32
    return %c0_i32, %c0_i32_0 : i32, i32
  }
  func.func @transform_31(%arg0: i32) -> (i32, i32) {
    %c0_i32 = arith.constant 0 : i32
    %c0_i32_0 = arith.constant 0 : i32
    %c0_i32_1 = arith.constant 0 : i32
    return %c0_i32, %c0_i32_0 : i32, i32
  }
  func.func @transform_32(%arg0: i32) -> (i32, i32) {
    %c0_i32 = arith.constant 0 : i32
    %c0_i32_0 = arith.constant 0 : i32
    %c0_i32_1 = arith.constant 0 : i32
    return %c0_i32, %c0_i32_0 : i32, i32
  }
  func.func @transform_33(%arg0: i32) -> (i32, i32) {
    %c0_i32 = arith.constant 0 : i32
    %c0_i32_0 = arith.constant 0 : i32
    %c0_i32_1 = arith.constant 0 : i32
    return %c0_i32, %c0_i32_0 : i32, i32
  }
  func.func @transform_34(%arg0: i32) -> (i32, i32, i32) {
    %c0_i32 = arith.constant 0 : i32
    %c0_i32_0 = arith.constant 0 : i32
    %c0_i32_1 = arith.constant 0 : i32
    return %arg0, %c0_i32, %c0_i32_0 : i32, i32, i32
  }
  func.func @transform_35(%arg0: i32) -> (i32, i32, i32) {
    %c0_i32 = arith.constant 0 : i32
    %c0_i32_0 = arith.constant 0 : i32
    %c0_i32_1 = arith.constant 0 : i32
    return %arg0, %c0_i32, %c0_i32_0 : i32, i32, i32
  }
  func.func @transform_36(%arg0: i32) -> (i32, i32, i32) {
    %c0_i32 = arith.constant 0 : i32
    %c0_i32_0 = arith.constant 0 : i32
    %c0_i32_1 = arith.constant 0 : i32
    return %arg0, %c0_i32, %c0_i32_0 : i32, i32, i32
  }
  func.func @transform_37(%arg0: i32) -> (i32, i32, i32) {
    %c0_i32 = arith.constant 0 : i32
    %c0_i32_0 = arith.constant 0 : i32
    %c0_i32_1 = arith.constant 0 : i32
    return %arg0, %c0_i32, %c0_i32_0 : i32, i32, i32
  }
}

module attributes {stable_mosaic.version = 11 : i64} {
  func.func @_dec_mel_postnet_kernel(%arg0: i32, %arg1: i32, %arg2: memref<1x1x13xf32, #tpu.memory_space<vmem>>, %arg3: memref<1x13x1xf32, #tpu.memory_space<vmem>>, %arg4: memref<1x13x32xf32, #tpu.memory_space<vmem>>, %arg5: memref<1x32x32xf32, #tpu.memory_space<vmem>>, %arg6: memref<1x1x32xf32, #tpu.memory_space<vmem>>, %arg7: memref<1x32x32xf32, #tpu.memory_space<vmem>>, %arg8: memref<1x1x32xf32, #tpu.memory_space<vmem>>, %arg9: memref<1x32x32xf32, #tpu.memory_space<vmem>>, %arg10: memref<1x1x32xf32, #tpu.memory_space<vmem>>, %arg11: memref<1x32x32xf32, #tpu.memory_space<vmem>>, %arg12: memref<1x1x32xf32, #tpu.memory_space<vmem>>, %arg13: memref<1x1x32xf32, #tpu.memory_space<vmem>>, %arg14: memref<1x1x32xf32, #tpu.memory_space<vmem>>, %arg15: memref<1x96x64xf32, #tpu.memory_space<vmem>>, %arg16: memref<1x1x64xf32, #tpu.memory_space<vmem>>, %arg17: memref<1x64x32xf32, #tpu.memory_space<vmem>>, %arg18: memref<1x1x32xf32, #tpu.memory_space<vmem>>, %arg19: memref<1x1x32xf32, #tpu.memory_space<vmem>>, %arg20: memref<1x1x32xf32, #tpu.memory_space<vmem>>, %arg21: memref<32x20xf32, #tpu.memory_space<vmem>>, %arg22: memref<1x20xf32, #tpu.memory_space<vmem>>, %arg23: memref<100x32xf32, #tpu.memory_space<vmem>>, %arg24: memref<1x32xf32, #tpu.memory_space<vmem>>, %arg25: memref<1x32xf32, #tpu.memory_space<vmem>>, %arg26: memref<1x32xf32, #tpu.memory_space<vmem>>, %arg27: memref<160x32xf32, #tpu.memory_space<vmem>>, %arg28: memref<1x32xf32, #tpu.memory_space<vmem>>, %arg29: memref<1x32xf32, #tpu.memory_space<vmem>>, %arg30: memref<1x32xf32, #tpu.memory_space<vmem>>, %arg31: memref<160x32xf32, #tpu.memory_space<vmem>>, %arg32: memref<1x32xf32, #tpu.memory_space<vmem>>, %arg33: memref<1x32xf32, #tpu.memory_space<vmem>>, %arg34: memref<1x32xf32, #tpu.memory_space<vmem>>, %arg35: memref<160x32xf32, #tpu.memory_space<vmem>>, %arg36: memref<1x32xf32, #tpu.memory_space<vmem>>, %arg37: memref<1x32xf32, #tpu.memory_space<vmem>>, %arg38: memref<1x32xf32, #tpu.memory_space<vmem>>, %arg39: memref<160x20xf32, #tpu.memory_space<vmem>>, %arg40: memref<1x20xf32, #tpu.memory_space<vmem>>, %arg41: memref<1x20xf32, #tpu.memory_space<vmem>>, %arg42: memref<1x20xf32, #tpu.memory_space<vmem>>, %arg43: memref<1x13x20xf32, #tpu.memory_space<vmem>>, %arg44: memref<1x13x20xf32, #tpu.memory_space<vmem>>, %arg45: memref<13x32xf32, #tpu.memory_space<vmem>>) attributes {dimension_semantics = [#tpu.dimension_semantics<parallel>, #tpu.dimension_semantics<arbitrary>], iteration_bounds = array<i64: 2, 2>, scalar_prefetch = 0 : i64, scratch_operands = 1 : i64, tpu.core_type = #tpu.core_type<tc>, window_params = [{transform_indices = @transform_0, window_bounds = array<i64: 1, 1, 13>}, {transform_indices = @transform_1, window_bounds = array<i64: 1, 13, 1>}, {transform_indices = @transform_2, window_bounds = array<i64: 1, 13, 32>}, {transform_indices = @transform_3, window_bounds = array<i64: 1, 32, 32>}, {transform_indices = @transform_4, window_bounds = array<i64: 1, 1, 32>}, {transform_indices = @transform_5, window_bounds = array<i64: 1, 32, 32>}, {transform_indices = @transform_6, window_bounds = array<i64: 1, 1, 32>}, {transform_indices = @transform_7, window_bounds = array<i64: 1, 32, 32>}, {transform_indices = @transform_8, window_bounds = array<i64: 1, 1, 32>}, {transform_indices = @transform_9, window_bounds = array<i64: 1, 32, 32>}, {transform_indices = @transform_10, window_bounds = array<i64: 1, 1, 32>}, {transform_indices = @transform_11, window_bounds = array<i64: 1, 1, 32>}, {transform_indices = @transform_12, window_bounds = array<i64: 1, 1, 32>}, {transform_indices = @transform_13, window_bounds = array<i64: 1, 96, 64>}, {transform_indices = @transform_14, window_bounds = array<i64: 1, 1, 64>}, {transform_indices = @transform_15, window_bounds = array<i64: 1, 64, 32>}, {transform_indices = @transform_16, window_bounds = array<i64: 1, 1, 32>}, {transform_indices = @transform_17, window_bounds = array<i64: 1, 1, 32>}, {transform_indices = @transform_18, window_bounds = array<i64: 1, 1, 32>}, {pipeline_mode = #tpu.pipeline_mode<synchronous>, transform_indices = @transform_19, window_bounds = array<i64: 32, 20>}, {pipeline_mode = #tpu.pipeline_mode<synchronous>, transform_indices = @transform_20, window_bounds = array<i64: 1, 20>}, {pipeline_mode = #tpu.pipeline_mode<synchronous>, transform_indices = @transform_21, window_bounds = array<i64: 100, 32>}, {pipeline_mode = #tpu.pipeline_mode<synchronous>, transform_indices = @transform_22, window_bounds = array<i64: 1, 32>}, {pipeline_mode = #tpu.pipeline_mode<synchronous>, transform_indices = @transform_23, window_bounds = array<i64: 1, 32>}, {pipeline_mode = #tpu.pipeline_mode<synchronous>, transform_indices = @transform_24, window_bounds = array<i64: 1, 32>}, {pipeline_mode = #tpu.pipeline_mode<synchronous>, transform_indices = @transform_25, window_bounds = array<i64: 160, 32>}, {pipeline_mode = #tpu.pipeline_mode<synchronous>, transform_indices = @transform_26, window_bounds = array<i64: 1, 32>}, {pipeline_mode = #tpu.pipeline_mode<synchronous>, transform_indices = @transform_27, window_bounds = array<i64: 1, 32>}, {pipeline_mode = #tpu.pipeline_mode<synchronous>, transform_indices = @transform_28, window_bounds = array<i64: 1, 32>}, {pipeline_mode = #tpu.pipeline_mode<synchronous>, transform_indices = @transform_29, window_bounds = array<i64: 160, 32>}, {pipeline_mode = #tpu.pipeline_mode<synchronous>, transform_indices = @transform_30, window_bounds = array<i64: 1, 32>}, {pipeline_mode = #tpu.pipeline_mode<synchronous>, transform_indices = @transform_31, window_bounds = array<i64: 1, 32>}, {pipeline_mode = #tpu.pipeline_mode<synchronous>, transform_indices = @transform_32, window_bounds = array<i64: 1, 32>}, {pipeline_mode = #tpu.pipeline_mode<synchronous>, transform_indices = @transform_33, window_bounds = array<i64: 160, 32>}, {pipeline_mode = #tpu.pipeline_mode<synchronous>, transform_indices = @transform_34, window_bounds = array<i64: 1, 32>}, {pipeline_mode = #tpu.pipeline_mode<synchronous>, transform_indices = @transform_35, window_bounds = array<i64: 1, 32>}, {pipeline_mode = #tpu.pipeline_mode<synchronous>, transform_indices = @transform_36, window_bounds = array<i64: 1, 32>}, {pipeline_mode = #tpu.pipeline_mode<synchronous>, transform_indices = @transform_37, window_bounds = array<i64: 160, 20>}, {pipeline_mode = #tpu.pipeline_mode<synchronous>, transform_indices = @transform_38, window_bounds = array<i64: 1, 20>}, {pipeline_mode = #tpu.pipeline_mode<synchronous>, transform_indices = @transform_39, window_bounds = array<i64: 1, 20>}, {pipeline_mode = #tpu.pipeline_mode<synchronous>, transform_indices = @transform_40, window_bounds = array<i64: 1, 20>}, {transform_indices = @transform_41, window_bounds = array<i64: 1, 13, 20>}, {transform_indices = @transform_42, window_bounds = array<i64: 1, 13, 20>}]} {
    %c0_i32 = arith.constant 0 : i32
    %0 = arith.cmpi eq, %arg1, %c0_i32 : i32
    %1 = arith.extui %0 : i1 to i32
    %c0_i32_0 = arith.constant 0 : i32
    %2 = arith.cmpi ne, %1, %c0_i32_0 : i32
    scf.if %2 {
      %c0_92 = arith.constant 0 : index
      %c0_93 = arith.constant 0 : index
      %c0_94 = arith.constant 0 : index
      %207 = vector.load %arg4[%c0_92, %c0_93, %c0_94] : memref<1x13x32xf32, #tpu.memory_space<vmem>>, vector<1x13x32xf32>
      %208 = vector.shape_cast %207 : vector<1x13x32xf32> to vector<13x32xf32>
      %c0_95 = arith.constant 0 : index
      %c0_96 = arith.constant 0 : index
      %209 = vector.load %arg45[%c0_95, %c0_96] : memref<13x32xf32, #tpu.memory_space<vmem>>, vector<13x32xf32>
      tpu.vector_store %arg45[%c0_95, %c0_96], %208 {strides = array<i32>} : memref<13x32xf32, #tpu.memory_space<vmem>>, vector<13x32xf32>,
    } else {
    }
    %c0 = arith.constant 0 : index
    %c0_1 = arith.constant 0 : index
    %3 = vector.load %arg45[%c0, %c0_1] : memref<13x32xf32, #tpu.memory_space<vmem>>, vector<13x32xf32>
    %c0_2 = arith.constant 0 : index
    %c0_3 = arith.constant 0 : index
    %c0_4 = arith.constant 0 : index
    %4 = vector.load %arg2[%c0_2, %c0_3, %c0_4] : memref<1x1x13xf32, #tpu.memory_space<vmem>>, vector<1x1x13xf32>
    %5 = vector.shape_cast %4 : vector<1x1x13xf32> to vector<1x13xf32>
    %cst = arith.constant 1.000000e+09 : f32
    %6 = vector.broadcast %cst : f32 to vector<1x13xf32>
    %7 = arith.mulf %5, %6 : vector<1x13xf32>
    %c0_5 = arith.constant 0 : index
    %c0_6 = arith.constant 0 : index
    %c0_7 = arith.constant 0 : index
    %8 = vector.load %arg3[%c0_5, %c0_6, %c0_7] : memref<1x13x1xf32, #tpu.memory_space<vmem>>, vector<1x13x1xf32>
    %9 = vector.shape_cast %8 : vector<1x13x1xf32> to vector<13x1xf32>
    %c0_8 = arith.constant 0 : index
    %c0_9 = arith.constant 0 : index
    %c0_10 = arith.constant 0 : index
    %10 = vector.load %arg5[%c0_8, %c0_9, %c0_10] : memref<1x32x32xf32, #tpu.memory_space<vmem>>, vector<1x32x32xf32>
    %11 = vector.shape_cast %10 : vector<1x32x32xf32> to vector<32x32xf32>
    %c0_11 = arith.constant 0 : index
    %c0_12 = arith.constant 0 : index
    %c0_13 = arith.constant 0 : index
    %12 = vector.load %arg6[%c0_11, %c0_12, %c0_13] : memref<1x1x32xf32, #tpu.memory_space<vmem>>, vector<1x1x32xf32>
    %13 = vector.shape_cast %12 : vector<1x1x32xf32> to vector<1x32xf32>
    %c0_14 = arith.constant 0 : index
    %c0_15 = arith.constant 0 : index
    %c0_16 = arith.constant 0 : index
    %14 = vector.load %arg7[%c0_14, %c0_15, %c0_16] : memref<1x32x32xf32, #tpu.memory_space<vmem>>, vector<1x32x32xf32>
    %15 = vector.shape_cast %14 : vector<1x32x32xf32> to vector<32x32xf32>
    %c0_17 = arith.constant 0 : index
    %c0_18 = arith.constant 0 : index
    %c0_19 = arith.constant 0 : index
    %16 = vector.load %arg8[%c0_17, %c0_18, %c0_19] : memref<1x1x32xf32, #tpu.memory_space<vmem>>, vector<1x1x32xf32>
    %17 = vector.shape_cast %16 : vector<1x1x32xf32> to vector<1x32xf32>
    %c0_20 = arith.constant 0 : index
    %c0_21 = arith.constant 0 : index
    %c0_22 = arith.constant 0 : index
    %18 = vector.load %arg9[%c0_20, %c0_21, %c0_22] : memref<1x32x32xf32, #tpu.memory_space<vmem>>, vector<1x32x32xf32>
    %19 = vector.shape_cast %18 : vector<1x32x32xf32> to vector<32x32xf32>
    %c0_23 = arith.constant 0 : index
    %c0_24 = arith.constant 0 : index
    %c0_25 = arith.constant 0 : index
    %20 = vector.load %arg10[%c0_23, %c0_24, %c0_25] : memref<1x1x32xf32, #tpu.memory_space<vmem>>, vector<1x1x32xf32>
    %21 = vector.shape_cast %20 : vector<1x1x32xf32> to vector<1x32xf32>
    %c0_26 = arith.constant 0 : index
    %c0_27 = arith.constant 0 : index
    %c0_28 = arith.constant 0 : index
    %22 = vector.load %arg11[%c0_26, %c0_27, %c0_28] : memref<1x32x32xf32, #tpu.memory_space<vmem>>, vector<1x32x32xf32>
    %23 = vector.shape_cast %22 : vector<1x32x32xf32> to vector<32x32xf32>
    %c0_29 = arith.constant 0 : index
    %c0_30 = arith.constant 0 : index
    %c0_31 = arith.constant 0 : index
    %24 = vector.load %arg12[%c0_29, %c0_30, %c0_31] : memref<1x1x32xf32, #tpu.memory_space<vmem>>, vector<1x1x32xf32>
    %25 = vector.shape_cast %24 : vector<1x1x32xf32> to vector<1x32xf32>
    %c0_32 = arith.constant 0 : index
    %c0_33 = arith.constant 0 : index
    %c0_34 = arith.constant 0 : index
    %26 = vector.load %arg13[%c0_32, %c0_33, %c0_34] : memref<1x1x32xf32, #tpu.memory_space<vmem>>, vector<1x1x32xf32>
    %27 = vector.shape_cast %26 : vector<1x1x32xf32> to vector<1x32xf32>
    %c0_35 = arith.constant 0 : index
    %c0_36 = arith.constant 0 : index
    %c0_37 = arith.constant 0 : index
    %28 = vector.load %arg14[%c0_35, %c0_36, %c0_37] : memref<1x1x32xf32, #tpu.memory_space<vmem>>, vector<1x1x32xf32>
    %29 = vector.shape_cast %28 : vector<1x1x32xf32> to vector<1x32xf32>
    %c0_38 = arith.constant 0 : index
    %c0_39 = arith.constant 0 : index
    %c0_40 = arith.constant 0 : index
    %30 = vector.load %arg15[%c0_38, %c0_39, %c0_40] : memref<1x96x64xf32, #tpu.memory_space<vmem>>, vector<1x96x64xf32>
    %31 = vector.shape_cast %30 : vector<1x96x64xf32> to vector<96x64xf32>
    %c0_41 = arith.constant 0 : index
    %c0_42 = arith.constant 0 : index
    %c0_43 = arith.constant 0 : index
    %32 = vector.load %arg16[%c0_41, %c0_42, %c0_43] : memref<1x1x64xf32, #tpu.memory_space<vmem>>, vector<1x1x64xf32>
    %33 = vector.shape_cast %32 : vector<1x1x64xf32> to vector<1x64xf32>
    %c0_44 = arith.constant 0 : index
    %c0_45 = arith.constant 0 : index
    %c0_46 = arith.constant 0 : index
    %34 = vector.load %arg17[%c0_44, %c0_45, %c0_46] : memref<1x64x32xf32, #tpu.memory_space<vmem>>, vector<1x64x32xf32>
    %35 = vector.shape_cast %34 : vector<1x64x32xf32> to vector<64x32xf32>
    %c0_47 = arith.constant 0 : index
    %c0_48 = arith.constant 0 : index
    %c0_49 = arith.constant 0 : index
    %36 = vector.load %arg18[%c0_47, %c0_48, %c0_49] : memref<1x1x32xf32, #tpu.memory_space<vmem>>, vector<1x1x32xf32>
    %37 = vector.shape_cast %36 : vector<1x1x32xf32> to vector<1x32xf32>
    %c0_50 = arith.constant 0 : index
    %c0_51 = arith.constant 0 : index
    %c0_52 = arith.constant 0 : index
    %38 = vector.load %arg19[%c0_50, %c0_51, %c0_52] : memref<1x1x32xf32, #tpu.memory_space<vmem>>, vector<1x1x32xf32>
    %39 = vector.shape_cast %38 : vector<1x1x32xf32> to vector<1x32xf32>
    %c0_53 = arith.constant 0 : index
    %c0_54 = arith.constant 0 : index
    %c0_55 = arith.constant 0 : index
    %40 = vector.load %arg20[%c0_53, %c0_54, %c0_55] : memref<1x1x32xf32, #tpu.memory_space<vmem>>, vector<1x1x32xf32>
    %41 = vector.shape_cast %40 : vector<1x1x32xf32> to vector<1x32xf32>
    %42 = arith.truncf %3 : vector<13x32xf32> to vector<13x32xbf16>
    %43 = arith.truncf %11 : vector<32x32xf32> to vector<32x32xbf16>
    %cst_56 = arith.constant dense<0.000000e+00> : vector<13x32xf32>
    %44 = tpu.matmul %42, %43, %cst_56 {dimension_numbers = #tpu.dot_dimension_numbers<[1], [0], [0], [1], [0, 0, 1, 1], [], []>} : vector<13x32xbf16>, vector<32x32xbf16>, vector<13x32xf32> -> vector<13x32xf32>
    %45 = vector.broadcast %13 : vector<1x32xf32> to vector<13x32xf32>
    %46 = arith.addf %44, %45 : vector<13x32xf32>
    %47 = arith.truncf %3 : vector<13x32xf32> to vector<13x32xbf16>
    %48 = arith.truncf %15 : vector<32x32xf32> to vector<32x32xbf16>
    %cst_57 = arith.constant dense<0.000000e+00> : vector<13x32xf32>
    %49 = tpu.matmul %47, %48, %cst_57 {dimension_numbers = #tpu.dot_dimension_numbers<[1], [0], [0], [1], [0, 0, 1, 1], [], []>} : vector<13x32xbf16>, vector<32x32xbf16>, vector<13x32xf32> -> vector<13x32xf32>
    %50 = vector.broadcast %17 : vector<1x32xf32> to vector<13x32xf32>
    %51 = arith.addf %49, %50 : vector<13x32xf32>
    %52 = arith.truncf %3 : vector<13x32xf32> to vector<13x32xbf16>
    %53 = arith.truncf %19 : vector<32x32xf32> to vector<32x32xbf16>
    %cst_58 = arith.constant dense<0.000000e+00> : vector<13x32xf32>
    %54 = tpu.matmul %52, %53, %cst_58 {dimension_numbers = #tpu.dot_dimension_numbers<[1], [0], [0], [1], [0, 0, 1, 1], [], []>} : vector<13x32xbf16>, vector<32x32xbf16>, vector<13x32xf32> -> vector<13x32xf32>
    %55 = vector.broadcast %21 : vector<1x32xf32> to vector<13x32xf32>
    %56 = arith.addf %54, %55 : vector<13x32xf32>
    %57 = vector.extract_strided_slice %46 {offsets = [0, 0], sizes = [13, 16], strides = [1, 1]} : vector<13x32xf32> to vector<13x16xf32>
    %58 = arith.truncf %57 : vector<13x16xf32> to vector<13x16xbf16>
    %59 = vector.extract_strided_slice %51 {offsets = [0, 0], sizes = [13, 16], strides = [1, 1]} : vector<13x32xf32> to vector<13x16xf32>
    %60 = arith.truncf %59 : vector<13x16xf32> to vector<13x16xbf16>
    %cst_59 = arith.constant dense<0.000000e+00> : vector<13x13xf32>
    %61 = tpu.matmul %58, %60, %cst_59 {dimension_numbers = #tpu.dot_dimension_numbers<[1], [1], [0], [0], [0, 0, 1, 0], [], []>} : vector<13x16xbf16>, vector<13x16xbf16>, vector<13x13xf32> -> vector<13x13xf32>
    %cst_60 = arith.constant 2.500000e-01 : f32
    %62 = vector.broadcast %cst_60 : f32 to vector<13x13xf32>
    %63 = arith.mulf %61, %62 : vector<13x13xf32>
    %64 = vector.broadcast %7 : vector<1x13xf32> to vector<13x13xf32>
    %65 = arith.subf %63, %64 : vector<13x13xf32>
    %cst_61 = arith.constant dense<0xFF800000> : vector<13xf32>
    %66 = vector.multi_reduction <maximumf>, %65, %cst_61 [1] : vector<13x13xf32> to vector<13xf32>
    %67 = vector.shape_cast %66 : vector<13xf32> to vector<13x1xf32>
    %68 = vector.broadcast %67 : vector<13x1xf32> to vector<13x13xf32>
    %69 = arith.subf %65, %68 : vector<13x13xf32>
    %70 = math.exp %69 : vector<13x13xf32>
    %cst_62 = arith.constant dense<0.000000e+00> : vector<13xf32>
    %71 = vector.multi_reduction <add>, %70, %cst_62 [1] : vector<13x13xf32> to vector<13xf32>
    %72 = vector.shape_cast %71 : vector<13xf32> to vector<13x1xf32>
    %73 = tpu.reciprocal %72 {approx = true} : vector<13x1xf32> -> vector<13x1xf32>
    %74 = vector.broadcast %73 : vector<13x1xf32> to vector<13x13xf32>
    %75 = arith.mulf %70, %74 : vector<13x13xf32>
    %76 = arith.truncf %75 : vector<13x13xf32> to vector<13x13xbf16>
    %77 = vector.extract_strided_slice %56 {offsets = [0, 0], sizes = [13, 16], strides = [1, 1]} : vector<13x32xf32> to vector<13x16xf32>
    %78 = arith.truncf %77 : vector<13x16xf32> to vector<13x16xbf16>
    %cst_63 = arith.constant dense<0.000000e+00> : vector<13x16xf32>
    %79 = tpu.matmul %76, %78, %cst_63 {dimension_numbers = #tpu.dot_dimension_numbers<[1], [0], [0], [1], [0, 0, 1, 1], [], []>} : vector<13x13xbf16>, vector<13x16xbf16>, vector<13x16xf32> -> vector<13x16xf32>
    %80 = vector.extract_strided_slice %23 {offsets = [0, 0], sizes = [16, 32], strides = [1, 1]} : vector<32x32xf32> to vector<16x32xf32>
    %81 = arith.truncf %79 : vector<13x16xf32> to vector<13x16xbf16>
    %82 = arith.truncf %80 : vector<16x32xf32> to vector<16x32xbf16>
    %cst_64 = arith.constant dense<0.000000e+00> : vector<13x32xf32>
    %83 = tpu.matmul %81, %82, %cst_64 {dimension_numbers = #tpu.dot_dimension_numbers<[1], [0], [0], [1], [0, 0, 1, 1], [], []>} : vector<13x16xbf16>, vector<16x32xbf16>, vector<13x32xf32> -> vector<13x32xf32>
    %84 = vector.extract_strided_slice %46 {offsets = [0, 16], sizes = [13, 16], strides = [1, 1]} : vector<13x32xf32> to vector<13x16xf32>
    %85 = arith.truncf %84 : vector<13x16xf32> to vector<13x16xbf16>
    %86 = vector.extract_strided_slice %51 {offsets = [0, 16], sizes = [13, 16], strides = [1, 1]} : vector<13x32xf32> to vector<13x16xf32>
    %87 = arith.truncf %86 : vector<13x16xf32> to vector<13x16xbf16>
    %cst_65 = arith.constant dense<0.000000e+00> : vector<13x13xf32>
    %88 = tpu.matmul %85, %87, %cst_65 {dimension_numbers = #tpu.dot_dimension_numbers<[1], [1], [0], [0], [0, 0, 1, 0], [], []>} : vector<13x16xbf16>, vector<13x16xbf16>, vector<13x13xf32> -> vector<13x13xf32>
    %cst_66 = arith.constant 2.500000e-01 : f32
    %89 = vector.broadcast %cst_66 : f32 to vector<13x13xf32>
    %90 = arith.mulf %88, %89 : vector<13x13xf32>
    %91 = vector.broadcast %7 : vector<1x13xf32> to vector<13x13xf32>
    %92 = arith.subf %90, %91 : vector<13x13xf32>
    %cst_67 = arith.constant dense<0xFF800000> : vector<13xf32>
    %93 = vector.multi_reduction <maximumf>, %92, %cst_67 [1] : vector<13x13xf32> to vector<13xf32>
    %94 = vector.shape_cast %93 : vector<13xf32> to vector<13x1xf32>
    %95 = vector.broadcast %94 : vector<13x1xf32> to vector<13x13xf32>
    %96 = arith.subf %92, %95 : vector<13x13xf32>
    %97 = math.exp %96 : vector<13x13xf32>
    %cst_68 = arith.constant dense<0.000000e+00> : vector<13xf32>
    %98 = vector.multi_reduction <add>, %97, %cst_68 [1] : vector<13x13xf32> to vector<13xf32>
    %99 = vector.shape_cast %98 : vector<13xf32> to vector<13x1xf32>
    %100 = tpu.reciprocal %99 {approx = true} : vector<13x1xf32> -> vector<13x1xf32>
    %101 = vector.broadcast %100 : vector<13x1xf32> to vector<13x13xf32>
    %102 = arith.mulf %97, %101 : vector<13x13xf32>
    %103 = arith.truncf %102 : vector<13x13xf32> to vector<13x13xbf16>
    %104 = vector.extract_strided_slice %56 {offsets = [0, 16], sizes = [13, 16], strides = [1, 1]} : vector<13x32xf32> to vector<13x16xf32>
    %105 = arith.truncf %104 : vector<13x16xf32> to vector<13x16xbf16>
    %cst_69 = arith.constant dense<0.000000e+00> : vector<13x16xf32>
    %106 = tpu.matmul %103, %105, %cst_69 {dimension_numbers = #tpu.dot_dimension_numbers<[1], [0], [0], [1], [0, 0, 1, 1], [], []>} : vector<13x13xbf16>, vector<13x16xbf16>, vector<13x16xf32> -> vector<13x16xf32>
    %107 = vector.extract_strided_slice %23 {offsets = [16, 0], sizes = [16, 32], strides = [1, 1]} : vector<32x32xf32> to vector<16x32xf32>
    %108 = arith.truncf %106 : vector<13x16xf32> to vector<13x16xbf16>
    %109 = arith.truncf %107 : vector<16x32xf32> to vector<16x32xbf16>
    %cst_70 = arith.constant dense<0.000000e+00> : vector<13x32xf32>
    %110 = tpu.matmul %108, %109, %cst_70 {dimension_numbers = #tpu.dot_dimension_numbers<[1], [0], [0], [1], [0, 0, 1, 1], [], []>} : vector<13x16xbf16>, vector<16x32xbf16>, vector<13x32xf32> -> vector<13x32xf32>
    %111 = arith.addf %83, %110 : vector<13x32xf32>
    %112 = vector.broadcast %25 : vector<1x32xf32> to vector<13x32xf32>
    %113 = arith.addf %111, %112 : vector<13x32xf32>
    %114 = arith.addf %113, %3 : vector<13x32xf32>
    %cst_71 = arith.constant dense<0.000000e+00> : vector<13xf32>
    %115 = vector.multi_reduction <add>, %114, %cst_71 [1] : vector<13x32xf32> to vector<13xf32>
    %116 = vector.shape_cast %115 : vector<13xf32> to vector<13x1xf32>
    %cst_72 = arith.constant 3.200000e+01 : f32
    %117 = vector.broadcast %cst_72 : f32 to vector<13x1xf32>
    %118 = arith.divf %116, %117 : vector<13x1xf32>
    %119 = vector.broadcast %118 : vector<13x1xf32> to vector<13x32xf32>
    %120 = arith.subf %114, %119 : vector<13x32xf32>
    %121 = arith.mulf %120, %120 : vector<13x32xf32>
    %cst_73 = arith.constant dense<0.000000e+00> : vector<13xf32>
    %122 = vector.multi_reduction <add>, %121, %cst_73 [1] : vector<13x32xf32> to vector<13xf32>
    %123 = vector.shape_cast %122 : vector<13xf32> to vector<13x1xf32>
    %cst_74 = arith.constant 3.200000e+01 : f32
    %124 = vector.broadcast %cst_74 : f32 to vector<13x1xf32>
    %125 = arith.divf %123, %124 : vector<13x1xf32>
    %126 = vector.broadcast %118 : vector<13x1xf32> to vector<13x32xf32>
    %127 = arith.subf %114, %126 : vector<13x32xf32>
    %cst_75 = arith.constant 9.99999974E-6 : f32
    %128 = vector.broadcast %cst_75 : f32 to vector<13x1xf32>
    %129 = arith.addf %125, %128 : vector<13x1xf32>
    %130 = math.rsqrt %129 : vector<13x1xf32>
    %131 = vector.broadcast %130 : vector<13x1xf32> to vector<13x32xf32>
    %132 = arith.mulf %127, %131 : vector<13x32xf32>
    %133 = vector.broadcast %27 : vector<1x32xf32> to vector<13x32xf32>
    %134 = arith.mulf %132, %133 : vector<13x32xf32>
    %135 = vector.broadcast %29 : vector<1x32xf32> to vector<13x32xf32>
    %136 = arith.addf %134, %135 : vector<13x32xf32>
    %137 = vector.broadcast %9 : vector<13x1xf32> to vector<13x32xf32>
    %138 = arith.mulf %136, %137 : vector<13x32xf32>
    %139 = tpu.iota {dimensions = array<i32: 0>} : vector<13x13xi32>
    %140 = tpu.iota {dimensions = array<i32: 1>} : vector<13x13xi32>
    %c-1_i32 = arith.constant -1 : i32
    %141 = vector.broadcast %c-1_i32 : i32 to vector<13x13xi32>
    %142 = arith.addi %139, %141 : vector<13x13xi32>
    %143 = arith.cmpi eq, %140, %142 : vector<13x13xi32>
    %144 = arith.extui %143 : vector<13x13xi1> to vector<13x13xi32>
    %145 = arith.sitofp %144 : vector<13x13xi32> to vector<13x13xf32>
    %cst_76 = arith.constant dense<0.000000e+00> : vector<13x32xf32>
    %146 = tpu.matmul %145, %138, %cst_76 {dimension_numbers = #tpu.dot_dimension_numbers<[1], [0], [0], [1], [0, 0, 1, 1], [], []>} : vector<13x13xf32>, vector<13x32xf32>, vector<13x32xf32> -> vector<13x32xf32>
    %147 = vector.extract_strided_slice %31 {offsets = [0, 0], sizes = [32, 64], strides = [1, 1]} : vector<96x64xf32> to vector<32x64xf32>
    %148 = arith.truncf %146 : vector<13x32xf32> to vector<13x32xbf16>
    %149 = arith.truncf %147 : vector<32x64xf32> to vector<32x64xbf16>
    %cst_77 = arith.constant dense<0.000000e+00> : vector<13x64xf32>
    %150 = tpu.matmul %148, %149, %cst_77 {dimension_numbers = #tpu.dot_dimension_numbers<[1], [0], [0], [1], [0, 0, 1, 1], [], []>} : vector<13x32xbf16>, vector<32x64xbf16>, vector<13x64xf32> -> vector<13x64xf32>
    %151 = vector.extract_strided_slice %31 {offsets = [32, 0], sizes = [32, 64], strides = [1, 1]} : vector<96x64xf32> to vector<32x64xf32>
    %152 = arith.truncf %138 : vector<13x32xf32> to vector<13x32xbf16>
    %153 = arith.truncf %151 : vector<32x64xf32> to vector<32x64xbf16>
    %cst_78 = arith.constant dense<0.000000e+00> : vector<13x64xf32>
    %154 = tpu.matmul %152, %153, %cst_78 {dimension_numbers = #tpu.dot_dimension_numbers<[1], [0], [0], [1], [0, 0, 1, 1], [], []>} : vector<13x32xbf16>, vector<32x64xbf16>, vector<13x64xf32> -> vector<13x64xf32>
    %155 = arith.addf %150, %154 : vector<13x64xf32>
    %156 = tpu.iota {dimensions = array<i32: 0>} : vector<13x13xi32>
    %157 = tpu.iota {dimensions = array<i32: 1>} : vector<13x13xi32>
    %c1_i32 = arith.constant 1 : i32
    %158 = vector.broadcast %c1_i32 : i32 to vector<13x13xi32>
    %159 = arith.addi %156, %158 : vector<13x13xi32>
    %160 = arith.cmpi eq, %157, %159 : vector<13x13xi32>
    %161 = arith.extui %160 : vector<13x13xi1> to vector<13x13xi32>
    %162 = arith.sitofp %161 : vector<13x13xi32> to vector<13x13xf32>
    %cst_79 = arith.constant dense<0.000000e+00> : vector<13x32xf32>
    %163 = tpu.matmul %162, %138, %cst_79 {dimension_numbers = #tpu.dot_dimension_numbers<[1], [0], [0], [1], [0, 0, 1, 1], [], []>} : vector<13x13xf32>, vector<13x32xf32>, vector<13x32xf32> -> vector<13x32xf32>
    %164 = vector.extract_strided_slice %31 {offsets = [64, 0], sizes = [32, 64], strides = [1, 1]} : vector<96x64xf32> to vector<32x64xf32>
    %165 = arith.truncf %163 : vector<13x32xf32> to vector<13x32xbf16>
    %166 = arith.truncf %164 : vector<32x64xf32> to vector<32x64xbf16>
    %cst_80 = arith.constant dense<0.000000e+00> : vector<13x64xf32>
    %167 = tpu.matmul %165, %166, %cst_80 {dimension_numbers = #tpu.dot_dimension_numbers<[1], [0], [0], [1], [0, 0, 1, 1], [], []>} : vector<13x32xbf16>, vector<32x64xbf16>, vector<13x64xf32> -> vector<13x64xf32>
    %168 = arith.addf %155, %167 : vector<13x64xf32>
    %169 = vector.broadcast %33 : vector<1x64xf32> to vector<13x64xf32>
    %170 = arith.addf %168, %169 : vector<13x64xf32>
    %cst_81 = arith.constant 0.000000e+00 : f32
    %171 = vector.broadcast %cst_81 : f32 to vector<13x64xf32>
    %172 = arith.maximumf %170, %171 : vector<13x64xf32>
    %173 = arith.truncf %172 : vector<13x64xf32> to vector<13x64xbf16>
    %174 = arith.truncf %35 : vector<64x32xf32> to vector<64x32xbf16>
    %cst_82 = arith.constant dense<0.000000e+00> : vector<13x32xf32>
    %175 = tpu.matmul %173, %174, %cst_82 {dimension_numbers = #tpu.dot_dimension_numbers<[1], [0], [0], [1], [0, 0, 1, 1], [], []>} : vector<13x64xbf16>, vector<64x32xbf16>, vector<13x32xf32> -> vector<13x32xf32>
    %176 = vector.broadcast %37 : vector<1x32xf32> to vector<13x32xf32>
    %177 = arith.addf %175, %176 : vector<13x32xf32>
    %178 = arith.addf %177, %138 : vector<13x32xf32>
    %cst_83 = arith.constant dense<0.000000e+00> : vector<13xf32>
    %179 = vector.multi_reduction <add>, %178, %cst_83 [1] : vector<13x32xf32> to vector<13xf32>
    %180 = vector.shape_cast %179 : vector<13xf32> to vector<13x1xf32>
    %cst_84 = arith.constant 3.200000e+01 : f32
    %181 = vector.broadcast %cst_84 : f32 to vector<13x1xf32>
    %182 = arith.divf %180, %181 : vector<13x1xf32>
    %183 = vector.broadcast %182 : vector<13x1xf32> to vector<13x32xf32>
    %184 = arith.subf %178, %183 : vector<13x32xf32>
    %185 = arith.mulf %184, %184 : vector<13x32xf32>
    %cst_85 = arith.constant dense<0.000000e+00> : vector<13xf32>
    %186 = vector.multi_reduction <add>, %185, %cst_85 [1] : vector<13x32xf32> to vector<13xf32>
    %187 = vector.shape_cast %186 : vector<13xf32> to vector<13x1xf32>
    %cst_86 = arith.constant 3.200000e+01 : f32
    %188 = vector.broadcast %cst_86 : f32 to vector<13x1xf32>
    %189 = arith.divf %187, %188 : vector<13x1xf32>
    %190 = vector.broadcast %182 : vector<13x1xf32> to vector<13x32xf32>
    %191 = arith.subf %178, %190 : vector<13x32xf32>
    %cst_87 = arith.constant 9.99999974E-6 : f32
    %192 = vector.broadcast %cst_87 : f32 to vector<13x1xf32>
    %193 = arith.addf %189, %192 : vector<13x1xf32>
    %194 = math.rsqrt %193 : vector<13x1xf32>
    %195 = vector.broadcast %194 : vector<13x1xf32> to vector<13x32xf32>
    %196 = arith.mulf %191, %195 : vector<13x32xf32>
    %197 = vector.broadcast %39 : vector<1x32xf32> to vector<13x32xf32>
    %198 = arith.mulf %196, %197 : vector<13x32xf32>
    %199 = vector.broadcast %41 : vector<1x32xf32> to vector<13x32xf32>
    %200 = arith.addf %198, %199 : vector<13x32xf32>
    %201 = vector.broadcast %9 : vector<13x1xf32> to vector<13x32xf32>
    %202 = arith.mulf %200, %201 : vector<13x32xf32>
    %c0_88 = arith.constant 0 : index
    %c0_89 = arith.constant 0 : index
    %203 = vector.load %arg45[%c0_88, %c0_89] : memref<13x32xf32, #tpu.memory_space<vmem>>, vector<13x32xf32>
    tpu.vector_store %arg45[%c0_88, %c0_89], %202 {strides = array<i32>} : memref<13x32xf32, #tpu.memory_space<vmem>>, vector<13x32xf32>,
    %c1_i32_90 = arith.constant 1 : i32
    %204 = arith.cmpi eq, %arg1, %c1_i32_90 : i32
    %205 = arith.extui %204 : i1 to i32
    %c0_i32_91 = arith.constant 0 : i32
    %206 = arith.cmpi ne, %205, %c0_i32_91 : i32
    scf.if %206 {
      %c0_92 = arith.constant 0 : index
      %c0_93 = arith.constant 0 : index
      %207 = vector.load %arg21[%c0_92, %c0_93] : memref<32x20xf32, #tpu.memory_space<vmem>>, vector<32x20xf32>
      %208 = arith.truncf %202 : vector<13x32xf32> to vector<13x32xbf16>
      %209 = arith.truncf %207 : vector<32x20xf32> to vector<32x20xbf16>
      %cst_94 = arith.constant dense<0.000000e+00> : vector<13x20xf32>
      %210 = tpu.matmul %208, %209, %cst_94 {dimension_numbers = #tpu.dot_dimension_numbers<[1], [0], [0], [1], [0, 0, 1, 1], [], []>} : vector<13x32xbf16>, vector<32x20xbf16>, vector<13x20xf32> -> vector<13x20xf32>
      %c0_95 = arith.constant 0 : index
      %c0_96 = arith.constant 0 : index
      %211 = vector.load %arg22[%c0_95, %c0_96] : memref<1x20xf32, #tpu.memory_space<vmem>>, vector<1x20xf32>
      %212 = vector.broadcast %211 : vector<1x20xf32> to vector<13x20xf32>
      %213 = arith.addf %210, %212 : vector<13x20xf32>
      %c0_97 = arith.constant 0 : index
      %c0_98 = arith.constant 0 : index
      %c0_99 = arith.constant 0 : index
      %214 = vector.load %arg43[%c0_97, %c0_98, %c0_99] : memref<1x13x20xf32, #tpu.memory_space<vmem>>, vector<1x13x20xf32>
      %215 = vector.shape_cast %214 : vector<1x13x20xf32> to vector<13x20xf32>
      %216 = vector.shape_cast %213 : vector<13x20xf32> to vector<1x13x20xf32>
      tpu.vector_store %arg43[%c0_97, %c0_98, %c0_99], %216 {strides = array<i32>} : memref<1x13x20xf32, #tpu.memory_space<vmem>>, vector<1x13x20xf32>,
      %c0_100 = arith.constant 0 : index
      %c0_101 = arith.constant 0 : index
      %217 = vector.load %arg23[%c0_100, %c0_101] : memref<100x32xf32, #tpu.memory_space<vmem>>, vector<100x32xf32>
      %c0_102 = arith.constant 0 : index
      %c0_103 = arith.constant 0 : index
      %218 = vector.load %arg24[%c0_102, %c0_103] : memref<1x32xf32, #tpu.memory_space<vmem>>, vector<1x32xf32>
      %219 = tpu.iota {dimensions = array<i32: 0>} : vector<13x13xi32>
      %220 = tpu.iota {dimensions = array<i32: 1>} : vector<13x13xi32>
      %c-2_i32 = arith.constant -2 : i32
      %221 = vector.broadcast %c-2_i32 : i32 to vector<13x13xi32>
      %222 = arith.addi %219, %221 : vector<13x13xi32>
      %223 = arith.cmpi eq, %220, %222 : vector<13x13xi32>
      %224 = arith.extui %223 : vector<13x13xi1> to vector<13x13xi32>
      %225 = arith.sitofp %224 : vector<13x13xi32> to vector<13x13xf32>
      %cst_104 = arith.constant dense<0.000000e+00> : vector<13x20xf32>
      %226 = tpu.matmul %225, %213, %cst_104 {dimension_numbers = #tpu.dot_dimension_numbers<[1], [0], [0], [1], [0, 0, 1, 1], [], []>} : vector<13x13xf32>, vector<13x20xf32>, vector<13x20xf32> -> vector<13x20xf32>
      %227 = vector.extract_strided_slice %217 {offsets = [0, 0], sizes = [20, 32], strides = [1, 1]} : vector<100x32xf32> to vector<20x32xf32>
      %228 = arith.truncf %226 : vector<13x20xf32> to vector<13x20xbf16>
      %229 = arith.truncf %227 : vector<20x32xf32> to vector<20x32xbf16>
      %cst_105 = arith.constant dense<0.000000e+00> : vector<13x32xf32>
      %230 = tpu.matmul %228, %229, %cst_105 {dimension_numbers = #tpu.dot_dimension_numbers<[1], [0], [0], [1], [0, 0, 1, 1], [], []>} : vector<13x20xbf16>, vector<20x32xbf16>, vector<13x32xf32> -> vector<13x32xf32>
      %231 = tpu.iota {dimensions = array<i32: 0>} : vector<13x13xi32>
      %232 = tpu.iota {dimensions = array<i32: 1>} : vector<13x13xi32>
      %c-1_i32_106 = arith.constant -1 : i32
      %233 = vector.broadcast %c-1_i32_106 : i32 to vector<13x13xi32>
      %234 = arith.addi %231, %233 : vector<13x13xi32>
      %235 = arith.cmpi eq, %232, %234 : vector<13x13xi32>
      %236 = arith.extui %235 : vector<13x13xi1> to vector<13x13xi32>
      %237 = arith.sitofp %236 : vector<13x13xi32> to vector<13x13xf32>
      %cst_107 = arith.constant dense<0.000000e+00> : vector<13x20xf32>
      %238 = tpu.matmul %237, %213, %cst_107 {dimension_numbers = #tpu.dot_dimension_numbers<[1], [0], [0], [1], [0, 0, 1, 1], [], []>} : vector<13x13xf32>, vector<13x20xf32>, vector<13x20xf32> -> vector<13x20xf32>
      %239 = vector.extract_strided_slice %217 {offsets = [20, 0], sizes = [20, 32], strides = [1, 1]} : vector<100x32xf32> to vector<20x32xf32>
      %240 = arith.truncf %238 : vector<13x20xf32> to vector<13x20xbf16>
      %241 = arith.truncf %239 : vector<20x32xf32> to vector<20x32xbf16>
      %cst_108 = arith.constant dense<0.000000e+00> : vector<13x32xf32>
      %242 = tpu.matmul %240, %241, %cst_108 {dimension_numbers = #tpu.dot_dimension_numbers<[1], [0], [0], [1], [0, 0, 1, 1], [], []>} : vector<13x20xbf16>, vector<20x32xbf16>, vector<13x32xf32> -> vector<13x32xf32>
      %243 = arith.addf %230, %242 : vector<13x32xf32>
      %244 = vector.extract_strided_slice %217 {offsets = [40, 0], sizes = [20, 32], strides = [1, 1]} : vector<100x32xf32> to vector<20x32xf32>
      %245 = arith.truncf %213 : vector<13x20xf32> to vector<13x20xbf16>
      %246 = arith.truncf %244 : vector<20x32xf32> to vector<20x32xbf16>
      %cst_109 = arith.constant dense<0.000000e+00> : vector<13x32xf32>
      %247 = tpu.matmul %245, %246, %cst_109 {dimension_numbers = #tpu.dot_dimension_numbers<[1], [0], [0], [1], [0, 0, 1, 1], [], []>} : vector<13x20xbf16>, vector<20x32xbf16>, vector<13x32xf32> -> vector<13x32xf32>
      %248 = arith.addf %243, %247 : vector<13x32xf32>
      %249 = tpu.iota {dimensions = array<i32: 0>} : vector<13x13xi32>
      %250 = tpu.iota {dimensions = array<i32: 1>} : vector<13x13xi32>
      %c1_i32_110 = arith.constant 1 : i32
      %251 = vector.broadcast %c1_i32_110 : i32 to vector<13x13xi32>
      %252 = arith.addi %249, %251 : vector<13x13xi32>
      %253 = arith.cmpi eq, %250, %252 : vector<13x13xi32>
      %254 = arith.extui %253 : vector<13x13xi1> to vector<13x13xi32>
      %255 = arith.sitofp %254 : vector<13x13xi32> to vector<13x13xf32>
      %cst_111 = arith.constant dense<0.000000e+00> : vector<13x20xf32>
      %256 = tpu.matmul %255, %213, %cst_111 {dimension_numbers = #tpu.dot_dimension_numbers<[1], [0], [0], [1], [0, 0, 1, 1], [], []>} : vector<13x13xf32>, vector<13x20xf32>, vector<13x20xf32> -> vector<13x20xf32>
      %257 = vector.extract_strided_slice %217 {offsets = [60, 0], sizes = [20, 32], strides = [1, 1]} : vector<100x32xf32> to vector<20x32xf32>
      %258 = arith.truncf %256 : vector<13x20xf32> to vector<13x20xbf16>
      %259 = arith.truncf %257 : vector<20x32xf32> to vector<20x32xbf16>
      %cst_112 = arith.constant dense<0.000000e+00> : vector<13x32xf32>
      %260 = tpu.matmul %258, %259, %cst_112 {dimension_numbers = #tpu.dot_dimension_numbers<[1], [0], [0], [1], [0, 0, 1, 1], [], []>} : vector<13x20xbf16>, vector<20x32xbf16>, vector<13x32xf32> -> vector<13x32xf32>
      %261 = arith.addf %248, %260 : vector<13x32xf32>
      %262 = tpu.iota {dimensions = array<i32: 0>} : vector<13x13xi32>
      %263 = tpu.iota {dimensions = array<i32: 1>} : vector<13x13xi32>
      %c2_i32 = arith.constant 2 : i32
      %264 = vector.broadcast %c2_i32 : i32 to vector<13x13xi32>
      %265 = arith.addi %262, %264 : vector<13x13xi32>
      %266 = arith.cmpi eq, %263, %265 : vector<13x13xi32>
      %267 = arith.extui %266 : vector<13x13xi1> to vector<13x13xi32>
      %268 = arith.sitofp %267 : vector<13x13xi32> to vector<13x13xf32>
      %cst_113 = arith.constant dense<0.000000e+00> : vector<13x20xf32>
      %269 = tpu.matmul %268, %213, %cst_113 {dimension_numbers = #tpu.dot_dimension_numbers<[1], [0], [0], [1], [0, 0, 1, 1], [], []>} : vector<13x13xf32>, vector<13x20xf32>, vector<13x20xf32> -> vector<13x20xf32>
      %270 = vector.extract_strided_slice %217 {offsets = [80, 0], sizes = [20, 32], strides = [1, 1]} : vector<100x32xf32> to vector<20x32xf32>
      %271 = arith.truncf %269 : vector<13x20xf32> to vector<13x20xbf16>
      %272 = arith.truncf %270 : vector<20x32xf32> to vector<20x32xbf16>
      %cst_114 = arith.constant dense<0.000000e+00> : vector<13x32xf32>
      %273 = tpu.matmul %271, %272, %cst_114 {dimension_numbers = #tpu.dot_dimension_numbers<[1], [0], [0], [1], [0, 0, 1, 1], [], []>} : vector<13x20xbf16>, vector<20x32xbf16>, vector<13x32xf32> -> vector<13x32xf32>
      %274 = arith.addf %261, %273 : vector<13x32xf32>
      %275 = vector.broadcast %218 : vector<1x32xf32> to vector<13x32xf32>
      %276 = arith.addf %274, %275 : vector<13x32xf32>
      %c0_115 = arith.constant 0 : index
      %c0_116 = arith.constant 0 : index
      %277 = vector.load %arg25[%c0_115, %c0_116] : memref<1x32xf32, #tpu.memory_space<vmem>>, vector<1x32xf32>
      %278 = vector.broadcast %277 : vector<1x32xf32> to vector<13x32xf32>
      %279 = arith.mulf %276, %278 : vector<13x32xf32>
      %c0_117 = arith.constant 0 : index
      %c0_118 = arith.constant 0 : index
      %280 = vector.load %arg26[%c0_117, %c0_118] : memref<1x32xf32, #tpu.memory_space<vmem>>, vector<1x32xf32>
      %281 = vector.broadcast %280 : vector<1x32xf32> to vector<13x32xf32>
      %282 = arith.addf %279, %281 : vector<13x32xf32>
      %283 = math.tanh %282 : vector<13x32xf32>
      %c0_119 = arith.constant 0 : index
      %c0_120 = arith.constant 0 : index
      %284 = vector.load %arg27[%c0_119, %c0_120] : memref<160x32xf32, #tpu.memory_space<vmem>>, vector<160x32xf32>
      %c0_121 = arith.constant 0 : index
      %c0_122 = arith.constant 0 : index
      %285 = vector.load %arg28[%c0_121, %c0_122] : memref<1x32xf32, #tpu.memory_space<vmem>>, vector<1x32xf32>
      %286 = tpu.iota {dimensions = array<i32: 0>} : vector<13x13xi32>
      %287 = tpu.iota {dimensions = array<i32: 1>} : vector<13x13xi32>
      %c-2_i32_123 = arith.constant -2 : i32
      %288 = vector.broadcast %c-2_i32_123 : i32 to vector<13x13xi32>
      %289 = arith.addi %286, %288 : vector<13x13xi32>
      %290 = arith.cmpi eq, %287, %289 : vector<13x13xi32>
      %291 = arith.extui %290 : vector<13x13xi1> to vector<13x13xi32>
      %292 = arith.sitofp %291 : vector<13x13xi32> to vector<13x13xf32>
      %cst_124 = arith.constant dense<0.000000e+00> : vector<13x32xf32>
      %293 = tpu.matmul %292, %283, %cst_124 {dimension_numbers = #tpu.dot_dimension_numbers<[1], [0], [0], [1], [0, 0, 1, 1], [], []>} : vector<13x13xf32>, vector<13x32xf32>, vector<13x32xf32> -> vector<13x32xf32>
      %294 = vector.extract_strided_slice %284 {offsets = [0, 0], sizes = [32, 32], strides = [1, 1]} : vector<160x32xf32> to vector<32x32xf32>
      %295 = arith.truncf %293 : vector<13x32xf32> to vector<13x32xbf16>
      %296 = arith.truncf %294 : vector<32x32xf32> to vector<32x32xbf16>
      %cst_125 = arith.constant dense<0.000000e+00> : vector<13x32xf32>
      %297 = tpu.matmul %295, %296, %cst_125 {dimension_numbers = #tpu.dot_dimension_numbers<[1], [0], [0], [1], [0, 0, 1, 1], [], []>} : vector<13x32xbf16>, vector<32x32xbf16>, vector<13x32xf32> -> vector<13x32xf32>
      %298 = tpu.iota {dimensions = array<i32: 0>} : vector<13x13xi32>
      %299 = tpu.iota {dimensions = array<i32: 1>} : vector<13x13xi32>
      %c-1_i32_126 = arith.constant -1 : i32
      %300 = vector.broadcast %c-1_i32_126 : i32 to vector<13x13xi32>
      %301 = arith.addi %298, %300 : vector<13x13xi32>
      %302 = arith.cmpi eq, %299, %301 : vector<13x13xi32>
      %303 = arith.extui %302 : vector<13x13xi1> to vector<13x13xi32>
      %304 = arith.sitofp %303 : vector<13x13xi32> to vector<13x13xf32>
      %cst_127 = arith.constant dense<0.000000e+00> : vector<13x32xf32>
      %305 = tpu.matmul %304, %283, %cst_127 {dimension_numbers = #tpu.dot_dimension_numbers<[1], [0], [0], [1], [0, 0, 1, 1], [], []>} : vector<13x13xf32>, vector<13x32xf32>, vector<13x32xf32> -> vector<13x32xf32>
      %306 = vector.extract_strided_slice %284 {offsets = [32, 0], sizes = [32, 32], strides = [1, 1]} : vector<160x32xf32> to vector<32x32xf32>
      %307 = arith.truncf %305 : vector<13x32xf32> to vector<13x32xbf16>
      %308 = arith.truncf %306 : vector<32x32xf32> to vector<32x32xbf16>
      %cst_128 = arith.constant dense<0.000000e+00> : vector<13x32xf32>
      %309 = tpu.matmul %307, %308, %cst_128 {dimension_numbers = #tpu.dot_dimension_numbers<[1], [0], [0], [1], [0, 0, 1, 1], [], []>} : vector<13x32xbf16>, vector<32x32xbf16>, vector<13x32xf32> -> vector<13x32xf32>
      %310 = arith.addf %297, %309 : vector<13x32xf32>
      %311 = vector.extract_strided_slice %284 {offsets = [64, 0], sizes = [32, 32], strides = [1, 1]} : vector<160x32xf32> to vector<32x32xf32>
      %312 = arith.truncf %283 : vector<13x32xf32> to vector<13x32xbf16>
      %313 = arith.truncf %311 : vector<32x32xf32> to vector<32x32xbf16>
      %cst_129 = arith.constant dense<0.000000e+00> : vector<13x32xf32>
      %314 = tpu.matmul %312, %313, %cst_129 {dimension_numbers = #tpu.dot_dimension_numbers<[1], [0], [0], [1], [0, 0, 1, 1], [], []>} : vector<13x32xbf16>, vector<32x32xbf16>, vector<13x32xf32> -> vector<13x32xf32>
      %315 = arith.addf %310, %314 : vector<13x32xf32>
      %316 = tpu.iota {dimensions = array<i32: 0>} : vector<13x13xi32>
      %317 = tpu.iota {dimensions = array<i32: 1>} : vector<13x13xi32>
      %c1_i32_130 = arith.constant 1 : i32
      %318 = vector.broadcast %c1_i32_130 : i32 to vector<13x13xi32>
      %319 = arith.addi %316, %318 : vector<13x13xi32>
      %320 = arith.cmpi eq, %317, %319 : vector<13x13xi32>
      %321 = arith.extui %320 : vector<13x13xi1> to vector<13x13xi32>
      %322 = arith.sitofp %321 : vector<13x13xi32> to vector<13x13xf32>
      %cst_131 = arith.constant dense<0.000000e+00> : vector<13x32xf32>
      %323 = tpu.matmul %322, %283, %cst_131 {dimension_numbers = #tpu.dot_dimension_numbers<[1], [0], [0], [1], [0, 0, 1, 1], [], []>} : vector<13x13xf32>, vector<13x32xf32>, vector<13x32xf32> -> vector<13x32xf32>
      %324 = vector.extract_strided_slice %284 {offsets = [96, 0], sizes = [32, 32], strides = [1, 1]} : vector<160x32xf32> to vector<32x32xf32>
      %325 = arith.truncf %323 : vector<13x32xf32> to vector<13x32xbf16>
      %326 = arith.truncf %324 : vector<32x32xf32> to vector<32x32xbf16>
      %cst_132 = arith.constant dense<0.000000e+00> : vector<13x32xf32>
      %327 = tpu.matmul %325, %326, %cst_132 {dimension_numbers = #tpu.dot_dimension_numbers<[1], [0], [0], [1], [0, 0, 1, 1], [], []>} : vector<13x32xbf16>, vector<32x32xbf16>, vector<13x32xf32> -> vector<13x32xf32>
      %328 = arith.addf %315, %327 : vector<13x32xf32>
      %329 = tpu.iota {dimensions = array<i32: 0>} : vector<13x13xi32>
      %330 = tpu.iota {dimensions = array<i32: 1>} : vector<13x13xi32>
      %c2_i32_133 = arith.constant 2 : i32
      %331 = vector.broadcast %c2_i32_133 : i32 to vector<13x13xi32>
      %332 = arith.addi %329, %331 : vector<13x13xi32>
      %333 = arith.cmpi eq, %330, %332 : vector<13x13xi32>
      %334 = arith.extui %333 : vector<13x13xi1> to vector<13x13xi32>
      %335 = arith.sitofp %334 : vector<13x13xi32> to vector<13x13xf32>
      %cst_134 = arith.constant dense<0.000000e+00> : vector<13x32xf32>
      %336 = tpu.matmul %335, %283, %cst_134 {dimension_numbers = #tpu.dot_dimension_numbers<[1], [0], [0], [1], [0, 0, 1, 1], [], []>} : vector<13x13xf32>, vector<13x32xf32>, vector<13x32xf32> -> vector<13x32xf32>
      %337 = vector.extract_strided_slice %284 {offsets = [128, 0], sizes = [32, 32], strides = [1, 1]} : vector<160x32xf32> to vector<32x32xf32>
      %338 = arith.truncf %336 : vector<13x32xf32> to vector<13x32xbf16>
      %339 = arith.truncf %337 : vector<32x32xf32> to vector<32x32xbf16>
      %cst_135 = arith.constant dense<0.000000e+00> : vector<13x32xf32>
      %340 = tpu.matmul %338, %339, %cst_135 {dimension_numbers = #tpu.dot_dimension_numbers<[1], [0], [0], [1], [0, 0, 1, 1], [], []>} : vector<13x32xbf16>, vector<32x32xbf16>, vector<13x32xf32> -> vector<13x32xf32>
      %341 = arith.addf %328, %340 : vector<13x32xf32>
      %342 = vector.broadcast %285 : vector<1x32xf32> to vector<13x32xf32>
      %343 = arith.addf %341, %342 : vector<13x32xf32>
      %c0_136 = arith.constant 0 : index
      %c0_137 = arith.constant 0 : index
      %344 = vector.load %arg29[%c0_136, %c0_137] : memref<1x32xf32, #tpu.memory_space<vmem>>, vector<1x32xf32>
      %345 = vector.broadcast %344 : vector<1x32xf32> to vector<13x32xf32>
      %346 = arith.mulf %343, %345 : vector<13x32xf32>
      %c0_138 = arith.constant 0 : index
      %c0_139 = arith.constant 0 : index
      %347 = vector.load %arg30[%c0_138, %c0_139] : memref<1x32xf32, #tpu.memory_space<vmem>>, vector<1x32xf32>
      %348 = vector.broadcast %347 : vector<1x32xf32> to vector<13x32xf32>
      %349 = arith.addf %346, %348 : vector<13x32xf32>
      %350 = math.tanh %349 : vector<13x32xf32>
      %c0_140 = arith.constant 0 : index
      %c0_141 = arith.constant 0 : index
      %351 = vector.load %arg31[%c0_140, %c0_141] : memref<160x32xf32, #tpu.memory_space<vmem>>, vector<160x32xf32>
      %c0_142 = arith.constant 0 : index
      %c0_143 = arith.constant 0 : index
      %352 = vector.load %arg32[%c0_142, %c0_143] : memref<1x32xf32, #tpu.memory_space<vmem>>, vector<1x32xf32>
      %353 = tpu.iota {dimensions = array<i32: 0>} : vector<13x13xi32>
      %354 = tpu.iota {dimensions = array<i32: 1>} : vector<13x13xi32>
      %c-2_i32_144 = arith.constant -2 : i32
      %355 = vector.broadcast %c-2_i32_144 : i32 to vector<13x13xi32>
      %356 = arith.addi %353, %355 : vector<13x13xi32>
      %357 = arith.cmpi eq, %354, %356 : vector<13x13xi32>
      %358 = arith.extui %357 : vector<13x13xi1> to vector<13x13xi32>
      %359 = arith.sitofp %358 : vector<13x13xi32> to vector<13x13xf32>
      %cst_145 = arith.constant dense<0.000000e+00> : vector<13x32xf32>
      %360 = tpu.matmul %359, %350, %cst_145 {dimension_numbers = #tpu.dot_dimension_numbers<[1], [0], [0], [1], [0, 0, 1, 1], [], []>} : vector<13x13xf32>, vector<13x32xf32>, vector<13x32xf32> -> vector<13x32xf32>
      %361 = vector.extract_strided_slice %351 {offsets = [0, 0], sizes = [32, 32], strides = [1, 1]} : vector<160x32xf32> to vector<32x32xf32>
      %362 = arith.truncf %360 : vector<13x32xf32> to vector<13x32xbf16>
      %363 = arith.truncf %361 : vector<32x32xf32> to vector<32x32xbf16>
      %cst_146 = arith.constant dense<0.000000e+00> : vector<13x32xf32>
      %364 = tpu.matmul %362, %363, %cst_146 {dimension_numbers = #tpu.dot_dimension_numbers<[1], [0], [0], [1], [0, 0, 1, 1], [], []>} : vector<13x32xbf16>, vector<32x32xbf16>, vector<13x32xf32> -> vector<13x32xf32>
      %365 = tpu.iota {dimensions = array<i32: 0>} : vector<13x13xi32>
      %366 = tpu.iota {dimensions = array<i32: 1>} : vector<13x13xi32>
      %c-1_i32_147 = arith.constant -1 : i32
      %367 = vector.broadcast %c-1_i32_147 : i32 to vector<13x13xi32>
      %368 = arith.addi %365, %367 : vector<13x13xi32>
      %369 = arith.cmpi eq, %366, %368 : vector<13x13xi32>
      %370 = arith.extui %369 : vector<13x13xi1> to vector<13x13xi32>
      %371 = arith.sitofp %370 : vector<13x13xi32> to vector<13x13xf32>
      %cst_148 = arith.constant dense<0.000000e+00> : vector<13x32xf32>
      %372 = tpu.matmul %371, %350, %cst_148 {dimension_numbers = #tpu.dot_dimension_numbers<[1], [0], [0], [1], [0, 0, 1, 1], [], []>} : vector<13x13xf32>, vector<13x32xf32>, vector<13x32xf32> -> vector<13x32xf32>
      %373 = vector.extract_strided_slice %351 {offsets = [32, 0], sizes = [32, 32], strides = [1, 1]} : vector<160x32xf32> to vector<32x32xf32>
      %374 = arith.truncf %372 : vector<13x32xf32> to vector<13x32xbf16>
      %375 = arith.truncf %373 : vector<32x32xf32> to vector<32x32xbf16>
      %cst_149 = arith.constant dense<0.000000e+00> : vector<13x32xf32>
      %376 = tpu.matmul %374, %375, %cst_149 {dimension_numbers = #tpu.dot_dimension_numbers<[1], [0], [0], [1], [0, 0, 1, 1], [], []>} : vector<13x32xbf16>, vector<32x32xbf16>, vector<13x32xf32> -> vector<13x32xf32>
      %377 = arith.addf %364, %376 : vector<13x32xf32>
      %378 = vector.extract_strided_slice %351 {offsets = [64, 0], sizes = [32, 32], strides = [1, 1]} : vector<160x32xf32> to vector<32x32xf32>
      %379 = arith.truncf %350 : vector<13x32xf32> to vector<13x32xbf16>
      %380 = arith.truncf %378 : vector<32x32xf32> to vector<32x32xbf16>
      %cst_150 = arith.constant dense<0.000000e+00> : vector<13x32xf32>
      %381 = tpu.matmul %379, %380, %cst_150 {dimension_numbers = #tpu.dot_dimension_numbers<[1], [0], [0], [1], [0, 0, 1, 1], [], []>} : vector<13x32xbf16>, vector<32x32xbf16>, vector<13x32xf32> -> vector<13x32xf32>
      %382 = arith.addf %377, %381 : vector<13x32xf32>
      %383 = tpu.iota {dimensions = array<i32: 0>} : vector<13x13xi32>
      %384 = tpu.iota {dimensions = array<i32: 1>} : vector<13x13xi32>
      %c1_i32_151 = arith.constant 1 : i32
      %385 = vector.broadcast %c1_i32_151 : i32 to vector<13x13xi32>
      %386 = arith.addi %383, %385 : vector<13x13xi32>
      %387 = arith.cmpi eq, %384, %386 : vector<13x13xi32>
      %388 = arith.extui %387 : vector<13x13xi1> to vector<13x13xi32>
      %389 = arith.sitofp %388 : vector<13x13xi32> to vector<13x13xf32>
      %cst_152 = arith.constant dense<0.000000e+00> : vector<13x32xf32>
      %390 = tpu.matmul %389, %350, %cst_152 {dimension_numbers = #tpu.dot_dimension_numbers<[1], [0], [0], [1], [0, 0, 1, 1], [], []>} : vector<13x13xf32>, vector<13x32xf32>, vector<13x32xf32> -> vector<13x32xf32>
      %391 = vector.extract_strided_slice %351 {offsets = [96, 0], sizes = [32, 32], strides = [1, 1]} : vector<160x32xf32> to vector<32x32xf32>
      %392 = arith.truncf %390 : vector<13x32xf32> to vector<13x32xbf16>
      %393 = arith.truncf %391 : vector<32x32xf32> to vector<32x32xbf16>
      %cst_153 = arith.constant dense<0.000000e+00> : vector<13x32xf32>
      %394 = tpu.matmul %392, %393, %cst_153 {dimension_numbers = #tpu.dot_dimension_numbers<[1], [0], [0], [1], [0, 0, 1, 1], [], []>} : vector<13x32xbf16>, vector<32x32xbf16>, vector<13x32xf32> -> vector<13x32xf32>
      %395 = arith.addf %382, %394 : vector<13x32xf32>
      %396 = tpu.iota {dimensions = array<i32: 0>} : vector<13x13xi32>
      %397 = tpu.iota {dimensions = array<i32: 1>} : vector<13x13xi32>
      %c2_i32_154 = arith.constant 2 : i32
      %398 = vector.broadcast %c2_i32_154 : i32 to vector<13x13xi32>
      %399 = arith.addi %396, %398 : vector<13x13xi32>
      %400 = arith.cmpi eq, %397, %399 : vector<13x13xi32>
      %401 = arith.extui %400 : vector<13x13xi1> to vector<13x13xi32>
      %402 = arith.sitofp %401 : vector<13x13xi32> to vector<13x13xf32>
      %cst_155 = arith.constant dense<0.000000e+00> : vector<13x32xf32>
      %403 = tpu.matmul %402, %350, %cst_155 {dimension_numbers = #tpu.dot_dimension_numbers<[1], [0], [0], [1], [0, 0, 1, 1], [], []>} : vector<13x13xf32>, vector<13x32xf32>, vector<13x32xf32> -> vector<13x32xf32>
      %404 = vector.extract_strided_slice %351 {offsets = [128, 0], sizes = [32, 32], strides = [1, 1]} : vector<160x32xf32> to vector<32x32xf32>
      %405 = arith.truncf %403 : vector<13x32xf32> to vector<13x32xbf16>
      %406 = arith.truncf %404 : vector<32x32xf32> to vector<32x32xbf16>
      %cst_156 = arith.constant dense<0.000000e+00> : vector<13x32xf32>
      %407 = tpu.matmul %405, %406, %cst_156 {dimension_numbers = #tpu.dot_dimension_numbers<[1], [0], [0], [1], [0, 0, 1, 1], [], []>} : vector<13x32xbf16>, vector<32x32xbf16>, vector<13x32xf32> -> vector<13x32xf32>
      %408 = arith.addf %395, %407 : vector<13x32xf32>
      %409 = vector.broadcast %352 : vector<1x32xf32> to vector<13x32xf32>
      %410 = arith.addf %408, %409 : vector<13x32xf32>
      %c0_157 = arith.constant 0 : index
      %c0_158 = arith.constant 0 : index
      %411 = vector.load %arg33[%c0_157, %c0_158] : memref<1x32xf32, #tpu.memory_space<vmem>>, vector<1x32xf32>
      %412 = vector.broadcast %411 : vector<1x32xf32> to vector<13x32xf32>
      %413 = arith.mulf %410, %412 : vector<13x32xf32>
      %c0_159 = arith.constant 0 : index
      %c0_160 = arith.constant 0 : index
      %414 = vector.load %arg34[%c0_159, %c0_160] : memref<1x32xf32, #tpu.memory_space<vmem>>, vector<1x32xf32>
      %415 = vector.broadcast %414 : vector<1x32xf32> to vector<13x32xf32>
      %416 = arith.addf %413, %415 : vector<13x32xf32>
      %417 = math.tanh %416 : vector<13x32xf32>
      %c0_161 = arith.constant 0 : index
      %c0_162 = arith.constant 0 : index
      %418 = vector.load %arg35[%c0_161, %c0_162] : memref<160x32xf32, #tpu.memory_space<vmem>>, vector<160x32xf32>
      %c0_163 = arith.constant 0 : index
      %c0_164 = arith.constant 0 : index
      %419 = vector.load %arg36[%c0_163, %c0_164] : memref<1x32xf32, #tpu.memory_space<vmem>>, vector<1x32xf32>
      %420 = tpu.iota {dimensions = array<i32: 0>} : vector<13x13xi32>
      %421 = tpu.iota {dimensions = array<i32: 1>} : vector<13x13xi32>
      %c-2_i32_165 = arith.constant -2 : i32
      %422 = vector.broadcast %c-2_i32_165 : i32 to vector<13x13xi32>
      %423 = arith.addi %420, %422 : vector<13x13xi32>
      %424 = arith.cmpi eq, %421, %423 : vector<13x13xi32>
      %425 = arith.extui %424 : vector<13x13xi1> to vector<13x13xi32>
      %426 = arith.sitofp %425 : vector<13x13xi32> to vector<13x13xf32>
      %cst_166 = arith.constant dense<0.000000e+00> : vector<13x32xf32>
      %427 = tpu.matmul %426, %417, %cst_166 {dimension_numbers = #tpu.dot_dimension_numbers<[1], [0], [0], [1], [0, 0, 1, 1], [], []>} : vector<13x13xf32>, vector<13x32xf32>, vector<13x32xf32> -> vector<13x32xf32>
      %428 = vector.extract_strided_slice %418 {offsets = [0, 0], sizes = [32, 32], strides = [1, 1]} : vector<160x32xf32> to vector<32x32xf32>
      %429 = arith.truncf %427 : vector<13x32xf32> to vector<13x32xbf16>
      %430 = arith.truncf %428 : vector<32x32xf32> to vector<32x32xbf16>
      %cst_167 = arith.constant dense<0.000000e+00> : vector<13x32xf32>
      %431 = tpu.matmul %429, %430, %cst_167 {dimension_numbers = #tpu.dot_dimension_numbers<[1], [0], [0], [1], [0, 0, 1, 1], [], []>} : vector<13x32xbf16>, vector<32x32xbf16>, vector<13x32xf32> -> vector<13x32xf32>
      %432 = tpu.iota {dimensions = array<i32: 0>} : vector<13x13xi32>
      %433 = tpu.iota {dimensions = array<i32: 1>} : vector<13x13xi32>
      %c-1_i32_168 = arith.constant -1 : i32
      %434 = vector.broadcast %c-1_i32_168 : i32 to vector<13x13xi32>
      %435 = arith.addi %432, %434 : vector<13x13xi32>
      %436 = arith.cmpi eq, %433, %435 : vector<13x13xi32>
      %437 = arith.extui %436 : vector<13x13xi1> to vector<13x13xi32>
      %438 = arith.sitofp %437 : vector<13x13xi32> to vector<13x13xf32>
      %cst_169 = arith.constant dense<0.000000e+00> : vector<13x32xf32>
      %439 = tpu.matmul %438, %417, %cst_169 {dimension_numbers = #tpu.dot_dimension_numbers<[1], [0], [0], [1], [0, 0, 1, 1], [], []>} : vector<13x13xf32>, vector<13x32xf32>, vector<13x32xf32> -> vector<13x32xf32>
      %440 = vector.extract_strided_slice %418 {offsets = [32, 0], sizes = [32, 32], strides = [1, 1]} : vector<160x32xf32> to vector<32x32xf32>
      %441 = arith.truncf %439 : vector<13x32xf32> to vector<13x32xbf16>
      %442 = arith.truncf %440 : vector<32x32xf32> to vector<32x32xbf16>
      %cst_170 = arith.constant dense<0.000000e+00> : vector<13x32xf32>
      %443 = tpu.matmul %441, %442, %cst_170 {dimension_numbers = #tpu.dot_dimension_numbers<[1], [0], [0], [1], [0, 0, 1, 1], [], []>} : vector<13x32xbf16>, vector<32x32xbf16>, vector<13x32xf32> -> vector<13x32xf32>
      %444 = arith.addf %431, %443 : vector<13x32xf32>
      %445 = vector.extract_strided_slice %418 {offsets = [64, 0], sizes = [32, 32], strides = [1, 1]} : vector<160x32xf32> to vector<32x32xf32>
      %446 = arith.truncf %417 : vector<13x32xf32> to vector<13x32xbf16>
      %447 = arith.truncf %445 : vector<32x32xf32> to vector<32x32xbf16>
      %cst_171 = arith.constant dense<0.000000e+00> : vector<13x32xf32>
      %448 = tpu.matmul %446, %447, %cst_171 {dimension_numbers = #tpu.dot_dimension_numbers<[1], [0], [0], [1], [0, 0, 1, 1], [], []>} : vector<13x32xbf16>, vector<32x32xbf16>, vector<13x32xf32> -> vector<13x32xf32>
      %449 = arith.addf %444, %448 : vector<13x32xf32>
      %450 = tpu.iota {dimensions = array<i32: 0>} : vector<13x13xi32>
      %451 = tpu.iota {dimensions = array<i32: 1>} : vector<13x13xi32>
      %c1_i32_172 = arith.constant 1 : i32
      %452 = vector.broadcast %c1_i32_172 : i32 to vector<13x13xi32>
      %453 = arith.addi %450, %452 : vector<13x13xi32>
      %454 = arith.cmpi eq, %451, %453 : vector<13x13xi32>
      %455 = arith.extui %454 : vector<13x13xi1> to vector<13x13xi32>
      %456 = arith.sitofp %455 : vector<13x13xi32> to vector<13x13xf32>
      %cst_173 = arith.constant dense<0.000000e+00> : vector<13x32xf32>
      %457 = tpu.matmul %456, %417, %cst_173 {dimension_numbers = #tpu.dot_dimension_numbers<[1], [0], [0], [1], [0, 0, 1, 1], [], []>} : vector<13x13xf32>, vector<13x32xf32>, vector<13x32xf32> -> vector<13x32xf32>
      %458 = vector.extract_strided_slice %418 {offsets = [96, 0], sizes = [32, 32], strides = [1, 1]} : vector<160x32xf32> to vector<32x32xf32>
      %459 = arith.truncf %457 : vector<13x32xf32> to vector<13x32xbf16>
      %460 = arith.truncf %458 : vector<32x32xf32> to vector<32x32xbf16>
      %cst_174 = arith.constant dense<0.000000e+00> : vector<13x32xf32>
      %461 = tpu.matmul %459, %460, %cst_174 {dimension_numbers = #tpu.dot_dimension_numbers<[1], [0], [0], [1], [0, 0, 1, 1], [], []>} : vector<13x32xbf16>, vector<32x32xbf16>, vector<13x32xf32> -> vector<13x32xf32>
      %462 = arith.addf %449, %461 : vector<13x32xf32>
      %463 = tpu.iota {dimensions = array<i32: 0>} : vector<13x13xi32>
      %464 = tpu.iota {dimensions = array<i32: 1>} : vector<13x13xi32>
      %c2_i32_175 = arith.constant 2 : i32
      %465 = vector.broadcast %c2_i32_175 : i32 to vector<13x13xi32>
      %466 = arith.addi %463, %465 : vector<13x13xi32>
      %467 = arith.cmpi eq, %464, %466 : vector<13x13xi32>
      %468 = arith.extui %467 : vector<13x13xi1> to vector<13x13xi32>
      %469 = arith.sitofp %468 : vector<13x13xi32> to vector<13x13xf32>
      %cst_176 = arith.constant dense<0.000000e+00> : vector<13x32xf32>
      %470 = tpu.matmul %469, %417, %cst_176 {dimension_numbers = #tpu.dot_dimension_numbers<[1], [0], [0], [1], [0, 0, 1, 1], [], []>} : vector<13x13xf32>, vector<13x32xf32>, vector<13x32xf32> -> vector<13x32xf32>
      %471 = vector.extract_strided_slice %418 {offsets = [128, 0], sizes = [32, 32], strides = [1, 1]} : vector<160x32xf32> to vector<32x32xf32>
      %472 = arith.truncf %470 : vector<13x32xf32> to vector<13x32xbf16>
      %473 = arith.truncf %471 : vector<32x32xf32> to vector<32x32xbf16>
      %cst_177 = arith.constant dense<0.000000e+00> : vector<13x32xf32>
      %474 = tpu.matmul %472, %473, %cst_177 {dimension_numbers = #tpu.dot_dimension_numbers<[1], [0], [0], [1], [0, 0, 1, 1], [], []>} : vector<13x32xbf16>, vector<32x32xbf16>, vector<13x32xf32> -> vector<13x32xf32>
      %475 = arith.addf %462, %474 : vector<13x32xf32>
      %476 = vector.broadcast %419 : vector<1x32xf32> to vector<13x32xf32>
      %477 = arith.addf %475, %476 : vector<13x32xf32>
      %c0_178 = arith.constant 0 : index
      %c0_179 = arith.constant 0 : index
      %478 = vector.load %arg37[%c0_178, %c0_179] : memref<1x32xf32, #tpu.memory_space<vmem>>, vector<1x32xf32>
      %479 = vector.broadcast %478 : vector<1x32xf32> to vector<13x32xf32>
      %480 = arith.mulf %477, %479 : vector<13x32xf32>
      %c0_180 = arith.constant 0 : index
      %c0_181 = arith.constant 0 : index
      %481 = vector.load %arg38[%c0_180, %c0_181] : memref<1x32xf32, #tpu.memory_space<vmem>>, vector<1x32xf32>
      %482 = vector.broadcast %481 : vector<1x32xf32> to vector<13x32xf32>
      %483 = arith.addf %480, %482 : vector<13x32xf32>
      %484 = math.tanh %483 : vector<13x32xf32>
      %c0_182 = arith.constant 0 : index
      %c0_183 = arith.constant 0 : index
      %485 = vector.load %arg39[%c0_182, %c0_183] : memref<160x20xf32, #tpu.memory_space<vmem>>, vector<160x20xf32>
      %c0_184 = arith.constant 0 : index
      %c0_185 = arith.constant 0 : index
      %486 = vector.load %arg40[%c0_184, %c0_185] : memref<1x20xf32, #tpu.memory_space<vmem>>, vector<1x20xf32>
      %487 = tpu.iota {dimensions = array<i32: 0>} : vector<13x13xi32>
      %488 = tpu.iota {dimensions = array<i32: 1>} : vector<13x13xi32>
      %c-2_i32_186 = arith.constant -2 : i32
      %489 = vector.broadcast %c-2_i32_186 : i32 to vector<13x13xi32>
      %490 = arith.addi %487, %489 : vector<13x13xi32>
      %491 = arith.cmpi eq, %488, %490 : vector<13x13xi32>
      %492 = arith.extui %491 : vector<13x13xi1> to vector<13x13xi32>
      %493 = arith.sitofp %492 : vector<13x13xi32> to vector<13x13xf32>
      %cst_187 = arith.constant dense<0.000000e+00> : vector<13x32xf32>
      %494 = tpu.matmul %493, %484, %cst_187 {dimension_numbers = #tpu.dot_dimension_numbers<[1], [0], [0], [1], [0, 0, 1, 1], [], []>} : vector<13x13xf32>, vector<13x32xf32>, vector<13x32xf32> -> vector<13x32xf32>
      %495 = vector.extract_strided_slice %485 {offsets = [0, 0], sizes = [32, 20], strides = [1, 1]} : vector<160x20xf32> to vector<32x20xf32>
      %496 = arith.truncf %494 : vector<13x32xf32> to vector<13x32xbf16>
      %497 = arith.truncf %495 : vector<32x20xf32> to vector<32x20xbf16>
      %cst_188 = arith.constant dense<0.000000e+00> : vector<13x20xf32>
      %498 = tpu.matmul %496, %497, %cst_188 {dimension_numbers = #tpu.dot_dimension_numbers<[1], [0], [0], [1], [0, 0, 1, 1], [], []>} : vector<13x32xbf16>, vector<32x20xbf16>, vector<13x20xf32> -> vector<13x20xf32>
      %499 = tpu.iota {dimensions = array<i32: 0>} : vector<13x13xi32>
      %500 = tpu.iota {dimensions = array<i32: 1>} : vector<13x13xi32>
      %c-1_i32_189 = arith.constant -1 : i32
      %501 = vector.broadcast %c-1_i32_189 : i32 to vector<13x13xi32>
      %502 = arith.addi %499, %501 : vector<13x13xi32>
      %503 = arith.cmpi eq, %500, %502 : vector<13x13xi32>
      %504 = arith.extui %503 : vector<13x13xi1> to vector<13x13xi32>
      %505 = arith.sitofp %504 : vector<13x13xi32> to vector<13x13xf32>
      %cst_190 = arith.constant dense<0.000000e+00> : vector<13x32xf32>
      %506 = tpu.matmul %505, %484, %cst_190 {dimension_numbers = #tpu.dot_dimension_numbers<[1], [0], [0], [1], [0, 0, 1, 1], [], []>} : vector<13x13xf32>, vector<13x32xf32>, vector<13x32xf32> -> vector<13x32xf32>
      %507 = vector.extract_strided_slice %485 {offsets = [32, 0], sizes = [32, 20], strides = [1, 1]} : vector<160x20xf32> to vector<32x20xf32>
      %508 = arith.truncf %506 : vector<13x32xf32> to vector<13x32xbf16>
      %509 = arith.truncf %507 : vector<32x20xf32> to vector<32x20xbf16>
      %cst_191 = arith.constant dense<0.000000e+00> : vector<13x20xf32>
      %510 = tpu.matmul %508, %509, %cst_191 {dimension_numbers = #tpu.dot_dimension_numbers<[1], [0], [0], [1], [0, 0, 1, 1], [], []>} : vector<13x32xbf16>, vector<32x20xbf16>, vector<13x20xf32> -> vector<13x20xf32>
      %511 = arith.addf %498, %510 : vector<13x20xf32>
      %512 = vector.extract_strided_slice %485 {offsets = [64, 0], sizes = [32, 20], strides = [1, 1]} : vector<160x20xf32> to vector<32x20xf32>
      %513 = arith.truncf %484 : vector<13x32xf32> to vector<13x32xbf16>
      %514 = arith.truncf %512 : vector<32x20xf32> to vector<32x20xbf16>
      %cst_192 = arith.constant dense<0.000000e+00> : vector<13x20xf32>
      %515 = tpu.matmul %513, %514, %cst_192 {dimension_numbers = #tpu.dot_dimension_numbers<[1], [0], [0], [1], [0, 0, 1, 1], [], []>} : vector<13x32xbf16>, vector<32x20xbf16>, vector<13x20xf32> -> vector<13x20xf32>
      %516 = arith.addf %511, %515 : vector<13x20xf32>
      %517 = tpu.iota {dimensions = array<i32: 0>} : vector<13x13xi32>
      %518 = tpu.iota {dimensions = array<i32: 1>} : vector<13x13xi32>
      %c1_i32_193 = arith.constant 1 : i32
      %519 = vector.broadcast %c1_i32_193 : i32 to vector<13x13xi32>
      %520 = arith.addi %517, %519 : vector<13x13xi32>
      %521 = arith.cmpi eq, %518, %520 : vector<13x13xi32>
      %522 = arith.extui %521 : vector<13x13xi1> to vector<13x13xi32>
      %523 = arith.sitofp %522 : vector<13x13xi32> to vector<13x13xf32>
      %cst_194 = arith.constant dense<0.000000e+00> : vector<13x32xf32>
      %524 = tpu.matmul %523, %484, %cst_194 {dimension_numbers = #tpu.dot_dimension_numbers<[1], [0], [0], [1], [0, 0, 1, 1], [], []>} : vector<13x13xf32>, vector<13x32xf32>, vector<13x32xf32> -> vector<13x32xf32>
      %525 = vector.extract_strided_slice %485 {offsets = [96, 0], sizes = [32, 20], strides = [1, 1]} : vector<160x20xf32> to vector<32x20xf32>
      %526 = arith.truncf %524 : vector<13x32xf32> to vector<13x32xbf16>
      %527 = arith.truncf %525 : vector<32x20xf32> to vector<32x20xbf16>
      %cst_195 = arith.constant dense<0.000000e+00> : vector<13x20xf32>
      %528 = tpu.matmul %526, %527, %cst_195 {dimension_numbers = #tpu.dot_dimension_numbers<[1], [0], [0], [1], [0, 0, 1, 1], [], []>} : vector<13x32xbf16>, vector<32x20xbf16>, vector<13x20xf32> -> vector<13x20xf32>
      %529 = arith.addf %516, %528 : vector<13x20xf32>
      %530 = tpu.iota {dimensions = array<i32: 0>} : vector<13x13xi32>
      %531 = tpu.iota {dimensions = array<i32: 1>} : vector<13x13xi32>
      %c2_i32_196 = arith.constant 2 : i32
      %532 = vector.broadcast %c2_i32_196 : i32 to vector<13x13xi32>
      %533 = arith.addi %530, %532 : vector<13x13xi32>
      %534 = arith.cmpi eq, %531, %533 : vector<13x13xi32>
      %535 = arith.extui %534 : vector<13x13xi1> to vector<13x13xi32>
      %536 = arith.sitofp %535 : vector<13x13xi32> to vector<13x13xf32>
      %cst_197 = arith.constant dense<0.000000e+00> : vector<13x32xf32>
      %537 = tpu.matmul %536, %484, %cst_197 {dimension_numbers = #tpu.dot_dimension_numbers<[1], [0], [0], [1], [0, 0, 1, 1], [], []>} : vector<13x13xf32>, vector<13x32xf32>, vector<13x32xf32> -> vector<13x32xf32>
      %538 = vector.extract_strided_slice %485 {offsets = [128, 0], sizes = [32, 20], strides = [1, 1]} : vector<160x20xf32> to vector<32x20xf32>
      %539 = arith.truncf %537 : vector<13x32xf32> to vector<13x32xbf16>
      %540 = arith.truncf %538 : vector<32x20xf32> to vector<32x20xbf16>
      %cst_198 = arith.constant dense<0.000000e+00> : vector<13x20xf32>
      %541 = tpu.matmul %539, %540, %cst_198 {dimension_numbers = #tpu.dot_dimension_numbers<[1], [0], [0], [1], [0, 0, 1, 1], [], []>} : vector<13x32xbf16>, vector<32x20xbf16>, vector<13x20xf32> -> vector<13x20xf32>
      %542 = arith.addf %529, %541 : vector<13x20xf32>
      %543 = vector.broadcast %486 : vector<1x20xf32> to vector<13x20xf32>
      %544 = arith.addf %542, %543 : vector<13x20xf32>
      %c0_199 = arith.constant 0 : index
      %c0_200 = arith.constant 0 : index
      %545 = vector.load %arg41[%c0_199, %c0_200] : memref<1x20xf32, #tpu.memory_space<vmem>>, vector<1x20xf32>
      %546 = vector.broadcast %545 : vector<1x20xf32> to vector<13x20xf32>
      %547 = arith.mulf %544, %546 : vector<13x20xf32>
      %c0_201 = arith.constant 0 : index
      %c0_202 = arith.constant 0 : index
      %548 = vector.load %arg42[%c0_201, %c0_202] : memref<1x20xf32, #tpu.memory_space<vmem>>, vector<1x20xf32>
      %549 = vector.broadcast %548 : vector<1x20xf32> to vector<13x20xf32>
      %550 = arith.addf %547, %549 : vector<13x20xf32>
      %551 = arith.addf %550, %213 : vector<13x20xf32>
      %c0_203 = arith.constant 0 : index
      %c0_204 = arith.constant 0 : index
      %c0_205 = arith.constant 0 : index
      %552 = vector.load %arg44[%c0_203, %c0_204, %c0_205] : memref<1x13x20xf32, #tpu.memory_space<vmem>>, vector<1x13x20xf32>
      %553 = vector.shape_cast %552 : vector<1x13x20xf32> to vector<13x20xf32>
      %554 = vector.shape_cast %551 : vector<13x20xf32> to vector<1x13x20xf32>
      tpu.vector_store %arg44[%c0_203, %c0_204, %c0_205], %554 {strides = array<i32>} : memref<1x13x20xf32, #tpu.memory_space<vmem>>, vector<1x13x20xf32>,
    } else {
    }
    return
  }
  func.func @transform_0(%arg0: i32, %arg1: i32) -> (i32, i32, i32) {
    %c0_i32 = arith.constant 0 : i32
    %c0_i32_0 = arith.constant 0 : i32
    %c0_i32_1 = arith.constant 0 : i32
    return %arg0, %c0_i32, %c0_i32_0 : i32, i32, i32
  }
  func.func @transform_1(%arg0: i32, %arg1: i32) -> (i32, i32, i32) {
    %c0_i32 = arith.constant 0 : i32
    %c0_i32_0 = arith.constant 0 : i32
    %c0_i32_1 = arith.constant 0 : i32
    return %arg0, %c0_i32, %c0_i32_0 : i32, i32, i32
  }
  func.func @transform_2(%arg0: i32, %arg1: i32) -> (i32, i32, i32) {
    %c0_i32 = arith.constant 0 : i32
    %c0_i32_0 = arith.constant 0 : i32
    %c0_i32_1 = arith.constant 0 : i32
    return %arg0, %c0_i32, %c0_i32_0 : i32, i32, i32
  }
  func.func @transform_3(%arg0: i32, %arg1: i32) -> (i32, i32, i32) {
    %c0_i32 = arith.constant 0 : i32
    %c0_i32_0 = arith.constant 0 : i32
    %c0_i32_1 = arith.constant 0 : i32
    return %arg1, %c0_i32, %c0_i32_0 : i32, i32, i32
  }
  func.func @transform_4(%arg0: i32, %arg1: i32) -> (i32, i32, i32) {
    %c0_i32 = arith.constant 0 : i32
    %c0_i32_0 = arith.constant 0 : i32
    %c0_i32_1 = arith.constant 0 : i32
    return %arg1, %c0_i32, %c0_i32_0 : i32, i32, i32
  }
  func.func @transform_5(%arg0: i32, %arg1: i32) -> (i32, i32, i32) {
    %c0_i32 = arith.constant 0 : i32
    %c0_i32_0 = arith.constant 0 : i32
    %c0_i32_1 = arith.constant 0 : i32
    return %arg1, %c0_i32, %c0_i32_0 : i32, i32, i32
  }
  func.func @transform_6(%arg0: i32, %arg1: i32) -> (i32, i32, i32) {
    %c0_i32 = arith.constant 0 : i32
    %c0_i32_0 = arith.constant 0 : i32
    %c0_i32_1 = arith.constant 0 : i32
    return %arg1, %c0_i32, %c0_i32_0 : i32, i32, i32
  }
  func.func @transform_7(%arg0: i32, %arg1: i32) -> (i32, i32, i32) {
    %c0_i32 = arith.constant 0 : i32
    %c0_i32_0 = arith.constant 0 : i32
    %c0_i32_1 = arith.constant 0 : i32
    return %arg1, %c0_i32, %c0_i32_0 : i32, i32, i32
  }
  func.func @transform_8(%arg0: i32, %arg1: i32) -> (i32, i32, i32) {
    %c0_i32 = arith.constant 0 : i32
    %c0_i32_0 = arith.constant 0 : i32
    %c0_i32_1 = arith.constant 0 : i32
    return %arg1, %c0_i32, %c0_i32_0 : i32, i32, i32
  }
  func.func @transform_9(%arg0: i32, %arg1: i32) -> (i32, i32, i32) {
    %c0_i32 = arith.constant 0 : i32
    %c0_i32_0 = arith.constant 0 : i32
    %c0_i32_1 = arith.constant 0 : i32
    return %arg1, %c0_i32, %c0_i32_0 : i32, i32, i32
  }
  func.func @transform_10(%arg0: i32, %arg1: i32) -> (i32, i32, i32) {
    %c0_i32 = arith.constant 0 : i32
    %c0_i32_0 = arith.constant 0 : i32
    %c0_i32_1 = arith.constant 0 : i32
    return %arg1, %c0_i32, %c0_i32_0 : i32, i32, i32
  }
  func.func @transform_11(%arg0: i32, %arg1: i32) -> (i32, i32, i32) {
    %c0_i32 = arith.constant 0 : i32
    %c0_i32_0 = arith.constant 0 : i32
    %c0_i32_1 = arith.constant 0 : i32
    return %arg1, %c0_i32, %c0_i32_0 : i32, i32, i32
  }
  func.func @transform_12(%arg0: i32, %arg1: i32) -> (i32, i32, i32) {
    %c0_i32 = arith.constant 0 : i32
    %c0_i32_0 = arith.constant 0 : i32
    %c0_i32_1 = arith.constant 0 : i32
    return %arg1, %c0_i32, %c0_i32_0 : i32, i32, i32
  }
  func.func @transform_13(%arg0: i32, %arg1: i32) -> (i32, i32, i32) {
    %c0_i32 = arith.constant 0 : i32
    %c0_i32_0 = arith.constant 0 : i32
    %c0_i32_1 = arith.constant 0 : i32
    return %arg1, %c0_i32, %c0_i32_0 : i32, i32, i32
  }
  func.func @transform_14(%arg0: i32, %arg1: i32) -> (i32, i32, i32) {
    %c0_i32 = arith.constant 0 : i32
    %c0_i32_0 = arith.constant 0 : i32
    %c0_i32_1 = arith.constant 0 : i32
    return %arg1, %c0_i32, %c0_i32_0 : i32, i32, i32
  }
  func.func @transform_15(%arg0: i32, %arg1: i32) -> (i32, i32, i32) {
    %c0_i32 = arith.constant 0 : i32
    %c0_i32_0 = arith.constant 0 : i32
    %c0_i32_1 = arith.constant 0 : i32
    return %arg1, %c0_i32, %c0_i32_0 : i32, i32, i32
  }
  func.func @transform_16(%arg0: i32, %arg1: i32) -> (i32, i32, i32) {
    %c0_i32 = arith.constant 0 : i32
    %c0_i32_0 = arith.constant 0 : i32
    %c0_i32_1 = arith.constant 0 : i32
    return %arg1, %c0_i32, %c0_i32_0 : i32, i32, i32
  }
  func.func @transform_17(%arg0: i32, %arg1: i32) -> (i32, i32, i32) {
    %c0_i32 = arith.constant 0 : i32
    %c0_i32_0 = arith.constant 0 : i32
    %c0_i32_1 = arith.constant 0 : i32
    return %arg1, %c0_i32, %c0_i32_0 : i32, i32, i32
  }
  func.func @transform_18(%arg0: i32, %arg1: i32) -> (i32, i32, i32) {
    %c0_i32 = arith.constant 0 : i32
    %c0_i32_0 = arith.constant 0 : i32
    %c0_i32_1 = arith.constant 0 : i32
    return %arg1, %c0_i32, %c0_i32_0 : i32, i32, i32
  }
  func.func @transform_19(%arg0: i32, %arg1: i32) -> (i32, i32) {
    %c0_i32 = arith.constant 0 : i32
    %c0_i32_0 = arith.constant 0 : i32
    %c0_i32_1 = arith.constant 0 : i32
    return %c0_i32, %c0_i32_0 : i32, i32
  }
  func.func @transform_20(%arg0: i32, %arg1: i32) -> (i32, i32) {
    %c0_i32 = arith.constant 0 : i32
    %c0_i32_0 = arith.constant 0 : i32
    %c0_i32_1 = arith.constant 0 : i32
    return %c0_i32, %c0_i32_0 : i32, i32
  }
  func.func @transform_21(%arg0: i32, %arg1: i32) -> (i32, i32) {
    %c0_i32 = arith.constant 0 : i32
    %c0_i32_0 = arith.constant 0 : i32
    %c0_i32_1 = arith.constant 0 : i32
    return %c0_i32, %c0_i32_0 : i32, i32
  }
  func.func @transform_22(%arg0: i32, %arg1: i32) -> (i32, i32) {
    %c0_i32 = arith.constant 0 : i32
    %c0_i32_0 = arith.constant 0 : i32
    %c0_i32_1 = arith.constant 0 : i32
    return %c0_i32, %c0_i32_0 : i32, i32
  }
  func.func @transform_23(%arg0: i32, %arg1: i32) -> (i32, i32) {
    %c0_i32 = arith.constant 0 : i32
    %c0_i32_0 = arith.constant 0 : i32
    %c0_i32_1 = arith.constant 0 : i32
    return %c0_i32, %c0_i32_0 : i32, i32
  }
  func.func @transform_24(%arg0: i32, %arg1: i32) -> (i32, i32) {
    %c0_i32 = arith.constant 0 : i32
    %c0_i32_0 = arith.constant 0 : i32
    %c0_i32_1 = arith.constant 0 : i32
    return %c0_i32, %c0_i32_0 : i32, i32
  }
  func.func @transform_25(%arg0: i32, %arg1: i32) -> (i32, i32) {
    %c0_i32 = arith.constant 0 : i32
    %c0_i32_0 = arith.constant 0 : i32
    %c0_i32_1 = arith.constant 0 : i32
    return %c0_i32, %c0_i32_0 : i32, i32
  }
  func.func @transform_26(%arg0: i32, %arg1: i32) -> (i32, i32) {
    %c0_i32 = arith.constant 0 : i32
    %c0_i32_0 = arith.constant 0 : i32
    %c0_i32_1 = arith.constant 0 : i32
    return %c0_i32, %c0_i32_0 : i32, i32
  }
  func.func @transform_27(%arg0: i32, %arg1: i32) -> (i32, i32) {
    %c0_i32 = arith.constant 0 : i32
    %c0_i32_0 = arith.constant 0 : i32
    %c0_i32_1 = arith.constant 0 : i32
    return %c0_i32, %c0_i32_0 : i32, i32
  }
  func.func @transform_28(%arg0: i32, %arg1: i32) -> (i32, i32) {
    %c0_i32 = arith.constant 0 : i32
    %c0_i32_0 = arith.constant 0 : i32
    %c0_i32_1 = arith.constant 0 : i32
    return %c0_i32, %c0_i32_0 : i32, i32
  }
  func.func @transform_29(%arg0: i32, %arg1: i32) -> (i32, i32) {
    %c0_i32 = arith.constant 0 : i32
    %c0_i32_0 = arith.constant 0 : i32
    %c0_i32_1 = arith.constant 0 : i32
    return %c0_i32, %c0_i32_0 : i32, i32
  }
  func.func @transform_30(%arg0: i32, %arg1: i32) -> (i32, i32) {
    %c0_i32 = arith.constant 0 : i32
    %c0_i32_0 = arith.constant 0 : i32
    %c0_i32_1 = arith.constant 0 : i32
    return %c0_i32, %c0_i32_0 : i32, i32
  }
  func.func @transform_31(%arg0: i32, %arg1: i32) -> (i32, i32) {
    %c0_i32 = arith.constant 0 : i32
    %c0_i32_0 = arith.constant 0 : i32
    %c0_i32_1 = arith.constant 0 : i32
    return %c0_i32, %c0_i32_0 : i32, i32
  }
  func.func @transform_32(%arg0: i32, %arg1: i32) -> (i32, i32) {
    %c0_i32 = arith.constant 0 : i32
    %c0_i32_0 = arith.constant 0 : i32
    %c0_i32_1 = arith.constant 0 : i32
    return %c0_i32, %c0_i32_0 : i32, i32
  }
  func.func @transform_33(%arg0: i32, %arg1: i32) -> (i32, i32) {
    %c0_i32 = arith.constant 0 : i32
    %c0_i32_0 = arith.constant 0 : i32
    %c0_i32_1 = arith.constant 0 : i32
    return %c0_i32, %c0_i32_0 : i32, i32
  }
  func.func @transform_34(%arg0: i32, %arg1: i32) -> (i32, i32) {
    %c0_i32 = arith.constant 0 : i32
    %c0_i32_0 = arith.constant 0 : i32
    %c0_i32_1 = arith.constant 0 : i32
    return %c0_i32, %c0_i32_0 : i32, i32
  }
  func.func @transform_35(%arg0: i32, %arg1: i32) -> (i32, i32) {
    %c0_i32 = arith.constant 0 : i32
    %c0_i32_0 = arith.constant 0 : i32
    %c0_i32_1 = arith.constant 0 : i32
    return %c0_i32, %c0_i32_0 : i32, i32
  }
  func.func @transform_36(%arg0: i32, %arg1: i32) -> (i32, i32) {
    %c0_i32 = arith.constant 0 : i32
    %c0_i32_0 = arith.constant 0 : i32
    %c0_i32_1 = arith.constant 0 : i32
    return %c0_i32, %c0_i32_0 : i32, i32
  }
  func.func @transform_37(%arg0: i32, %arg1: i32) -> (i32, i32) {
    %c0_i32 = arith.constant 0 : i32
    %c0_i32_0 = arith.constant 0 : i32
    %c0_i32_1 = arith.constant 0 : i32
    return %c0_i32, %c0_i32_0 : i32, i32
  }
  func.func @transform_38(%arg0: i32, %arg1: i32) -> (i32, i32) {
    %c0_i32 = arith.constant 0 : i32
    %c0_i32_0 = arith.constant 0 : i32
    %c0_i32_1 = arith.constant 0 : i32
    return %c0_i32, %c0_i32_0 : i32, i32
  }
  func.func @transform_39(%arg0: i32, %arg1: i32) -> (i32, i32) {
    %c0_i32 = arith.constant 0 : i32
    %c0_i32_0 = arith.constant 0 : i32
    %c0_i32_1 = arith.constant 0 : i32
    return %c0_i32, %c0_i32_0 : i32, i32
  }
  func.func @transform_40(%arg0: i32, %arg1: i32) -> (i32, i32) {
    %c0_i32 = arith.constant 0 : i32
    %c0_i32_0 = arith.constant 0 : i32
    %c0_i32_1 = arith.constant 0 : i32
    return %c0_i32, %c0_i32_0 : i32, i32
  }
  func.func @transform_41(%arg0: i32, %arg1: i32) -> (i32, i32, i32) {
    %c0_i32 = arith.constant 0 : i32
    %c0_i32_0 = arith.constant 0 : i32
    %c0_i32_1 = arith.constant 0 : i32
    return %arg0, %c0_i32, %c0_i32_0 : i32, i32, i32
  }
  func.func @transform_42(%arg0: i32, %arg1: i32) -> (i32, i32, i32) {
    %c0_i32 = arith.constant 0 : i32
    %c0_i32_0 = arith.constant 0 : i32
    %c0_i32_1 = arith.constant 0 : i32
    return %arg0, %c0_i32, %c0_i32_0 : i32, i32, i32
  }
}

</mosaic_0001>

<bundles_post_ra>
// kernel: custom-call.12
= control target key start
LH: loop header
LB: loop body
LE: loop exit
PB: predicated region body
PF: predicated region fallthrough
CT: control target
= control target key end

     0   :  { %s6_s0 = inlined_call_operand.vmem [shape: u32[2,8], index: 0, kind: output, shape index: {}]  }

// kernel: ne.21
= control target key start
LH: loop header
LB: loop body
LE: loop exit
PB: predicated region body
PF: predicated region fallthrough
CT: control target
= control target key end

     0   :  { %v15_v2 = vmov 0   ;;  %s40_s0 = inlined_call_operand.vmem [shape: f32[2,8], index: 0, kind: input, shape index: {}, may-alias: {0,1}]   ;;  %s41_s1 = inlined_call_operand.vmem [shape: f32[2,8], index: 1, kind: input, shape index: {}, may-alias: {0,1}]   ;;  %s42_s2 = inlined_call_operand.vmem [shape: pred[2,8], index: 2, kind: output, shape index: {}]  }
   0x1   :  { %v3_v0 = vld [vmem:[%s40_s0] sm:$0x3] }
   0x2   :  { %v4_v1 = vld [vmem:[%s41_s1] sm:$0x3] }
   0x3   :  { %vm7_vm0 = vcmp.ne.f32.partialorder %v3_v0, %v4_v1 }
   0x4   :  { %v8_v3 = vsel %vm7_vm0, 1, %v15_v2 }
   0x5   :  { %v10_v4 = vpack.c.b16 %v15_v2, %v8_v3 }
   0x7   :  { %v11_v5 = vpack.c.b8 %v15_v2, %v10_v4 }
   0x9   :  { %13 = vst [vmem:[%s42_s2] sm:$0x1] %v11_v5 }

// kernel: squeeze.25
= control target key start
LH: loop header
LB: loop body
LE: loop exit
PB: predicated region body
PF: predicated region fallthrough
CT: control target
= control target key end

     0   :  { %vm7_vm0 = vcmask 64512   ;;  %s39_s0 = inlined_call_operand.vmem [shape: f32[16], index: 0, kind: input, shape index: {}]   ;;  %s40_s1 = inlined_call_operand.vmem [shape: f32[2,8], index: 1, kind: output, shape index: {}]  }
   0x1   :  { %v4_v0 = vld [vmem:[%s39_s0] sm:$0x1]  ;;  %s22_s0 = smov 120  }
   0x2   :  { %5 = vst [vmem:[#allocation1] sm:$0x1] %v4_v0 }
   0x9   :  { %v9_v1 = vld [vmem:[#allocation1] sm:$0x1]  }
   0xa   :  { %v6_v2 = vld [vmem:[#allocation1] sm:$0x1]   ;;  %10 = vrot.lane.b32.xlu0 %v9_v1, %s22_s0 }
   0xb   :  { %8 = vst.msk [vmem:[#allocation0] sm:$0x1] %vm7_vm0, %v6_v2  }
  0x7c   :  { %v11_v3 = vpop.permute.xlu0 %10  }
  0x7d   :  { %14 = vst.msk [vmem:[#allocation0 + $0x1] sm:$0x1] %vm7_vm0, %v11_v3  }
  0x84   :  { %v18_v4 = vld [vmem:[#allocation0] sm:$0x3] }
  0x85   :  { %20 = vst [vmem:[%s40_s1] sm:$0x3] %v18_v4 }

// kernel: fastspeech2_forward.3
= control target key start
LH: loop header
LB: loop body
LE: loop exit
PB: predicated region body
PF: predicated region fallthrough
CT: control target
= control target key end

     0   :  { %s2513_s30 = smov 0   ;;  %s2515_s20 = smov 0   ;;  %s2861_s0 = inlined_call_operand.vmem [shape: f32[2,1,8], index: 0, kind: input, shape index: {}]   ;;  %s2862_s1 = inlined_call_operand.vmem [shape: f32[2,8,1], index: 1, kind: input, shape index: {}]   ;;  %s2863_s2 = inlined_call_operand.vmem [shape: f32[2,8,32], index: 2, kind: input, shape index: {}]   ;;  %s2864_s3 = inlined_call_operand.vmem [shape: f32[2,32,32], index: 3, kind: input, shape index: {}]   ;;  %s2865_s4 = inlined_call_operand.vmem [shape: f32[2,1,32], index: 4, kind: input, shape index: {}]   ;;  %s2866_s5 = inlined_call_operand.vmem [shape: f32[2,32,32], index: 5, kind: input, shape index: {}]   ;;  %s2867_s6 = inlined_call_operand.vmem [shape: f32[2,1,32], index: 6, kind: input, shape index: {}]   ;;  %s2868_s7 = inlined_call_operand.vmem [shape: f32[2,32,32], index: 7, kind: input, shape index: {}]   ;;  %s2869_s8 = inlined_call_operand.vmem [shape: f32[2,1,32], index: 8, kind: input, shape index: {}]   ;;  %s2870_s9 = inlined_call_operand.vmem [shape: f32[2,32,32], index: 9, kind: input, shape index: {}]   ;;  %s2871_s10 = inlined_call_operand.vmem [shape: f32[2,1,32], index: 10, kind: input, shape index: {}]   ;;  %s2872_s11 = inlined_call_operand.vmem [shape: f32[2,1,32], index: 11, kind: input, shape index: {}]   ;;  %s2873_s12 = inlined_call_operand.vmem [shape: f32[2,1,32], index: 12, kind: input, shape index: {}]   ;;  %s2874_s13 = inlined_call_operand.vmem [shape: f32[2,96,64], index: 13, kind: input, shape index: {}]   ;;  %s2875_s14 = inlined_call_operand.vmem [shape: f32[2,1,64], index: 14, kind: input, shape index: {}]   ;;  %s2876_s15 = inlined_call_operand.vmem [shape: f32[2,64,32], index: 15, kind: input, shape index: {}]   ;;  %s2877_s16 = inlined_call_operand.vmem [shape: f32[2,1,32], index: 16, kind: input, shape index: {}]   ;;  %s2878_s17 = inlined_call_operand.vmem [shape: f32[2,1,32], index: 17, kind: input, shape index: {}]   ;;  %s2879_s18 = inlined_call_operand.vmem [shape: f32[2,1,32], index: 18, kind: input, shape index: {}]   ;;  %s2880_s19 = inlined_call_operand.vmem [shape: f32[2,8,32], index: 19, kind: output, shape index: {}]  }
   0x1   :  { %2887 = sst [smem:[#allocation10_spill]] %s2861_s0  ;;  %s2511_s0 = smov 0  }
   0x2   :  { %2888 = sst [smem:[#allocation11_spill]] %s2862_s1  ;;  %s2517_s21 = smov 0  }
   0x3   :  { %2889 = sst [smem:[#allocation12_spill]] %s2863_s2  ;;  %s2519_s1 = smov 0  }
   0x4   :  { %2890 = sst [smem:[#allocation13_spill]] %s2864_s3 }
   0x5   :  { %2891 = sst [smem:[#allocation14_spill]] %s2865_s4 }
   0x6   :  { %2892 = sst [smem:[#allocation15_spill]] %s2866_s5 }
   0x7   :  { %2893 = sst [smem:[#allocation16_spill]] %s2868_s7 }
   0x8   :  { %2894 = sst [smem:[#allocation17_spill]] %s2870_s9 }
   0x9   :  { %2895 = sst [smem:[#allocation18_spill]] %s2872_s11 }
   0xa   :  { %2896 = sst [smem:[#allocation19_spill]] %s2873_s12 }
   0xb   :  { %2897 = sst [smem:[#allocation20_spill]] %s2874_s13 }
   0xc   :  { %2898 = sst [smem:[#allocation21_spill]] %s2875_s14 }
   0xd   :  { %2899 = sst [smem:[#allocation22_spill]] %s2877_s16 }
   0xe   :  { %2900 = sst [smem:[#allocation23_spill]] %s2878_s17 }
   0xf   :  { %2901 = sst [smem:[#allocation24_spill]] %s2879_s18 }
  0x10   :  { %2902 = sst [smem:[#allocation25_spill]] %s2880_s19 }
  0x11 LB: > { %2903 = sst [smem:[#allocation2_spill]] %s2389_s0  ;;  %s38_s22 = sadd.s32 1, %s2397_s20  ;;  %s2405_s1 = sphi %s2519_s1, %s29_s1   ;;  %s2401_s21 = sphi %s2517_s21, %s2952_s21   ;;  %s2397_s20 = sphi %s2515_s20, %s2951_s20   ;;  %s2393_s30 = sphi %s2513_s30, %s2950_s30   ;;  %s2389_s0 = sphi %s2511_s0, %s2949_s0  }
  0x12   : > { %2904 = sst [smem:[#allocation3_spill]] %s2397_s20  ;;  %s41_s2 = sadd.s32 1, %s2401_s21 }
  0x13   : > { %2905 = sst [smem:[#allocation4_spill]] %s2401_s21  ;;  %p39_p0 = scmp.ge.s32.totalorder %s38_s22, 2 }
  0x14   : > { %2906 = sst [smem:[#allocation5_spill]] %s2405_s1  ;;  %p2114_p1 = scmp.ge.s32.totalorder %s2405_s1, 1 }
  0x15   : > { %p705_p2 = scmp.lt.s32.totalorder %s2405_s1, 5  ;;  %s2954_s22 = smov (%p39_p0, %s38_s22), 0 }
  0x16   : > { %2907 = sst [smem:[#allocation6_spill]] %s2954_s22  ;;  %s2956_s2 = smov (!%p39_p0, %s41_s2), %s2401_s21 }
  0x17   : > { %p706_p3 = pnand %p2114_p1, %p705_p2  ;;  %p43_p4 = scmp.ge.s32.totalorder %s2956_s2, 2 }
  0x19   : > { %s2958_s2 = smov (%p43_p4, %s2956_s2), 0  ;;  %709 = sbr.rel (%p706_p3) target bundleno = 2672 (0xa70), region = 96 }
  0x1a   : > { %2908 = sst [smem:[#allocation7_spill]] %s2958_s2 }
  0x20   : > { %p826_p5 = scmp.lt.s32.totalorder %s2393_s30, 1  ;;  %p837_p6 = scmp.lt.s32.totalorder %s2389_s0, 1 }
  0x21   : > { %s2912_s21 = sld [smem:[#allocation12_spill]]  ;;  %s2914_s18 = sld [smem:[#allocation13_spill]] }
  0x22   : > { %s2960_s30 = smov (!%p826_p5, %s2393_s30), 1  ;;  %s2915_s5 = sld [smem:[#allocation15_spill]] }
  0x23   : > { %2909 = sst [smem:[#allocation8_spill]] %s2960_s30  ;;  %s2554_s27 = sshll.u32 %s2960_s30, 3 }
  0x24   : > { %s2547_s23 = scalar_select %p837_p6, %s2389_s0, 1 }
  0x25   : > { %s2916_s7 = sld [smem:[#allocation16_spill]]  ;;  %s2918_s9 = sld [smem:[#allocation17_spill]] }
  0x26   : > { %s2159_s1 = sshll.u32 %s2547_s23, 5  ;;  %s2163_s3 = sshll.u32 %s2547_s23, 6 }
  0x27   : > { %s836_s20 = scalar_lea.vmem %s2912_s21, %s2554_s27  ;;  %s841_s17 = scalar_lea.vmem %s2914_s18, %s2159_s1 }
  0x28   : > { %s2575_s2 = scalar_lea.vmem %s2915_s5, %s2159_s1  ;;  %s2922_s13 = sld [smem:[#allocation20_spill]] }
  0x29   : > { %s2621_s21 = scalar_lea.vmem %s2876_s15, %s2163_s3  ;;  %s2923_s25 = sld [smem:[#allocation22_spill]] }
  0x2a   : > { %s2924_s12 = sld [smem:[#allocation23_spill]]  ;;  %s2925_s14 = sld [smem:[#allocation24_spill]] }
  0x2b   : > { %s2584_s0 = scalar_lea.vmem %s2916_s7, %s2159_s1  ;;  %s2593_s16 = scalar_lea.vmem %s2918_s9, %s2159_s1 }
  0x2c   : > { %2917 = sst [smem:[#allocation9_spill]] %s2584_s0  ;;  %s2309_s0 = smul.u32 96, %s2547_s23 }
  0x2d   : > { %s2926_s26 = sld [smem:[#allocation25_spill]]  ;;  %s2927_s5 = sld [smem:[#allocation2_spill]] }
  0x2e   : > { %s2616_s9 = scalar_lea.vmem %s2922_s13, %s2309_s0 }
  0x2f   : > { %s890_s19 = scalar_lea.vmem %s2923_s25, %s2547_s23 }
  0x30   : > { %s893_s22 = scalar_lea.vmem %s2924_s12, %s2547_s23  ;;  %s896_s11 = scalar_lea.vmem %s2925_s14, %s2547_s23 }
  0x33   : > { %s2639_s13 = scalar_lea.vmem %s2926_s26, %s2554_s27  ;;  %p2129_p7 = scmp.ne.s32.totalorder %s2927_s5, 0 }
  0x34   : > { %v906_v0 = vld [vmem:[%s836_s20] sm:$0xff] (!%p2129_p7)  ;;  %vm907_vm0 = vcmask (!%p2129_p7), 261120  }
  0x35   : > { %905 = sbr.rel (%p2129_p7) target bundleno = 60 (0x3c), region = 100  ;;  %908 = vst.msk [vmem:[%s2639_s13] sm:$0xff] (!%p2129_p7), %vm907_vm0, %v906_v0 }
  0x3c PF: > { %v913_v1 = vld [vmem:[%s841_s17] sm:$0xff]  ;;  %v914_v2 = vld [vmem:[%s841_s17 + $0x8] sm:$0xff]  ;;  %v915_v3 = vld [vmem:[%s841_s17 + $0x10] sm:$0xff]  ;;  %v2407_v4 = vmov 0.0   ;;  %vm2408_vm1 = vmmov 0   ;;  %vm968_vm2 = vcmask 261120   ;;  %s2928_s12 = scalar_lea.vmem %s2867_s6, %s2547_s23  ;;  %v1159_v40 = vlaneseq  ;;  %s2935_s26 = scalar_lea.vmem %s2869_s8, %s2547_s23 }
  0x3d   : > { %2203 = vmatprep.subr.bf16.mxu1 %v2407_v4  ;;  %v960_v5 = vpack.c.bf16 %v914_v2, %v913_v1  ;;  %v916_v6 = vld [vmem:[%s841_s17 + $0x18] sm:$0xff]  ;;  %2207 = vmatprep.mubr.msk.bf16.mxu1 %vm2408_vm1, %v2407_v4  ;;  %v2650_v8 = vld [vmem:[%s2639_s13] sm:$0xff]  ;;  %v919_v10 = vld [vmem:[%s2575_s2 + $0x8] sm:$0xff]  ;;  %s2929_s20 = sld [smem:[#allocation14_spill]]  ;;  %s2931_s18 = sld [smem:[#allocation9_spill]]  ;;  %vm1110_vm3 = vcmask 130048  }
  0x3e   : > { %2219 = vmatprep.subr.bf16.mxu0 %v2407_v4  ;;  %2223 = vmatprep.mubr.msk.bf16.mxu0 %vm2408_vm1, %v2407_v4  ;;  %v961_v7 = vpack.c.bf16 %v916_v6, %v915_v3  ;;  %v918_v9 = vld [vmem:[%s2575_s2] sm:$0xff]  ;;  %v959_v11 = vpack.c.bf16 %v2650_v8, %v2650_v8  ;;  %v920_v13 = vld [vmem:[%s2575_s2 + $0x10] sm:$0xff]  ;;  %v921_v14 = vld [vmem:[%s2575_s2 + $0x18] sm:$0xff]  ;;  %s2409_s29 = smov 112   ;;  %s2932_s3 = sld [smem:[#allocation8_spill]]  ;;  %v2700_v41 = vshrl.u32 %v1159_v40, 7 }
  0x3f   : > { %2204 = vmatpush3.bf16.msra.mxu1 %v960_v5  ;;  %v1012_v12 = vpack.c.bf16 %v919_v10, %v918_v9  ;;  %v1013_v15 = vpack.c.bf16 %v921_v14, %v920_v13  ;;  %v2132_v20 = vld [vmem:[%s2928_s12] ss:$0 sm:$0xff]  ;;  %s2933_s25 = sld [smem:[#allocation10_spill]]  ;;  %vm1165_vm4 = vcmask 64512   ;;  %vm1182_vm5 = vcmask 1043456   ;;  %s2936_s4 = scalar_lea.vmem %s2871_s10, %s2547_s23 }
  0x40   : > { %2205 = vmatprep.subr.bf16.mxu1 %v2407_v4  ;;  %v1161_v44 = vsub.s32 0, %v2700_v41  ;;  %v2134_v5 = vld [vmem:[%s2935_s26] ss:$0 sm:$0xff]  ;;  %s2937_s14 = sld [smem:[#allocation11_spill]]  ;;  %vm1789_vm8 = vcmask 523264  }
  0x41   : > { %s2941_s28 = sld [smem:[#allocation19_spill]] }
  0x43   : > { %2206 = vmatpush3.bf16.msra.mxu1 %v961_v7  ;;  %s2930_s2 = scalar_lea.vmem %s2929_s20, %s2547_s23  ;;  %v923_v31 = vld [vmem:[%s2931_s18] sm:$0xff]  ;;  %v924_v32 = vld [vmem:[%s2931_s18 + $0x8] sm:$0xff]  ;;  %v925_v33 = vld [vmem:[%s2931_s18 + $0x10] sm:$0xff] }
  0x44   : > { %2211 = vmatprep.subr.bf16.mxu1 %v2407_v4  ;;  %v2130_v21 = vld [vmem:[%s2930_s2] ss:$0 sm:$0xff]  ;;  %v1060_v34 = vpack.c.bf16 %v924_v32, %v923_v31  ;;  %v926_v35 = vld [vmem:[%s2931_s18 + $0x18] sm:$0xff]  ;;  %s2939_s2 = sld [smem:[#allocation18_spill]] }
  0x45   : > { %v1061_v36 = vpack.c.bf16 %v926_v35, %v925_v33  ;;  %s2934_s30 = scalar_lea.vmem %s2933_s25, %s2932_s3 }
  0x46   : > { %2208 = vmatmul.mubr.msk.bf16.vlgmr.msra.gmra.mrb[0].mxu1 %vm968_vm2, %v959_v11  ;;  %2220 = vmatpush3.bf16.msra.mxu0 %v1060_v34  ;;  %v910_v42 = vld [vmem:[%s2934_s30] sm:$0x1]  ;;  %s2938_s17 = scalar_lea.vmem %s2937_s14, %s2554_s27  ;;  %s2943_s30 = sld [smem:[#allocation21_spill]] }
  0x47   : > { %2212 = vmatpush3.bf16.msra.mxu1 %v1012_v12  ;;  %2215 = vmatprep.mubr.msk.bf16.mxu1 %vm2408_vm1, %v2407_v4  ;;  %v911_v43 = vmul.f32 1e+09, %v910_v42  ;;  %s2942_s24 = scalar_lea.vmem %s2941_s28, %s2547_s23 }
  0x48   : > { %2213 = vmatprep.subr.bf16.mxu1 %v2407_v4  ;;  %2221 = vmatprep.subr.bf16.mxu0 %v2407_v4 }
  0x49   : > { %v1162_v45 = vrot.slane %v911_v43, %v1161_v44 }
  0x4a   : > { %2222 = vmatpush3.bf16.msra.mxu0 %v1061_v36  ;;  %s2940_s18 = scalar_lea.vmem %s2939_s2, %s2547_s23 }
  0x4b   : > { %2214 = vmatpush3.bf16.msra.mxu1 %v1013_v15  ;;  %2233 = vmatprep.subr.bf16.mxu0 %v2407_v4 }
  0x4c   : > { %2227 = vmatprep.subr.bf16.mxu1 %v2407_v4  ;;  %s2944_s1 = scalar_lea.vmem %s2943_s30, %s2547_s23 }
  0x4d   : > { %2224 = vmatmul.mubr.msk.bf16.vlgmr.msra.gmra.mrb[0].mxu0 %vm968_vm2, %v959_v11 }
  0x4e   : > { %2216 = vmatmul.mubr.msk.bf16.vlgmr.msra.gmra.mrb[4].mxu1 %vm968_vm2, %v959_v11  ;;  %2235 = vmatprep.mubr.msk.bf16.mxu0 %vm2408_vm1, %v2407_v4 }
  0x4f   : > { %2229 = vmatprep.mubr.msk.bf16.mxu1 %vm2408_vm1, %v2407_v4 }
 0x119   : > { %v1006_v16 = vpop.f32.mrb[0].mxu1 }
 0x11a   : > { %v2209_v17 = vpop.f32.mrb[1].mxu1  ;;  %v1007_v26 = vadd.f32 %v2130_v21, %v1006_v16 }
 0x11b   : > { %v1009_v18 = vpop.f32.mrb[2].mxu1 }
 0x11c   : > { %v2210_v19 = vpop.f32.mrb[3].mxu1  ;;  %v1108_v30 = vpack.c.bf16 %v1007_v26, %v1007_v26 }
 0x120   : > { %v1102_v1 = vpop.f32.mrb[0].mxu0 }
 0x121   : > { %v1054_v22 = vpop.f32.mrb[4].mxu1  ;;  %v2225_v2 = vpop.f32.mrb[1].mxu0  ;;  %v1103_v7 = vadd.f32 %v2134_v5, %v1102_v1 }
 0x122   : > { %v1055_v23 = vadd.f32 %v2132_v20, %v1054_v22  ;;  %v2217_v24 = vpop.f32.mrb[5].mxu1  ;;  %v1105_v3 = vpop.f32.mrb[2].mxu0  ;;  %v941_v2 = vld [vmem:[%s2616_s9 + $0x30] sm:$0xff] }
 0x123   : > { %v1057_v25 = vpop.f32.mrb[6].mxu1  ;;  %v2226_v6 = vpop.f32.mrb[3].mxu0  ;;  %v1178_v9 = vpack.c.bf16 %v1103_v7, %v1103_v7  ;;  %v929_v24 = vld [vmem:[%s2593_s16 + $0x8] sm:$0xff]  ;;  %v942_v3 = vld [vmem:[%s2616_s9 + $0x38] sm:$0xff] }
 0x124   : > { %v1109_v27 = vpack.c.bf16 %v1055_v23, %v1055_v23  ;;  %v2218_v28 = vpop.f32.mrb[7].mxu1  ;;  %v928_v23 = vld [vmem:[%s2593_s16] sm:$0xff]  ;;  %v1559_v5 = vpack.c.bf16 %v942_v3, %v941_v2 }
 0x125   : > { %v1184_v10 = vsel %vm1182_vm5, %v1178_v9, 0 }
 0x126   : > { %v1115_v29 = vsel %vm1110_vm3, %v1109_v27, 0  ;;  %1232 = vrot.lane.b32.xlu0 %v1109_v27, %s2409_s29  ;;  %2234 = vmatpush3.bf16.msra.mxu0 %v1184_v10  ;;  %v1227_v27 = vpack.c.bf16 %v929_v24, %v928_v23  ;;  %v1646_v24 = vadd.s32 1, %v2700_v41 }
 0x127   : > { %2228 = vmatpush3.bf16.xpose.msra.mxu1 %v1115_v29  ;;  %2245 = vmatprep.subr.bf16.mxu0 %v2407_v4  ;;  %v930_v29 = vld [vmem:[%s2593_s16 + $0x10] sm:$0xff] }
 0x128   : > { %2239 = vmatprep.subr.bf16.mxu1 %v2407_v4 }
 0x12a   : > { %1229 = vrot.lane.b32.xlu0 %v1108_v30, %s2409_s29 }
 0x12e   : > { %2230 = vmatmul.mubr.msk.bf16.vlgmr.msra.gmra.mrb[8].mxu1 %vm1110_vm3, %v1108_v30  ;;  %v931_v30 = vld [vmem:[%s2593_s16 + $0x18] sm:$0xff] }
 0x12f   : > { %2241 = vmatprep.mubr.msk.bf16.mxu1 %vm2408_vm1, %v2407_v4  ;;  %v1344_v31 = vpack.c.bf16 %v931_v30, %v930_v29  ;;  %v944_v29 = vld [vmem:[%s2616_s9 + $0x48] sm:$0xff] }
 0x198   : > { %v1233_v37 = vpop.permute.xlu0 %1232 }
 0x199   : > { %v1238_v38 = vsel %vm1110_vm3, %v1233_v37, 0 }
 0x19a   : > { %2240 = vmatpush3.bf16.xpose.msra.mxu1 %v1238_v38 }
 0x19b   : > { %2251 = vmatprep.subr.bf16.mxu1 %v2407_v4 }
 0x19c   : > { %v1230_v39 = vpop.permute.xlu0 %1229 }
 0x1a1   : > { %2242 = vmatmul.mubr.msk.bf16.vlgmr.msra.gmra.mrb[12].mxu1 %vm1110_vm3, %v1230_v39 }
 0x1a2   : > { %2253 = vmatprep.mubr.msk.bf16.mxu1 %vm2408_vm1, %v2407_v4  ;;  %2252 = vmatpush3.bf16.msra.mxu1 %v1344_v31 }
 0x1a3   : > { %2263 = vmatprep.subr.mxu1 %v2407_v4 }
 0x201   : > { %v1151_v46 = vpop.f32.mrb[8].mxu1 }
 0x202   : > { %v1157_v47 = vmul.f32 0.25, %v1151_v46  ;;  %v2231_v48 = vpop.f32.mrb[9].mxu1 }
 0x203   : > { %v1154_v49 = vpop.f32.mrb[10].mxu1  ;;  %v2142_v48 = vld [vmem:[%s2936_s4] ss:$0 sm:$0xff] }
 0x204   : > { %v2232_v50 = vpop.f32.mrb[11].mxu1  ;;  %v1164_v51 = vsub.f32 %v1157_v47, %v1162_v45 }
 0x206   : > { %v1166_v52 = vsel %vm1165_vm4, %v1164_v51, -inf }
 0x207   : > { %1167 = vmax.xlane.f32.xlu1 %v1166_v52 }
 0x274   : > { %v1274_v53 = vpop.f32.mrb[12].mxu1 }
 0x275   : > { %v1280_v54 = vmul.f32 0.25, %v1274_v53  ;;  %v2243_v55 = vpop.f32.mrb[13].mxu1 }
 0x276   : > { %v1277_v56 = vpop.f32.mrb[14].mxu1 }
 0x277   : > { %v2244_v57 = vpop.f32.mrb[15].mxu1  ;;  %v1281_v58 = vsub.f32 %v1280_v54, %v1162_v45 }
 0x278   : > { %v2410_v57 = vmov 0  }
 0x279   : > { %v1282_v59 = vsel %vm1165_vm4, %v1281_v58, -inf  ;;  %2354 = vset.pattern.permute.xlu0 %v2410_v57 }
 0x27a   : > { %1283 = vmax.xlane.f32.xlu1 %v1282_v59 }
 0x294   : > { %v1168_v60 = vpop.xlane.xlu1 %1167 }
 0x295   : > { %v1169_v61 = vsub.f32 %v1164_v51, %v1168_v60 }
 0x297   : > { %v1170_v62 = vmul.f32 1.442695, %v1169_v61 }
 0x299   : > { %2355 = vpow2.f32 %v1170_v62 }
 0x2a3   : > { %v2356_v63 = vpop.eup %2355 }
 0x2a4   : > { %v1172_v0 = vsel %vm1165_vm4, %v2356_v63, 0.0 }
 0x2a5   : > { %1173 = vadd.xlane.f32.xlu0 %v1172_v0  ;;  %v940_v0 = vld [vmem:[%s2616_s9 + $0x28] sm:$0xff] }
 0x307   : > { %v1284_v11 = vpop.xlane.xlu1 %1283 }
 0x308   : > { %v1285_v12 = vsub.f32 %v1281_v58, %v1284_v11  ;;  %v2143_v11 = vld [vmem:[%s2940_s18] ss:$0 sm:$0xff] }
 0x30a   : > { %v1286_v13 = vmul.f32 1.442695, %v1285_v12  ;;  %v1476_v12 = vand.u32 127, %v1159_v40 }
 0x30c   : > { %2357 = vpow2.f32 %v1286_v13  ;;  %v1477_v13 = vadd.s32 4294967295, %v2700_v41  ;;  %vm1647_vm7 = vcmp.eq.s32.totalorder %v1476_v12, %v1646_v24 }
 0x30d   : > { %v2149_v41 = vsel %vm1647_vm7, 1.0, %v2407_v4 }
 0x30e   : > { %vm1478_vm6 = vcmp.eq.s32.totalorder %v1476_v12, %v1477_v13 }
 0x30f   : > { %v2145_v40 = vsel %vm1478_vm6, 1.0, %v2407_v4 }
 0x316   : > { %v2358_v14 = vpop.eup %2357 }
 0x317   : > { %v1288_v15 = vsel %vm1165_vm4, %v2358_v14, 0.0 }
 0x318   : > { %1289 = vadd.xlane.f32.xlu1 %v1288_v15  ;;  %v2144_v15 = vld [vmem:[%s2942_s24] ss:$0 sm:$0xff] }
 0x329   : > { %1295 = vrot.lane.b32.xlu1 %v1178_v9, %s2409_s29 }
 0x332   : > { %v1174_v16 = vpop.xlane.xlu0 %1173 }
 0x333   : > { %2359 = vrcp.f32 %v1174_v16 }
 0x33d   : > { %v2360_v17 = vpop.eup %2359 }
 0x33e   : > { %v1176_v18 = vmul.f32 %v2360_v17, %v2356_v63  ;;  %v939_v63 = vld [vmem:[%s2616_s9 + $0x20] sm:$0xff] }
 0x33f   : > { %v1558_v1 = vpack.c.bf16 %v940_v0, %v939_v63  ;;  %v2152_v63 = vld [vmem:[%s2944_s1] ss:$0 sm:$0xff] }
 0x340   : > { %v1177_v19 = vpack.c.bf16 %v1176_v18, %v1176_v18  ;;  %v935_v18 = vld [vmem:[%s2616_s9] sm:$0xff] }
 0x342   : > { %2236 = vmatmul.mubr.msk.bf16.vlgmr.msra.gmra.mrb[4].mxu0 %vm1165_vm4, %v1177_v19  ;;  %v936_v19 = vld [vmem:[%s2616_s9 + $0x8] sm:$0xff] }
 0x343   : > { %2247 = vmatprep.mubr.msk.bf16.mxu0 %vm2408_vm1, %v2407_v4 }
 0x3a5   : > { %v1290_v20 = vpop.xlane.xlu1 %1289 }
 0x3a6   : > { %2361 = vrcp.f32 %v1290_v20 }
 0x3a9   : > { %v1296_v21 = vpop.permute.xlu1 %1295 }
 0x3aa   : > { %v1301_v22 = vsel %vm1182_vm5, %v1296_v21, 0 }
 0x3ab   : > { %2246 = vmatpush3.bf16.msra.mxu0 %v1301_v22  ;;  %v1555_v22 = vpack.c.bf16 %v936_v19, %v935_v18 }
 0x3ac   : > { %2257 = vmatprep.subr.bf16.mxu0 %v2407_v4 }
 0x3b0   : > { %v2362_v25 = vpop.eup %2361 }
 0x3b1   : > { %v1292_v26 = vmul.f32 %v2362_v25, %v2358_v14  ;;  %v937_v25 = vld [vmem:[%s2616_s9 + $0x10] sm:$0xff] }
 0x3b3   : > { %v1293_v28 = vpack.c.bf16 %v1292_v26, %v1292_v26  ;;  %v938_v26 = vld [vmem:[%s2616_s9 + $0x18] sm:$0xff] }
 0x3b5   : > { %2248 = vmatmul.mubr.msk.bf16.vlgmr.msra.gmra.mrb[8].mxu0 %vm1165_vm4, %v1293_v28  ;;  %v943_v28 = vld [vmem:[%s2616_s9 + $0x40] sm:$0xff] }
 0x3b6   : > { %2258 = vmatpush3.bf16.msra.mxu0 %v1227_v27  ;;  %2259 = vmatprep.mubr.msk.bf16.mxu0 %vm2408_vm1, %v2407_v4  ;;  %v1556_v27 = vpack.c.bf16 %v938_v26, %v937_v25  ;;  %v1724_v31 = vpack.c.bf16 %v944_v29, %v943_v28  ;;  %v2156_v26 = vld [vmem:[%s896_s11] ss:$0 sm:$0xff] }
 0x3b7   : > { %2268 = vmatprep.subr.bf16.mxu0 %v2407_v4 }
 0x415   : > { %v1220_v32 = vpop.f32.mrb[4].mxu0 }
 0x416   : > { %v1226_v33 = vpack.c.bf16 %v1220_v32, %v1220_v32  ;;  %v2237_v34 = vpop.f32.mrb[5].mxu0 }
 0x417   : > { %v1223_v35 = vpop.f32.mrb[6].mxu0 }
 0x418   : > { %v2238_v36 = vpop.f32.mrb[7].mxu0  ;;  %2260 = vmatmul.mubr.msk.bf16.vlgmr.msra.gmra.mrb[12].mxu0 %vm1110_vm3, %v1226_v33  ;;  %v945_v35 = vld [vmem:[%s2616_s9 + $0x50] sm:$0xff] }
 0x419   : > { %2272 = vmatprep.mubr.msk.bf16.mxu0 %vm2408_vm1, %v2407_v4  ;;  %2269 = vmatpush3.bf16.msra.mxu0 %v1558_v1  ;;  %v946_v36 = vld [vmem:[%s2616_s9 + $0x58] sm:$0xff] }
 0x41a   : > { %2270 = vmatprep.subr.bf16.mxu0 %v2407_v4 }
 0x41d   : > { %2271 = vmatpush3.bf16.msra.mxu0 %v1559_v5 }
 0x41e   : > { %2284 = vmatprep.subr.mxu0 %v2407_v4 }
 0x488   : > { %v1337_v37 = vpop.f32.mrb[8].mxu0 }
 0x489   : > { %v1343_v38 = vpack.c.bf16 %v1337_v37, %v1337_v37  ;;  %v2249_v39 = vpop.f32.mrb[9].mxu0 }
 0x48a   : > { %v1340_v42 = vpop.f32.mrb[10].mxu0 }
 0x48b   : > { %v2250_v43 = vpop.f32.mrb[11].mxu0  ;;  %2254 = vmatmul.mubr.msk.bf16.vlgmr.msra.gmra.mrb[16].mxu1 %vm1110_vm3, %v1343_v38  ;;  %v1725_v42 = vpack.c.bf16 %v946_v36, %v945_v35 }
 0x48c   : > { %2265 = vmatprep.mubr.msk.f32.mxu1 %vm2408_vm1, %v2407_v4 }
 0x4eb   : > { %v1425_v44 = vpop.f32.mrb[12].mxu0 }
 0x4ec   : > { %v2261_v45 = vpop.f32.mrb[13].mxu0 }
 0x4ed   : > { %v1428_v46 = vpop.f32.mrb[14].mxu0 }
 0x4ee   : > { %v2262_v47 = vpop.f32.mrb[15].mxu0  ;;  %v948_v46 = vld [vmem:[%s2621_s21] sm:$0xff] }
 0x4ef   : > { %v949_v47 = vld [vmem:[%s2621_s21 + $0x8] sm:$0xff] }
 0x55e   : > { %v1382_v49 = vpop.f32.mrb[16].mxu1 }
 0x55f   : > { %v1426_v50 = vadd.f32 %v1425_v44, %v1382_v49  ;;  %v2255_v51 = vpop.f32.mrb[17].mxu1  ;;  %v950_v49 = vld [vmem:[%s2621_s21 + $0x10] sm:$0xff] }
 0x560   : > { %v1385_v52 = vpop.f32.mrb[18].mxu1 }
 0x561   : > { %v1437_v53 = vadd.f32 %v2142_v48, %v1426_v50  ;;  %v2256_v54 = vpop.f32.mrb[19].mxu1  ;;  %v1779_v48 = vpack.c.bf16 %v949_v47, %v948_v46  ;;  %v951_v50 = vld [vmem:[%s2621_s21 + $0x18] sm:$0xff]  ;;  %v952_v52 = vld [vmem:[%s2621_s21 + $0x20] sm:$0xff] }
 0x562   : > { %v1780_v51 = vpack.c.bf16 %v951_v50, %v950_v49 }
 0x563   : > { %v1438_v55 = vadd.f32 %v1437_v53, %v2650_v8  ;;  %v912_v8 = vld [vmem:[%s2938_s17] sm:$0xff]  ;;  %v953_v53 = vld [vmem:[%s2621_s21 + $0x28] sm:$0xff] }
 0x564   : > { %v1781_v54 = vpack.c.bf16 %v953_v53, %v952_v52 }
 0x565   : > { %v1439_v56 = vsel %vm968_vm2, %v1438_v55, 0.0 }
 0x566   : > { %1440 = vadd.xlane.f32.xlu1 %v1439_v56  ;;  %v955_v56 = vld [vmem:[%s2621_s21 + $0x38] sm:$0xff] }
 0x5f3   : > { %v1441_v58 = vpop.xlane.xlu1 %1440 }
 0x5f4   : > { %v1443_v59 = vmul.f32 0.03125, %v1441_v58 }
 0x5f6   : > { %v1444_v60 = vsub.f32 %v1438_v55, %v1443_v59  ;;  %v954_v55 = vld [vmem:[%s2621_s21 + $0x30] sm:$0xff] }
 0x5f7   : > { %v1782_v57 = vpack.c.bf16 %v955_v56, %v954_v55 }
 0x5f8   : > { %v1445_v61 = vmul.f32 %v1444_v60, %v1444_v60 }
 0x5fa   : > { %v1446_v62 = vsel %vm968_vm2, %v1445_v61, 0.0 }
 0x5fb   : > { %1447 = vadd.xlane.f32.xlu0 %v1446_v62 }
 0x611   : > { %1469 = vperm.xlu0 %2354, %v912_v8  }
 0x688   : > { %v1448_v6 = vpop.xlane.xlu0 %1447 }
 0x689   : > { %v1449_v7 = vmul.f32 0.03125, %v1448_v6 }
 0x68b   : > { %v1450_v9 = vadd.f32 1e-05, %v1449_v7  ;;  %v2153_v7 = vld [vmem:[%s890_s19] ss:$0 sm:$0xff] }
 0x68d   : > { %2363 = vrsqrt.f32 %v1450_v9 }
 0x690   : > { %v2771_v17 = vpop.permute.xlu0 %1469 }
 0x697   : > { %v2364_v10 = vpop.eup %2363 }
 0x698   : > { %v1452_v14 = vmul.f32 %v2364_v10, %v1444_v60 }
 0x69a   : > { %v1459_v16 = vmul.f32 %v2143_v11, %v1452_v14 }
 0x69c   : > { %v1466_v20 = vadd.f32 %v2144_v15, %v1459_v16 }
 0x69e   : > { %v2776_v21 = vmul.f32 %v2771_v17, %v1466_v20 }
 0x6a0   : > { %v1557_v23 = vpack.c.bf16 %v2776_v21, %v2776_v21  ;;  %2264 = vmatpush3.msra.mxu1 %v2776_v21 }
 0x6a1   : > { %2266 = vmatmul.mubr.msk.f32.vlgmr.msra.gmra.mrb[20].mxu1 %vm1165_vm4, %v2145_v40  ;;  %2276 = vmatprep.subr.bf16.mxu1 %v2407_v4 }
 0x6a2   : > { %2273 = vmatmul.mubr.msk.bf16.vlgmr.msra.gmra.mrb[16].mxu0 %vm968_vm2, %v1557_v23  ;;  %2277 = vmatpush3.bf16.msra.mxu1 %v1555_v22 }
 0x6a3   : > { %2285 = vmatpush3.msra.mxu0 %v2776_v21  ;;  %2286 = vmatprep.mubr.msk.f32.mxu0 %vm2408_vm1, %v2407_v4 }
 0x6a4   : > { %2278 = vmatprep.subr.bf16.mxu1 %v2407_v4  ;;  %2280 = vmatprep.mubr.msk.bf16.mxu1 %vm2408_vm1, %v2407_v4 }
 0x6a5   : > { %2297 = vmatprep.subr.bf16.mxu0 %v2407_v4 }
 0x6a6   : > { %2279 = vmatpush3.bf16.msra.mxu1 %v1556_v27 }
 0x6a7   : > { %2289 = vmatprep.subr.bf16.mxu1 %v2407_v4 }
 0x6aa   : > { %2287 = vmatmul.mubr.msk.f32.vlgmr.msra.gmra.mrb[20].mxu0 %vm1165_vm4, %v2149_v41 }
 0x6ab   : > { %2305 = vmatprep.mubr.msk.bf16.mxu0 %vm2408_vm1, %v2407_v4  ;;  %2298 = vmatpush3.bf16.msra.mxu0 %v1779_v48 }
 0x6ac   : > { %2299 = vmatprep.subr.bf16.mxu0 %v2407_v4 }
 0x6af   : > { %2300 = vmatpush3.bf16.msra.mxu0 %v1780_v51 }
 0x6b0   : > { %2301 = vmatprep.subr.bf16.mxu0 %v2407_v4 }
 0x6b3   : > { %2302 = vmatpush3.bf16.msra.mxu0 %v1781_v54 }
 0x6b4   : > { %2303 = vmatprep.subr.bf16.mxu0 %v2407_v4 }
 0x6b7   : > { %2304 = vmatpush3.bf16.msra.mxu0 %v1782_v57 }
 0x774   : > { %v1550_v30 = vpop.f32.mrb[20].mxu1 }
 0x775   : > { %v1554_v32 = vpack.c.bf16 %v1550_v30, %v1550_v30  ;;  %v1597_v33 = vpop.f32.mrb[16].mxu0  ;;  %v2267_v34 = vpop.f32.mrb[21].mxu1 }
 0x776   : > { %v2274_v37 = vpop.f32.mrb[17].mxu0 }
 0x777   : > { %v1600_v38 = vpop.f32.mrb[18].mxu0  ;;  %2281 = vmatmul.mubr.msk.bf16.vlgmr.msra.gmra.mrb[24].mxu1 %vm968_vm2, %v1554_v32 }
 0x778   : > { %v2275_v39 = vpop.f32.mrb[19].mxu0  ;;  %2290 = vmatpush3.bf16.msra.mxu1 %v1724_v31  ;;  %2293 = vmatprep.mubr.msk.bf16.mxu1 %vm2408_vm1, %v2407_v4 }
 0x779   : > { %2291 = vmatprep.subr.bf16.mxu1 %v2407_v4 }
 0x77c   : > { %2292 = vmatpush3.bf16.msra.mxu1 %v1725_v42 }
 0x77d   : > { %v1719_v43 = vpop.f32.mrb[20].mxu0 }
 0x77e   : > { %v1723_v44 = vpack.c.bf16 %v1719_v43, %v1719_v43  ;;  %v2288_v45 = vpop.f32.mrb[21].mxu0 }
 0x780   : > { %2294 = vmatmul.mubr.msk.bf16.vlgmr.msra.gmra.mrb[28].mxu1 %vm968_vm2, %v1723_v44 }
 0x84a   : > { %v1640_v58 = vpop.f32.mrb[24].mxu1 }
 0x84b   : > { %v1641_v59 = vadd.f32 %v1640_v58, %v1597_v33  ;;  %v2282_v60 = vpop.f32.mrb[25].mxu1 }
 0x84c   : > { %v1643_v61 = vpop.f32.mrb[26].mxu1 }
 0x84d   : > { %v2283_v62 = vpop.f32.mrb[27].mxu1 }
 0x853   : > { %v1763_v0 = vpop.f32.mrb[28].mxu1 }
 0x854   : > { %v1769_v8 = vadd.f32 %v1763_v0, %v1641_v59  ;;  %v2295_v1 = vpop.f32.mrb[29].mxu1 }
 0x855   : > { %v1766_v2 = vpop.f32.mrb[30].mxu1 }
 0x856   : > { %v1776_v4 = vadd.f32 %v2152_v63, %v1769_v8  ;;  %v2296_v3 = vpop.f32.mrb[31].mxu1 }
 0x858   : > { %v1777_v5 = vmax.f32 %v1776_v4, 0.0 }
 0x85a   : > { %v1778_v6 = vpack.c.bf16 %v1777_v5, %v1777_v5 }
 0x85c   : > { %2306 = vmatmul.mubr.msk.bf16.vlgmr.msra.gmra.mrb[24].mxu0 %vm1789_vm8, %v1778_v6 }
 0x92f   : > { %v1827_v9 = vpop.f32.mrb[24].mxu0 }
 0x930   : > { %v1828_v10 = vadd.f32 %v2153_v7, %v1827_v9  ;;  %v2307_v11 = vpop.f32.mrb[25].mxu0 }
 0x931   : > { %v1830_v12 = vpop.f32.mrb[26].mxu0 }
 0x932   : > { %v2308_v13 = vpop.f32.mrb[27].mxu0  ;;  %v1833_v14 = vadd.f32 %v1828_v10, %v2776_v21  ;;  %v2155_v21 = vld [vmem:[%s893_s22] ss:$0 sm:$0xff] }
 0x934   : > { %v1834_v15 = vsel %vm968_vm2, %v1833_v14, 0.0 }
 0x935   : > { %1835 = vadd.xlane.f32.xlu1 %v1834_v15 }
 0x9c2   : > { %v1836_v16 = vpop.xlane.xlu1 %1835 }
 0x9c3   : > { %v1837_v18 = vmul.f32 0.03125, %v1836_v16 }
 0x9c5   : > { %v1838_v19 = vsub.f32 %v1833_v14, %v1837_v18 }
 0x9c7   : > { %v1839_v20 = vmul.f32 %v1838_v19, %v1838_v19 }
 0x9c9   : > { %v1840_v40 = vsel %vm968_vm2, %v1839_v20, 0.0 }
 0x9ca   : > { %1841 = vadd.xlane.f32.xlu1 %v1840_v40 }
 0xa57   : > { %v1842_v22 = vpop.xlane.xlu1 %1841 }
 0xa58   : > { %v1843_v23 = vmul.f32 0.03125, %v1842_v22 }
 0xa5a   : > { %v1844_v24 = vadd.f32 1e-05, %v1843_v23 }
 0xa5c   : > { %2365 = vrsqrt.f32 %v1844_v24 }
 0xa66   : > { %v2366_v41 = vpop.eup %2365 }
 0xa67   : > { %v1846_v25 = vmul.f32 %v2366_v41, %v1838_v19 }
 0xa69   : > { %v1853_v27 = vmul.f32 %v2155_v21, %v1846_v25 }
 0xa6b   : > { %v1860_v28 = vadd.f32 %v2156_v26, %v1853_v27 }
 0xa6d   : > { %v1861_v29 = vmul.f32 %v1860_v28, %v2771_v17 }
 0xa6f   : > { %1862 = vst.msk [vmem:[%s2639_s13] sm:$0xff] %vm968_vm2, %v1861_v29 }
 0xa70 PF: > { %s2948_s14 = sld [smem:[#allocation5_spill]]  ;;  %s2949_s0 = sld [smem:[#allocation3_spill]] }
 0xa71   : > { %s2950_s30 = sld [smem:[#allocation4_spill]]  ;;  %s2951_s20 = sld [smem:[#allocation6_spill]] }
 0xa72   : > { %s2952_s21 = sld [smem:[#allocation7_spill]] }
 0xa76   : > { %s29_s1 = sadd.s32 1, %s2948_s14  }
 0xa77   : > { %p26_p8 = scmp.ge.s32.totalorder %s29_s1, 6  }
 0xa79   :  { %28 = sbr.rel (!%p26_p8) target bundleno = 17 (0x11), region = 184 }

// kernel: fastspeech2_forward.4
= control target key start
LH: loop header
LB: loop body
LE: loop exit
PB: predicated region body
PF: predicated region fallthrough
CT: control target
= control target key end

     0   :  { %s3895_s6 = smov 1   ;;  %s3896_s10 = smov 2   ;;  %s4462_s0 = inlined_call_operand.smem [shape: u32[38], index: -1, kind: input, shape index: {}] }
   0x1   :  { %s3942_s5 = sld [smem:[%s4462_s0]]   ;;  %s3897_s14 = smov 3  }
   0x2   :  { %s3947_s9 = sld [smem:[%s4462_s0 + %s3895_s6]]   ;;  %s3898_s18 = smov 4  }
   0x3   :  { %s3952_s13 = sld [smem:[%s4462_s0 + %s3896_s10]]   ;;  %s3899_s22 = smov 5  }
   0x4   :  { %s3957_s17 = sld [smem:[%s4462_s0 + %s3897_s14]]   ;;  %s3900_s26 = smov 6  }
   0x5   :  { %s3962_s21 = sld [smem:[%s4462_s0 + %s3898_s18]]   ;;  %s3901_s30 = smov 7  }
   0x6   :  { %s3967_s25 = sld [smem:[%s4462_s0 + %s3899_s22]]   ;;  %s3902_s4 = smov 8  }
   0x7   :  { %s3972_s29 = sld [smem:[%s4462_s0 + %s3900_s26]]   ;;  %s3903_s10 = smov 9  }
   0x8   :  { %4468 = sst [smem:[#allocation5_spill]] %s3947_s9  ;;  %s3904_s15 = smov 10  }
   0x9   :  { %4469 = sst [smem:[#allocation6_spill]] %s3952_s13  ;;  %s3905_s20 = smov 11  }
   0xa   :  { %s3977_s3 = sld [smem:[%s4462_s0 + %s3901_s30]]   ;;  %s3906_s26 = smov 12  }
   0xb   :  { %s3982_s8 = sld [smem:[%s4462_s0 + %s3902_s4]]   ;;  %s3907_s1 = smov 13  }
   0xc   :  { %s3987_s14 = sld [smem:[%s4462_s0 + %s3903_s10]]   ;;  %s3908_s7 = smov 14  }
   0xd   :  { %s3992_s19 = sld [smem:[%s4462_s0 + %s3904_s15]]   ;;  %s3909_s15 = smov 15  }
   0xe   :  { %s3997_s24 = sld [smem:[%s4462_s0 + %s3905_s20]]   ;;  %s3910_s22 = smov 16  }
   0xf   :  { %s4002_s30 = sld [smem:[%s4462_s0 + %s3906_s26]]   ;;  %s3911_s28 = smov 17  }
  0x10   :  { %s3433_s6 = sld [smem:[%s4462_s0 + %s3907_s1]]   ;;  %s3916_s10 = smov 22  }
  0x11   :  { %s4010_s12 = sld [smem:[%s4462_s0 + %s3908_s7]]   ;;  %s3912_s7 = smov 18  }
  0x12   :  { %s4015_s20 = sld [smem:[%s4462_s0 + %s3909_s15]]   ;;  %s3913_s15 = smov 19  }
  0x13   :  { %s4020_s27 = sld [smem:[%s4462_s0 + %s3910_s22]]   ;;  %s3914_s22 = smov 20  }
  0x14   :  { %s4025_s4 = sld [smem:[%s4462_s0 + %s3911_s28]]   ;;  %s3915_s28 = smov 21  }
  0x15   :  { %s4030_s13 = sld [smem:[%s4462_s0 + %s3912_s7]]  }
  0x16   :  { %s4035_s9 = sld [smem:[%s4462_s0 + %s3913_s15]]   ;;  %v81_v0 = vstv %s3433_s6  ;;  %s3917_s6 = smov 24  }
  0x17   :  { %s4040_s1 = sld [smem:[%s4462_s0 + %s3914_s22]]   ;;  %82 = vst [vmem:[#allocation2] sm:$0x1] %v81_v0  ;;  %s3918_s22 = smov 25  }
  0x18   :  { %s4045_s7 = sld [smem:[%s4462_s0 + %s3915_s28]]   ;;  %s3931_s28 = smov 33  }
  0x19   :  { %4470 = sst [smem:[#allocation7_spill]] %s4020_s27  ;;  %s3920_s27 = smov 27  }
  0x1a   :  { %4471 = sst [smem:[#allocation8_spill]] %s4025_s4  ;;  %s3919_s4 = smov 26  }
  0x1b   :  { %4472 = sst [smem:[#allocation9_spill]] %s4030_s13 }
  0x1c   :  { %4473 = sst [smem:[#allocation10_spill]] %s4035_s9 }
  0x1d   :  { %4474 = sst [smem:[#allocation11_spill]] %s4040_s1  ;;  %s3922_s1 = smov 29  }
  0x1e   :  { %4475 = sst [smem:[#allocation12_spill]] %s4045_s7 }
  0x1f   :  { %s4050_s15 = sld [smem:[%s4462_s0 + %s3916_s10]]  }
  0x20   :  { %s4055_s23 = sld [smem:[%s4462_s0 + %s3917_s6]]   ;;  %s3921_s6 = smov 28  }
  0x21   :  { %s4060_s9 = sld [smem:[%s4462_s0 + %s3918_s22]]  }
  0x22   :  { %s4065_s7 = sld [smem:[%s4462_s0 + %s3919_s4]]   ;;  %s3923_s4 = smov 30  }
  0x25   :  { %4476 = sst [smem:[#allocation13_spill]] %s4050_s15 }
  0x26   :  { %4477 = sst [smem:[#allocation14_spill]] %s4055_s23 }
  0x27   :  { %4478 = sst [smem:[#allocation15_spill]] %s4060_s9 }
  0x28   :  { %4479 = sst [smem:[#allocation16_spill]] %s4065_s7 }
  0x29   :  { %s4070_s15 = sld [smem:[%s4462_s0 + %s3920_s27]]   ;;  %s3924_s27 = smov 31  }
  0x2a   :  { %s4075_s23 = sld [smem:[%s4462_s0 + %s3921_s6]]   ;;  %s3925_s6 = smov 32  }
  0x2b   :  { %s4080_s9 = sld [smem:[%s4462_s0 + %s3922_s1]]   ;;  %s3926_s1 = smov 34  }
  0x2c   :  { %s4085_s7 = sld [smem:[%s4462_s0 + %s3923_s4]]   ;;  %s3927_s4 = smov 35  }
  0x2f   :  { %4480 = sst [smem:[#allocation17_spill]] %s4070_s15 }
  0x30   :  { %4481 = sst [smem:[#allocation18_spill]] %s4075_s23 }
  0x31   :  { %4482 = sst [smem:[#allocation19_spill]] %s4080_s9 }
  0x32   :  { %4483 = sst [smem:[#allocation20_spill]] %s4085_s7 }
  0x33   :  { %s4090_s15 = sld [smem:[%s4462_s0 + %s3924_s27]]   ;;  %s3928_s27 = smov 36  }
  0x34   :  { %s4095_s23 = sld [smem:[%s4462_s0 + %s3925_s6]]   ;;  %s3929_s6 = smov 37  }
  0x35   :  { %s4100_s9 = sld [smem:[%s4462_s0 + %s3926_s1]]   ;;  %s3930_s1 = smov 23  }
  0x36   :  { %s4105_s7 = sld [smem:[%s4462_s0 + %s3927_s4]]  }
  0x37   :  { %s3443_s13 = sld [smem:[%s4462_s0 + %s3930_s1]]  }
  0x39   :  { %4484 = sst [smem:[#allocation21_spill]] %s4090_s15 }
  0x3a   :  { %4485 = sst [smem:[#allocation22_spill]] %s4095_s23 }
  0x3b   :  { %s4110_s15 = sld [smem:[%s4462_s0 + %s3928_s27]]   ;;  %s4123_s27 = smov 0  }
  0x3c   :  { %4486 = sst [smem:[#allocation23_spill]] %s4105_s7 }
  0x3d   :  { %s4115_s23 = sld [smem:[%s4462_s0 + %s3929_s6]]   ;;  %v83_v1 = vstv %s3443_s13 }
  0x3e   :  { %s3453_s7 = sld [smem:[%s4462_s0 + %s3931_s28]]   ;;  %84 = vst [vmem:[#allocation3] sm:$0x1] %v83_v1 }
  0x44   :  { %v85_v2 = vstv %s3453_s7 }
  0x45   :  { %86 = vst [vmem:[#allocation4] sm:$0x1] %v85_v2 }
  0x46 LB: > { %s3458_s10 = sadd.s32 4294967295, %s3893_s27   ;;  %p3462_p0 = scmp.ge.s32.totalorder %s3893_s27, 1  ;;  %s3893_s27 = sphi %s4123_s27, %s92_s27  }
  0x47   : > { %p1064_p1 = scmp.lt.s32.totalorder %s3893_s27, 3 }
  0x49   : > { %p1065_p2 = pnand %p3462_p0, %p1064_p1 }
  0x4a   : > { %v1217_v3 = vld [vmem:[%s3962_s21 + $0x20] sm:$0xff] (!%p1065_p2)  ;;  %v1218_v4 = vld [vmem:[%s3962_s21 + $0x28] sm:$0xff] (!%p1065_p2)  ;;  %p1178_p3 = scmp.lt.s32.totalorder (!%p1065_p2), %s3458_s10, 1  ;;  %v1219_v5 = vld [vmem:[%s3962_s21 + $0x30] sm:$0xff] (!%p1065_p2)  ;;  %v1226_v6 = vlaneseq (!%p1065_p2)  ;;  %v3932_v7 = vmov (!%p1065_p2), 0.0   ;;  %vm3933_vm0 = vmmov (!%p1065_p2), 0  }
  0x4b   : > { %1068 = sbr.rel (%p1065_p2) target bundleno = 4638 (0x121e), region = 156  ;;  %3615 = vmatprep.subr.bf16.mxu1 (!%p1065_p2), %v3932_v7  ;;  %v1312_v8 = vpack.c.bf16 (!%p1065_p2), %v1218_v4, %v1217_v3  ;;  %3610 = vmatprep.subr.mxu0 (!%p1065_p2), %v3932_v7  ;;  %v1220_v9 = vld [vmem:[%s3962_s21 + $0x38] sm:$0xff] (!%p1065_p2)  ;;  %v1213_v13 = vld [vmem:[%s3962_s21] sm:$0xff] (!%p1065_p2)  ;;  %v1214_v14 = vld [vmem:[%s3962_s21 + $0x8] sm:$0xff] (!%p1065_p2)  ;;  %vm1234_vm1 = vcmask (!%p1065_p2), 64512   ;;  %vm1314_vm3 = vcmask (!%p1065_p2), 261120  }
  0x4c   : > { %3612 = vmatprep.mubr.msk.f32.mxu0 (!%p1065_p2), %vm3933_vm0, %v3932_v7  ;;  %v1227_v10 = vshrl.u32 (!%p1065_p2), %v1226_v6, 7  ;;  %v1229_v11 = vand.u32 (!%p1065_p2), 127, %v1226_v6  ;;  %3619 = vmatprep.mubr.msk.bf16.mxu1 (!%p1065_p2), %vm3933_vm0, %v3932_v7  ;;  %v1313_v12 = vpack.c.bf16 (!%p1065_p2), %v1220_v9, %v1219_v5  ;;  %v1309_v17 = vpack.c.bf16 (!%p1065_p2), %v1214_v14, %v1213_v13  ;;  %v1215_v22 = vld [vmem:[%s3962_s21 + $0x10] sm:$0xff] (!%p1065_p2)  ;;  %v1216_v23 = vld [vmem:[%s3962_s21 + $0x18] sm:$0xff] (!%p1065_p2)  ;;  %v1221_v25 = vld [vmem:[%s3962_s21 + $0x40] sm:$0xff] (!%p1065_p2)  ;;  %s4487_s6 = sld [smem:[#allocation9_spill]] (!%p1065_p2) }
  0x4d   : > { %3616 = vmatpush3.bf16.msra.mxu1 (!%p1065_p2), %v1312_v8  ;;  %v1310_v24 = vpack.c.bf16 (!%p1065_p2), %v1216_v23, %v1215_v22  ;;  %v1222_v26 = vld [vmem:[%s3962_s21 + $0x48] sm:$0xff] (!%p1065_p2)  ;;  %v1223_v31 = vld [vmem:[%s3962_s21 + $0x50] sm:$0xff] (!%p1065_p2)  ;;  %v1224_v32 = vld [vmem:[%s3962_s21 + $0x58] sm:$0xff] (!%p1065_p2)  ;;  %vm1950_vm5 = vcmask (!%p1065_p2), 7168   ;;  %s4488_s16 = sld [smem:[#allocation7_spill]] (!%p1065_p2)  ;;  %s4489_s18 = sld [smem:[#allocation8_spill]] (!%p1065_p2) }
  0x4e   : > { %3617 = vmatprep.subr.bf16.mxu1 (!%p1065_p2), %v3932_v7  ;;  %v1230_v15 = vadd.s32 (!%p1065_p2), 4294967295, %v1227_v10  ;;  %v1401_v20 = vadd.s32 (!%p1065_p2), 1, %v1227_v10  ;;  %v1479_v28 = vpack.c.bf16 (!%p1065_p2), %v1222_v26, %v1221_v25  ;;  %v1480_v36 = vpack.c.bf16 (!%p1065_p2), %v1224_v32, %v1223_v31  ;;  %v3478_v47 = vld [vmem:[%s3967_s25] ss:$0 sm:$0xff] (!%p1065_p2)  ;;  %v1568_v61 = vld [vmem:[%s3982_s8 + $0x28] sm:$0xff] (!%p1065_p2)  ;;  %v1569_v62 = vld [vmem:[%s3982_s8 + $0x30] sm:$0xff] (!%p1065_p2) }
  0x4f   : > { %v1567_v60 = vld [vmem:[%s3982_s8 + $0x20] sm:$0xff] (!%p1065_p2)  ;;  %v1570_v0 = vld [vmem:[%s3982_s8 + $0x38] sm:$0xff] (!%p1065_p2)  ;;  %v1573_v31 = vld [vmem:[%s3982_s8 + $0x50] sm:$0xff] (!%p1065_p2)  ;;  %s4490_s1 = sld [smem:[#allocation5_spill]] (!%p1065_p2)  ;;  %s4491_s22 = sld [smem:[#allocation6_spill]] (!%p1065_p2) }
  0x50   : > { %vm1231_vm2 = vcmp.eq.s32.totalorder (!%p1065_p2), %v1229_v11, %v1230_v15  ;;  %vm1402_vm4 = vcmp.eq.s32.totalorder (!%p1065_p2), %v1229_v11, %v1401_v20  ;;  %v1650_v63 = vpack.c.bf16 (!%p1065_p2), %v1568_v61, %v1567_v60  ;;  %v1651_v1 = vpack.c.bf16 (!%p1065_p2), %v1570_v0, %v1569_v62  ;;  %v3479_v6 = vld [vmem:[%s3972_s29] ss:$0 sm:$0xff] (!%p1065_p2)  ;;  %v1564_v11 = vld [vmem:[%s3982_s8 + $0x8] sm:$0xff] (!%p1065_p2)  ;;  %v1566_v20 = vld [vmem:[%s3982_s8 + $0x18] sm:$0xff] (!%p1065_p2)  ;;  %s4492_s4 = sld [smem:[#allocation10_spill]] (!%p1065_p2) }
  0x51   : > { %3618 = vmatpush3.bf16.msra.mxu1 (!%p1065_p2), %v1313_v12  ;;  %v4152_v18 = vsel (!%p1065_p2), %vm1231_vm2, 1.0, %v3932_v7  ;;  %v4172_v21 = vsel (!%p1065_p2), %vm1402_vm4, 1.0, %v3932_v7  ;;  %v3480_v9 = vld [vmem:[%s3977_s3] ss:$0 sm:$0xff] (!%p1065_p2)  ;;  %v1574_v32 = vld [vmem:[%s3982_s8 + $0x58] sm:$0xff] (!%p1065_p2) }
  0x52   : > { %s4507_s10 = smov (!%p1178_p3, %s3458_s10), 1  ;;  %3631 = vmatprep.subr.mxu1 %v3932_v7  ;;  %v1563_v10 = vld [vmem:[%s3982_s8] sm:$0xff] }
  0x53   : > { %s4144_s0 = sshll.u32 %s4507_s10, 3  ;;  %v1647_v14 = vpack.c.bf16 %v1564_v11, %v1563_v10  ;;  %v1571_v23 = vld [vmem:[%s3982_s8 + $0x40] sm:$0xff]  ;;  %s4493_s10 = sld [smem:[#allocation13_spill]] }
  0x54   : > { %s1181_s13 = scalar_lea.vmem %s3942_s5, %s4144_s0  ;;  %s1193_s7 = scalar_lea.vmem %s3957_s17, %s4144_s0 }
  0x55   : > { %v4148_v16 = vld [vmem:[%s1181_s13] sm:$0xff]  ;;  %s1197_s11 = scalar_lea.vmem %s4100_s9, %s4144_s0  ;;  %s1185_s26 = scalar_lea.vmem %s4490_s1, %s4144_s0 }
  0x56   : > { %3611 = vmatpush3.msra.mxu0 %v4148_v16  ;;  %v4156_v19 = vpack.c.bf16 %v4148_v16, %v4148_v16  ;;  %s1189_s28 = scalar_lea.vmem %s4491_s22, %s4144_s0  ;;  %s1209_s2 = scalar_lea.vmem %s4115_s23, %s4144_s0 }
  0x57   : > { %3613 = vmatmul.mubr.msk.f32.vlgmr.msra.gmra.mrb[0].mxu0 %vm1234_vm1, %v4152_v18  ;;  %3623 = vmatprep.subr.bf16.mxu0 %v3932_v7  ;;  %s4494_s13 = sld [smem:[#allocation14_spill]]  ;;  %s4499_s22 = sld [smem:[#allocation18_spill]] }
  0x58   : > { %3627 = vmatprep.mubr.msk.bf16.mxu0 %vm3933_vm0, %v3932_v7  ;;  %3620 = vmatmul.mubr.msk.bf16.vlgmr.msra.gmra.mrb[0].mxu1 %vm1314_vm3, %v4156_v19 }
  0x59   : > { %3624 = vmatpush3.bf16.msra.mxu0 %v1309_v17  ;;  %3632 = vmatpush3.msra.mxu1 %v4148_v16  ;;  %v1565_v17 = vld [vmem:[%s3982_s8 + $0x10] sm:$0xff] }
  0x5a   : > { %3633 = vmatprep.mubr.msk.f32.mxu1 %vm3933_vm0, %v3932_v7  ;;  %3625 = vmatprep.subr.bf16.mxu0 %v3932_v7  ;;  %v1648_v22 = vpack.c.bf16 %v1566_v20, %v1565_v17  ;;  %v1893_v17 = vld [vmem:[%s4002_s30 + $0x8] sm:$0xff] }
  0x5b   : > { %3644 = vmatprep.subr.mxu1 %v3932_v7 }
  0x5d   : > { %3626 = vmatpush3.bf16.msra.mxu0 %v1310_v24  ;;  %v1572_v24 = vld [vmem:[%s3982_s8 + $0x48] sm:$0xff] }
  0x5e   : > { %3636 = vmatprep.subr.bf16.mxu0 %v3932_v7  ;;  %v1809_v26 = vpack.c.bf16 %v1572_v24, %v1571_v23  ;;  %v1895_v23 = vld [vmem:[%s4002_s30 + $0x18] sm:$0xff] }
  0x60   : > { %3634 = vmatmul.mubr.msk.f32.vlgmr.msra.gmra.mrb[4].mxu1 %vm1234_vm1, %v4172_v21 }
  0x61   : > { %3646 = vmatprep.mubr.msk.f32.mxu1 %vm3933_vm0, %v3932_v7 }
 0x12a   : > { %v1304_v27 = vpop.f32.mrb[0].mxu0 }
 0x12b   : > { %v4183_v29 = vpack.c.bf16 %v1304_v27, %v1304_v27  ;;  %v3614_v30 = vpop.f32.mrb[1].mxu0  ;;  %v1352_v33 = vpop.f32.mrb[0].mxu1 }
 0x12c   : > { %v3621_v34 = vpop.f32.mrb[1].mxu1 }
 0x12d   : > { %3628 = vmatmul.mubr.msk.bf16.vlgmr.msra.gmra.mrb[4].mxu0 %vm1314_vm3, %v4183_v29  ;;  %v1355_v35 = vpop.f32.mrb[2].mxu1 }
 0x12e   : > { %3637 = vmatpush3.bf16.msra.mxu0 %v1479_v28  ;;  %3640 = vmatprep.mubr.msk.bf16.mxu0 %vm3933_vm0, %v3932_v7  ;;  %v3622_v37 = vpop.f32.mrb[3].mxu1 }
 0x12f   : > { %3638 = vmatprep.subr.bf16.mxu0 %v3932_v7  ;;  %v1956_v37 = vld [vmem:[%s4010_s12 + $0x20] sm:$0xff] }
 0x132   : > { %3639 = vmatpush3.bf16.msra.mxu0 %v1480_v36  ;;  %v1810_v36 = vpack.c.bf16 %v1574_v32, %v1573_v31  ;;  %v3488_v32 = vld [vmem:[%s3997_s24] ss:$0 sm:$0xff] }
 0x133   : > { %3649 = vmatprep.subr.bf16.mxu0 %v3932_v7  ;;  %v1474_v38 = vpop.f32.mrb[4].mxu1 }
 0x134   : > { %v4193_v39 = vpack.c.bf16 %v1474_v38, %v1474_v38  ;;  %v3635_v40 = vpop.f32.mrb[5].mxu1  ;;  %v1957_v38 = vld [vmem:[%s4010_s12 + $0x28] sm:$0xff] }
 0x136   : > { %3641 = vmatmul.mubr.msk.bf16.vlgmr.msra.gmra.mrb[8].mxu0 %vm1314_vm3, %v4193_v39 }
 0x137   : > { %3653 = vmatprep.mubr.msk.bf16.mxu0 %vm3933_vm0, %v3932_v7  ;;  %3650 = vmatpush3.bf16.msra.mxu0 %v1650_v63 }
 0x138   : > { %3651 = vmatprep.subr.bf16.mxu0 %v3932_v7 }
 0x13b   : > { %3652 = vmatpush3.bf16.msra.mxu0 %v1651_v1 }
 0x13c   : > { %3665 = vmatprep.subr.mxu0 %v3932_v7 }
 0x200   : > { %v1395_v41 = vpop.f32.mrb[4].mxu0 }
 0x201   : > { %v1396_v42 = vadd.f32 %v1395_v41, %v1352_v33  ;;  %v3629_v43 = vpop.f32.mrb[5].mxu0  ;;  %v1967_v41 = vpack.c.bf16 %v1957_v38, %v1956_v37 }
 0x202   : > { %v1398_v44 = vpop.f32.mrb[6].mxu0 }
 0x203   : > { %v3630_v45 = vpop.f32.mrb[7].mxu0  ;;  %v1958_v44 = vld [vmem:[%s4010_s12 + $0x30] sm:$0xff] }
 0x204   : > { %v1959_v45 = vld [vmem:[%s4010_s12 + $0x38] sm:$0xff] }
 0x209   : > { %v1518_v46 = vpop.f32.mrb[8].mxu0 }
 0x20a   : > { %v1524_v48 = vadd.f32 %v1518_v46, %v1396_v42  ;;  %v3642_v49 = vpop.f32.mrb[9].mxu0  ;;  %v1968_v46 = vpack.c.bf16 %v1959_v45, %v1958_v44  ;;  %v4287_v44 = vld [vmem:[%s1193_s7] sm:$0xff]  ;;  %s4495_s7 = sld [smem:[#allocation11_spill]] }
 0x20b   : > { %v1521_v50 = vpop.f32.mrb[10].mxu0 }
 0x20c   : > { %v3643_v51 = vpop.f32.mrb[11].mxu0  ;;  %v1531_v52 = vadd.f32 %v3478_v47, %v1524_v48  ;;  %v1960_v47 = vld [vmem:[%s4010_s12 + $0x40] sm:$0xff]  ;;  %v1961_v48 = vld [vmem:[%s4010_s12 + $0x48] sm:$0xff]  ;;  %v1962_v50 = vld [vmem:[%s4010_s12 + $0x50] sm:$0xff] }
 0x20d   : > { %v2049_v49 = vpack.c.bf16 %v1961_v48, %v1960_v47  ;;  %v1963_v51 = vld [vmem:[%s4010_s12 + $0x58] sm:$0xff] }
 0x20e   : > { %v1532_v53 = vmax.f32 %v1531_v52, 0.0  ;;  %v2050_v52 = vpack.c.bf16 %v1963_v51, %v1962_v50 }
 0x210   : > { %v1535_v54 = vsel %vm1314_vm3, %v1532_v53, 0.0 }
 0x211   : > { %1536 = vadd.xlane.f32.xlu0 %v1535_v54 }
 0x29e   : > { %v1537_v55 = vpop.xlane.xlu0 %1536 }
 0x29f   : > { %v1539_v56 = vmul.f32 0.03125, %v1537_v55 }
 0x2a1   : > { %v1540_v57 = vsub.f32 %v1532_v53, %v1539_v56 }
 0x2a3   : > { %v1541_v58 = vmul.f32 %v1540_v57, %v1540_v57 }
 0x2a5   : > { %v1542_v59 = vsel %vm1314_vm3, %v1541_v58, 0.0  ;;  %v3486_v58 = vld [vmem:[%s3987_s14] ss:$0 sm:$0xff] }
 0x2a6   : > { %1543 = vadd.xlane.f32.xlu0 %v1542_v59 }
 0x333   : > { %v1544_v2 = vpop.xlane.xlu0 %1543 }
 0x334   : > { %v1545_v3 = vmul.f32 0.03125, %v1544_v2 }
 0x336   : > { %v1546_v4 = vadd.f32 1e-05, %v1545_v3 }
 0x338   : > { %3875 = vrsqrt.f32 %v1546_v4 }
 0x342   : > { %v3876_v5 = vpop.eup %3875 }
 0x343   : > { %v1548_v8 = vmul.f32 %v3876_v5, %v1540_v57 }
 0x345   : > { %v1555_v12 = vmul.f32 %v3479_v6, %v1548_v8 }
 0x347   : > { %v1562_v13 = vadd.f32 %v3480_v9, %v1555_v12 }
 0x349   : > { %3645 = vmatpush3.msra.mxu1 %v1562_v13  ;;  %v1649_v15 = vpack.c.bf16 %v1562_v13, %v1562_v13 }
 0x34a   : > { %3647 = vmatmul.mubr.msk.f32.vlgmr.msra.gmra.mrb[6].mxu1 %vm1234_vm1, %v4152_v18  ;;  %3657 = vmatprep.subr.bf16.mxu1 %v3932_v7 }
 0x34b   : > { %3654 = vmatmul.mubr.msk.bf16.vlgmr.msra.gmra.mrb[12].mxu0 %vm1314_vm3, %v1649_v15  ;;  %3658 = vmatpush3.bf16.msra.mxu1 %v1647_v14  ;;  %v1892_v15 = vld [vmem:[%s4002_s30] sm:$0xff] }
 0x34c   : > { %3666 = vmatpush3.msra.mxu0 %v1562_v13  ;;  %3667 = vmatprep.mubr.msk.f32.mxu0 %vm3933_vm0, %v3932_v7  ;;  %v1897_v20 = vpack.c.bf16 %v1893_v17, %v1892_v15 }
 0x34d   : > { %3659 = vmatprep.subr.bf16.mxu1 %v3932_v7  ;;  %3661 = vmatprep.mubr.msk.bf16.mxu1 %vm3933_vm0, %v3932_v7 }
 0x34e   : > { %3678 = vmatprep.subr.bf16.mxu0 %v3932_v7 }
 0x34f   : > { %3660 = vmatpush3.bf16.msra.mxu1 %v1648_v22  ;;  %v1894_v22 = vld [vmem:[%s4002_s30 + $0x10] sm:$0xff] }
 0x350   : > { %3670 = vmatprep.subr.bf16.mxu1 %v3932_v7  ;;  %v1898_v24 = vpack.c.bf16 %v1895_v23, %v1894_v22  ;;  %v2131_v23 = vld [vmem:[%s4487_s6 + $0x10] sm:$0xff] }
 0x353   : > { %3668 = vmatmul.mubr.msk.f32.vlgmr.msra.gmra.mrb[2].mxu0 %vm1234_vm1, %v4172_v21 }
 0x354   : > { %3682 = vmatprep.mubr.msk.bf16.mxu0 %vm3933_vm0, %v3932_v7  ;;  %3679 = vmatpush3.bf16.msra.mxu0 %v1897_v20 }
 0x355   : > { %3680 = vmatprep.subr.bf16.mxu0 %v3932_v7 }
 0x358   : > { %3681 = vmatpush3.bf16.msra.mxu0 %v1898_v24  ;;  %v2132_v24 = vld [vmem:[%s4487_s6 + $0x18] sm:$0xff] }
 0x359   : > { %3694 = vmatprep.subr.bf16.mxu0 %v3932_v7 }
 0x41d   : > { %v1642_v25 = vpop.f32.mrb[6].mxu1 }
 0x41e   : > { %v1646_v27 = vpack.c.bf16 %v1642_v25, %v1642_v25  ;;  %v3648_v28 = vpop.f32.mrb[7].mxu1  ;;  %v1689_v30 = vpop.f32.mrb[12].mxu0 }
 0x41f   : > { %v3655_v33 = vpop.f32.mrb[13].mxu0 }
 0x420   : > { %v1692_v34 = vpop.f32.mrb[14].mxu0  ;;  %3662 = vmatmul.mubr.msk.bf16.vlgmr.msra.gmra.mrb[8].mxu1 %vm1314_vm3, %v1646_v27 }
 0x421   : > { %v3656_v35 = vpop.f32.mrb[15].mxu0  ;;  %3671 = vmatpush3.bf16.msra.mxu1 %v1809_v26  ;;  %3674 = vmatprep.mubr.msk.bf16.mxu1 %vm3933_vm0, %v3932_v7  ;;  %v1952_v34 = vld [vmem:[%s4010_s12] sm:$0xff] }
 0x422   : > { %3672 = vmatprep.subr.bf16.mxu1 %v3932_v7  ;;  %v1953_v35 = vld [vmem:[%s4010_s12 + $0x8] sm:$0xff] }
 0x423   : > { %v1965_v37 = vpack.c.bf16 %v1953_v35, %v1952_v34  ;;  %v2139_v34 = vld [vmem:[%s4487_s6 + $0x50] sm:$0xff]  ;;  %v2140_v35 = vld [vmem:[%s4487_s6 + $0x58] sm:$0xff] }
 0x425   : > { %3673 = vmatpush3.bf16.msra.mxu1 %v1810_v36 }
 0x426   : > { %v1804_v40 = vpop.f32.mrb[2].mxu0  ;;  %3686 = vmatprep.subr.bf16.mxu1 %v3932_v7 }
 0x427   : > { %v1808_v42 = vpack.c.bf16 %v1804_v40, %v1804_v40  ;;  %v3669_v43 = vpop.f32.mrb[3].mxu0  ;;  %v1954_v40 = vld [vmem:[%s4010_s12 + $0x10] sm:$0xff] }
 0x428   : > { %v3489_v43 = vld [vmem:[#allocation2] ss:$0 sm:$0xff] }
 0x429   : > { %3675 = vmatmul.mubr.msk.bf16.vlgmr.msra.gmra.mrb[12].mxu1 %vm1314_vm3, %v1808_v42 }
 0x42a   : > { %3687 = vmatpush3.bf16.msra.mxu1 %v1967_v41  ;;  %3690 = vmatprep.mubr.msk.bf16.mxu1 %vm3933_vm0, %v3932_v7  ;;  %v1955_v41 = vld [vmem:[%s4010_s12 + $0x18] sm:$0xff] }
 0x42b   : > { %3688 = vmatprep.subr.bf16.mxu1 %v3932_v7  ;;  %v1966_v42 = vpack.c.bf16 %v1955_v41, %v1954_v40  ;;  %v2376_v40 = vpack.c.bf16 %v2140_v35, %v2139_v34  ;;  %v2525_v34 = vld [vmem:[%s4494_s13 + $0x30] sm:$0xff]  ;;  %v2526_v35 = vld [vmem:[%s4494_s13 + $0x38] sm:$0xff] }
 0x42e   : > { %3689 = vmatpush3.bf16.msra.mxu1 %v1968_v46 }
 0x42f   : > { %3702 = vmatprep.subr.bf16.mxu1 %v3932_v7 }
 0x431   : > { %3691 = vmatmul.mubr.msk.bf16.vlgmr.msra.gmra.mrb[16].mxu1 %vm1314_vm3, %v4156_v19 }
 0x432   : > { %3703 = vmatpush3.bf16.msra.mxu1 %v2049_v49  ;;  %3706 = vmatprep.mubr.msk.bf16.mxu1 %vm3933_vm0, %v3932_v7 }
 0x433   : > { %3704 = vmatprep.subr.bf16.mxu1 %v3932_v7 }
 0x436   : > { %3705 = vmatpush3.bf16.msra.mxu1 %v2050_v52 }
 0x437   : > { %3715 = vmatprep.subr.bf16.mxu1 %v3932_v7 }
 0x439   : > { %3707 = vmatmul.mubr.msk.bf16.vlgmr.msra.gmra.mrb[20].mxu1 %vm1314_vm3, %v4193_v39 }
 0x43a   : > { %3719 = vmatprep.mubr.msk.bf16.mxu1 %vm3933_vm0, %v3932_v7 }
 0x4f3   : > { %v1732_v53 = vpop.f32.mrb[8].mxu1 }
 0x4f4   : > { %v1733_v54 = vadd.f32 %v1732_v53, %v1689_v30  ;;  %v3663_v55 = vpop.f32.mrb[9].mxu1  ;;  %v3487_v30 = vld [vmem:[%s3992_s19] ss:$0 sm:$0xff] }
 0x4f5   : > { %v1735_v19 = vpop.f32.mrb[10].mxu1 }
 0x4f6   : > { %v3664_v56 = vpop.f32.mrb[11].mxu1 }
 0x4fc   : > { %v1848_v57 = vpop.f32.mrb[12].mxu1 }
 0x4fd   : > { %v1854_v59 = vadd.f32 %v1848_v57, %v1733_v54  ;;  %v3676_v60 = vpop.f32.mrb[13].mxu1  ;;  %v3494_v54 = vld [vmem:[%s4015_s20] ss:$0 sm:$0xff] }
 0x4fe   : > { %v1851_v61 = vpop.f32.mrb[14].mxu1 }
 0x4ff   : > { %v3677_v62 = vpop.f32.mrb[15].mxu1  ;;  %v1861_v63 = vadd.f32 %v3486_v58, %v1854_v59 }
 0x501   : > { %v1862_v0 = vmax.f32 %v1861_v63, 0.0 }
 0x503   : > { %v1865_v1 = vsel %vm1314_vm3, %v1862_v0, 0.0 }
 0x504   : > { %1866 = vadd.xlane.f32.xlu1 %v1865_v1  ;;  %v2003_v39 = vpop.f32.mrb[16].mxu1  ;;  %v2134_v1 = vld [vmem:[%s4487_s6 + $0x28] sm:$0xff] }
 0x505   : > { %v3692_v2 = vpop.f32.mrb[17].mxu1 }
 0x506   : > { %v2006_v3 = vpop.f32.mrb[18].mxu1 }
 0x507   : > { %v3693_v4 = vpop.f32.mrb[19].mxu1  ;;  %v2136_v3 = vld [vmem:[%s4487_s6 + $0x38] sm:$0xff] }
 0x50c   : > { %v2085_v5 = vpop.f32.mrb[20].mxu1 }
 0x50d   : > { %v3708_v6 = vpop.f32.mrb[21].mxu1 }
 0x50e   : > { %v2088_v8 = vpop.f32.mrb[22].mxu1 }
 0x50f   : > { %v3709_v9 = vpop.f32.mrb[23].mxu1 }
 0x591   : > { %v1867_v10 = vpop.xlane.xlu1 %1866 }
 0x592   : > { %v1868_v11 = vmul.f32 0.03125, %v1867_v10  ;;  %v3495_v10 = vld [vmem:[%s4488_s16] ss:$0 sm:$0xff]  ;;  %s4497_s16 = sld [smem:[#allocation23_spill]] }
 0x594   : > { %v1869_v12 = vsub.f32 %v1862_v0, %v1868_v11  ;;  %v2133_v0 = vld [vmem:[%s4487_s6 + $0x20] sm:$0xff] }
 0x595   : > { %v2216_v2 = vpack.c.bf16 %v2134_v1, %v2133_v0  ;;  %v2458_v1 = vld [vmem:[%s4493_s10] sm:$0xff] }
 0x596   : > { %v1870_v13 = vmul.f32 %v1869_v12, %v1869_v12 }
 0x597   : > { %3716 = vmatpush3.bf16.msra.mxu1 %v2216_v2 }
 0x598   : > { %v1871_v14 = vsel %vm1314_vm3, %v1870_v13, 0.0  ;;  %3717 = vmatprep.subr.bf16.mxu1 %v3932_v7  ;;  %v2129_v13 = vld [vmem:[%s4487_s6] sm:$0xff]  ;;  %s1201_s1 = scalar_lea.vmem %s4497_s16, %s4144_s0  ;;  %s1205_s16 = scalar_lea.vmem %s4110_s15, %s4144_s0 }
 0x599   : > { %1872 = vadd.xlane.f32.xlu1 %v1871_v14  ;;  %v2130_v14 = vld [vmem:[%s4487_s6 + $0x8] sm:$0xff] }
 0x59a   : > { %v2213_v20 = vpack.c.bf16 %v2130_v14, %v2129_v13 }
 0x626   : > { %v1873_v25 = vpop.xlane.xlu1 %1872 }
 0x627   : > { %v1874_v26 = vmul.f32 0.03125, %v1873_v25  ;;  %v2214_v25 = vpack.c.bf16 %v2132_v24, %v2131_v23  ;;  %v3503_v24 = vld [vmem:[%s4495_s7] ss:$0 sm:$0xff]  ;;  %s4504_s7 = sld [smem:[#allocation20_spill]] }
 0x629   : > { %v1875_v27 = vadd.f32 1e-05, %v1874_v26  ;;  %v2137_v26 = vld [vmem:[%s4487_s6 + $0x40] sm:$0xff] }
 0x62b   : > { %3877 = vrsqrt.f32 %v1875_v27  ;;  %v2138_v27 = vld [vmem:[%s4487_s6 + $0x48] sm:$0xff] }
 0x635   : > { %v3878_v28 = vpop.eup %3877 }
 0x636   : > { %v1877_v31 = vmul.f32 %v3878_v28, %v1869_v12  ;;  %v3496_v12 = vld [vmem:[%s4489_s18] ss:$0 sm:$0xff]  ;;  %s4498_s18 = sld [smem:[#allocation15_spill]] }
 0x638   : > { %v1884_v33 = vmul.f32 %v3487_v30, %v1877_v31  ;;  %v2375_v30 = vpack.c.bf16 %v2138_v27, %v2137_v26 }
 0x63a   : > { %v1891_v36 = vadd.f32 %v3488_v32, %v1884_v33 }
 0x63c   : > { %v1896_v38 = vpack.c.bf16 %v1891_v36, %v1891_v36 }
 0x63e   : > { %3683 = vmatmul.mubr.msk.bf16.vlgmr.msra.gmra.mrb[16].mxu0 %vm1314_vm3, %v1896_v38 }
 0x63f   : > { %3695 = vmatpush3.bf16.msra.mxu0 %v1965_v37  ;;  %3698 = vmatprep.mubr.msk.bf16.mxu0 %vm3933_vm0, %v3932_v7 }
 0x640   : > { %3696 = vmatprep.subr.bf16.mxu0 %v3932_v7 }
 0x643   : > { %3697 = vmatpush3.bf16.msra.mxu0 %v1966_v42 }
 0x644   : > { %3710 = vmatprep.subr.mxu0 %v3932_v7 }
 0x646   : > { %3699 = vmatmul.mubr.msk.bf16.vlgmr.msra.gmra.mrb[20].mxu0 %vm1314_vm3, %v4183_v29 }
 0x647   : > { %3712 = vmatprep.mubr.msk.f32.mxu0 %vm3933_vm0, %v3932_v7 }
 0x711   : > { %v1943_v45 = vpop.f32.mrb[16].mxu0 }
 0x712   : > { %v1944_v46 = vadd.f32 %v3489_v43, %v1943_v45  ;;  %v3684_v47 = vpop.f32.mrb[17].mxu0  ;;  %v2517_v45 = vld [vmem:[%s1185_s26] sm:$0xff]  ;;  %s4500_s26 = sld [smem:[#allocation16_spill]] }
 0x713   : > { %v1946_v48 = vpop.f32.mrb[18].mxu0  ;;  %v4340_v47 = vadd.f32 %v2517_v45, %v4148_v16 }
 0x714   : > { %v1949_v49 = vmul.f32 %v1944_v46, %v4287_v44  ;;  %v3685_v50 = vpop.f32.mrb[19].mxu0  ;;  %v3236_v46 = vld [vmem:[%s1189_s28] sm:$0xff]  ;;  %s4501_s28 = sld [smem:[#allocation17_spill]] }
 0x715   : > { %v3237_v48 = vadd.f32 %v3236_v46, %v4340_v47 }
 0x716   : > { %1951 = vst.msk [vmem:[%s1197_s11] sm:$0xff] %vm1950_vm5, %v1949_v49  ;;  %s4496_s11 = sld [smem:[#allocation12_spill]] }
 0x717   : > { %3238 = vst.msk [vmem:[%s1209_s2] sm:$0xff] %vm1314_vm3, %v3237_v48  ;;  %v2530_v48 = vld [vmem:[%s4494_s13 + $0x58] sm:$0xff]  ;;  %s4503_s2 = sld [smem:[#allocation22_spill]] }
 0x719   : > { %v2043_v29 = vpop.f32.mrb[20].mxu0 }
 0x71a   : > { %v2044_v51 = vadd.f32 %v2043_v29, %v2003_v39  ;;  %v3700_v52 = vpop.f32.mrb[21].mxu0  ;;  %v2135_v39 = vld [vmem:[%s4487_s6 + $0x30] sm:$0xff] }
 0x71b   : > { %v2046_v53 = vpop.f32.mrb[22].mxu0  ;;  %v2217_v4 = vpack.c.bf16 %v2136_v3, %v2135_v39  ;;  %v3502_v52 = vld [vmem:[%s4492_s4] ss:$0 sm:$0xff]  ;;  %v2459_v39 = vld [vmem:[%s4493_s10 + $0x8] sm:$0xff]  ;;  %v2460_v3 = vld [vmem:[%s4493_s10 + $0x10] sm:$0xff]  ;;  %s4502_s4 = sld [smem:[#allocation19_spill]] }
 0x71c   : > { %v2091_v55 = vadd.f32 %v2085_v5, %v2044_v51  ;;  %v3701_v19 = vpop.f32.mrb[23].mxu0  ;;  %v2463_v2 = vpack.c.bf16 %v2459_v39, %v2458_v1  ;;  %v3504_v26 = vld [vmem:[%s4496_s11] ss:$0 sm:$0xff]  ;;  %s4505_s11 = sld [smem:[#allocation21_spill]] }
 0x71d   : > { %3718 = vmatpush3.bf16.msra.mxu1 %v2217_v4  ;;  %v2461_v4 = vld [vmem:[%s4493_s10 + $0x18] sm:$0xff] }
 0x71e   : > { %v2098_v56 = vadd.f32 %v3494_v54, %v2091_v55  ;;  %3731 = vmatprep.subr.mxu1 %v3932_v7 }
 0x720   : > { %v2099_v57 = vmax.f32 %v2098_v56, 0.0 }
 0x722   : > { %v2102_v58 = vsel %vm1314_vm3, %v2099_v57, 0.0 }
 0x723   : > { %2103 = vadd.xlane.f32.xlu0 %v2102_v58 }
 0x7b0   : > { %v2104_v59 = vpop.xlane.xlu0 %2103 }
 0x7b1   : > { %v2105_v60 = vmul.f32 0.03125, %v2104_v59 }
 0x7b3   : > { %v2106_v61 = vsub.f32 %v2099_v57, %v2105_v60 }
 0x7b5   : > { %v2107_v62 = vmul.f32 %v2106_v61, %v2106_v61 }
 0x7b7   : > { %v2108_v63 = vsel %vm1314_vm3, %v2107_v62, 0.0 }
 0x7b8   : > { %2109 = vadd.xlane.f32.xlu1 %v2108_v63 }
 0x845   : > { %v2110_v5 = vpop.xlane.xlu1 %2109 }
 0x846   : > { %v2111_v6 = vmul.f32 0.03125, %v2110_v5  ;;  %v2464_v5 = vpack.c.bf16 %v2461_v4, %v2460_v3 }
 0x848   : > { %v2112_v8 = vadd.f32 1e-05, %v2111_v6  ;;  %v2519_v6 = vld [vmem:[%s4494_s13] sm:$0xff] }
 0x84a   : > { %3879 = vrsqrt.f32 %v2112_v8  ;;  %v2520_v8 = vld [vmem:[%s4494_s13 + $0x8] sm:$0xff] }
 0x854   : > { %v3880_v9 = vpop.eup %3879 }
 0x855   : > { %v2114_v11 = vmul.f32 %v3880_v9, %v2106_v61  ;;  %v2603_v9 = vpack.c.bf16 %v2520_v8, %v2519_v6 }
 0x857   : > { %v2121_v15 = vmul.f32 %v3495_v10, %v2114_v11  ;;  %v2521_v10 = vld [vmem:[%s4494_s13 + $0x10] sm:$0xff]  ;;  %v2522_v11 = vld [vmem:[%s4494_s13 + $0x18] sm:$0xff] }
 0x859   : > { %v2128_v17 = vadd.f32 %v3496_v12, %v2121_v15  ;;  %v2604_v12 = vpack.c.bf16 %v2522_v11, %v2521_v10 }
 0x85b   : > { %3711 = vmatpush3.msra.mxu0 %v2128_v17  ;;  %v2215_v22 = vpack.c.bf16 %v2128_v17, %v2128_v17 }
 0x85c   : > { %3713 = vmatmul.mubr.msk.f32.vlgmr.msra.gmra.mrb[24].mxu0 %vm1234_vm1, %v4152_v18  ;;  %3723 = vmatprep.subr.bf16.mxu0 %v3932_v7 }
 0x85d   : > { %3720 = vmatmul.mubr.msk.bf16.vlgmr.msra.gmra.mrb[24].mxu1 %vm1314_vm3, %v2215_v22  ;;  %3724 = vmatpush3.bf16.msra.mxu0 %v2213_v20 }
 0x85e   : > { %3732 = vmatpush3.msra.mxu1 %v2128_v17  ;;  %3733 = vmatprep.mubr.msk.f32.mxu1 %vm3933_vm0, %v3932_v7 }
 0x85f   : > { %3725 = vmatprep.subr.bf16.mxu0 %v3932_v7  ;;  %3727 = vmatprep.mubr.msk.bf16.mxu0 %vm3933_vm0, %v3932_v7 }
 0x860   : > { %3744 = vmatprep.subr.bf16.mxu1 %v3932_v7 }
 0x861   : > { %3726 = vmatpush3.bf16.msra.mxu0 %v2214_v25 }
 0x862   : > { %3736 = vmatprep.subr.bf16.mxu0 %v3932_v7 }
 0x865   : > { %3734 = vmatmul.mubr.msk.f32.vlgmr.msra.gmra.mrb[28].mxu1 %vm1234_vm1, %v4172_v21 }
 0x866   : > { %3748 = vmatprep.mubr.msk.bf16.mxu1 %vm3933_vm0, %v3932_v7  ;;  %3745 = vmatpush3.bf16.msra.mxu1 %v2463_v2 }
 0x867   : > { %3746 = vmatprep.subr.bf16.mxu1 %v3932_v7 }
 0x86a   : > { %3747 = vmatpush3.bf16.msra.mxu1 %v2464_v5 }
 0x86b   : > { %3757 = vmatprep.subr.bf16.mxu1 %v3932_v7 }
 0x92f   : > { %v2208_v28 = vpop.f32.mrb[24].mxu0 }
 0x930   : > { %v2212_v31 = vpack.c.bf16 %v2208_v28, %v2208_v28  ;;  %v2255_v32 = vpop.f32.mrb[24].mxu1  ;;  %v3714_v33 = vpop.f32.mrb[25].mxu0  ;;  %v2523_v28 = vld [vmem:[%s4494_s13 + $0x20] sm:$0xff] }
 0x931   : > { %v3721_v36 = vpop.f32.mrb[25].mxu1 }
 0x932   : > { %v2258_v37 = vpop.f32.mrb[26].mxu1  ;;  %3728 = vmatmul.mubr.msk.bf16.vlgmr.msra.gmra.mrb[28].mxu0 %vm1314_vm3, %v2212_v31  ;;  %v2607_v36 = vpack.c.bf16 %v2526_v35, %v2525_v34 }
 0x933   : > { %v3722_v38 = vpop.f32.mrb[27].mxu1  ;;  %3737 = vmatpush3.bf16.msra.mxu0 %v2375_v30  ;;  %3740 = vmatprep.mubr.msk.bf16.mxu0 %vm3933_vm0, %v3932_v7  ;;  %v2524_v30 = vld [vmem:[%s4494_s13 + $0x28] sm:$0xff]  ;;  %v2605_v37 = vpack.c.bf16 %v4340_v47, %v4340_v47 }
 0x934   : > { %3738 = vmatprep.subr.bf16.mxu0 %v3932_v7 }
 0x937   : > { %3739 = vmatpush3.bf16.msra.mxu0 %v2376_v40  ;;  %v2527_v40 = vld [vmem:[%s4494_s13 + $0x40] sm:$0xff] }
 0x938   : > { %v2370_v41 = vpop.f32.mrb[28].mxu1  ;;  %3752 = vmatprep.subr.mxu0 %v3932_v7 }
 0x939   : > { %v2374_v42 = vpack.c.bf16 %v2370_v41, %v2370_v41  ;;  %v3735_v43 = vpop.f32.mrb[29].mxu1  ;;  %v2528_v41 = vld [vmem:[%s4494_s13 + $0x48] sm:$0xff] }
 0x93b   : > { %3741 = vmatmul.mubr.msk.bf16.vlgmr.msra.gmra.mrb[32].mxu0 %vm1314_vm3, %v2374_v42  ;;  %v2765_v42 = vpack.c.bf16 %v2528_v41, %v2527_v40  ;;  %v2857_v40 = vld [vmem:[%s4499_s22 + $0x48] sm:$0xff] }
 0x93c   : > { %3754 = vmatprep.mubr.msk.f32.mxu0 %vm3933_vm0, %v3932_v7  ;;  %3753 = vmatpush3.msra.mxu0 %v4340_v47 }
 0x93d   : > { %3765 = vmatprep.subr.bf16.mxu0 %v3932_v7 }
 0x943   : > { %3755 = vmatmul.mubr.msk.f32.vlgmr.msra.gmra.mrb[26].mxu0 %vm1234_vm1, %v4152_v18 }
 0x944   : > { %3769 = vmatprep.mubr.msk.bf16.mxu0 %vm3933_vm0, %v3932_v7  ;;  %3766 = vmatpush3.bf16.msra.mxu0 %v2603_v9 }
 0x945   : > { %3767 = vmatprep.subr.bf16.mxu0 %v3932_v7 }
 0x948   : > { %3768 = vmatpush3.bf16.msra.mxu0 %v2604_v12  ;;  %v2848_v12 = vld [vmem:[%s4499_s22] sm:$0xff] }
 0x949   : > { %3778 = vmatprep.subr.bf16.mxu0 %v3932_v7 }
 0xa05   : > { %v2298_v49 = vpop.f32.mrb[28].mxu0 }
 0xa06   : > { %v2299_v50 = vadd.f32 %v2298_v49, %v2255_v32  ;;  %v3729_v29 = vpop.f32.mrb[29].mxu0  ;;  %v2606_v32 = vpack.c.bf16 %v2524_v30, %v2523_v28 }
 0xa07   : > { %v2301_v16 = vpop.f32.mrb[30].mxu0 }
 0xa08   : > { %v3730_v51 = vpop.f32.mrb[31].mxu0 }
 0xa0e   : > { %v2414_v53 = vpop.f32.mrb[32].mxu0 }
 0xa0f   : > { %v2420_v54 = vadd.f32 %v2414_v53, %v2299_v50  ;;  %v3742_v55 = vpop.f32.mrb[33].mxu0  ;;  %v3505_v50 = vld [vmem:[#allocation3] ss:$0 sm:$0xff] }
 0xa10   : > { %v2417_v19 = vpop.f32.mrb[34].mxu0 }
 0xa11   : > { %v2427_v56 = vadd.f32 %v3502_v52, %v2420_v54  ;;  %v3743_v57 = vpop.f32.mrb[35].mxu0 }
 0xa13   : > { %v2428_v58 = vmax.f32 %v2427_v56, 0.0 }
 0xa15   : > { %v2431_v59 = vsel %vm1314_vm3, %v2428_v58, 0.0 }
 0xa16   : > { %2432 = vadd.xlane.f32.xlu0 %v2431_v59  ;;  %v2598_v13 = vpop.f32.mrb[26].mxu0 }
 0xa17   : > { %v2602_v14 = vpack.c.bf16 %v2598_v13, %v2598_v13  ;;  %v3756_v15 = vpop.f32.mrb[27].mxu0  ;;  %v2849_v13 = vld [vmem:[%s4499_s22 + $0x8] sm:$0xff] }
 0xa19   : > { %3770 = vmatmul.mubr.msk.bf16.vlgmr.msra.gmra.mrb[36].mxu0 %vm1314_vm3, %v2602_v14  ;;  %v2932_v14 = vpack.c.bf16 %v2849_v13, %v2848_v12 }
 0xa1a   : > { %3782 = vmatprep.mubr.msk.bf16.mxu0 %vm3933_vm0, %v3932_v7  ;;  %3779 = vmatpush3.bf16.msra.mxu0 %v2765_v42 }
 0xa1b   : > { %3780 = vmatprep.subr.bf16.mxu0 %v3932_v7 }
 0xaa3   : > { %v2433_v60 = vpop.xlane.xlu0 %2432 }
 0xaa4   : > { %v2434_v61 = vmul.f32 0.03125, %v2433_v60 }
 0xaa6   : > { %v2435_v62 = vsub.f32 %v2428_v58, %v2434_v61 }
 0xaa8   : > { %v2436_v63 = vmul.f32 %v2435_v62, %v2435_v62 }
 0xaaa   : > { %v2437_v0 = vsel %vm1314_vm3, %v2436_v63, 0.0 }
 0xaab   : > { %2438 = vadd.xlane.f32.xlu1 %v2437_v0 }
 0xaec   : > { %v2688_v38 = vpop.f32.mrb[36].mxu0 }
 0xaed   : > { %v3771_v43 = vpop.f32.mrb[37].mxu0 }
 0xaee   : > { %v2691_v45 = vpop.f32.mrb[38].mxu0 }
 0xaef   : > { %v3772_v46 = vpop.f32.mrb[39].mxu0 }
 0xaf0   : > { %v2858_v46 = vld [vmem:[%s4499_s22 + $0x50] sm:$0xff] }
 0xb38   : > { %v2439_v17 = vpop.xlane.xlu1 %2438 }
 0xb39   : > { %v2440_v20 = vmul.f32 0.03125, %v2439_v17 }
 0xb3b   : > { %v2441_v22 = vadd.f32 1e-05, %v2440_v20 }
 0xb3d   : > { %3881 = vrsqrt.f32 %v2441_v22 }
 0xb47   : > { %v3882_v23 = vpop.eup %3881 }
 0xb48   : > { %v2443_v25 = vmul.f32 %v3882_v23, %v2435_v62  ;;  %v3512_v62 = vld [vmem:[%s4498_s18] ss:$0 sm:$0xff] }
 0xb49   : > { %v3513_v23 = vld [vmem:[%s4500_s26] ss:$0 sm:$0xff] }
 0xb4a   : > { %v2450_v27 = vmul.f32 %v3503_v24, %v2443_v25  ;;  %v3514_v25 = vld [vmem:[%s4501_s28] ss:$0 sm:$0xff] }
 0xb4c   : > { %v2457_v31 = vadd.f32 %v3504_v26, %v2450_v27  ;;  %v2852_v26 = vld [vmem:[%s4499_s22 + $0x20] sm:$0xff]  ;;  %v2853_v27 = vld [vmem:[%s4499_s22 + $0x28] sm:$0xff] }
 0xb4e   : > { %v2462_v33 = vpack.c.bf16 %v2457_v31, %v2457_v31  ;;  %v2935_v31 = vpack.c.bf16 %v2853_v27, %v2852_v26  ;;  %v3523_v27 = vld [vmem:[#allocation4] ss:$0 sm:$0xff] }
 0xb50   : > { %3749 = vmatmul.mubr.msk.bf16.vlgmr.msra.gmra.mrb[32].mxu1 %vm1314_vm3, %v2462_v33  ;;  %v2855_v33 = vld [vmem:[%s4499_s22 + $0x38] sm:$0xff] }
 0xb51   : > { %3758 = vmatpush3.bf16.msra.mxu1 %v2606_v32  ;;  %3761 = vmatprep.mubr.msk.bf16.mxu1 %vm3933_vm0, %v3932_v7  ;;  %v2854_v32 = vld [vmem:[%s4499_s22 + $0x30] sm:$0xff] }
 0xb52   : > { %3759 = vmatprep.subr.bf16.mxu1 %v3932_v7  ;;  %v2936_v34 = vpack.c.bf16 %v2855_v33, %v2854_v32 }
 0xb55   : > { %3760 = vmatpush3.bf16.msra.mxu1 %v2607_v36  ;;  %v2851_v36 = vld [vmem:[%s4499_s22 + $0x18] sm:$0xff] }
 0xb56   : > { %3773 = vmatprep.subr.mxu1 %v3932_v7 }
 0xb58   : > { %3762 = vmatmul.mubr.msk.bf16.vlgmr.msra.gmra.mrb[36].mxu1 %vm1314_vm3, %v2605_v37 }
 0xb59   : > { %3774 = vmatpush3.msra.mxu1 %v4340_v47  ;;  %3775 = vmatprep.mubr.msk.f32.mxu1 %vm3933_vm0, %v3932_v7  ;;  %v2529_v47 = vld [vmem:[%s4494_s13 + $0x50] sm:$0xff] }
 0xb5a   : > { %3786 = vmatprep.subr.mxu1 %v3932_v7  ;;  %v2766_v49 = vpack.c.bf16 %v2530_v48, %v2529_v47  ;;  %v2859_v47 = vld [vmem:[%s4499_s22 + $0x58] sm:$0xff] }
 0xb5c   : > { %3781 = vmatpush3.bf16.msra.mxu0 %v2766_v49 }
 0xb5d   : > { %3799 = vmatprep.subr.bf16.mxu0 %v3932_v7 }
 0xb60   : > { %3776 = vmatmul.mubr.msk.f32.vlgmr.msra.gmra.mrb[30].mxu1 %vm1234_vm1, %v4172_v21 }
 0xb61   : > { %3788 = vmatprep.mubr.msk.f32.mxu1 %vm3933_vm0, %v3932_v7 }
 0xc23   : > { %v2509_v29 = vpop.f32.mrb[32].mxu1 }
 0xc24   : > { %v2510_v16 = vadd.f32 %v3505_v50, %v2509_v29  ;;  %v3750_v51 = vpop.f32.mrb[33].mxu1 }
 0xc25   : > { %v2512_v52 = vpop.f32.mrb[34].mxu1 }
 0xc26   : > { %v2515_v53 = vmul.f32 %v2510_v16, %v4287_v44  ;;  %v3751_v54 = vpop.f32.mrb[35].mxu1 }
 0xc28   : > { %2516 = vst.msk [vmem:[%s1201_s1] sm:$0xff] %vm1950_vm5, %v2515_v53 }
 0xc2b   : > { %v2645_v55 = vpop.f32.mrb[36].mxu1 }
 0xc2c   : > { %v3763_v19 = vpop.f32.mrb[37].mxu1  ;;  %v2689_v56 = vadd.f32 %v2688_v38, %v2645_v55  ;;  %v2856_v38 = vld [vmem:[%s4499_s22 + $0x40] sm:$0xff] }
 0xc2d   : > { %v2648_v57 = vpop.f32.mrb[38].mxu1  ;;  %v3094_v42 = vpack.c.bf16 %v2857_v40, %v2856_v38 }
 0xc2e   : > { %v3764_v58 = vpop.f32.mrb[39].mxu1  ;;  %v3520_v57 = vld [vmem:[%s4502_s4] ss:$0 sm:$0xff] }
 0xc33   : > { %v2760_v59 = vpop.f32.mrb[30].mxu1 }
 0xc34   : > { %v2764_v60 = vpack.c.bf16 %v2760_v59, %v2760_v59  ;;  %v3777_v61 = vpop.f32.mrb[31].mxu1 }
 0xc36   : > { %3783 = vmatmul.mubr.msk.bf16.vlgmr.msra.gmra.mrb[40].mxu0 %vm1314_vm3, %v2764_v60 }
 0xc37   : > { %3803 = vmatprep.mubr.msk.bf16.mxu0 %vm3933_vm0, %v3932_v7  ;;  %3800 = vmatpush3.bf16.msra.mxu0 %v2932_v14 }
 0xc38   : > { %3801 = vmatprep.subr.bf16.mxu0 %v3932_v7 }
 0xd09   : > { %v2804_v63 = vpop.f32.mrb[40].mxu0 }
 0xd0a   : > { %v2810_v0 = vadd.f32 %v2804_v63, %v2689_v56  ;;  %v3784_v1 = vpop.f32.mrb[41].mxu0 }
 0xd0b   : > { %v2807_v39 = vpop.f32.mrb[42].mxu0 }
 0xd0c   : > { %v2817_v2 = vadd.f32 %v3512_v62, %v2810_v0  ;;  %v3785_v3 = vpop.f32.mrb[43].mxu0 }
 0xd0e   : > { %v2818_v4 = vmax.f32 %v2817_v2, 0.0 }
 0xd10   : > { %v2821_v5 = vsel %vm1314_vm3, %v2818_v4, 0.0 }
 0xd11   : > { %2822 = vadd.xlane.f32.xlu0 %v2821_v5 }
 0xd9e   : > { %v2823_v6 = vpop.xlane.xlu0 %2822 }
 0xd9f   : > { %v2824_v8 = vmul.f32 0.03125, %v2823_v6  ;;  %v3177_v6 = vld [vmem:[%s4503_s2] sm:$0xff] }
 0xda1   : > { %v2825_v9 = vsub.f32 %v2818_v4, %v2824_v8  ;;  %v3178_v8 = vld [vmem:[%s4503_s2 + $0x8] sm:$0xff] }
 0xda3   : > { %v2826_v10 = vmul.f32 %v2825_v9, %v2825_v9 }
 0xda5   : > { %v2827_v11 = vsel %vm1314_vm3, %v2826_v10, 0.0  ;;  %v3179_v10 = vld [vmem:[%s4503_s2 + $0x10] sm:$0xff] }
 0xda6   : > { %2828 = vadd.xlane.f32.xlu1 %v2827_v11  ;;  %v3180_v11 = vld [vmem:[%s4503_s2 + $0x18] sm:$0xff] }
 0xda7   : > { %v3183_v12 = vpack.c.bf16 %v3180_v11, %v3179_v10 }
 0xe33   : > { %v2829_v15 = vpop.xlane.xlu1 %2828 }
 0xe34   : > { %v2830_v17 = vmul.f32 0.03125, %v2829_v15 }
 0xe36   : > { %v2831_v20 = vadd.f32 1e-05, %v2830_v17 }
 0xe38   : > { %3883 = vrsqrt.f32 %v2831_v20  ;;  %v3521_v20 = vld [vmem:[%s4504_s7] ss:$0 sm:$0xff] }
 0xe42   : > { %v3884_v22 = vpop.eup %3883 }
 0xe43   : > { %v2833_v24 = vmul.f32 %v3884_v22, %v2825_v9  ;;  %v3182_v9 = vpack.c.bf16 %v3178_v8, %v3177_v6 }
 0xe45   : > { %v2840_v28 = vmul.f32 %v3513_v23, %v2833_v24  ;;  %v3522_v23 = vld [vmem:[%s4505_s11] ss:$0 sm:$0xff] }
 0xe47   : > { %v2847_v30 = vadd.f32 %v3514_v25, %v2840_v28 }
 0xe49   : > { %3787 = vmatpush3.msra.mxu1 %v2847_v30  ;;  %v2934_v35 = vpack.c.bf16 %v2847_v30, %v2847_v30 }
 0xe4a   : > { %3789 = vmatmul.mubr.msk.f32.vlgmr.msra.gmra.mrb[40].mxu1 %vm1234_vm1, %v4152_v18  ;;  %3791 = vmatprep.subr.bf16.mxu1 %v3932_v7  ;;  %v2850_v18 = vld [vmem:[%s4499_s22 + $0x10] sm:$0xff] }
 0xe4b   : > { %3792 = vmatpush3.bf16.msra.mxu1 %v2935_v31  ;;  %3795 = vmatprep.mubr.msk.bf16.mxu1 %vm3933_vm0, %v3932_v7  ;;  %v2933_v37 = vpack.c.bf16 %v2851_v36, %v2850_v18 }
 0xe4c   : > { %3793 = vmatprep.subr.bf16.mxu1 %v3932_v7 }
 0xe4d   : > { %3802 = vmatpush3.bf16.msra.mxu0 %v2933_v37 }
 0xe4e   : > { %3812 = vmatprep.subr.bf16.mxu0 %v3932_v7 }
 0xe4f   : > { %3794 = vmatpush3.bf16.msra.mxu1 %v2936_v34 }
 0xe50   : > { %3807 = vmatprep.subr.mxu1 %v3932_v7 }
 0xe52   : > { %3796 = vmatmul.mubr.msk.bf16.vlgmr.msra.gmra.mrb[44].mxu1 %vm1314_vm3, %v2934_v35 }
 0xe53   : > { %3808 = vmatpush3.msra.mxu1 %v2847_v30  ;;  %3809 = vmatprep.mubr.msk.f32.mxu1 %vm3933_vm0, %v3932_v7 }
 0xe54   : > { %3820 = vmatprep.subr.bf16.mxu1 %v3932_v7 }
 0xe5a   : > { %3810 = vmatmul.mubr.msk.f32.vlgmr.msra.gmra.mrb[42].mxu1 %vm1234_vm1, %v4172_v21  ;;  %v3095_v21 = vpack.c.bf16 %v2859_v47, %v2858_v46 }
 0xe5b   : > { %3824 = vmatprep.mubr.msk.bf16.mxu1 %vm3933_vm0, %v3932_v7  ;;  %3821 = vmatpush3.bf16.msra.mxu1 %v3182_v9 }
 0xe5c   : > { %3822 = vmatprep.subr.bf16.mxu1 %v3932_v7 }
 0xe5f   : > { %3823 = vmatpush3.bf16.msra.mxu1 %v3183_v12 }
 0xf1d   : > { %v2927_v41 = vpop.f32.mrb[40].mxu1 }
 0xf1e   : > { %v2931_v43 = vpack.c.bf16 %v2927_v41, %v2927_v41  ;;  %v3790_v45 = vpop.f32.mrb[41].mxu1 }
 0xf20   : > { %3804 = vmatmul.mubr.msk.bf16.vlgmr.msra.gmra.mrb[44].mxu0 %vm1314_vm3, %v2931_v43 }
 0xf21   : > { %3813 = vmatpush3.bf16.msra.mxu0 %v3094_v42  ;;  %3816 = vmatprep.mubr.msk.bf16.mxu0 %vm3933_vm0, %v3932_v7 }
 0xf22   : > { %3814 = vmatprep.subr.bf16.mxu0 %v3932_v7 }
 0xf25   : > { %v2974_v48 = vpop.f32.mrb[44].mxu1  ;;  %3815 = vmatpush3.bf16.msra.mxu0 %v3095_v21 }
 0xf26   : > { %v3797_v49 = vpop.f32.mrb[45].mxu1 }
 0xf27   : > { %v2977_v50 = vpop.f32.mrb[46].mxu1 }
 0xf28   : > { %v3798_v29 = vpop.f32.mrb[47].mxu1 }
 0xf2d   : > { %v3089_v16 = vpop.f32.mrb[42].mxu1 }
 0xf2e   : > { %v3093_v51 = vpack.c.bf16 %v3089_v16, %v3089_v16  ;;  %v3811_v52 = vpop.f32.mrb[43].mxu1 }
 0xf30   : > { %3817 = vmatmul.mubr.msk.bf16.vlgmr.msra.gmra.mrb[48].mxu0 %vm1314_vm3, %v3093_v51 }
 0xff3   : > { %v3017_v53 = vpop.f32.mrb[44].mxu0 }
 0xff4   : > { %v3018_v54 = vadd.f32 %v3017_v53, %v2974_v48  ;;  %v3805_v55 = vpop.f32.mrb[45].mxu0 }
 0xff5   : > { %v3020_v19 = vpop.f32.mrb[46].mxu0 }
 0xff6   : > { %v3806_v56 = vpop.f32.mrb[47].mxu0 }
0x1003   : > { %v3133_v58 = vpop.f32.mrb[48].mxu0 }
0x1004   : > { %v3139_v59 = vadd.f32 %v3133_v58, %v3018_v54  ;;  %v3818_v60 = vpop.f32.mrb[49].mxu0 }
0x1005   : > { %v3136_v61 = vpop.f32.mrb[50].mxu0 }
0x1006   : > { %v3146_v62 = vadd.f32 %v3520_v57, %v3139_v59  ;;  %v3819_v63 = vpop.f32.mrb[51].mxu0 }
0x1008   : > { %v3147_v0 = vmax.f32 %v3146_v62, 0.0 }
0x100a   : > { %v3150_v1 = vsel %vm1314_vm3, %v3147_v0, 0.0 }
0x100b   : > { %3151 = vadd.xlane.f32.xlu0 %v3150_v1 }
0x1098   : > { %v3152_v39 = vpop.xlane.xlu0 %3151 }
0x1099   : > { %v3153_v2 = vmul.f32 0.03125, %v3152_v39 }
0x109b   : > { %v3154_v3 = vsub.f32 %v3147_v0, %v3153_v2 }
0x109d   : > { %v3155_v4 = vmul.f32 %v3154_v3, %v3154_v3 }
0x109f   : > { %v3156_v5 = vsel %vm1314_vm3, %v3155_v4, 0.0 }
0x10a0   : > { %3157 = vadd.xlane.f32.xlu1 %v3156_v5 }
0x112d   : > { %v3158_v13 = vpop.xlane.xlu1 %3157 }
0x112e   : > { %v3159_v14 = vmul.f32 0.03125, %v3158_v13 }
0x1130   : > { %v3160_v15 = vadd.f32 1e-05, %v3159_v14 }
0x1132   : > { %3885 = vrsqrt.f32 %v3160_v15 }
0x113c   : > { %v3886_v17 = vpop.eup %3885 }
0x113d   : > { %v3162_v22 = vmul.f32 %v3886_v17, %v3154_v3 }
0x113f   : > { %v3169_v24 = vmul.f32 %v3521_v20, %v3162_v22 }
0x1141   : > { %v3176_v25 = vadd.f32 %v3522_v23, %v3169_v24 }
0x1143   : > { %v3181_v26 = vpack.c.bf16 %v3176_v25, %v3176_v25 }
0x1145   : > { %3825 = vmatmul.mubr.msk.bf16.vlgmr.msra.gmra.mrb[48].mxu1 %vm1314_vm3, %v3181_v26 }
0x1218   : > { %v3228_v28 = vpop.f32.mrb[48].mxu1 }
0x1219   : > { %v3229_v7 = vadd.f32 %v3523_v27, %v3228_v28  ;;  %v3826_v30 = vpop.f32.mrb[49].mxu1 }
0x121a   : > { %v3231_v31 = vpop.f32.mrb[50].mxu1 }
0x121b   : > { %v3234_v32 = vmul.f32 %v3229_v7, %v4287_v44  ;;  %v3827_v33 = vpop.f32.mrb[51].mxu1 }
0x121d   : > { %3235 = vst.msk [vmem:[%s1205_s16] sm:$0xff] %vm1950_vm5, %v3234_v32 }
0x121e PF: > { %s92_s27 = sadd.s32 1, %s3893_s27  }
0x121f   : > { %p89_p4 = scmp.ge.s32.totalorder %s92_s27, 4  }
0x1221   :  { %91 = sbr.rel (!%p89_p4) target bundleno = 70 (0x46), region = 268 }

// kernel: fastspeech2_forward.5
= control target key start
LH: loop header
LB: loop body
LE: loop exit
PB: predicated region body
PF: predicated region fallthrough
CT: control target
= control target key end

     0   :  { %s7217_s6 = smov 1   ;;  %s7218_s10 = smov 2   ;;  %s8284_s0 = inlined_call_operand.smem [shape: u32[43], index: -1, kind: input, shape index: {}] }
   0x1   :  { %s7275_s5 = sld [smem:[%s8284_s0]]   ;;  %s7219_s14 = smov 3  }
   0x2   :  { %s7280_s9 = sld [smem:[%s8284_s0 + %s7217_s6]]   ;;  %s7220_s18 = smov 4  }
   0x3   :  { %s7285_s13 = sld [smem:[%s8284_s0 + %s7218_s10]]   ;;  %s7221_s22 = smov 5  }
   0x4   :  { %s7290_s17 = sld [smem:[%s8284_s0 + %s7219_s14]]   ;;  %s7222_s26 = smov 6  }
   0x5   :  { %s7295_s21 = sld [smem:[%s8284_s0 + %s7220_s18]]   ;;  %s7223_s30 = smov 7  }
   0x6   :  { %s7300_s25 = sld [smem:[%s8284_s0 + %s7221_s22]]   ;;  %s7224_s4 = smov 8  }
   0x7   :  { %8300 = sst [smem:[#allocation3_spill]] %s7275_s5  ;;  %s7225_s10 = smov 9  }
   0x8   :  { %8301 = sst [smem:[#allocation4_spill]] %s7280_s9  ;;  %s7226_s15 = smov 10  }
   0x9   :  { %8302 = sst [smem:[#allocation5_spill]] %s7285_s13  ;;  %s7227_s20 = smov 11  }
   0xa   :  { %8303 = sst [smem:[#allocation6_spill]] %s7290_s17  ;;  %s7229_s1 = smov 13  }
   0xb   :  { %8304 = sst [smem:[#allocation7_spill]] %s7295_s21  ;;  %s7230_s7 = smov 14  }
   0xc   :  { %8305 = sst [smem:[#allocation8_spill]] %s7300_s25  ;;  %s7232_s22 = smov 16  }
   0xd   :  { %s7305_s29 = sld [smem:[%s8284_s0 + %s7222_s26]]   ;;  %s7228_s26 = smov 12  }
   0xe   :  { %s7310_s3 = sld [smem:[%s8284_s0 + %s7223_s30]]   ;;  %s7233_s28 = smov 17  }
   0xf   :  { %s7315_s8 = sld [smem:[%s8284_s0 + %s7224_s4]]   ;;  %s7489_s16 = smov 0  }
  0x10   :  { %s7320_s14 = sld [smem:[%s8284_s0 + %s7225_s10]]   ;;  %s7491_s18 = smov 0  }
  0x11   :  { %s7325_s19 = sld [smem:[%s8284_s0 + %s7226_s15]]   ;;  %s7231_s15 = smov 15  }
  0x12   :  { %s7330_s24 = sld [smem:[%s8284_s0 + %s7227_s20]]   ;;  %s7495_s23 = smov 0  }
  0x13   :  { %8306 = sst [smem:[#allocation9_spill]] %s7305_s29 }
  0x14   :  { %8307 = sst [smem:[#allocation10_spill]] %s7310_s3 }
  0x15   :  { %8308 = sst [smem:[#allocation11_spill]] %s7315_s8 }
  0x16   :  { %s7335_s30 = sld [smem:[%s8284_s0 + %s7228_s26]]  }
  0x17   :  { %s7340_s6 = sld [smem:[%s8284_s0 + %s7229_s1]]  }
  0x18   :  { %s7345_s12 = sld [smem:[%s8284_s0 + %s7230_s7]]   ;;  %s7234_s7 = smov 18  }
  0x19   :  { %s7350_s20 = sld [smem:[%s8284_s0 + %s7231_s15]]   ;;  %s7235_s15 = smov 19  }
  0x1a   :  { %s7355_s27 = sld [smem:[%s8284_s0 + %s7232_s22]]   ;;  %s7236_s22 = smov 20  }
  0x1b   :  { %s7360_s4 = sld [smem:[%s8284_s0 + %s7233_s28]]   ;;  %s7237_s28 = smov 21  }
  0x1d   :  { %8309 = sst [smem:[#allocation12_spill]] %s7340_s6 }
  0x1e   :  { %s7365_s6 = sld [smem:[%s8284_s0 + %s7234_s7]]   ;;  %s7238_s7 = smov 22  }
  0x1f   :  { %8310 = sst [smem:[#allocation13_spill]] %s7350_s20 }
  0x20   :  { %8311 = sst [smem:[#allocation14_spill]] %s7355_s27 }
  0x21   :  { %8312 = sst [smem:[#allocation15_spill]] %s7360_s4 }
  0x22   :  { %s7370_s20 = sld [smem:[%s8284_s0 + %s7235_s15]]   ;;  %s7239_s15 = smov 23  }
  0x23   :  { %s7375_s27 = sld [smem:[%s8284_s0 + %s7236_s22]]   ;;  %s7240_s22 = smov 24  }
  0x24   :  { %8313 = sst [smem:[#allocation16_spill]] %s7365_s6 }
  0x25   :  { %s7380_s4 = sld [smem:[%s8284_s0 + %s7237_s28]]   ;;  %s7241_s28 = smov 25  }
  0x26   :  { %s7385_s6 = sld [smem:[%s8284_s0 + %s7238_s7]]   ;;  %s7242_s7 = smov 26  }
  0x28   :  { %8314 = sst [smem:[#allocation17_spill]] %s7370_s20 }
  0x29   :  { %8315 = sst [smem:[#allocation18_spill]] %s7375_s27 }
  0x2a   :  { %s7390_s20 = sld [smem:[%s8284_s0 + %s7239_s15]]   ;;  %s7243_s15 = smov 27  }
  0x2b   :  { %8316 = sst [smem:[#allocation19_spill]] %s7380_s4 }
  0x2c   :  { %8317 = sst [smem:[#allocation20_spill]] %s7385_s6 }
  0x2d   :  { %s7395_s27 = sld [smem:[%s8284_s0 + %s7240_s22]]   ;;  %s7244_s22 = smov 28  }
  0x2e   :  { %s7400_s4 = sld [smem:[%s8284_s0 + %s7241_s28]]   ;;  %s7245_s28 = smov 29  }
  0x2f   :  { %s7405_s6 = sld [smem:[%s8284_s0 + %s7242_s7]]   ;;  %s7246_s7 = smov 30  }
  0x30   :  { %8318 = sst [smem:[#allocation21_spill]] %s7390_s20 }
  0x31   :  { %s7410_s20 = sld [smem:[%s8284_s0 + %s7243_s15]]   ;;  %s7247_s15 = smov 31  }
  0x33   :  { %8319 = sst [smem:[#allocation22_spill]] %s7395_s27 }
  0x34   :  { %8320 = sst [smem:[#allocation23_spill]] %s7400_s4 }
  0x35   :  { %8321 = sst [smem:[#allocation24_spill]] %s7405_s6 }
  0x36   :  { %s7415_s27 = sld [smem:[%s8284_s0 + %s7244_s22]]   ;;  %s7248_s22 = smov 32  }
  0x37   :  { %8322 = sst [smem:[#allocation25_spill]] %s7410_s20 }
  0x38   :  { %s7420_s4 = sld [smem:[%s8284_s0 + %s7245_s28]]   ;;  %s7249_s28 = smov 33  }
  0x39   :  { %s7425_s6 = sld [smem:[%s8284_s0 + %s7246_s7]]   ;;  %s7250_s7 = smov 34  }
  0x3a   :  { %s7430_s20 = sld [smem:[%s8284_s0 + %s7247_s15]]   ;;  %s7251_s15 = smov 35  }
  0x3c   :  { %8323 = sst [smem:[#allocation26_spill]] %s7415_s27 }
  0x3d   :  { %s7435_s27 = sld [smem:[%s8284_s0 + %s7248_s22]]   ;;  %s7252_s22 = smov 36  }
  0x3e   :  { %8324 = sst [smem:[#allocation27_spill]] %s7420_s4 }
  0x3f   :  { %8325 = sst [smem:[#allocation28_spill]] %s7425_s6 }
  0x40   :  { %8326 = sst [smem:[#allocation29_spill]] %s7430_s20 }
  0x41   :  { %s7440_s4 = sld [smem:[%s8284_s0 + %s7249_s28]]   ;;  %s7253_s28 = smov 37  }
  0x42   :  { %s7445_s6 = sld [smem:[%s8284_s0 + %s7250_s7]]   ;;  %s7254_s7 = smov 38  }
  0x43   :  { %8327 = sst [smem:[#allocation30_spill]] %s7435_s27 }
  0x44   :  { %s7450_s20 = sld [smem:[%s8284_s0 + %s7251_s15]]   ;;  %s7255_s15 = smov 39  }
  0x45   :  { %s7455_s27 = sld [smem:[%s8284_s0 + %s7252_s22]]   ;;  %s7256_s22 = smov 40  }
  0x47   :  { %8328 = sst [smem:[#allocation31_spill]] %s7440_s4 }
  0x48   :  { %8329 = sst [smem:[#allocation32_spill]] %s7445_s6 }
  0x49   :  { %s7460_s4 = sld [smem:[%s8284_s0 + %s7253_s28]]   ;;  %s7257_s28 = smov 41  }
  0x4a   :  { %8330 = sst [smem:[#allocation33_spill]] %s7450_s20 }
  0x4b   :  { %8331 = sst [smem:[#allocation34_spill]] %s7455_s27 }
  0x4c   :  { %s7465_s6 = sld [smem:[%s8284_s0 + %s7254_s7]]   ;;  %s7258_s7 = smov 42  }
  0x4d   :  { %s7470_s20 = sld [smem:[%s8284_s0 + %s7255_s15]]   ;;  %s7487_s15 = smov 0  }
  0x4e   :  { %s7475_s27 = sld [smem:[%s8284_s0 + %s7256_s22]]   ;;  %s7493_s22 = smov 0  }
  0x4f   :  { %8332 = sst [smem:[#allocation35_spill]] %s7460_s4 }
  0x50   :  { %s7480_s4 = sld [smem:[%s8284_s0 + %s7257_s28]]  }
  0x52   :  { %8333 = sst [smem:[#allocation36_spill]] %s7465_s6 }
  0x53   :  { %8334 = sst [smem:[#allocation37_spill]] %s7470_s20 }
  0x54   :  { %8335 = sst [smem:[#allocation38_spill]] %s7475_s27 }
  0x55   :  { %s7485_s6 = sld [smem:[%s8284_s0 + %s7258_s7]]  }
  0x56 LB: > { %8336 = sst [smem:[#allocation39_spill]] %s7199_s15  ;;  %s105_s0 = sadd.s32 1, %s7207_s18  ;;  %s7215_s23 = sphi %s7495_s23, %s96_s23   ;;  %s7211_s22 = sphi %s7493_s22, %s8408_s22   ;;  %s7207_s18 = sphi %s7491_s18, %s8407_s18   ;;  %s7203_s16 = sphi %s7489_s16, %s8406_s16   ;;  %s7199_s15 = sphi %s7487_s15, %s8405_s15  }
  0x57   : > { %8337 = sst [smem:[#allocation40_spill]] %s7207_s18  ;;  %s108_s26 = sadd.s32 1, %s7211_s22 }
  0x58   : > { %8338 = sst [smem:[#allocation41_spill]] %s7211_s22  ;;  %p106_p0 = scmp.ge.s32.totalorder %s105_s0, 2 }
  0x59   : > { %8339 = sst [smem:[#allocation42_spill]] %s7215_s23  ;;  %p6081_p1 = scmp.ge.s32.totalorder %s7215_s23, 1 }
  0x5a   : > { %p1328_p2 = scmp.lt.s32.totalorder %s7215_s23, 5  ;;  %s8410_s0 = smov (%p106_p0, %s105_s0), 0 }
  0x5b   : > { %8340 = sst [smem:[#allocation43_spill]] %s8410_s0  ;;  %s8412_s26 = smov (!%p106_p0, %s108_s26), %s7211_s22 }
  0x5c   : > { %p1329_p3 = pnand %p6081_p1, %p1328_p2  ;;  %p110_p4 = scmp.ge.s32.totalorder %s8412_s26, 2 }
  0x5e   : > { %s8414_s26 = smov (%p110_p4, %s8412_s26), 0  ;;  %1332 = sbr.rel (%p1329_p3) target bundleno = 6400 (0x1900), region = 184 }
  0x5f   : > { %8341 = sst [smem:[#allocation44_spill]] %s8414_s26 }
  0x65   : > { %p1503_p5 = scmp.lt.s32.totalorder %s7203_s16, 1  ;;  %s8343_s9 = sld [smem:[#allocation4_spill]] }
  0x66   : > { %s8344_s13 = sld [smem:[#allocation5_spill]]  ;;  %s8346_s17 = sld [smem:[#allocation6_spill]] }
  0x67   : > { %s8347_s25 = sld [smem:[#allocation8_spill]]  ;;  %s8349_s3 = sld [smem:[#allocation10_spill]] }
  0x68   : > { %p1516_p6 = scmp.lt.s32.totalorder %s7199_s15, 1  ;;  %s8416_s16 = smov (!%p1503_p5, %s7203_s16), 1 }
  0x69   : > { %8351 = sst [smem:[#allocation45_spill]] %s8416_s16  ;;  %s6244_s2 = sshll.u32 %s8416_s16, 4 }
  0x6a   : > { %s7523_s28 = scalar_select %p1516_p6, %s7199_s15, 1 }
  0x6b   : > { %s7529_s7 = scalar_lea.vmem %s8343_s9, %s6244_s2  ;;  %s8353_s10 = sld [smem:[#allocation12_spill]] }
  0x6c   : > { %8352 = sst [smem:[#allocation46_spill]] %s7529_s7  ;;  %s1515_s11 = scalar_lea.vmem %s8344_s13, %s6244_s2 }
  0x6d   : > { %s8354_s26 = sld [smem:[#allocation13_spill]]  ;;  %s6246_s0 = sshll.u32 %s7523_s28, 5 }
  0x6e   : > { %s8355_s22 = sld [smem:[#allocation14_spill]]  ;;  %s8356_s23 = sld [smem:[#allocation15_spill]] }
  0x6f   : > { %s7536_s27 = scalar_lea.vmem %s8346_s17, %s6246_s0  ;;  %s8358_s20 = sld [smem:[#allocation16_spill]] }
  0x70   : > { %8357 = sst [smem:[#allocation47_spill]] %s7536_s27  ;;  %s7539_s1 = scalar_lea.vmem %s8347_s25, %s6246_s0 }
  0x71   : > { %8359 = sst [smem:[#allocation48_spill]] %s7539_s1  ;;  %s7544_s9 = scalar_lea.vmem %s8349_s3, %s6246_s0 }
  0x72   : > { %8360 = sst [smem:[#allocation49_spill]] %s7544_s9  ;;  %s7549_s13 = scalar_lea.vmem %s7320_s14, %s6246_s0 }
  0x73   : > { %s1547_s5 = scalar_lea.vmem %s7325_s19, %s7523_s28  ;;  %s1550_s15 = scalar_lea.vmem %s7330_s24, %s7523_s28 }
  0x74   : > { %s1553_s18 = scalar_lea.vmem %s7335_s30, %s7523_s28  ;;  %s7044_s21 = smul.u32 96, %s7523_s28 }
  0x75   : > { %s1561_s17 = scalar_lea.vmem %s7345_s12, %s7523_s28  ;;  %s6250_s27 = sshll.u32 %s7523_s28, 6 }
  0x76   : > { %s7562_s25 = scalar_lea.vmem %s8353_s10, %s7044_s21  ;;  %s7565_s1 = scalar_lea.vmem %s8354_s26, %s6250_s27 }
  0x77   : > { %s1569_s16 = scalar_lea.vmem %s8355_s22, %s7523_s28  ;;  %s1572_s29 = scalar_lea.vmem %s8356_s23, %s7523_s28 }
  0x78   : > { %s1575_s3 = scalar_lea.vmem %s8358_s20, %s7523_s28  ;;  %s7574_s9 = scalar_lea.vmem %s7480_s4, %s6244_s2 }
  0x79   : > { %s7577_s7 = scalar_lea.vmem %s7485_s6, %s6244_s2  ;;  %s8361_s8 = sld [smem:[#allocation39_spill]] }
  0x7f   : > { %p6101_p7 = scmp.ne.s32.totalorder %s8361_s8, 0 }
  0x80   : > { %v1591_v0 = vld [vmem:[%s1515_s11] sm:$0xff] (!%p6101_p7)  ;;  %vm1593_vm0 = vcmask (!%p6101_p7), 261120   ;;  %v1592_v1 = vld [vmem:[%s1515_s11 + $0x8] sm:$0x1f] (!%p6101_p7)  ;;  %vm1595_vm1 = vcmask (!%p6101_p7), 258048  }
  0x81   : > { %1590 = sbr.rel (%p6101_p7) target bundleno = 136 (0x88), region = 188  ;;  %1594 = vst.msk [vmem:[#allocation2] sm:$0xff] (!%p6101_p7), %vm1593_vm0, %v1591_v0 }
  0x82   : > { %1596 = vst.msk [vmem:[#allocation2 + $0x8] sm:$0x1f] (!%p6101_p7), %vm1595_vm1, %v1592_v1 }
  0x88 PF: > { %s8362_s21 = sld [smem:[#allocation47_spill]]  ;;  %s8363_s20 = sld [smem:[#allocation48_spill]]  ;;  %v7259_v5 = vmov 0.0   ;;  %vm7260_vm2 = vmmov 0   ;;  %v7590_v9 = vld [vmem:[#allocation2] sm:$0xff]  ;;  %vm1658_vm3 = vcmask 261120   ;;  %v1854_v44 = vlaneseq }
  0x89   : > { %6454 = vmatprep.subr.bf16.mxu1 %v7259_v5  ;;  %6458 = vmatprep.mubr.msk.bf16.mxu1 %vm7260_vm2, %v7259_v5  ;;  %v7592_v10 = vld [vmem:[#allocation2 + $0x8] sm:$0x1f]  ;;  %s8364_s8 = sld [smem:[#allocation7_spill]]  ;;  %s8365_s27 = sld [smem:[#allocation9_spill]]  ;;  %vm1803_vm4 = vcmask 130048   ;;  %vm1861_vm5 = vcmask 105472  }
  0x8a   : > { %6470 = vmatprep.subr.bf16.mxu0 %v7259_v5  ;;  %6474 = vmatprep.mubr.msk.bf16.mxu0 %vm7260_vm2, %v7259_v5  ;;  %v1649_v13 = vpack.c.bf16 %v7592_v10, %v7590_v9  ;;  %s8368_s0 = sld [smem:[#allocation49_spill]]  ;;  %s7261_s26 = smov 112   ;;  %v7638_v45 = vshrl.u32 %v1854_v44, 7  ;;  %vm1865_vm6 = vcmask 102400   ;;  %vm1890_vm7 = vcmask 1045504  }
  0x8b   : > { %s8369_s2 = sld [smem:[#allocation3_spill]]  ;;  %s8370_s10 = sld [smem:[#allocation45_spill]]  ;;  %vm1891_vm8 = vcmask 1046528   ;;  %vm2173_vm9 = vcmask 258048   ;;  %vm2245_vm11 = vcmask 1044480   ;;  %vm7264_vm13 = vmmov 1  }
  0x8c   : > { %v1856_v48 = vsub.s32 0, %v7638_v45  ;;  %vm7722_vm14 = vmpackc.low %vm2245_vm11, %vm7264_vm13  ;;  %vm2577_vm1 = vcmask 523264  }
  0x8e   : > { %v1603_v2 = vld [vmem:[%s8362_s21] sm:$0xff]  ;;  %v1604_v3 = vld [vmem:[%s8362_s21 + $0x8] sm:$0xff]  ;;  %v1605_v4 = vld [vmem:[%s8362_s21 + $0x10] sm:$0xff] }
  0x8f   : > { %v1650_v6 = vpack.c.bf16 %v1604_v3, %v1603_v2  ;;  %v1606_v7 = vld [vmem:[%s8362_s21 + $0x18] sm:$0xff]  ;;  %v1608_v11 = vld [vmem:[%s8363_s20] sm:$0xff]  ;;  %v1609_v12 = vld [vmem:[%s8363_s20 + $0x8] sm:$0xff]  ;;  %s8366_s22 = scalar_lea.vmem %s8364_s8, %s7523_s28  ;;  %s8367_s23 = scalar_lea.vmem %s8365_s27, %s7523_s28 }
  0x90   : > { %v1651_v8 = vpack.c.bf16 %v1606_v7, %v1605_v4  ;;  %v1703_v14 = vpack.c.bf16 %v1609_v12, %v1608_v11  ;;  %v1610_v15 = vld [vmem:[%s8363_s20 + $0x10] sm:$0xff]  ;;  %v1611_v16 = vld [vmem:[%s8363_s20 + $0x18] sm:$0xff]  ;;  %v6102_v18 = vld [vmem:[%s8366_s22] ss:$0 sm:$0xff]  ;;  %s8372_s21 = sld [smem:[#allocation11_spill]] }
  0x91   : > { %6455 = vmatpush3.bf16.msra.mxu1 %v1650_v6  ;;  %v1704_v17 = vpack.c.bf16 %v1611_v16, %v1610_v15  ;;  %v6104_v26 = vld [vmem:[%s8367_s23] ss:$0 sm:$0xff]  ;;  %v1614_v36 = vld [vmem:[%s8368_s0 + $0x8] sm:$0xff]  ;;  %v1615_v37 = vld [vmem:[%s8368_s0 + $0x10] sm:$0xff]  ;;  %s8371_s11 = scalar_lea.vmem %s8369_s2, %s8370_s10 }
  0x92   : > { %6456 = vmatprep.subr.bf16.mxu1 %v7259_v5  ;;  %v1613_v35 = vld [vmem:[%s8368_s0] sm:$0xff]  ;;  %v1616_v39 = vld [vmem:[%s8368_s0 + $0x18] sm:$0xff] }
  0x93   : > { %v1752_v38 = vpack.c.bf16 %v1614_v36, %v1613_v35  ;;  %v1753_v40 = vpack.c.bf16 %v1616_v39, %v1615_v37  ;;  %v1599_v46 = vld [vmem:[%s8371_s11] sm:$0x1] }
  0x94   : > { %v1600_v47 = vmul.f32 1e+09, %v1599_v46 }
  0x95   : > { %6457 = vmatpush3.bf16.msra.mxu1 %v1651_v8  ;;  %6471 = vmatpush3.bf16.msra.mxu0 %v1752_v38 }
  0x96   : > { %6462 = vmatprep.subr.bf16.mxu1 %v7259_v5  ;;  %6472 = vmatprep.subr.bf16.mxu0 %v7259_v5  ;;  %v1857_v49 = vrot.slane %v1600_v47, %v1856_v48  ;;  %s8373_s20 = scalar_lea.vmem %s8372_s21, %s7523_s28 }
  0x98   : > { %6459 = vmatmul.mubr.msk.bf16.vlgmr.msra.gmra.mrb[0].mxu1 %vm1658_vm3, %v1649_v13 }
  0x99   : > { %6463 = vmatpush3.bf16.msra.mxu1 %v1703_v14  ;;  %6466 = vmatprep.mubr.msk.bf16.mxu1 %vm7260_vm2, %v7259_v5 }
  0x9a   : > { %6464 = vmatprep.subr.bf16.mxu1 %v7259_v5  ;;  %6473 = vmatpush3.bf16.msra.mxu0 %v1753_v40 }
  0x9b   : > { %6484 = vmatprep.subr.bf16.mxu0 %v7259_v5 }
  0x9d   : > { %6465 = vmatpush3.bf16.msra.mxu1 %v1704_v17  ;;  %6475 = vmatmul.mubr.msk.bf16.vlgmr.msra.gmra.mrb[0].mxu0 %vm1658_vm3, %v1649_v13 }
  0x9e   : > { %6478 = vmatprep.subr.bf16.mxu1 %v7259_v5  ;;  %6486 = vmatprep.mubr.msk.bf16.mxu0 %vm7260_vm2, %v7259_v5 }
  0xa0   : > { %6467 = vmatmul.mubr.msk.bf16.vlgmr.msra.gmra.mrb[4].mxu1 %vm1658_vm3, %v1649_v13 }
  0xa1   : > { %6480 = vmatprep.mubr.msk.bf16.mxu1 %vm7260_vm2, %v7259_v5 }
 0x16b   : > { %v1696_v19 = vpop.f32.mrb[0].mxu1 }
 0x16c   : > { %v6460_v20 = vpop.f32.mrb[1].mxu1  ;;  %v1697_v22 = vadd.f32 %v6102_v18, %v1696_v19 }
 0x16d   : > { %v1699_v21 = vpop.f32.mrb[2].mxu1 }
 0x16e   : > { %v1700_v23 = vadd.f32 %v6102_v18, %v1699_v21  ;;  %v6461_v24 = vpop.f32.mrb[3].mxu1 }
 0x170   : > { %v1801_v25 = vpack.c.bf16 %v1700_v23, %v1697_v22  ;;  %v1794_v19 = vpop.f32.mrb[0].mxu0  ;;  %v6106_v22 = vld [vmem:[%s8373_s20] ss:$0 sm:$0xff] }
 0x171   : > { %v6476_v20 = vpop.f32.mrb[1].mxu0  ;;  %v1795_v24 = vadd.f32 %v6106_v22, %v1794_v19 }
 0x172   : > { %v1797_v21 = vpop.f32.mrb[2].mxu0 }
 0x173   : > { %v1745_v27 = vpop.f32.mrb[4].mxu1  ;;  %v6477_v23 = vpop.f32.mrb[3].mxu0 }
 0x174   : > { %v6468_v28 = vpop.f32.mrb[5].mxu1  ;;  %v1746_v30 = vadd.f32 %v6104_v26, %v1745_v27  ;;  %v7262_v27 = vmov 65535  }
 0x175   : > { %v1748_v29 = vpop.f32.mrb[6].mxu1  ;;  %v1892_v28 = vsel %vm1890_vm7, 4294967295, %v7262_v27 }
 0x176   : > { %v1749_v31 = vadd.f32 %v6104_v26, %v1748_v29  ;;  %v6469_v32 = vpop.f32.mrb[7].mxu1  ;;  %v1893_v29 = vsel %vm1891_vm8, %v1892_v28, 0 }
 0x178   : > { %v1802_v33 = vpack.c.bf16 %v1749_v31, %v1746_v30 }
 0x17a   : > { %1944 = vrot.lane.b32.xlu0 %v1802_v33, %s7261_s26  ;;  %v1808_v34 = vsel %vm1803_vm4, %v1802_v33, 0 }
 0x17b   : > { %6479 = vmatpush3.bf16.xpose.msra.mxu1 %v1808_v34 }
 0x17c   : > { %6490 = vmatprep.subr.bf16.mxu1 %v7259_v5 }
 0x17e   : > { %1941 = vrot.lane.b32.xlu0 %v1801_v25, %s7261_s26 }
 0x182   : > { %6481 = vmatmul.mubr.msk.bf16.vlgmr.msra.gmra.mrb[8].mxu1 %vm1803_vm4, %v1801_v25  ;;  %v1798_v25 = vadd.f32 %v6106_v22, %v1797_v21 }
 0x183   : > { %6492 = vmatprep.mubr.msk.bf16.mxu1 %vm7260_vm2, %v7259_v5 }
 0x184   : > { %v1886_v26 = vpack.c.bf16 %v1798_v25, %v1795_v24 }
 0x186   : > { %v1895_v30 = vand.u32 %v1893_v29, %v1886_v26 }
 0x188   : > { %6485 = vmatpush3.bf16.msra.mxu0 %v1895_v30 }
 0x189   : > { %6496 = vmatprep.subr.bf16.mxu0 %v7259_v5 }
 0x1ec   : > { %v1945_v41 = vpop.permute.xlu0 %1944 }
 0x1ed   : > { %v1950_v42 = vsel %vm1803_vm4, %v1945_v41, 0 }
 0x1ee   : > { %6491 = vmatpush3.bf16.xpose.msra.mxu1 %v1950_v42 }
 0x1ef   : > { %6502 = vmatprep.subr.bf16.mxu1 %v7259_v5 }
 0x1f0   : > { %v1942_v43 = vpop.permute.xlu0 %1941 }
 0x1f5   : > { %6493 = vmatmul.mubr.msk.bf16.vlgmr.msra.gmra.mrb[12].mxu1 %vm1803_vm4, %v1942_v43 }
 0x1f6   : > { %6504 = vmatprep.mubr.msk.bf16.mxu1 %vm7260_vm2, %v7259_v5 }
 0x255   : > { %v1844_v50 = vpop.f32.mrb[8].mxu1 }
 0x256   : > { %v1851_v51 = vmul.f32 0.25, %v1844_v50  ;;  %v6482_v52 = vpop.f32.mrb[9].mxu1 }
 0x257   : > { %v1847_v53 = vpop.f32.mrb[10].mxu1 }
 0x258   : > { %v1852_v54 = vmul.f32 0.25, %v1847_v53  ;;  %v6483_v55 = vpop.f32.mrb[11].mxu1  ;;  %v1859_v56 = vsub.f32 %v1851_v51, %v1857_v49 }
 0x259   : > { %v1618_v55 = vld [vmem:[%s7549_s13] sm:$0xff] }
 0x25a   : > { %v1862_v57 = vsel %vm1861_vm5, %v1859_v56, -inf  ;;  %v1860_v58 = vsub.f32 %v1852_v54, %v1857_v49 }
 0x25b   : > { %1863 = vmax.xlane.f32.xlu1 %v1862_v57 }
 0x25c   : > { %v1866_v59 = vsel %vm1865_vm6, %v1860_v58, -inf }
 0x25f   : > { %1867 = vmax.xlane.f32.xlu1 %v1866_v59 }
 0x2c8   : > { %v1986_v60 = vpop.f32.mrb[12].mxu1 }
 0x2c9   : > { %v1993_v61 = vmul.f32 0.25, %v1986_v60  ;;  %v6494_v62 = vpop.f32.mrb[13].mxu1 }
 0x2ca   : > { %v1989_v63 = vpop.f32.mrb[14].mxu1  ;;  %v1620_v62 = vld [vmem:[%s7549_s13 + $0x10] sm:$0xff] }
 0x2cb   : > { %v1994_v0 = vmul.f32 0.25, %v1989_v63  ;;  %v6495_v1 = vpop.f32.mrb[15].mxu1  ;;  %v1995_v2 = vsub.f32 %v1993_v61, %v1857_v49  ;;  %v1621_v63 = vld [vmem:[%s7549_s13 + $0x18] sm:$0xff] }
 0x2cd   : > { %v1997_v3 = vsel %vm1861_vm5, %v1995_v2, -inf  ;;  %v1996_v4 = vsub.f32 %v1994_v0, %v1857_v49  ;;  %v2071_v0 = vpack.c.bf16 %v1621_v63, %v1620_v62  ;;  %v6116_v63 = vld [vmem:[%s1553_s18] ss:$0 sm:$0xff] }
 0x2ce   : > { %1998 = vmax.xlane.f32.xlu0 %v1997_v3 }
 0x2cf   : > { %v2000_v6 = vsel %vm1865_vm6, %v1996_v4, -inf  ;;  %6503 = vmatpush3.bf16.msra.mxu1 %v2071_v0 }
 0x2d0   : > { %2001 = vmax.xlane.f32.xlu1 %v2000_v6 }
 0x2e8   : > { %v1864_v7 = vpop.xlane.xlu1 %1863 }
 0x2e9   : > { %v1869_v8 = vsub.f32 %v1859_v56, %v1864_v7  ;;  %v1619_v56 = vld [vmem:[%s7549_s13 + $0x8] sm:$0xff] }
 0x2ea   : > { %v1939_v60 = vpack.c.bf16 %v1619_v56, %v1618_v55 }
 0x2eb   : > { %v1871_v11 = vmul.f32 1.442695, %v1869_v8 }
 0x2ec   : > { %v1868_v12 = vpop.xlane.xlu1 %1867 }
 0x2ed   : > { %7137 = vpow2.f32 %v1871_v11  ;;  %v1870_v13 = vsub.f32 %v1860_v58, %v1868_v12 }
 0x2ef   : > { %v1873_v14 = vmul.f32 1.442695, %v1870_v13 }
 0x2f1   : > { %7139 = vpow2.f32 %v1873_v14 }
 0x2f7   : > { %v7138_v15 = vpop.eup %7137 }
 0x2f8   : > { %v1875_v16 = vsel %vm1861_vm5, %v7138_v15, 0.0 }
 0x2f9   : > { %1876 = vadd.xlane.f32.xlu1 %v1875_v16 }
 0x2fb   : > { %v7140_v17 = vpop.eup %7139 }
 0x2fc   : > { %v1878_v18 = vsel %vm1865_vm6, %v7140_v17, 0.0 }
 0x2fd   : > { %1879 = vadd.xlane.f32.xlu1 %v1878_v18  ;;  %v6114_v18 = vld [vmem:[%s1547_s5] ss:$0 sm:$0xff]  ;;  %s8374_s5 = sld [smem:[#allocation46_spill]] }
 0x35b   : > { %v1999_v31 = vpop.xlane.xlu0 %1998 }
 0x35c   : > { %v2003_v32 = vsub.f32 %v1995_v2, %v1999_v31  ;;  %v7263_v31 = vmov 0  }
 0x35d   : > { %v2002_v33 = vpop.xlane.xlu1 %2001  ;;  %7135 = vset.pattern.permute.xlu0 %v7263_v31  ;;  %7136 = vset.pattern.permute.xlu1 %v7263_v31 }
 0x35e   : > { %v2005_v34 = vmul.f32 1.442695, %v2003_v32  ;;  %v2004_v35 = vsub.f32 %v1996_v4, %v2002_v33 }
 0x360   : > { %7141 = vpow2.f32 %v2005_v34  ;;  %v2007_v36 = vmul.f32 1.442695, %v2004_v35 }
 0x362   : > { %7143 = vpow2.f32 %v2007_v36 }
 0x36a   : > { %v7142_v37 = vpop.eup %7141 }
 0x36b   : > { %v2009_v38 = vsel %vm1861_vm5, %v7142_v37, 0.0 }
 0x36c   : > { %v7144_v39 = vpop.eup %7143  ;;  %2010 = vadd.xlane.f32.xlu1 %v2009_v38 }
 0x36d   : > { %v2012_v40 = vsel %vm1865_vm6, %v7144_v39, 0.0 }
 0x370   : > { %2013 = vadd.xlane.f32.xlu1 %v2012_v40  ;;  %v1602_v40 = vld [vmem:[%s8374_s5 + $0x8] sm:$0x1f] }
 0x381   : > { %2021 = vrot.lane.b32.xlu1 %v1886_v26, %s7261_s26 }
 0x386   : > { %v1877_v41 = vpop.xlane.xlu1 %1876 }
 0x387   : > { %7145 = vrcp.f32 %v1877_v41  ;;  %v1601_v41 = vld [vmem:[%s8374_s5] sm:$0xff] }
 0x38a   : > { %v1880_v42 = vpop.xlane.xlu1 %1879 }
 0x38b   : > { %7147 = vrcp.f32 %v1880_v42  ;;  %v1629_v42 = vld [vmem:[%s7562_s25 + $0x20] sm:$0xff] }
 0x391   : > { %v7146_v43 = vpop.eup %7145 }
 0x392   : > { %v1883_v47 = vmul.f32 %v7146_v43, %v7138_v15  ;;  %v1630_v43 = vld [vmem:[%s7562_s25 + $0x28] sm:$0xff] }
 0x395   : > { %v7148_v46 = vpop.eup %7147 }
 0x396   : > { %v1884_v48 = vmul.f32 %v7148_v46, %v7140_v17  ;;  %v2328_v46 = vpack.c.bf16 %v1630_v43, %v1629_v42  ;;  %v1640_v43 = vld [vmem:[%s7565_s1 + $0x10] sm:$0xff] }
 0x398   : > { %v1885_v49 = vpack.c.bf16 %v1884_v48, %v1883_v47  ;;  %v1631_v47 = vld [vmem:[%s7562_s25 + $0x30] sm:$0xff]  ;;  %v1632_v48 = vld [vmem:[%s7562_s25 + $0x38] sm:$0xff] }
 0x39a   : > { %6487 = vmatmul.mubr.msk.bf16.vlgmr.msra.gmra.mrb[4].mxu0 %vm1861_vm5, %v1885_v49  ;;  %v2329_v49 = vpack.c.bf16 %v1632_v48, %v1631_v47  ;;  %v1642_v48 = vld [vmem:[%s7565_s1 + $0x20] sm:$0xff] }
 0x39b   : > { %6498 = vmatprep.mubr.msk.bf16.mxu0 %vm7260_vm2, %v7259_v5 }
 0x3f9   : > { %v2011_v50 = vpop.xlane.xlu1 %2010 }
 0x3fa   : > { %7149 = vrcp.f32 %v2011_v50  ;;  %v7691_v50 = vand.u32 127, %v1854_v44 }
 0x3fd   : > { %v2014_v51 = vpop.xlane.xlu1 %2013 }
 0x3fe   : > { %7151 = vrcp.f32 %v2014_v51  ;;  %v2231_v51 = vadd.s32 4294967295, %v7638_v45 }
 0x400   : > { %vm2233_vm10 = vcmp.eq.s32.totalorder %v7691_v50, %v2231_v51 }
 0x401   : > { %v2022_v52 = vpop.permute.xlu1 %2021 }
 0x402   : > { %v2027_v53 = vand.u32 %v2022_v52, %v1893_v29  ;;  %v7696_v52 = vsel %vm2233_vm10, 1.0, %v7259_v5 }
 0x404   : > { %6497 = vmatpush3.bf16.msra.mxu0 %v2027_v53  ;;  %v7150_v54 = vpop.eup %7149 }
 0x405   : > { %6508 = vmatprep.subr.bf16.mxu0 %v7259_v5  ;;  %v2017_v58 = vmul.f32 %v7150_v54, %v7142_v37 }
 0x408   : > { %v7152_v57 = vpop.eup %7151 }
 0x409   : > { %v2018_v59 = vmul.f32 %v7152_v57, %v7144_v39 }
 0x40b   : > { %v2019_v61 = vpack.c.bf16 %v2018_v59, %v2017_v58  ;;  %v6115_v59 = vld [vmem:[%s1550_s15] ss:$0 sm:$0xff]  ;;  %s8380_s15 = sld [smem:[#allocation39_spill]] }
 0x40d   : > { %6499 = vmatmul.mubr.msk.bf16.vlgmr.msra.gmra.mrb[8].mxu0 %vm1861_vm5, %v2019_v61 }
 0x40e   : > { %6509 = vmatpush3.bf16.msra.mxu0 %v1939_v60  ;;  %6510 = vmatprep.mubr.msk.bf16.mxu0 %vm7260_vm2, %v7259_v5 }
 0x40f   : > { %6521 = vmatprep.subr.bf16.mxu0 %v7259_v5 }
 0x411   : > { %p6135_p8 = scmp.ne.s32.totalorder %s8380_s15, 1 }
 0x412   : > { %vm2732_vm6 = vcmask (!%p6135_p8), 162816   ;;  %vm2734_vm8 = vcmask (!%p6135_p8), 159744   ;;  %vm2933_vm10 = vcmask (!%p6135_p8), 1041408   ;;  %s8386_s18 = sld [smem:[#allocation21_spill]] (!%p6135_p8)  ;;  %s8388_s8 = sld [smem:[#allocation23_spill]] (!%p6135_p8) }
 0x413   : > { %s8389_s27 = sld [smem:[#allocation24_spill]] (!%p6135_p8)  ;;  %s8390_s22 = sld [smem:[#allocation25_spill]] (!%p6135_p8) }
 0x414   : > { %s8391_s23 = sld [smem:[#allocation26_spill]] (!%p6135_p8)  ;;  %s8392_s0 = sld [smem:[#allocation27_spill]] (!%p6135_p8) }
 0x415   : > { %s8393_s26 = sld [smem:[#allocation28_spill]] (!%p6135_p8)  ;;  %s8394_s2 = sld [smem:[#allocation29_spill]] (!%p6135_p8) }
 0x416   : > { %s8395_s10 = sld [smem:[#allocation30_spill]] (!%p6135_p8)  ;;  %s8396_s11 = sld [smem:[#allocation31_spill]] (!%p6135_p8) }
 0x417   : > { %s8397_s21 = sld [smem:[#allocation32_spill]] (!%p6135_p8)  ;;  %s8398_s20 = sld [smem:[#allocation33_spill]] (!%p6135_p8) }
 0x418   : > { %s8399_s5 = sld [smem:[#allocation34_spill]] (!%p6135_p8)  ;;  %s8400_s13 = sld [smem:[#allocation35_spill]] (!%p6135_p8) }
 0x419   : > { %s8403_s15 = sld [smem:[#allocation38_spill]] (!%p6135_p8) }
 0x46d   : > { %v1931_v1 = vpop.f32.mrb[4].mxu0 }
 0x46e   : > { %v6488_v2 = vpop.f32.mrb[5].mxu0 }
 0x46f   : > { %v1934_v3 = vpop.f32.mrb[6].mxu0 }
 0x470   : > { %v1938_v4 = vpack.c.bf16 %v1934_v3, %v1931_v1  ;;  %v6489_v6 = vpop.f32.mrb[7].mxu0  ;;  %v7707_v1 = vadd.s32 8, %v7638_v45 }
 0x472   : > { %6511 = vmatmul.mubr.msk.bf16.vlgmr.msra.gmra.mrb[12].mxu0 %vm1803_vm4, %v1938_v4  ;;  %v2418_v4 = vadd.s32 1, %v7638_v45 }
 0x473   : > { %6525 = vmatprep.mubr.msk.bf16.mxu0 %vm7260_vm2, %v7259_v5  ;;  %6522 = vmatpush3.bf16.msra.mxu0 %v2328_v46  ;;  %v1641_v46 = vld [vmem:[%s7565_s1 + $0x18] sm:$0xff] }
 0x474   : > { %6523 = vmatprep.subr.bf16.mxu0 %v7259_v5  ;;  %vm2420_vm12 = vcmp.eq.s32.totalorder %v7691_v50, %v2418_v4  ;;  %v2568_v47 = vpack.c.bf16 %v1641_v46, %v1640_v43  ;;  %v6133_v46 = vld [vmem:[%s1572_s29] ss:$0 sm:$0xff]  ;;  %s8381_s29 = sld [smem:[#allocation17_spill]] (!%p6135_p8) }
 0x477   : > { %6524 = vmatpush3.bf16.msra.mxu0 %v2329_v49  ;;  %v1643_v49 = vld [vmem:[%s7565_s1 + $0x28] sm:$0xff] }
 0x478   : > { %v2569_v51 = vpack.c.bf16 %v1643_v49, %v1642_v48  ;;  %v6134_v48 = vld [vmem:[%s1575_s3] ss:$0 sm:$0xff]  ;;  %s8382_s3 = sld [smem:[#allocation18_spill]] (!%p6135_p8) }
 0x4e0   : > { %v2063_v7 = vpop.f32.mrb[8].mxu0 }
 0x4e1   : > { %v6500_v8 = vpop.f32.mrb[9].mxu0 }
 0x4e2   : > { %v2066_v11 = vpop.f32.mrb[10].mxu0 }
 0x4e3   : > { %v2070_v12 = vpack.c.bf16 %v2066_v11, %v2063_v7  ;;  %v6501_v13 = vpop.f32.mrb[11].mxu0  ;;  %v2232_v11 = vadd.s32 4294967295, %v7707_v1 }
 0x4e5   : > { %6505 = vmatmul.mubr.msk.bf16.vlgmr.msra.gmra.mrb[16].mxu1 %vm1803_vm4, %v2070_v12  ;;  %vm2234_vm15 = vcmp.eq.s32.totalorder %v7691_v50, %v2232_v11 }
 0x4e6   : > { %6518 = vmatprep.mubr.msk.f32.mxu1 %vm1861_vm5, %v7696_v52 }
 0x545   : > { %v2153_v14 = vpop.f32.mrb[12].mxu0 }
 0x546   : > { %v6512_v15 = vpop.f32.mrb[13].mxu0 }
 0x547   : > { %v2156_v16 = vpop.f32.mrb[14].mxu0 }
 0x548   : > { %v6513_v17 = vpop.f32.mrb[15].mxu0 }
 0x549   : > { %v7731_v17 = vsel %vm2420_vm12, 1.0, %v7259_v5 }
 0x5b8   : > { %v2109_v19 = vpop.f32.mrb[16].mxu1 }
 0x5b9   : > { %v2154_v20 = vadd.f32 %v2153_v14, %v2109_v19  ;;  %v6506_v21 = vpop.f32.mrb[17].mxu1  ;;  %v5170_v14 = vld [vmem:[%s8400_s13 + $0x60] sm:$0xff] (!%p6135_p8) }
 0x5ba   : > { %v2112_v22 = vpop.f32.mrb[18].mxu1  ;;  %v1626_v21 = vld [vmem:[%s7562_s25 + $0x8] sm:$0xff] }
 0x5bb   : > { %v2166_v23 = vadd.f32 %v6114_v18, %v2154_v20  ;;  %v2157_v24 = vadd.f32 %v2156_v16, %v2112_v22  ;;  %v6507_v25 = vpop.f32.mrb[19].mxu1  ;;  %v2419_v16 = vadd.s32 1, %v7707_v1  ;;  %v1625_v20 = vld [vmem:[%s7562_s25] sm:$0xff] }
 0x5bc   : > { %v2325_v22 = vpack.c.bf16 %v1626_v21, %v1625_v20  ;;  %v6131_v20 = vld [vmem:[%s1569_s16] ss:$0 sm:$0xff]  ;;  %s8383_s16 = sld [smem:[#allocation19_spill]] (!%p6135_p8) }
 0x5bd   : > { %v2167_v26 = vadd.f32 %v6114_v18, %v2157_v24  ;;  %v2168_v27 = vadd.f32 %v2166_v23, %v7590_v9  ;;  %v7741_v18 = vsel %vm2234_vm15, 1.0, %v7259_v5  ;;  %vm2421_vm0 = vcmp.eq.s32.totalorder %v7691_v50, %v2419_v16  ;;  %v1627_v23 = vld [vmem:[%s7562_s25 + $0x10] sm:$0xff]  ;;  %v1628_v24 = vld [vmem:[%s7562_s25 + $0x18] sm:$0xff] }
 0x5be   : > { %v7753_v19 = vsel %vm2421_vm0, 1.0, %v7259_v5  ;;  %v2326_v25 = vpack.c.bf16 %v1628_v24, %v1627_v23 }
 0x5bf   : > { %v2170_v28 = vsel %vm1658_vm3, %v2168_v27, 0.0  ;;  %v2169_v29 = vadd.f32 %v2167_v26, %v7592_v10 }
 0x5c0   : > { %2171 = vadd.xlane.f32.xlu0 %v2170_v28 }
 0x5c1   : > { %v2174_v30 = vsel %vm2173_vm9, %v2169_v29, 0.0 }
 0x5c2   : > { %s8384_s28 = smov (!%p6135_p8), %s8383_s16 }
 0x5c4   : > { %2175 = vadd.xlane.f32.xlu0 %v2174_v30  ;;  %v1634_v30 = vld [vmem:[%s7562_s25 + $0x48] sm:$0xff] }
 0x64d   : > { %v2172_v32 = vpop.xlane.xlu0 %2171 }
 0x64e   : > { %v2178_v33 = vmul.f32 0.03125, %v2172_v32 }
 0x650   : > { %v2180_v34 = vsub.f32 %v2168_v27, %v2178_v33 }
 0x651   : > { %v2176_v9 = vpop.xlane.xlu0 %2175 }
 0x652   : > { %v2179_v35 = vmul.f32 0.03125, %v2176_v9  ;;  %v2182_v36 = vmul.f32 %v2180_v34, %v2180_v34 }
 0x654   : > { %v2181_v10 = vsub.f32 %v2169_v29, %v2179_v35  ;;  %v2184_v37 = vsel %vm1658_vm3, %v2182_v36, 0.0  ;;  %v1633_v29 = vld [vmem:[%s7562_s25 + $0x40] sm:$0xff]  ;;  %v1635_v35 = vld [vmem:[%s7562_s25 + $0x50] sm:$0xff]  ;;  %v1636_v36 = vld [vmem:[%s7562_s25 + $0x58] sm:$0xff]  ;;  %s8402_s25 = sld [smem:[#allocation37_spill]] (!%p6135_p8) }
 0x655   : > { %2185 = vadd.xlane.f32.xlu1 %v2184_v37 }
 0x656   : > { %v2183_v38 = vmul.f32 %v2181_v10, %v2181_v10 }
 0x658   : > { %v2187_v39 = vsel %vm2173_vm9, %v2183_v38, 0.0  ;;  %v2509_v38 = vpack.c.bf16 %v1636_v36, %v1635_v35 }
 0x659   : > { %2188 = vadd.xlane.f32.xlu0 %v2187_v39 }
 0x666   : > { %2221 = vperm.xlu1 %7136, %v1602_v40   ;;  %v1638_v40 = vld [vmem:[%s7565_s1] sm:$0xff] }
 0x66f   : > { %2216 = vperm.xlu0 %7135, %v1601_v41   ;;  %v1639_v41 = vld [vmem:[%s7565_s1 + $0x8] sm:$0xff] }
 0x670   : > { %v2567_v42 = vpack.c.bf16 %v1639_v41, %v1638_v40 }
 0x6e2   : > { %v2186_v53 = vpop.xlane.xlu1 %2185 }
 0x6e3   : > { %v2190_v54 = vmul.f32 0.03125, %v2186_v53  ;;  %v1644_v53 = vld [vmem:[%s7565_s1 + $0x30] sm:$0xff] }
 0x6e5   : > { %v2192_v55 = vadd.f32 1e-05, %v2190_v54  ;;  %v1645_v54 = vld [vmem:[%s7565_s1 + $0x38] sm:$0xff]  ;;  %s8387_s1 = sld [smem:[#allocation22_spill]] (!%p6135_p8) }
 0x6e6   : > { %v2189_v56 = vpop.xlane.xlu0 %2188  ;;  %v7712_v7 = vpop.permute.xlu1 %2221 }
 0x6e7   : > { %7153 = vrsqrt.f32 %v2192_v55  ;;  %v2191_v57 = vmul.f32 0.03125, %v2189_v56  ;;  %v2570_v55 = vpack.c.bf16 %v1645_v54, %v1644_v53 }
 0x6e9   : > { %v2193_v44 = vadd.f32 1e-05, %v2191_v57 }
 0x6eb   : > { %7155 = vrsqrt.f32 %v2193_v44 }
 0x6ee   : > { %v7710_v6 = vpop.permute.xlu0 %2216 }
 0x6f1   : > { %v7154_v58 = vpop.eup %7153 }
 0x6f2   : > { %v2196_v60 = vmul.f32 %v7154_v58, %v2180_v34  ;;  %v2508_v34 = vpack.c.bf16 %v1634_v30, %v1633_v29 }
 0x6f4   : > { %v2204_v61 = vmul.f32 %v6115_v59, %v2196_v60 }
 0x6f5   : > { %v7156_v62 = vpop.eup %7155 }
 0x6f6   : > { %v2197_v0 = vmul.f32 %v7156_v62, %v2181_v10  ;;  %v2212_v2 = vadd.f32 %v6116_v63, %v2204_v61  ;;  %v6130_v61 = vld [vmem:[%s1561_s17] ss:$0 sm:$0xff]  ;;  %s8401_s17 = sld [smem:[#allocation36_spill]] (!%p6135_p8) }
 0x6f8   : > { %v2205_v3 = vmul.f32 %v6115_v59, %v2197_v0  ;;  %v7716_v12 = vmul.f32 %v7710_v6, %v2212_v2 }
 0x6fa   : > { %v2213_v8 = vadd.f32 %v6116_v63, %v2205_v3 }
 0x6fc   : > { %v7719_v13 = vmul.f32 %v7712_v7, %v2213_v8 }
 0x6fe   : > { %v6912_v15 = vpack.c.bf16 %v7719_v13, %v7716_v12 }
 0x700   : > { %6914 = vmatprep.subr.msk.bf16.mxu1 %vm7722_vm14, %v6912_v15  ;;  %6526 = vmatmul.mubr.msk.bf16.vlgmr.msra.gmra.mrb[16].mxu0 %vm1658_vm3, %v6912_v15 }
 0x701   : > { %6920 = vmatprep.subr.msk.bf16.mxu0 %vm7722_vm14, %v6912_v15  ;;  %6917 = vmatpush3.bf16.msk.msra.mxu1 %vm7722_vm14, %v6912_v15 }
 0x702   : > { %6923 = vmatpush3.bf16.msk.msra.mxu0 %vm7722_vm14, %v6912_v15  ;;  %6541 = vmatprep.mubr.msk.f32.mxu0 %vm1861_vm5, %v7731_v17 }
 0x703   : > { %6529 = vmatprep.subr.bf16.mxu1 %v7259_v5  ;;  %6552 = vmatprep.subr.bf16.mxu0 %v7259_v5 }
 0x704   : > { %6519 = vmatmul.mubr.msk.f32.vlgmr.msra.gmra.mrb[20].mxu1 %vm1861_vm5, %v7741_v18 }
 0x705   : > { %6533 = vmatprep.mubr.msk.bf16.mxu1 %vm7260_vm2, %v7259_v5  ;;  %6530 = vmatpush3.bf16.msra.mxu1 %v2325_v22 }
 0x706   : > { %6531 = vmatprep.subr.bf16.mxu1 %v7259_v5 }
 0x708   : > { %6542 = vmatmul.mubr.msk.f32.vlgmr.msra.gmra.mrb[20].mxu0 %vm1861_vm5, %v7753_v19 }
 0x709   : > { %6560 = vmatprep.mubr.msk.bf16.mxu0 %vm7260_vm2, %v7259_v5  ;;  %6532 = vmatpush3.bf16.msra.mxu1 %v2326_v25 }
 0x70a   : > { %6544 = vmatprep.subr.bf16.mxu1 %v7259_v5  ;;  %6553 = vmatpush3.bf16.msra.mxu0 %v2567_v42 }
 0x70b   : > { %6554 = vmatprep.subr.bf16.mxu0 %v7259_v5 }
 0x70e   : > { %6555 = vmatpush3.bf16.msra.mxu0 %v2568_v47 }
 0x70f   : > { %6556 = vmatprep.subr.bf16.mxu0 %v7259_v5 }
 0x712   : > { %6557 = vmatpush3.bf16.msra.mxu0 %v2569_v51 }
 0x713   : > { %6558 = vmatprep.subr.bf16.mxu0 %v7259_v5 }
 0x716   : > { %6559 = vmatpush3.bf16.msra.mxu0 %v2570_v55 }
 0x7d3   : > { %v2367_v26 = vpop.f32.mrb[16].mxu0 }
 0x7d4   : > { %v6527_v27 = vpop.f32.mrb[17].mxu0 }
 0x7d5   : > { %v2370_v28 = vpop.f32.mrb[18].mxu0 }
 0x7d6   : > { %v6528_v31 = vpop.f32.mrb[19].mxu0 }
 0x7d7   : > { %v6520_v32 = vpop.f32.mrb[20].mxu1 }
 0x7d8   : > { %v2315_v33 = vpop.f32.mrb[21].mxu1 }
 0x7d9   : > { %v2324_v9 = vpack.c.bf16 %v6520_v32, %v2315_v33 }
 0x7db   : > { %6534 = vmatmul.mubr.msk.bf16.vlgmr.msra.gmra.mrb[24].mxu1 %vm1658_vm3, %v2324_v9  ;;  %v6543_v10 = vpop.f32.mrb[20].mxu0 }
 0x7dc   : > { %6545 = vmatpush3.bf16.msra.mxu1 %v2508_v34  ;;  %v2498_v37 = vpop.f32.mrb[21].mxu0  ;;  %6548 = vmatprep.mubr.msk.bf16.mxu1 %vm7260_vm2, %v7259_v5  ;;  %vm7266_vm2 = vmmov (!%p6135_p8), 0  }
 0x7dd   : > { %6546 = vmatprep.subr.bf16.mxu1 %v7259_v5  ;;  %v2507_v39 = vpack.c.bf16 %v6543_v10, %v2498_v37 }
 0x7e0   : > { %6547 = vmatpush3.bf16.msra.mxu1 %v2509_v38 }
 0x7e3   : > { %6549 = vmatmul.mubr.msk.bf16.vlgmr.msra.gmra.mrb[28].mxu1 %vm1658_vm3, %v2507_v39 }
 0x8ae   : > { %v2411_v56 = vpop.f32.mrb[24].mxu1 }
 0x8af   : > { %v2412_v57 = vadd.f32 %v2411_v56, %v2367_v26  ;;  %v6535_v44 = vpop.f32.mrb[25].mxu1 }
 0x8b0   : > { %v2414_v58 = vpop.f32.mrb[26].mxu1 }
 0x8b1   : > { %v2415_v59 = vadd.f32 %v2414_v58, %v2370_v28  ;;  %v6536_v60 = vpop.f32.mrb[27].mxu1  ;;  %v2674_v58 = vld [vmem:[%s8381_s29] sm:$0xff] (!%p6135_p8) }
 0x8b2   : > { %v2676_v60 = vld [vmem:[%s8381_s29 + $0x10] sm:$0xff] (!%p6135_p8) }
 0x8b6   : > { %v2547_v62 = vpop.f32.mrb[28].mxu1 }
 0x8b7   : > { %v2554_v63 = vadd.f32 %v2547_v62, %v2412_v57  ;;  %v6550_v0 = vpop.f32.mrb[29].mxu1  ;;  %v2677_v62 = vld [vmem:[%s8381_s29 + $0x18] sm:$0xff] (!%p6135_p8) }
 0x8b8   : > { %v2550_v2 = vpop.f32.mrb[30].mxu1  ;;  %v2750_v0 = vadd.s32 (!%p6135_p8), 4294967294, %v7638_v45 }
 0x8b9   : > { %v2562_v3 = vadd.f32 %v6130_v61, %v2554_v63  ;;  %v2555_v5 = vadd.f32 %v2550_v2, %v2415_v59  ;;  %v6551_v4 = vpop.f32.mrb[31].mxu1  ;;  %v2675_v59 = vld [vmem:[%s8381_s29 + $0x8] sm:$0xff] (!%p6135_p8) }
 0x8ba   : > { %vm2752_vm4 = vcmp.eq.s32.totalorder (!%p6135_p8), %v7691_v50, %v2750_v0 }
 0x8bb   : > { %v2563_v8 = vadd.f32 %v6130_v61, %v2555_v5  ;;  %v2564_v11 = vmax.f32 %v2562_v3, 0.0  ;;  %v7265_v61 = vmov (!%p6135_p8), 0.0   ;;  %v6136_v3 = vld [vmem:[%s8382_s3] ss:$0 sm:$0xff] (!%p6135_p8) }
 0x8bc   : > { %6564 = vmatprep.subr.bf16.mxu0 (!%p6135_p8), %v7265_v61  ;;  %v7825_v2 = vsel (!%p6135_p8), %vm2752_vm4, 1.0, %v7265_v61 }
 0x8bd   : > { %v2565_v15 = vmax.f32 %v2563_v8, 0.0  ;;  %6576 = vmatprep.mubr.msk.f32.mxu1 (!%p6135_p8), %vm1861_vm5, %v7825_v2 }
 0x8bf   : > { %v2566_v16 = vpack.c.bf16 %v2565_v15, %v2564_v11  ;;  %v2751_v11 = vadd.s32 (!%p6135_p8), 4294967294, %v7707_v1 }
 0x8c1   : > { %6561 = vmatmul.mubr.msk.bf16.vlgmr.msra.gmra.mrb[24].mxu0 %vm2577_vm1, %v2566_v16 }
 0x8c2   : > { %6568 = vmatprep.mubr.msk.bf16.mxu0 (!%p6135_p8), %vm7266_vm2, %v7265_v61 }
 0x994   : > { %v2615_v21 = vpop.f32.mrb[24].mxu0 }
 0x995   : > { %v2616_v22 = vadd.f32 %v6131_v20, %v2615_v21  ;;  %v6562_v23 = vpop.f32.mrb[25].mxu0 }
 0x996   : > { %v2618_v24 = vpop.f32.mrb[26].mxu0  ;;  %v2736_v23 = vld [vmem:[%s8383_s16] sm:$0xff] (!%p6135_p8) }
 0x997   : > { %v2619_v25 = vadd.f32 %v6131_v20, %v2618_v24  ;;  %v6563_v26 = vpop.f32.mrb[27].mxu0  ;;  %v2622_v27 = vadd.f32 %v2616_v22, %v7716_v12  ;;  %v2737_v24 = vld [vmem:[%s8384_s28 + $0x8] sm:$0xff] (!%p6135_p8) }
 0x998   : > { %v2843_v26 = vpack.c.bf16 (!%p6135_p8), %v2737_v24, %v2736_v23 }
 0x999   : > { %v2624_v28 = vsel %vm1658_vm3, %v2622_v27, 0.0  ;;  %v2623_v29 = vadd.f32 %v2619_v25, %v7719_v13  ;;  %v2738_v25 = vld [vmem:[%s8384_s28 + $0x10] sm:$0xff] (!%p6135_p8) }
 0x99a   : > { %2625 = vadd.xlane.f32.xlu0 %v2624_v28 }
 0x99b   : > { %v2627_v30 = vsel %vm2173_vm9, %v2623_v29, 0.0 }
 0x99c   : > { %2628 = vadd.xlane.f32.xlu1 %v2627_v30  ;;  %v2740_v30 = vld [vmem:[%s8384_s28 + $0x20] sm:$0xff] (!%p6135_p8) }
 0xa27   : > { %v2626_v31 = vpop.xlane.xlu0 %2625 }
 0xa28   : > { %v2630_v32 = vmul.f32 0.03125, %v2626_v31 }
 0xa29   : > { %v2629_v33 = vpop.xlane.xlu1 %2628 }
 0xa2a   : > { %v2632_v34 = vsub.f32 %v2622_v27, %v2630_v32  ;;  %v2631_v9 = vmul.f32 0.03125, %v2629_v33  ;;  %v2844_v27 = vpack.c.bf16 (!%p6135_p8), %v2738_v25, %v2738_v25  ;;  %v2922_v32 = vpack.c.bf16 (!%p6135_p8), %v2740_v30, %v2740_v30 }
 0xa2c   : > { %v2633_v35 = vsub.f32 %v2623_v29, %v2631_v9  ;;  %v2634_v36 = vmul.f32 %v2632_v34, %v2632_v34  ;;  %v2982_v28 = vsel (!%p6135_p8), %vm2933_vm10, %v2844_v27, 0  ;;  %v2739_v29 = vld [vmem:[%s8384_s28 + $0x18] sm:$0xff] (!%p6135_p8) }
 0xa2d   : > { %v2921_v31 = vpack.c.bf16 (!%p6135_p8), %v2739_v29, %v2738_v25 }
 0xa2e   : > { %v2636_v10 = vsel %vm1658_vm3, %v2634_v36, 0.0  ;;  %v2635_v12 = vmul.f32 %v2633_v35, %v2633_v35 }
 0xa2f   : > { %2637 = vadd.xlane.f32.xlu0 %v2636_v10  ;;  %v2926_v33 = vrot.slane (!%p6135_p8), %v2921_v31, 2 }
 0xa30   : > { %v2639_v13 = vsel %vm2173_vm9, %v2635_v12, 0.0 }
 0xa33   : > { %2640 = vadd.xlane.f32.xlu0 %v2639_v13  ;;  %v2741_v13 = vld [vmem:[%s8384_s28 + $0x28] sm:$0xff] (!%p6135_p8) }
 0xabc   : > { %v2638_v37 = vpop.xlane.xlu0 %2637 }
 0xabd   : > { %v2642_v38 = vmul.f32 0.03125, %v2638_v37  ;;  %v2742_v37 = vld [vmem:[%s8384_s28 + $0x30] sm:$0xff] (!%p6135_p8) }
 0xabf   : > { %v2644_v39 = vadd.f32 1e-05, %v2642_v38  ;;  %v2743_v38 = vld [vmem:[%s8384_s28 + $0x38] sm:$0xff] (!%p6135_p8) }
 0xac0   : > { %v2641_v40 = vpop.xlane.xlu0 %2640 }
 0xac1   : > { %7157 = vrsqrt.f32 %v2644_v39  ;;  %v2643_v41 = vmul.f32 0.03125, %v2641_v40  ;;  %v3210_v40 = vadd.s32 (!%p6135_p8), 2, %v7638_v45 }
 0xac3   : > { %v2645_v42 = vadd.f32 1e-05, %v2643_v41  ;;  %vm3212_vm11 = vcmp.eq.s32.totalorder (!%p6135_p8), %v7691_v50, %v3210_v40 }
 0xac5   : > { %7159 = vrsqrt.f32 %v2645_v42  ;;  %v3026_v42 = vpack.c.bf16 (!%p6135_p8), %v2742_v37, %v2741_v13 }
 0xacb   : > { %v7158_v43 = vpop.eup %7157 }
 0xacc   : > { %v2648_v47 = vmul.f32 %v7158_v43, %v2632_v34  ;;  %v2927_v34 = vrot.slane (!%p6135_p8), %v2922_v32, 2 }
 0xace   : > { %v2656_v49 = vmul.f32 %v6133_v46, %v2648_v47  ;;  %v2928_v9 = vsel (!%p6135_p8), %vm1890_vm7, %v2926_v33, %v2927_v34  ;;  %v3211_v47 = vadd.s32 (!%p6135_p8), 2, %v7707_v1 }
 0xacf   : > { %v7160_v51 = vpop.eup %7159 }
 0xad0   : > { %v2664_v53 = vadd.f32 %v6134_v48, %v2656_v49  ;;  %v2649_v54 = vmul.f32 %v7160_v51, %v2633_v35  ;;  %v2935_v35 = vsel (!%p6135_p8), %vm2933_vm10, %v2927_v34, 0  ;;  %vm3213_vm12 = vcmp.eq.s32.totalorder (!%p6135_p8), %v7691_v50, %v3211_v47  ;;  %v2745_v49 = vld [vmem:[%s8384_s28 + $0x48] sm:$0xff] (!%p6135_p8) }
 0xad1   : > { %v7914_v1 = vsel (!%p6135_p8), %vm3213_vm12, 1.0, %v7265_v61 }
 0xad2   : > { %v2666_v55 = vmul.f32 %v2664_v53, %v7710_v6  ;;  %v2657_v56 = vmul.f32 %v6133_v46, %v2649_v54  ;;  %2673 = sbr.rel (%p6135_p8) target bundleno = 6400 (0x1900), region = 192  ;;  %v2679_v6 = vpack.c.bf16 (!%p6135_p8), %v2675_v59, %v2674_v58  ;;  %v3027_v46 = vpack.c.bf16 (!%p6135_p8), %v2743_v38, %v2743_v38 }
 0xad3   : > { %v3154_v53 = vpack.c.bf16 (!%p6135_p8), %v2745_v49, %v2745_v49 }
 0xad4   : > { %2668 = vst.msk [vmem:[#allocation2] sm:$0xff] %vm1658_vm3, %v2666_v55  ;;  %v2665_v57 = vadd.f32 %v6134_v48, %v2657_v56  ;;  %6565 = vmatpush3.bf16.msra.mxu0 (!%p6135_p8), %v2679_v6  ;;  %v3032_v45 = vsel (!%p6135_p8), %vm2933_vm10, %v3027_v46, 0  ;;  %v7906_v48 = vsel (!%p6135_p8), %vm3212_vm11, 1.0, %v7265_v61 }
 0xad5   : > { %6566 = vmatprep.subr.bf16.mxu0 (!%p6135_p8), %v7265_v61 }
 0xad6   : > { %v2667_v44 = vmul.f32 %v2665_v57, %v7712_v7  ;;  %v2680_v7 = vpack.c.bf16 (!%p6135_p8), %v2677_v62, %v2676_v60  ;;  %v2746_v57 = vld [vmem:[%s8384_s28 + $0x50] sm:$0xff] (!%p6135_p8)  ;;  %v2748_v60 = vld [vmem:[%s8384_s28 + $0x60] sm:$0xf] (!%p6135_p8) }
 0xad7   : > { %v3301_v6 = vpack.c.bf16 (!%p6135_p8), %v2748_v60, %v2748_v60  ;;  %v3381_v60 = vld [vmem:[%s8388_s8 + $0x10] sm:$0xff] (!%p6135_p8) }
 0xad8   : > { %2669 = vst.msk [vmem:[#allocation2 + $0x8] sm:$0x1f] %vm2173_vm9, %v2667_v44  ;;  %v2678_v63 = vpack.c.bf16 (!%p6135_p8), %v2667_v44, %v2666_v55  ;;  %6567 = vmatpush3.bf16.msra.mxu0 (!%p6135_p8), %v2680_v7  ;;  %vm2753_vm9 = vcmp.eq.s32.totalorder (!%p6135_p8), %v7691_v50, %v2751_v11  ;;  %v2744_v50 = vld [vmem:[%s8384_s28 + $0x40] sm:$0xff] (!%p6135_p8)  ;;  %v3158_v55 = vrot.slane (!%p6135_p8), %v3154_v53, 2  ;;  %v2747_v44 = vld [vmem:[%s8384_s28 + $0x58] sm:$0xff] (!%p6135_p8) }
 0xad9   : > { %6586 = vmatprep.subr.bf16.mxu0 %v7265_v61  ;;  %v7853_v22 = vsel %vm2753_vm9, 1.0, %v7265_v61  ;;  %v3153_v51 = vpack.c.bf16 %v2744_v50, %v2743_v38  ;;  %v3300_v58 = vpack.c.bf16 %v2747_v44, %v2746_v57  ;;  %v3306_v62 = vsel %vm2933_vm10, %v3301_v6, 0  ;;  %v3379_v44 = vld [vmem:[%s8388_s8] sm:$0xff]  ;;  %v3382_v6 = vld [vmem:[%s8388_s8 + $0x18] sm:$0xff] }
 0xada   : > { %v3165_v59 = vsel %vm2933_vm10, %v3158_v55, 0 }
 0xadb   : > { %6569 = vmatmul.mubr.msk.bf16.vlgmr.msra.gmra.mrb[0].mxu0 %vm1658_vm3, %v2678_v63  ;;  %v3157_v54 = vrot.slane %v3153_v51, 2 }
 0xadc   : > { %6590 = vmatprep.mubr.msk.bf16.mxu0 %vm7266_vm2, %v7265_v61  ;;  %6587 = vmatpush3.bf16.msra.mxu0 %v2928_v9 }
 0xadd   : > { %6588 = vmatprep.subr.bf16.mxu0 %v7265_v61  ;;  %v3159_v56 = vsel %vm1890_vm7, %v3157_v54, %v3158_v55 }
 0xae0   : > { %6589 = vmatpush3.bf16.msra.mxu0 %v2935_v35 }
 0xae1   : > { %6602 = vmatprep.subr.bf16.mxu0 %v7265_v61 }
 0xbae   : > { %v2725_v5 = vpop.f32.mrb[0].mxu0 }
 0xbaf   : > { %v7830_v4 = vadd.f32 %v6136_v3, %v2725_v5  ;;  %v6570_v8 = vpop.f32.mrb[1].mxu0 }
 0xbb0   : > { %v2728_v15 = vpop.f32.mrb[2].mxu0 }
 0xbb1   : > { %2733 = vst.msk [vmem:[%s7574_s9] sm:$0xff] %vm2732_vm6, %v7830_v4  ;;  %v7836_v16 = vadd.f32 %v6136_v3, %v2728_v15  ;;  %v6571_v20 = vpop.f32.mrb[3].mxu0 }
 0xbb3   : > { %2735 = vst.msk [vmem:[%s7574_s9 + $0x8] sm:$0x1f] %vm2734_vm8, %v7836_v16  ;;  %v7843_v21 = vpack.c.bf16 %v7836_v16, %v7830_v4  ;;  %s8385_s9 = sld [smem:[#allocation20_spill]] }
 0xbb5   : > { %6926 = vmatprep.subr.msk.bf16.mxu1 %vm7722_vm14, %v7843_v21 }
 0xbb6   : > { %6929 = vmatpush3.bf16.msk.msra.mxu1 %vm7722_vm14, %v7843_v21 }
 0xbb7   : > { %6932 = vmatprep.subr.msk.bf16.mxu1 %vm7722_vm14, %v7843_v21 }
 0xbb9   : > { %6577 = vmatmul.mubr.msk.f32.vlgmr.msra.gmra.mrb[0].mxu1 %vm1861_vm5, %v7853_v22  ;;  %v6159_v37 = vld [vmem:[%s8385_s9] ss:$0 sm:$0xff] }
 0xbba   : > { %6935 = vmatpush3.bf16.msk.msra.mxu1 %vm7722_vm14, %v7843_v21  ;;  %6583 = vmatprep.mubr.msk.f32.mxu1 %vm1861_vm5, %v7696_v52 }
 0xbbb   : > { %6594 = vmatprep.subr.bf16.mxu1 %v7265_v61 }
 0xbbd   : > { %6584 = vmatmul.mubr.msk.f32.vlgmr.msra.gmra.mrb[2].mxu1 %vm1861_vm5, %v7741_v18 }
 0xbbe   : > { %6595 = vmatpush3.bf16.msra.mxu1 %v2843_v26  ;;  %6598 = vmatprep.mubr.msk.bf16.mxu1 %vm7266_vm2, %v7265_v61 }
 0xbbf   : > { %6596 = vmatprep.subr.bf16.mxu1 %v7265_v61 }
 0xbc2   : > { %6597 = vmatpush3.bf16.msra.mxu1 %v2982_v28 }
 0xbc3   : > { %6938 = vmatprep.subr.msk.bf16.mxu1 %vm7722_vm14, %v7843_v21 }
 0xc8c   : > { %v6578_v36 = vpop.f32.mrb[0].mxu1 }
 0xc8d   : > { %v2833_v10 = vpop.f32.mrb[1].mxu1 }
 0xc8e   : > { %v2842_v12 = vpack.c.bf16 %v6578_v36, %v2833_v10 }
 0xc90   : > { %v6585_v39 = vpop.f32.mrb[2].mxu1  ;;  %6599 = vmatmul.mubr.msk.bf16.vlgmr.msra.gmra.mrb[4].mxu1 %vm2732_vm6, %v2842_v12 }
 0xc91   : > { %6941 = vmatpush3.bf16.msk.msra.mxu1 %vm7722_vm14, %v7843_v21  ;;  %v2911_v41 = vpop.f32.mrb[3].mxu1  ;;  %6614 = vmatprep.mubr.msk.f32.mxu1 %vm1861_vm5, %v7731_v17 }
 0xc92   : > { %v2920_v43 = vpack.c.bf16 %v6585_v39, %v2911_v41  ;;  %6944 = vmatprep.subr.msk.bf16.mxu1 %vm7722_vm14, %v7843_v21  ;;  %v6160_v41 = vld [vmem:[%s8386_s18] ss:$0 sm:$0xff] }
 0xc94   : > { %6591 = vmatmul.mubr.msk.bf16.vlgmr.msra.gmra.mrb[4].mxu0 %vm2732_vm6, %v2920_v43 }
 0xc95   : > { %6603 = vmatpush3.bf16.msra.mxu0 %v3026_v42  ;;  %6606 = vmatprep.mubr.msk.bf16.mxu0 %vm7266_vm2, %v7265_v61 }
 0xc96   : > { %6604 = vmatprep.subr.bf16.mxu0 %v7265_v61 }
 0xc98   : > { %6615 = vmatmul.mubr.msk.f32.vlgmr.msra.gmra.mrb[8].mxu1 %vm1861_vm5, %v7753_v19 }
 0xc99   : > { %6947 = vmatpush3.bf16.msk.msra.mxu1 %vm7722_vm14, %v7843_v21  ;;  %6605 = vmatpush3.bf16.msra.mxu0 %v3032_v45  ;;  %v6161_v45 = vld [vmem:[%s8387_s1] ss:$0 sm:$0xff] }
 0xc9a   : > { %6629 = vmatprep.mubr.msk.f32.mxu1 %vm1861_vm5, %v7906_v48  ;;  %6617 = vmatprep.subr.bf16.mxu0 %v7265_v61 }
 0xc9b   : > { %6632 = vmatprep.subr.bf16.mxu1 %v7265_v61 }
 0xc9c   : > { %6607 = vmatmul.mubr.msk.bf16.vlgmr.msra.gmra.mrb[8].mxu0 %vm2732_vm6, %v7843_v21  ;;  %6630 = vmatmul.mubr.msk.f32.vlgmr.msra.gmra.mrb[10].mxu1 %vm1861_vm5, %v7914_v1 }
 0xc9d   : > { %6621 = vmatprep.mubr.msk.bf16.mxu0 %vm7266_vm2, %v7265_v61  ;;  %6636 = vmatprep.mubr.msk.bf16.mxu1 %vm7266_vm2, %v7265_v61 }
 0xc9e   : > { %6618 = vmatpush3.bf16.msra.mxu0 %v3159_v56  ;;  %6633 = vmatpush3.bf16.msra.mxu1 %v3300_v58  ;;  %v3380_v58 = vld [vmem:[%s8388_s8 + $0x8] sm:$0xff] }
 0xc9f   : > { %6619 = vmatprep.subr.bf16.mxu0 %v7265_v61  ;;  %6634 = vmatprep.subr.bf16.mxu1 %v7265_v61 }
 0xca2   : > { %6620 = vmatpush3.bf16.msra.mxu0 %v3165_v59  ;;  %6635 = vmatpush3.bf16.msra.mxu1 %v3306_v62  ;;  %v3479_v59 = vpack.c.bf16 %v3380_v58, %v3379_v44  ;;  %v3480_v62 = vpack.c.bf16 %v3382_v6, %v3381_v60 }
 0xca3   : > { %6654 = vmatprep.subr.bf16.mxu1 %v7265_v61 }
 0xd63   : > { %v3018_v7 = vpop.f32.mrb[4].mxu1 }
 0xd64   : > { %v6600_v63 = vpop.f32.mrb[5].mxu1 }
 0xd65   : > { %v3021_v0 = vpop.f32.mrb[6].mxu1  ;;  %v3384_v63 = vld [vmem:[%s8388_s8 + $0x28] sm:$0xff] }
 0xd66   : > { %v6601_v3 = vpop.f32.mrb[7].mxu1 }
 0xd67   : > { %v2971_v5 = vpop.f32.mrb[4].mxu0  ;;  %v3385_v3 = vld [vmem:[%s8388_s8 + $0x30] sm:$0xff] }
 0xd68   : > { %v3019_v8 = vadd.f32 %v3018_v7, %v2971_v5  ;;  %v6592_v11 = vpop.f32.mrb[5].mxu0  ;;  %v3383_v7 = vld [vmem:[%s8388_s8 + $0x20] sm:$0xff]  ;;  %v3386_v5 = vld [vmem:[%s8388_s8 + $0x38] sm:$0xff] }
 0xd69   : > { %v2974_v15 = vpop.f32.mrb[6].mxu0 }
 0xd6a   : > { %v3022_v20 = vadd.f32 %v3021_v0, %v2974_v15  ;;  %v6593_v21 = vpop.f32.mrb[7].mxu0  ;;  %v3557_v0 = vpack.c.bf16 %v3384_v63, %v3383_v7 }
 0xd6b   : > { %v6616_v23 = vpop.f32.mrb[8].mxu1  ;;  %v3387_v21 = vld [vmem:[%s8388_s8 + $0x40] sm:$0xff] }
 0xd6c   : > { %v3143_v24 = vpop.f32.mrb[9].mxu1 }
 0xd6d   : > { %v3152_v25 = vpack.c.bf16 %v6616_v23, %v3143_v24  ;;  %v3388_v23 = vld [vmem:[%s8388_s8 + $0x48] sm:$0xff] }
 0xd6f   : > { %v3068_v26 = vpop.f32.mrb[8].mxu0  ;;  %6622 = vmatmul.mubr.msk.bf16.vlgmr.msra.gmra.mrb[12].mxu0 %vm2732_vm6, %v3152_v25  ;;  %v6631_v27 = vpop.f32.mrb[10].mxu1 }
 0xd70   : > { %v3075_v28 = vadd.f32 %v3068_v26, %v3019_v8  ;;  %v6608_v29 = vpop.f32.mrb[9].mxu0  ;;  %v3290_v30 = vpop.f32.mrb[11].mxu1  ;;  %6644 = vmatprep.mubr.msk.f32.mxu0 %vm1861_vm5, %v7825_v2  ;;  %v3558_v8 = vpack.c.bf16 %v3386_v5, %v3385_v3  ;;  %v3648_v26 = vpack.c.bf16 %v3388_v23, %v3387_v21  ;;  %v6180_v23 = vld [vmem:[%s8390_s22] ss:$0 sm:$0xff] }
 0xd71   : > { %v3299_v31 = vpack.c.bf16 %v6631_v27, %v3290_v30  ;;  %v3071_v32 = vpop.f32.mrb[10].mxu0  ;;  %v3390_v29 = vld [vmem:[%s8388_s8 + $0x58] sm:$0xff] }
 0xd72   : > { %v3076_v33 = vadd.f32 %v3071_v32, %v3022_v20  ;;  %v6609_v34 = vpop.f32.mrb[11].mxu0  ;;  %v3392_v32 = vld [vmem:[%s8388_s8 + $0x68] sm:$0xff] }
 0xd73   : > { %6637 = vmatmul.mubr.msk.bf16.vlgmr.msra.gmra.mrb[12].mxu1 %vm2732_vm6, %v3299_v31  ;;  %v3391_v31 = vld [vmem:[%s8388_s8 + $0x60] sm:$0xff]  ;;  %v3393_v34 = vld [vmem:[%s8388_s8 + $0x70] sm:$0xff] }
 0xd74   : > { %6658 = vmatprep.mubr.msk.bf16.mxu1 %vm7266_vm2, %v7265_v61  ;;  %6655 = vmatpush3.bf16.msra.mxu1 %v3557_v0 }
 0xd75   : > { %6656 = vmatprep.subr.bf16.mxu1 %v7265_v61 }
 0xd78   : > { %6657 = vmatpush3.bf16.msra.mxu1 %v3558_v8 }
 0xd79   : > { %6670 = vmatprep.subr.bf16.mxu1 %v7265_v61 }
 0xe42   : > { %v3201_v9 = vpop.f32.mrb[12].mxu0 }
 0xe43   : > { %v3208_v35 = vadd.f32 %v3201_v9, %v3075_v28  ;;  %v6623_v36 = vpop.f32.mrb[13].mxu0  ;;  %v3389_v28 = vld [vmem:[%s8388_s8 + $0x50] sm:$0xff]  ;;  %v3394_v9 = vld [vmem:[%s8388_s8 + $0x78] sm:$0xff] }
 0xe44   : > { %v3204_v10 = vpop.f32.mrb[14].mxu0  ;;  %v3649_v30 = vpack.c.bf16 %v3390_v29, %v3389_v28  ;;  %v6181_v28 = vld [vmem:[%s8391_s23] ss:$0 sm:$0xff] }
 0xe45   : > { %v3209_v12 = vadd.f32 %v3204_v10, %v3076_v33  ;;  %v6624_v13 = vpop.f32.mrb[15].mxu0  ;;  %v3772_v33 = vpack.c.bf16 %v3392_v32, %v3391_v31 }
 0xe46   : > { %v3342_v38 = vpop.f32.mrb[12].mxu1 }
 0xe47   : > { %v3349_v39 = vadd.f32 %v3342_v38, %v3208_v35  ;;  %v6638_v40 = vpop.f32.mrb[13].mxu1  ;;  %v3773_v35 = vpack.c.bf16 %v3394_v9, %v3393_v34 }
 0xe48   : > { %v3345_v42 = vpop.f32.mrb[14].mxu1 }
 0xe49   : > { %v3357_v43 = vadd.f32 %v6159_v37, %v3349_v39  ;;  %v3350_v46 = vadd.f32 %v3345_v42, %v3209_v12  ;;  %v6639_v47 = vpop.f32.mrb[15].mxu1  ;;  %v3396_v42 = vld [vmem:[%s8388_s8 + $0x88] sm:$0xff] }
 0xe4b   : > { %v3366_v50 = vmul.f32 %v6160_v41, %v3357_v43  ;;  %v3358_v49 = vadd.f32 %v6159_v37, %v3350_v46 }
 0xe4d   : > { %v3375_v51 = vadd.f32 %v6161_v45, %v3366_v50  ;;  %v3367_v53 = vmul.f32 %v6160_v41, %v3358_v49  ;;  %v3395_v41 = vld [vmem:[%s8388_s8 + $0x80] sm:$0xff] }
 0xe4e   : > { %v3896_v50 = vpack.c.bf16 %v3396_v42, %v3395_v41  ;;  %v3978_v42 = vld [vmem:[%s8392_s0 + $0x30] sm:$0xff] }
 0xe4f   : > { %v3376_v54 = vadd.f32 %v6161_v45, %v3367_v53  ;;  %7161 = vtanh.f32 %v3375_v51  ;;  %v3397_v51 = vld [vmem:[%s8388_s8 + $0x90] sm:$0xff]  ;;  %v3398_v53 = vld [vmem:[%s8388_s8 + $0x98] sm:$0xff] }
 0xe50   : > { %v3897_v58 = vpack.c.bf16 %v3398_v53, %v3397_v51  ;;  %v3981_v51 = vld [vmem:[%s8392_s0 + $0x48] sm:$0xff] }
 0xe51   : > { %7163 = vtanh.f32 %v3376_v54 }
 0xe59   : > { %v7162_v55 = vpop.eup %7161 }
 0xe5b   : > { %v7164_v56 = vpop.eup %7163 }
 0xe5c   : > { %v6948_v57 = vpack.c.bf16 %v7164_v56, %v7162_v55 }
 0xe5e   : > { %6950 = vmatprep.subr.msk.bf16.mxu0 %vm7722_vm14, %v6948_v57 }
 0xe5f   : > { %6953 = vmatpush3.bf16.msk.msra.mxu0 %vm7722_vm14, %v6948_v57 }
 0xe60   : > { %6956 = vmatprep.subr.msk.bf16.mxu0 %vm7722_vm14, %v6948_v57 }
 0xe62   : > { %6645 = vmatmul.mubr.msk.f32.vlgmr.msra.gmra.mrb[16].mxu0 %vm1861_vm5, %v7853_v22 }
 0xe63   : > { %6959 = vmatpush3.bf16.msk.msra.mxu0 %vm7722_vm14, %v6948_v57  ;;  %6651 = vmatprep.mubr.msk.f32.mxu0 %vm1861_vm5, %v7696_v52 }
 0xe64   : > { %6662 = vmatprep.subr.bf16.mxu0 %v7265_v61 }
 0xe66   : > { %6652 = vmatmul.mubr.msk.f32.vlgmr.msra.gmra.mrb[18].mxu0 %vm1861_vm5, %v7741_v18 }
 0xe67   : > { %6663 = vmatpush3.bf16.msra.mxu0 %v3479_v59  ;;  %6666 = vmatprep.mubr.msk.bf16.mxu0 %vm7266_vm2, %v7265_v61 }
 0xe68   : > { %6664 = vmatprep.subr.bf16.mxu0 %v7265_v61 }
 0xe6b   : > { %6665 = vmatpush3.bf16.msra.mxu0 %v3480_v62 }
 0xe6c   : > { %6962 = vmatprep.subr.msk.bf16.mxu0 %vm7722_vm14, %v6948_v57 }
 0xf35   : > { %v6646_v11 = vpop.f32.mrb[16].mxu0 }
 0xf36   : > { %v3469_v15 = vpop.f32.mrb[17].mxu0 }
 0xf37   : > { %v3478_v20 = vpack.c.bf16 %v6646_v11, %v3469_v15  ;;  %v6179_v11 = vld [vmem:[%s8389_s27] ss:$0 sm:$0xff] }
 0xf39   : > { %v6653_v24 = vpop.f32.mrb[18].mxu0  ;;  %6667 = vmatmul.mubr.msk.bf16.vlgmr.msra.gmra.mrb[20].mxu0 %vm1658_vm3, %v3478_v20 }
 0xf3a   : > { %6965 = vmatpush3.bf16.msk.msra.mxu0 %vm7722_vm14, %v6948_v57  ;;  %v3547_v25 = vpop.f32.mrb[19].mxu0  ;;  %6682 = vmatprep.mubr.msk.f32.mxu0 %vm1861_vm5, %v7731_v17 }
 0xf3b   : > { %v3556_v27 = vpack.c.bf16 %v6653_v24, %v3547_v25  ;;  %6968 = vmatprep.subr.msk.bf16.mxu0 %vm7722_vm14, %v6948_v57 }
 0xf3d   : > { %6659 = vmatmul.mubr.msk.bf16.vlgmr.msra.gmra.mrb[16].mxu1 %vm1658_vm3, %v3556_v27 }
 0xf3e   : > { %6671 = vmatpush3.bf16.msra.mxu1 %v3648_v26  ;;  %6674 = vmatprep.mubr.msk.bf16.mxu1 %vm7266_vm2, %v7265_v61 }
 0xf3f   : > { %6672 = vmatprep.subr.bf16.mxu1 %v7265_v61 }
 0xf41   : > { %6683 = vmatmul.mubr.msk.f32.vlgmr.msra.gmra.mrb[24].mxu0 %vm1861_vm5, %v7753_v19 }
 0xf42   : > { %6971 = vmatpush3.bf16.msk.msra.mxu0 %vm7722_vm14, %v6948_v57  ;;  %6673 = vmatpush3.bf16.msra.mxu1 %v3649_v30 }
 0xf43   : > { %6697 = vmatprep.mubr.msk.f32.mxu0 %vm1861_vm5, %v7906_v48  ;;  %6685 = vmatprep.subr.bf16.mxu1 %v7265_v61 }
 0xf45   : > { %6675 = vmatmul.mubr.msk.bf16.vlgmr.msra.gmra.mrb[20].mxu1 %vm1658_vm3, %v6948_v57  ;;  %6698 = vmatmul.mubr.msk.f32.vlgmr.msra.gmra.mrb[26].mxu0 %vm1861_vm5, %v7914_v1 }
 0xf46   : > { %6689 = vmatprep.mubr.msk.bf16.mxu1 %vm7266_vm2, %v7265_v61  ;;  %6712 = vmatprep.mubr.msk.f32.mxu0 %vm1861_vm5, %v7825_v2 }
 0xf47   : > { %6686 = vmatpush3.bf16.msra.mxu1 %v3772_v33 }
 0xf48   : > { %6687 = vmatprep.subr.bf16.mxu1 %v7265_v61 }
 0xf4b   : > { %6688 = vmatpush3.bf16.msra.mxu1 %v3773_v35 }
 0xf4c   : > { %6700 = vmatprep.subr.bf16.mxu1 %v7265_v61 }
0x100c   : > { %v3640_v36 = vpop.f32.mrb[20].mxu0 }
0x100d   : > { %v6668_v10 = vpop.f32.mrb[21].mxu0 }
0x100e   : > { %v3643_v12 = vpop.f32.mrb[22].mxu0  ;;  %v3973_v10 = vld [vmem:[%s8392_s0 + $0x8] sm:$0xff] }
0x100f   : > { %v6669_v13 = vpop.f32.mrb[23].mxu0 }
0x1010   : > { %v3596_v37 = vpop.f32.mrb[16].mxu1  ;;  %v3974_v13 = vld [vmem:[%s8392_s0 + $0x10] sm:$0xff] }
0x1011   : > { %v3641_v38 = vadd.f32 %v3640_v36, %v3596_v37  ;;  %v6660_v39 = vpop.f32.mrb[17].mxu1  ;;  %v3972_v36 = vld [vmem:[%s8392_s0] sm:$0xff]  ;;  %v3975_v37 = vld [vmem:[%s8392_s0 + $0x18] sm:$0xff] }
0x1012   : > { %v3599_v40 = vpop.f32.mrb[18].mxu1  ;;  %v3976_v39 = vld [vmem:[%s8392_s0 + $0x20] sm:$0xff] }
0x1013   : > { %v3644_v43 = vadd.f32 %v3643_v12, %v3599_v40  ;;  %v6661_v46 = vpop.f32.mrb[19].mxu1  ;;  %v4072_v12 = vpack.c.bf16 %v3973_v10, %v3972_v36  ;;  %v3977_v40 = vld [vmem:[%s8392_s0 + $0x28] sm:$0xff] }
0x1014   : > { %v6684_v47 = vpop.f32.mrb[24].mxu0  ;;  %v4150_v41 = vpack.c.bf16 %v3977_v40, %v3976_v39 }
0x1015   : > { %v3762_v45 = vpop.f32.mrb[25].mxu0 }
0x1016   : > { %v3771_v49 = vpack.c.bf16 %v6684_v47, %v3762_v45 }
0x1018   : > { %v3687_v54 = vpop.f32.mrb[20].mxu1  ;;  %6690 = vmatmul.mubr.msk.bf16.vlgmr.msra.gmra.mrb[24].mxu1 %vm1658_vm3, %v3771_v49  ;;  %v6699_v55 = vpop.f32.mrb[26].mxu0  ;;  %v3980_v49 = vld [vmem:[%s8392_s0 + $0x40] sm:$0xff] }
0x1019   : > { %v3694_v56 = vadd.f32 %v3687_v54, %v3641_v38  ;;  %v6676_v57 = vpop.f32.mrb[21].mxu1  ;;  %6701 = vmatpush3.bf16.msra.mxu1 %v3896_v50  ;;  %v3886_v44 = vpop.f32.mrb[27].mxu0  ;;  %6704 = vmatprep.mubr.msk.bf16.mxu1 %vm7266_vm2, %v7265_v61  ;;  %v4073_v38 = vpack.c.bf16 %v3975_v37, %v3974_v13 }
0x101a   : > { %v3690_v59 = vpop.f32.mrb[22].mxu1  ;;  %v3895_v60 = vpack.c.bf16 %v6699_v55, %v3886_v44  ;;  %6702 = vmatprep.subr.bf16.mxu1 %v7265_v61  ;;  %v4241_v55 = vpack.c.bf16 %v3981_v51, %v3980_v49  ;;  %v3982_v57 = vld [vmem:[%s8392_s0 + $0x50] sm:$0xff]  ;;  %v3983_v44 = vld [vmem:[%s8392_s0 + $0x58] sm:$0xff]  ;;  %v6200_v51 = vld [vmem:[%s8394_s2] ss:$0 sm:$0xff] }
0x101b   : > { %v3695_v6 = vadd.f32 %v3690_v59, %v3644_v43  ;;  %v6677_v62 = vpop.f32.mrb[23].mxu1  ;;  %v3979_v43 = vld [vmem:[%s8392_s0 + $0x38] sm:$0xff]  ;;  %v3984_v59 = vld [vmem:[%s8392_s0 + $0x60] sm:$0xff] }
0x101c   : > { %v4151_v46 = vpack.c.bf16 %v3979_v43, %v3978_v42  ;;  %v3986_v62 = vld [vmem:[%s8392_s0 + $0x70] sm:$0xff] }
0x101d   : > { %6703 = vmatpush3.bf16.msra.mxu1 %v3897_v58  ;;  %v4242_v58 = vpack.c.bf16 %v3983_v44, %v3982_v57  ;;  %v6201_v57 = vld [vmem:[%s8395_s10] ss:$0 sm:$0xff] }
0x101e   : > { %6722 = vmatprep.subr.bf16.mxu1 %v7265_v61 }
0x1020   : > { %6705 = vmatmul.mubr.msk.bf16.vlgmr.msra.gmra.mrb[28].mxu1 %vm1658_vm3, %v3895_v60  ;;  %v3985_v60 = vld [vmem:[%s8392_s0 + $0x68] sm:$0xff] }
0x1021   : > { %6726 = vmatprep.mubr.msk.bf16.mxu1 %vm7266_vm2, %v7265_v61  ;;  %6723 = vmatpush3.bf16.msra.mxu1 %v4150_v41 }
0x1022   : > { %6724 = vmatprep.subr.bf16.mxu1 %v7265_v61 }
0x1025   : > { %6725 = vmatpush3.bf16.msra.mxu1 %v4151_v46 }
0x1026   : > { %6738 = vmatprep.subr.bf16.mxu1 %v7265_v61 }
0x10eb   : > { %v3811_v7 = vpop.f32.mrb[24].mxu1 }
0x10ec   : > { %v3818_v63 = vadd.f32 %v3811_v7, %v3694_v56  ;;  %v6691_v0 = vpop.f32.mrb[25].mxu1  ;;  %v3987_v7 = vld [vmem:[%s8392_s0 + $0x78] sm:$0xff] }
0x10ed   : > { %v3814_v3 = vpop.f32.mrb[26].mxu1  ;;  %v4366_v0 = vpack.c.bf16 %v3987_v7, %v3986_v62 }
0x10ee   : > { %v3819_v5 = vadd.f32 %v3814_v3, %v3695_v6  ;;  %v6692_v8 = vpop.f32.mrb[27].mxu1  ;;  %v4365_v6 = vpack.c.bf16 %v3985_v60, %v3984_v59  ;;  %v3989_v3 = vld [vmem:[%s8392_s0 + $0x88] sm:$0xff] }
0x10ef   : > { %v3990_v8 = vld [vmem:[%s8392_s0 + $0x90] sm:$0xff] }
0x10f3   : > { %v3935_v15 = vpop.f32.mrb[28].mxu1 }
0x10f4   : > { %v3942_v20 = vadd.f32 %v3935_v15, %v3818_v63  ;;  %v6706_v21 = vpop.f32.mrb[29].mxu1  ;;  %v3988_v63 = vld [vmem:[%s8392_s0 + $0x80] sm:$0xff] }
0x10f5   : > { %v3938_v24 = vpop.f32.mrb[30].mxu1 }
0x10f6   : > { %v3950_v25 = vadd.f32 %v6179_v11, %v3942_v20  ;;  %v3943_v26 = vadd.f32 %v3938_v24, %v3819_v5  ;;  %v6707_v27 = vpop.f32.mrb[31].mxu1  ;;  %v4489_v5 = vpack.c.bf16 %v3989_v3, %v3988_v63  ;;  %v4566_v3 = vld [vmem:[%s8396_s11 + $0x8] sm:$0xff] }
0x10f8   : > { %v3959_v29 = vmul.f32 %v6180_v23, %v3950_v25  ;;  %v3951_v30 = vadd.f32 %v6179_v11, %v3943_v26  ;;  %v3991_v11 = vld [vmem:[%s8392_s0 + $0x98] sm:$0xff] }
0x10f9   : > { %v4490_v15 = vpack.c.bf16 %v3991_v11, %v3990_v8  ;;  %v4567_v8 = vld [vmem:[%s8396_s11 + $0x10] sm:$0xff]  ;;  %v4568_v11 = vld [vmem:[%s8396_s11 + $0x18] sm:$0xff] }
0x10fa   : > { %v3968_v31 = vadd.f32 %v6181_v28, %v3959_v29  ;;  %v3960_v32 = vmul.f32 %v6180_v23, %v3951_v30 }
0x10fc   : > { %v3969_v33 = vadd.f32 %v6181_v28, %v3960_v32  ;;  %7165 = vtanh.f32 %v3968_v31 }
0x10fe   : > { %7167 = vtanh.f32 %v3969_v33 }
0x1106   : > { %v7166_v34 = vpop.eup %7165 }
0x1108   : > { %v7168_v9 = vpop.eup %7167 }
0x1109   : > { %v6972_v35 = vpack.c.bf16 %v7168_v9, %v7166_v34 }
0x110b   : > { %6974 = vmatprep.subr.msk.bf16.mxu0 %vm7722_vm14, %v6972_v35 }
0x110c   : > { %6977 = vmatpush3.bf16.msk.msra.mxu0 %vm7722_vm14, %v6972_v35 }
0x110d   : > { %6980 = vmatprep.subr.msk.bf16.mxu0 %vm7722_vm14, %v6972_v35 }
0x110f   : > { %6713 = vmatmul.mubr.msk.f32.vlgmr.msra.gmra.mrb[28].mxu0 %vm1861_vm5, %v7853_v22 }
0x1110   : > { %6983 = vmatpush3.bf16.msk.msra.mxu0 %vm7722_vm14, %v6972_v35  ;;  %6719 = vmatprep.mubr.msk.f32.mxu0 %vm1861_vm5, %v7696_v52 }
0x1111   : > { %6730 = vmatprep.subr.bf16.mxu0 %v7265_v61 }
0x1113   : > { %6720 = vmatmul.mubr.msk.f32.vlgmr.msra.gmra.mrb[30].mxu0 %vm1861_vm5, %v7741_v18 }
0x1114   : > { %6731 = vmatpush3.bf16.msra.mxu0 %v4072_v12  ;;  %6734 = vmatprep.mubr.msk.bf16.mxu0 %vm7266_vm2, %v7265_v61 }
0x1115   : > { %6732 = vmatprep.subr.bf16.mxu0 %v7265_v61 }
0x1118   : > { %6733 = vmatpush3.bf16.msra.mxu0 %v4073_v38 }
0x1119   : > { %6986 = vmatprep.subr.msk.bf16.mxu0 %vm7722_vm14, %v6972_v35 }
0x11e2   : > { %v6714_v47 = vpop.f32.mrb[28].mxu0 }
0x11e3   : > { %v4062_v45 = vpop.f32.mrb[29].mxu0 }
0x11e4   : > { %v4071_v50 = vpack.c.bf16 %v6714_v47, %v4062_v45  ;;  %v6199_v47 = vld [vmem:[%s8393_s26] ss:$0 sm:$0xff] }
0x11e6   : > { %v6721_v53 = vpop.f32.mrb[30].mxu0  ;;  %6735 = vmatmul.mubr.msk.bf16.vlgmr.msra.gmra.mrb[32].mxu0 %vm1658_vm3, %v4071_v50 }
0x11e7   : > { %6989 = vmatpush3.bf16.msk.msra.mxu0 %vm7722_vm14, %v6972_v35  ;;  %v4140_v54 = vpop.f32.mrb[31].mxu0  ;;  %6750 = vmatprep.mubr.msk.f32.mxu0 %vm1861_vm5, %v7731_v17 }
0x11e8   : > { %v4149_v56 = vpack.c.bf16 %v6721_v53, %v4140_v54  ;;  %6992 = vmatprep.subr.msk.bf16.mxu0 %vm7722_vm14, %v6972_v35 }
0x11ea   : > { %6727 = vmatmul.mubr.msk.bf16.vlgmr.msra.gmra.mrb[32].mxu1 %vm1658_vm3, %v4149_v56 }
0x11eb   : > { %6739 = vmatpush3.bf16.msra.mxu1 %v4241_v55  ;;  %6742 = vmatprep.mubr.msk.bf16.mxu1 %vm7266_vm2, %v7265_v61 }
0x11ec   : > { %6740 = vmatprep.subr.bf16.mxu1 %v7265_v61 }
0x11ee   : > { %6751 = vmatmul.mubr.msk.f32.vlgmr.msra.gmra.mrb[36].mxu0 %vm1861_vm5, %v7753_v19 }
0x11ef   : > { %6995 = vmatpush3.bf16.msk.msra.mxu0 %vm7722_vm14, %v6972_v35  ;;  %6741 = vmatpush3.bf16.msra.mxu1 %v4242_v58 }
0x11f0   : > { %6765 = vmatprep.mubr.msk.f32.mxu0 %vm1861_vm5, %v7906_v48  ;;  %6753 = vmatprep.subr.bf16.mxu1 %v7265_v61 }
0x11f1   : > { %6768 = vmatprep.subr.bf16.mxu0 %v7265_v61 }
0x11f2   : > { %6743 = vmatmul.mubr.msk.bf16.vlgmr.msra.gmra.mrb[36].mxu1 %vm1658_vm3, %v6972_v35  ;;  %6766 = vmatmul.mubr.msk.f32.vlgmr.msra.gmra.mrb[38].mxu0 %vm1861_vm5, %v7914_v1 }
0x11f3   : > { %6757 = vmatprep.mubr.msk.bf16.mxu1 %vm7266_vm2, %v7265_v61  ;;  %6772 = vmatprep.mubr.msk.bf16.mxu0 %vm7266_vm2, %v7265_v61 }
0x11f4   : > { %6754 = vmatpush3.bf16.msra.mxu1 %v4365_v6  ;;  %6769 = vmatpush3.bf16.msra.mxu0 %v4489_v5 }
0x11f5   : > { %6755 = vmatprep.subr.bf16.mxu1 %v7265_v61  ;;  %6770 = vmatprep.subr.bf16.mxu0 %v7265_v61 }
0x11f8   : > { %6756 = vmatpush3.bf16.msra.mxu1 %v4366_v0  ;;  %6771 = vmatpush3.bf16.msra.mxu0 %v4490_v15  ;;  %v4565_v0 = vld [vmem:[%s8396_s11] sm:$0xff]  ;;  %v4666_v15 = vpack.c.bf16 %v4568_v11, %v4567_v8 }
0x11f9   : > { %6790 = vmatprep.subr.bf16.mxu0 %v7265_v61  ;;  %v4665_v5 = vpack.c.bf16 %v4566_v3, %v4565_v0 }
0x12b9   : > { %v4233_v20 = vpop.f32.mrb[32].mxu0 }
0x12ba   : > { %v6736_v21 = vpop.f32.mrb[33].mxu0 }
0x12bb   : > { %v4236_v23 = vpop.f32.mrb[34].mxu0  ;;  %v4570_v21 = vld [vmem:[%s8396_s11 + $0x28] sm:$0xff] }
0x12bc   : > { %v6737_v24 = vpop.f32.mrb[35].mxu0 }
0x12bd   : > { %v4189_v25 = vpop.f32.mrb[32].mxu1  ;;  %v4571_v24 = vld [vmem:[%s8396_s11 + $0x30] sm:$0xff] }
0x12be   : > { %v4234_v26 = vadd.f32 %v4233_v20, %v4189_v25  ;;  %v6728_v27 = vpop.f32.mrb[33].mxu1  ;;  %v4569_v20 = vld [vmem:[%s8396_s11 + $0x20] sm:$0xff]  ;;  %v4572_v25 = vld [vmem:[%s8396_s11 + $0x38] sm:$0xff] }
0x12bf   : > { %v4192_v28 = vpop.f32.mrb[34].mxu1 }
0x12c0   : > { %v4237_v29 = vadd.f32 %v4236_v23, %v4192_v28  ;;  %v6729_v30 = vpop.f32.mrb[35].mxu1  ;;  %v4743_v23 = vpack.c.bf16 %v4570_v21, %v4569_v20 }
0x12c1   : > { %v6752_v31 = vpop.f32.mrb[36].mxu0  ;;  %v4573_v30 = vld [vmem:[%s8396_s11 + $0x40] sm:$0xff] }
0x12c2   : > { %v4355_v32 = vpop.f32.mrb[37].mxu0 }
0x12c3   : > { %v4364_v33 = vpack.c.bf16 %v6752_v31, %v4355_v32  ;;  %v4574_v31 = vld [vmem:[%s8396_s11 + $0x48] sm:$0xff] }
0x12c5   : > { %v4280_v34 = vpop.f32.mrb[36].mxu1  ;;  %6758 = vmatmul.mubr.msk.bf16.vlgmr.msra.gmra.mrb[40].mxu1 %vm1658_vm3, %v4364_v33  ;;  %v6767_v9 = vpop.f32.mrb[38].mxu0 }
0x12c6   : > { %v4287_v35 = vadd.f32 %v4280_v34, %v4234_v26  ;;  %v6744_v36 = vpop.f32.mrb[37].mxu1  ;;  %v4479_v10 = vpop.f32.mrb[39].mxu0  ;;  %6780 = vmatprep.mubr.msk.f32.mxu1 %vm1861_vm5, %v7825_v2  ;;  %v4744_v26 = vpack.c.bf16 %v4572_v25, %v4571_v24  ;;  %v4834_v34 = vpack.c.bf16 %v4574_v31, %v4573_v30  ;;  %v6220_v30 = vld [vmem:[%s8398_s20] ss:$0 sm:$0xff] }
0x12c7   : > { %v4488_v12 = vpack.c.bf16 %v6767_v9, %v4479_v10  ;;  %v4283_v13 = vpop.f32.mrb[38].mxu1  ;;  %v4576_v36 = vld [vmem:[%s8396_s11 + $0x58] sm:$0xff] }
0x12c8   : > { %v4288_v37 = vadd.f32 %v4283_v13, %v4237_v29  ;;  %v6745_v38 = vpop.f32.mrb[39].mxu1  ;;  %v4578_v13 = vld [vmem:[%s8396_s11 + $0x68] sm:$0xff] }
0x12c9   : > { %6773 = vmatmul.mubr.msk.bf16.vlgmr.msra.gmra.mrb[40].mxu0 %vm1658_vm3, %v4488_v12  ;;  %v4577_v12 = vld [vmem:[%s8396_s11 + $0x60] sm:$0xff]  ;;  %v4579_v38 = vld [vmem:[%s8396_s11 + $0x70] sm:$0xff] }
0x12ca   : > { %6794 = vmatprep.mubr.msk.bf16.mxu0 %vm7266_vm2, %v7265_v61  ;;  %6791 = vmatpush3.bf16.msra.mxu0 %v4743_v23 }
0x12cb   : > { %6792 = vmatprep.subr.bf16.mxu0 %v7265_v61 }
0x12ce   : > { %6793 = vmatpush3.bf16.msra.mxu0 %v4744_v26  ;;  %v6219_v26 = vld [vmem:[%s8397_s21] ss:$0 sm:$0xff] }
0x12cf   : > { %6806 = vmatprep.subr.bf16.mxu0 %v7265_v61 }
0x1398   : > { %v4404_v39 = vpop.f32.mrb[40].mxu1 }
0x1399   : > { %v4411_v40 = vadd.f32 %v4404_v39, %v4287_v35  ;;  %v6759_v41 = vpop.f32.mrb[41].mxu1  ;;  %v4575_v35 = vld [vmem:[%s8396_s11 + $0x50] sm:$0xff]  ;;  %v4580_v39 = vld [vmem:[%s8396_s11 + $0x78] sm:$0xff] }
0x139a   : > { %v4407_v42 = vpop.f32.mrb[42].mxu1  ;;  %v4835_v10 = vpack.c.bf16 %v4576_v36, %v4575_v35 }
0x139b   : > { %v4412_v43 = vadd.f32 %v4407_v42, %v4288_v37  ;;  %v6760_v46 = vpop.f32.mrb[43].mxu1  ;;  %v4958_v37 = vpack.c.bf16 %v4578_v13, %v4577_v12 }
0x139c   : > { %v4528_v45 = vpop.f32.mrb[40].mxu0 }
0x139d   : > { %v4535_v50 = vadd.f32 %v4528_v45, %v4411_v40  ;;  %v6774_v49 = vpop.f32.mrb[41].mxu0  ;;  %v4959_v40 = vpack.c.bf16 %v4580_v39, %v4579_v38 }
0x139e   : > { %v4531_v53 = vpop.f32.mrb[42].mxu0  ;;  %v4581_v49 = vld [vmem:[%s8396_s11 + $0x80] sm:$0xff] }
0x139f   : > { %v4543_v54 = vadd.f32 %v6199_v47, %v4535_v50  ;;  %v4536_v55 = vadd.f32 %v4531_v53, %v4412_v43  ;;  %v6775_v56 = vpop.f32.mrb[43].mxu0 }
0x13a1   : > { %v4552_v44 = vmul.f32 %v6200_v51, %v4543_v54  ;;  %v4544_v58 = vadd.f32 %v6199_v47, %v4536_v55 }
0x13a3   : > { %v4561_v59 = vadd.f32 %v6201_v57, %v4552_v44  ;;  %v4553_v60 = vmul.f32 %v6200_v51, %v4544_v58  ;;  %v4582_v51 = vld [vmem:[%s8396_s11 + $0x88] sm:$0xff]  ;;  %v4583_v58 = vld [vmem:[%s8396_s11 + $0x90] sm:$0xff] }
0x13a5   : > { %v4562_v6 = vadd.f32 %v6201_v57, %v4553_v60  ;;  %7169 = vtanh.f32 %v4561_v59  ;;  %v5082_v57 = vpack.c.bf16 %v4582_v51, %v4581_v49  ;;  %v4584_v59 = vld [vmem:[%s8396_s11 + $0x98] sm:$0xff] }
0x13a6   : > { %v5083_v0 = vpack.c.bf16 %v4584_v59, %v4583_v58  ;;  %v5168_v59 = vld [vmem:[%s8400_s13 + $0x50] sm:$0xff] }
0x13a7   : > { %7171 = vtanh.f32 %v4562_v6 }
0x13af   : > { %v7170_v62 = vpop.eup %7169 }
0x13b1   : > { %v7172_v7 = vpop.eup %7171 }
0x13b2   : > { %v6996_v63 = vpack.c.bf16 %v7172_v7, %v7170_v62 }
0x13b4   : > { %6998 = vmatprep.subr.msk.bf16.mxu1 %vm7722_vm14, %v6996_v63 }
0x13b5   : > { %7001 = vmatpush3.bf16.msk.msra.mxu1 %vm7722_vm14, %v6996_v63 }
0x13b6   : > { %7004 = vmatprep.subr.msk.bf16.mxu1 %vm7722_vm14, %v6996_v63 }
0x13b8   : > { %6781 = vmatmul.mubr.msk.f32.vlgmr.msra.gmra.mrb[44].mxu1 %vm1861_vm5, %v7853_v22 }
0x13b9   : > { %7007 = vmatpush3.bf16.msk.msra.mxu1 %vm7722_vm14, %v6996_v63  ;;  %6787 = vmatprep.mubr.msk.f32.mxu1 %vm1861_vm5, %v7696_v52 }
0x13ba   : > { %6798 = vmatprep.subr.bf16.mxu1 %v7265_v61 }
0x13bc   : > { %6788 = vmatmul.mubr.msk.f32.vlgmr.msra.gmra.mrb[46].mxu1 %vm1861_vm5, %v7741_v18 }
0x13bd   : > { %6799 = vmatpush3.bf16.msra.mxu1 %v4665_v5  ;;  %6802 = vmatprep.mubr.msk.bf16.mxu1 %vm7266_vm2, %v7265_v61 }
0x13be   : > { %6800 = vmatprep.subr.bf16.mxu1 %v7265_v61 }
0x13c1   : > { %6801 = vmatpush3.bf16.msra.mxu1 %v4666_v15 }
0x13c2   : > { %7010 = vmatprep.subr.msk.bf16.mxu1 %vm7722_vm14, %v6996_v63 }
0x148b   : > { %v6782_v27 = vpop.f32.mrb[44].mxu1 }
0x148c   : > { %v4655_v28 = vpop.f32.mrb[45].mxu1 }
0x148d   : > { %v4664_v29 = vpack.c.bf16 %v6782_v27, %v4655_v28 }
0x148f   : > { %v6789_v32 = vpop.f32.mrb[46].mxu1  ;;  %6803 = vmatmul.mubr.msk.bf16.vlgmr.msra.gmra.mrb[48].mxu1 %vm1658_vm3, %v4664_v29 }
0x1490   : > { %7013 = vmatpush3.bf16.msk.msra.mxu1 %vm7722_vm14, %v6996_v63  ;;  %v4733_v33 = vpop.f32.mrb[47].mxu1  ;;  %6818 = vmatprep.mubr.msk.f32.mxu1 %vm1861_vm5, %v7731_v17 }
0x1491   : > { %v4742_v9 = vpack.c.bf16 %v6789_v32, %v4733_v33  ;;  %7016 = vmatprep.subr.msk.bf16.mxu1 %vm7722_vm14, %v6996_v63 }
0x1493   : > { %6795 = vmatmul.mubr.msk.bf16.vlgmr.msra.gmra.mrb[44].mxu0 %vm1658_vm3, %v4742_v9  ;;  %v6221_v9 = vld [vmem:[%s8399_s5] ss:$0 sm:$0xff] }
0x1494   : > { %6807 = vmatpush3.bf16.msra.mxu0 %v4834_v34  ;;  %6810 = vmatprep.mubr.msk.bf16.mxu0 %vm7266_vm2, %v7265_v61 }
0x1495   : > { %6808 = vmatprep.subr.bf16.mxu0 %v7265_v61 }
0x1497   : > { %6819 = vmatmul.mubr.msk.f32.vlgmr.msra.gmra.mrb[52].mxu1 %vm1861_vm5, %v7753_v19 }
0x1498   : > { %7019 = vmatpush3.bf16.msk.msra.mxu1 %vm7722_vm14, %v6996_v63  ;;  %6809 = vmatpush3.bf16.msra.mxu0 %v4835_v10 }
0x1499   : > { %6833 = vmatprep.mubr.msk.f32.mxu1 %vm1861_vm5, %v7906_v48  ;;  %6821 = vmatprep.subr.bf16.mxu0 %v7265_v61 }
0x149b   : > { %6811 = vmatmul.mubr.msk.bf16.vlgmr.msra.gmra.mrb[48].mxu0 %vm1658_vm3, %v6996_v63  ;;  %6834 = vmatmul.mubr.msk.f32.vlgmr.msra.gmra.mrb[54].mxu1 %vm1861_vm5, %v7914_v1 }
0x149c   : > { %6825 = vmatprep.mubr.msk.bf16.mxu0 %vm7266_vm2, %v7265_v61  ;;  %6848 = vmatprep.mubr.msk.f32.mxu1 %vm1861_vm5, %v7825_v2 }
0x149d   : > { %6822 = vmatpush3.bf16.msra.mxu0 %v4958_v37 }
0x149e   : > { %6823 = vmatprep.subr.bf16.mxu0 %v7265_v61 }
0x14a1   : > { %6824 = vmatpush3.bf16.msra.mxu0 %v4959_v40  ;;  %v5158_v40 = vld [vmem:[%s8400_s13] sm:$0xff] }
0x14a2   : > { %6836 = vmatprep.subr.bf16.mxu0 %v7265_v61 }
0x1562   : > { %v4826_v41 = vpop.f32.mrb[48].mxu1 }
0x1563   : > { %v6804_v42 = vpop.f32.mrb[49].mxu1 }
0x1564   : > { %v4829_v43 = vpop.f32.mrb[50].mxu1 }
0x1565   : > { %v6805_v2 = vpop.f32.mrb[51].mxu1 }
0x1566   : > { %v4782_v46 = vpop.f32.mrb[44].mxu0  ;;  %v5161_v2 = vld [vmem:[%s8400_s13 + $0x18] sm:$0xff] }
0x1567   : > { %v4827_v47 = vadd.f32 %v4826_v41, %v4782_v46  ;;  %v6796_v45 = vpop.f32.mrb[45].mxu0  ;;  %v5159_v41 = vld [vmem:[%s8400_s13 + $0x8] sm:$0xff] }
0x1568   : > { %v4785_v50 = vpop.f32.mrb[46].mxu0  ;;  %v5258_v42 = vpack.c.bf16 %v5159_v41, %v5158_v40  ;;  %v5165_v45 = vld [vmem:[%s8400_s13 + $0x38] sm:$0xff] }
0x1569   : > { %v4830_v53 = vadd.f32 %v4829_v43, %v4785_v50  ;;  %v6797_v54 = vpop.f32.mrb[47].mxu0  ;;  %v5160_v43 = vld [vmem:[%s8400_s13 + $0x10] sm:$0xff] }
0x156a   : > { %v6820_v55 = vpop.f32.mrb[52].mxu1  ;;  %v5259_v46 = vpack.c.bf16 %v5161_v2, %v5160_v43  ;;  %v5166_v54 = vld [vmem:[%s8400_s13 + $0x40] sm:$0xff] }
0x156b   : > { %v4948_v56 = vpop.f32.mrb[53].mxu1 }
0x156c   : > { %v4957_v44 = vpack.c.bf16 %v6820_v55, %v4948_v56  ;;  %v5167_v55 = vld [vmem:[%s8400_s13 + $0x48] sm:$0xff] }
0x156e   : > { %v4873_v60 = vpop.f32.mrb[48].mxu0  ;;  %6826 = vmatmul.mubr.msk.bf16.vlgmr.msra.gmra.mrb[52].mxu0 %vm1658_vm3, %v4957_v44  ;;  %v6835_v6 = vpop.f32.mrb[54].mxu1  ;;  %v5427_v44 = vpack.c.bf16 %v5167_v55, %v5166_v54 }
0x156f   : > { %v4880_v62 = vadd.f32 %v4873_v60, %v4827_v47  ;;  %v6812_v7 = vpop.f32.mrb[49].mxu0  ;;  %6837 = vmatpush3.bf16.msra.mxu0 %v5082_v57  ;;  %v5072_v63 = vpop.f32.mrb[55].mxu1  ;;  %6840 = vmatprep.mubr.msk.bf16.mxu0 %vm7266_vm2, %v7265_v61  ;;  %v5169_v60 = vld [vmem:[%s8400_s13 + $0x58] sm:$0xff] }
0x1570   : > { %v4876_v3 = vpop.f32.mrb[50].mxu0  ;;  %6838 = vmatprep.subr.bf16.mxu0 %v7265_v61  ;;  %v5081_v5 = vpack.c.bf16 %v6835_v6, %v5072_v63  ;;  %v5428_v6 = vpack.c.bf16 %v5169_v60, %v5168_v59  ;;  %v5174_v7 = vld [vmem:[%s8400_s13 + $0x80] sm:$0xff] }
0x1571   : > { %v4881_v8 = vadd.f32 %v4876_v3, %v4830_v53  ;;  %v6813_v11 = vpop.f32.mrb[51].mxu0  ;;  %v5176_v3 = vld [vmem:[%s8400_s13 + $0x90] sm:$0xff] }
0x1573   : > { %6839 = vmatpush3.bf16.msra.mxu0 %v5083_v0  ;;  %v5175_v0 = vld [vmem:[%s8400_s13 + $0x88] sm:$0xff] }
0x1574   : > { %6858 = vmatprep.subr.bf16.mxu0 %v7265_v61 }
0x1576   : > { %6841 = vmatmul.mubr.msk.bf16.vlgmr.msra.gmra.mrb[56].mxu0 %vm1658_vm3, %v5081_v5  ;;  %v5177_v5 = vld [vmem:[%s8400_s13 + $0x98] sm:$0xff] }
0x1577   : > { %6862 = vmatprep.mubr.msk.bf16.mxu0 %vm7266_vm2, %v7265_v61 }
0x1641   : > { %v4997_v15 = vpop.f32.mrb[52].mxu0 }
0x1642   : > { %v5004_v20 = vadd.f32 %v4997_v15, %v4880_v62  ;;  %v6827_v21 = vpop.f32.mrb[53].mxu0  ;;  %v5173_v62 = vld [vmem:[%s8400_s13 + $0x78] sm:$0xff] }
0x1643   : > { %v5000_v23 = vpop.f32.mrb[54].mxu0 }
0x1644   : > { %v5005_v24 = vadd.f32 %v5000_v23, %v4881_v8  ;;  %v6828_v25 = vpop.f32.mrb[55].mxu0  ;;  %v5676_v8 = vpack.c.bf16 %v5177_v5, %v5176_v3 }
0x1649   : > { %v5121_v27 = vpop.f32.mrb[56].mxu0 }
0x164a   : > { %v5128_v28 = vadd.f32 %v5121_v27, %v5004_v20  ;;  %v6842_v29 = vpop.f32.mrb[57].mxu0 }
0x164b   : > { %v5124_v31 = vpop.f32.mrb[58].mxu0 }
0x164c   : > { %v5136_v32 = vadd.f32 %v6219_v26, %v5128_v28  ;;  %v5129_v33 = vadd.f32 %v5124_v31, %v5005_v24  ;;  %v6843_v34 = vpop.f32.mrb[59].mxu0 }
0x164e   : > { %v5145_v35 = vmul.f32 %v6220_v30, %v5136_v32  ;;  %v5137_v36 = vadd.f32 %v6219_v26, %v5129_v33 }
0x1650   : > { %v5154_v10 = vadd.f32 %v6221_v9, %v5145_v35  ;;  %v5146_v12 = vmul.f32 %v6220_v30, %v5137_v36 }
0x1652   : > { %v5155_v13 = vadd.f32 %v6221_v9, %v5146_v12  ;;  %7173 = vtanh.f32 %v5154_v10 }
0x1654   : > { %7175 = vtanh.f32 %v5155_v13 }
0x165c   : > { %v7174_v37 = vpop.eup %7173 }
0x165e   : > { %v7176_v38 = vpop.eup %7175 }
0x165f   : > { %v7020_v39 = vpack.c.bf16 %v7176_v38, %v7174_v37 }
0x1661   : > { %7022 = vmatprep.subr.msk.bf16.mxu1 %vm7722_vm14, %v7020_v39 }
0x1662   : > { %7025 = vmatpush3.bf16.msk.msra.mxu1 %vm7722_vm14, %v7020_v39 }
0x1663   : > { %7028 = vmatprep.subr.msk.bf16.mxu1 %vm7722_vm14, %v7020_v39 }
0x1665   : > { %6849 = vmatmul.mubr.msk.f32.vlgmr.msra.gmra.mrb[56].mxu1 %vm1861_vm5, %v7853_v22  ;;  %v5163_v22 = vld [vmem:[%s8400_s13 + $0x28] sm:$0xff] }
0x1666   : > { %7031 = vmatpush3.bf16.msk.msra.mxu1 %vm7722_vm14, %v7020_v39  ;;  %6855 = vmatprep.mubr.msk.f32.mxu1 %vm1861_vm5, %v7696_v52  ;;  %v5162_v52 = vld [vmem:[%s8400_s13 + $0x20] sm:$0xff] }
0x1667   : > { %6866 = vmatprep.subr.bf16.mxu1 %v7265_v61  ;;  %v5336_v47 = vpack.c.bf16 %v5163_v22, %v5162_v52  ;;  %v6240_v52 = vld [vmem:[%s8402_s25] ss:$0 sm:$0xff] }
0x1669   : > { %6856 = vmatmul.mubr.msk.f32.vlgmr.msra.gmra.mrb[58].mxu1 %vm1861_vm5, %v7741_v18  ;;  %6859 = vmatpush3.bf16.msra.mxu0 %v5336_v47  ;;  %v5164_v18 = vld [vmem:[%s8400_s13 + $0x30] sm:$0xff] }
0x166a   : > { %6867 = vmatpush3.bf16.msra.mxu1 %v5258_v42  ;;  %6870 = vmatprep.mubr.msk.bf16.mxu1 %vm7266_vm2, %v7265_v61  ;;  %v5337_v50 = vpack.c.bf16 %v5165_v45, %v5164_v18  ;;  %v6239_v42 = vld [vmem:[%s8401_s17] ss:$0 sm:$0xff] }
0x166b   : > { %6868 = vmatprep.subr.bf16.mxu1 %v7265_v61  ;;  %6860 = vmatprep.subr.bf16.mxu0 %v7265_v61 }
0x166d   : > { %6861 = vmatpush3.bf16.msra.mxu0 %v5337_v50  ;;  %v6241_v50 = vld [vmem:[%s8403_s15] ss:$0 sm:$0xff] }
0x166e   : > { %6869 = vmatpush3.bf16.msra.mxu1 %v5259_v46  ;;  %6874 = vmatprep.subr.bf16.mxu0 %v7265_v61 }
0x166f   : > { %7034 = vmatprep.subr.msk.bf16.mxu1 %vm7722_vm14, %v7020_v39 }
0x1738   : > { %v6850_v49 = vpop.f32.mrb[56].mxu1 }
0x1739   : > { %v5248_v51 = vpop.f32.mrb[57].mxu1 }
0x173a   : > { %v5257_v53 = vpack.c.bf16 %v6850_v49, %v5248_v51 }
0x173c   : > { %v6857_v56 = vpop.f32.mrb[58].mxu1  ;;  %6871 = vmatmul.mubr.msk.bf16.vlgmr.msra.gmra.mrb[60].mxu1 %vm1658_vm3, %v5257_v53 }
0x173d   : > { %7037 = vmatpush3.bf16.msk.msra.mxu1 %vm7722_vm14, %v7020_v39  ;;  %v5326_v57 = vpop.f32.mrb[59].mxu1  ;;  %6886 = vmatprep.mubr.msk.f32.mxu1 %vm1861_vm5, %v7731_v17  ;;  %v5171_v17 = vld [vmem:[%s8400_s13 + $0x68] sm:$0xff] }
0x173e   : > { %v5335_v58 = vpack.c.bf16 %v6857_v56, %v5326_v57  ;;  %7040 = vmatprep.subr.msk.bf16.mxu1 %vm7722_vm14, %v7020_v39 }
0x1740   : > { %6863 = vmatmul.mubr.msk.bf16.vlgmr.msra.gmra.mrb[60].mxu0 %vm1658_vm3, %v5335_v58 }
0x1741   : > { %6875 = vmatpush3.bf16.msra.mxu0 %v5427_v44  ;;  %6878 = vmatprep.mubr.msk.bf16.mxu0 %vm7266_vm2, %v7265_v61 }
0x1742   : > { %6876 = vmatprep.subr.bf16.mxu0 %v7265_v61 }
0x1744   : > { %6887 = vmatmul.mubr.msk.f32.vlgmr.msra.gmra.mrb[64].mxu1 %vm1861_vm5, %v7753_v19  ;;  %v5551_v19 = vpack.c.bf16 %v5171_v17, %v5170_v14 }
0x1745   : > { %7043 = vmatpush3.bf16.msk.msra.mxu1 %vm7722_vm14, %v7020_v39  ;;  %6877 = vmatpush3.bf16.msra.mxu0 %v5428_v6 }
0x1746   : > { %6901 = vmatprep.mubr.msk.f32.mxu1 %vm1861_vm5, %v7906_v48  ;;  %6889 = vmatprep.subr.bf16.mxu0 %v7265_v61  ;;  %v5172_v48 = vld [vmem:[%s8400_s13 + $0x70] sm:$0xff] }
0x1747   : > { %6904 = vmatprep.subr.bf16.mxu1 %v7265_v61  ;;  %v5552_v63 = vpack.c.bf16 %v5173_v62, %v5172_v48 }
0x1748   : > { %6879 = vmatmul.mubr.msk.bf16.vlgmr.msra.gmra.mrb[64].mxu0 %vm1658_vm3, %v7020_v39  ;;  %6902 = vmatmul.mubr.msk.f32.vlgmr.msra.gmra.mrb[66].mxu1 %vm1861_vm5, %v7914_v1  ;;  %v5675_v1 = vpack.c.bf16 %v5175_v0, %v5174_v7 }
0x1749   : > { %6893 = vmatprep.mubr.msk.bf16.mxu0 %vm7266_vm2, %v7265_v61  ;;  %6908 = vmatprep.mubr.msk.bf16.mxu1 %vm7266_vm2, %v7265_v61 }
0x174a   : > { %6890 = vmatpush3.bf16.msra.mxu0 %v5551_v19  ;;  %6905 = vmatpush3.bf16.msra.mxu1 %v5675_v1 }
0x174b   : > { %6891 = vmatprep.subr.bf16.mxu0 %v7265_v61  ;;  %6906 = vmatprep.subr.bf16.mxu1 %v7265_v61 }
0x174e   : > { %6892 = vmatpush3.bf16.msra.mxu0 %v5552_v63  ;;  %6907 = vmatpush3.bf16.msra.mxu1 %v5676_v8 }
0x180f   : > { %v5419_v11 = vpop.f32.mrb[60].mxu1 }
0x1810   : > { %v6872_v15 = vpop.f32.mrb[61].mxu1 }
0x1811   : > { %v5422_v20 = vpop.f32.mrb[62].mxu1 }
0x1812   : > { %v6873_v21 = vpop.f32.mrb[63].mxu1 }
0x1813   : > { %v5375_v23 = vpop.f32.mrb[60].mxu0 }
0x1814   : > { %v5420_v24 = vadd.f32 %v5419_v11, %v5375_v23  ;;  %v6864_v25 = vpop.f32.mrb[61].mxu0 }
0x1815   : > { %v5378_v26 = vpop.f32.mrb[62].mxu0 }
0x1816   : > { %v5423_v27 = vadd.f32 %v5422_v20, %v5378_v26  ;;  %v6865_v28 = vpop.f32.mrb[63].mxu0 }
0x1817   : > { %v6888_v29 = vpop.f32.mrb[64].mxu1 }
0x1818   : > { %v5541_v30 = vpop.f32.mrb[65].mxu1 }
0x1819   : > { %v5550_v31 = vpack.c.bf16 %v6888_v29, %v5541_v30 }
0x181b   : > { %v5466_v32 = vpop.f32.mrb[64].mxu0  ;;  %6894 = vmatmul.mubr.msk.bf16.vlgmr.msra.gmra.mrb[68].mxu0 %vm1658_vm3, %v5550_v31  ;;  %v6903_v61 = vpop.f32.mrb[66].mxu1 }
0x181c   : > { %v5473_v33 = vadd.f32 %v5466_v32, %v5420_v24  ;;  %v6880_v34 = vpop.f32.mrb[65].mxu0  ;;  %v5665_v9 = vpop.f32.mrb[67].mxu1 }
0x181d   : > { %v5674_v35 = vpack.c.bf16 %v6903_v61, %v5665_v9  ;;  %v5469_v36 = vpop.f32.mrb[66].mxu0 }
0x181e   : > { %v5474_v10 = vadd.f32 %v5469_v36, %v5423_v27  ;;  %v6881_v12 = vpop.f32.mrb[67].mxu0 }
0x181f   : > { %6909 = vmatmul.mubr.msk.bf16.vlgmr.msra.gmra.mrb[68].mxu1 %vm1658_vm3, %v5674_v35 }
0x18ee   : > { %v5590_v13 = vpop.f32.mrb[68].mxu0 }
0x18ef   : > { %v5597_v37 = vadd.f32 %v5590_v13, %v5473_v33  ;;  %v6895_v38 = vpop.f32.mrb[69].mxu0 }
0x18f0   : > { %v5593_v39 = vpop.f32.mrb[70].mxu0 }
0x18f1   : > { %v5598_v40 = vadd.f32 %v5593_v39, %v5474_v10  ;;  %v6896_v41 = vpop.f32.mrb[71].mxu0 }
0x18f2   : > { %v5714_v43 = vpop.f32.mrb[68].mxu1 }
0x18f3   : > { %v5721_v2 = vadd.f32 %v5714_v43, %v5597_v37  ;;  %v6910_v46 = vpop.f32.mrb[69].mxu1 }
0x18f4   : > { %v5717_v22 = vpop.f32.mrb[70].mxu1 }
0x18f5   : > { %v5729_v47 = vadd.f32 %v6239_v42, %v5721_v2  ;;  %v5722_v18 = vadd.f32 %v5717_v22, %v5598_v40  ;;  %v6911_v45 = vpop.f32.mrb[71].mxu1 }
0x18f7   : > { %v5738_v49 = vmul.f32 %v6240_v52, %v5729_v47  ;;  %v5730_v51 = vadd.f32 %v6239_v42, %v5722_v18 }
0x18f9   : > { %v5747_v53 = vadd.f32 %v6241_v50, %v5738_v49  ;;  %v5739_v54 = vmul.f32 %v6240_v52, %v5730_v51 }
0x18fb   : > { %v5749_v55 = vadd.f32 %v5747_v53, %v7830_v4  ;;  %v5748_v56 = vadd.f32 %v6241_v50, %v5739_v54 }
0x18fd   : > { %5751 = vst.msk [vmem:[%s7577_s7] sm:$0xff] %vm2732_vm6, %v5749_v55  ;;  %v5750_v57 = vadd.f32 %v5748_v56, %v7836_v16 }
0x18ff   : > { %5752 = vst.msk [vmem:[%s7577_s7 + $0x8] sm:$0x1f] %vm2734_vm8, %v5750_v57 }
0x1900 PF: > { %s8404_s3 = sld [smem:[#allocation42_spill]]  ;;  %s8405_s15 = sld [smem:[#allocation40_spill]] }
0x1901   : > { %s8406_s16 = sld [smem:[#allocation41_spill]]  ;;  %s8407_s18 = sld [smem:[#allocation43_spill]] }
0x1902   : > { %s8408_s22 = sld [smem:[#allocation44_spill]] }
0x1906   : > { %s96_s23 = sadd.s32 1, %s8404_s3  }
0x1907   : > { %p93_p9 = scmp.ge.s32.totalorder %s96_s23, 6  }
0x1909   :  { %95 = sbr.rel (!%p93_p9) target bundleno = 86 (0x56), region = 330 }

</bundles_post_ra>
